<compile_context>
chip_gen: v7x
topology: tpu7x:2x2x1
jax: 0.10.0
libtpu: 0.0.40
codegen_flags: <defaults>
</compile_context>

<pallas_src>
import jax
import jax.numpy as jnp
from jax import lax
from jax.experimental import pallas as pl
from jax.experimental.pallas import tpu as pltpu

LEAKY_SLOPE = 0.3
BN_EPS = 1e-5
SEL_CHUNK = 128          # downsample-selector chunk width (columns)


# ----------------------------------------------------------------------------
# In-kernel helpers (values only, all shapes static).
# ----------------------------------------------------------------------------
def _leaky(y):
    # max(y, 0.3*y) == LeakyReLU(0.3) for all y (single vmul + vmax).
    return jnp.maximum(y, LEAKY_SLOPE * y)


def _conv1d_leaky(x, w, b):
    # Stride-1 conv.  x: (Cin, L) f32; w: (Cout, K*Cin) bf16 packed tap-major.
    Cin, L = x.shape
    K = w.shape[1] // Cin
    Lout = L - K + 1
    xb = x.astype(jnp.bfloat16)
    cols = jnp.concatenate([xb[:, k:k + Lout] for k in range(K)], axis=0)
    y = jnp.dot(w, cols, preferred_element_type=jnp.float32)
    return _leaky(y + b)


def _conv1d_s2_leaky(x, w, b, sel):
    # Stride-2 conv via full-res matmul + precomputed constant 0/1 selector
    # (used for blocks 2-5 whose inputs are in-kernel values).
    Cin, L = x.shape
    K = w.shape[1] // Cin
    Lfull = L - K + 1
    Lout = (L - K) // 2 + 1
    xb = x.astype(jnp.bfloat16)
    cols = jnp.concatenate([xb[:, k:k + Lfull] for k in range(K)], axis=0)
    y = jnp.dot(w, cols, preferred_element_type=jnp.float32)      # (Cout, Lfull)
    yb = y.astype(jnp.bfloat16)
    pieces = []
    for c0 in range(0, Lout, SEL_CHUNK):
        cw = min(SEL_CHUNK, Lout - c0)
        ysub = yb[:, 2 * c0: 2 * c0 + 2 * cw - 1]
        pieces.append(jnp.dot(ysub, sel[:2 * cw - 1, :cw],
                              preferred_element_type=jnp.float32))
    yd = pieces[0] if len(pieces) == 1 else jnp.concatenate(pieces, axis=1)
    return _leaky(yd + b)


def _poly_conv_k3(xe, xo, w, b):
    # Stride-1 K=3 conv on a sequence stored as (even, odd) phase pair.
    # Even/odd output phases of the conv are produced directly (contiguous
    # slices only).  Packed weight (Cout, 3*Cin) is the standard tap-major one.
    n = xe.shape[1] - 1
    xe = xe.astype(jnp.bfloat16)
    xo = xo.astype(jnp.bfloat16)
    cols_e = jnp.concatenate([xe[:, 0:n], xo[:, 0:n], xe[:, 1:n + 1]], axis=0)
    cols_o = jnp.concatenate([xo[:, 0:n], xe[:, 1:n + 1], xo[:, 1:n + 1]], axis=0)
    ye = _leaky(jnp.dot(w, cols_e, preferred_element_type=jnp.float32) + b)
    yo = _leaky(jnp.dot(w, cols_o, preferred_element_type=jnp.float32) + b)
    return ye, yo


def _poly_conv_s2(xe, xo, w, b):
    # Stride-2 conv (even K) consuming a phase pair: only the kept (even-start)
    # windows are ever computed -- half the MXU work, no selector needed.
    Cin = xe.shape[0]
    K = w.shape[1] // Cin
    n = xe.shape[1] - K // 2 + 1                       # = Lout
    xe = xe.astype(jnp.bfloat16)
    xo = xo.astype(jnp.bfloat16)
    parts = []
    for k in range(K):                                  # tap-major, matches w
        src = xe if (k % 2 == 0) else xo
        q = k // 2
        parts.append(src[:, q:q + n])
    cols = jnp.concatenate(parts, axis=0)               # (K*Cin, Lout)
    y = jnp.dot(w, cols, preferred_element_type=jnp.float32)
    return _leaky(y + b)


# ----------------------------------------------------------------------------
# Fused forward kernel: one grid step == one batch sample.
# ----------------------------------------------------------------------------
def _phychal_kernel(xe_ref, xo_ref, w12_ref, cb_ref, w3a_ref, w3b_ref, sel_ref,
                    gwih_ref, gbih_ref, gwhh_ref, gbhh_ref,
                    aw1_ref, ab1_ref, aw2_ref, lw_ref, lb_ref, o_ref):
    sel = sel_ref[...]

    # ---- Block 1: polyphase (input pre-split into even/odd phases) ----------
    xe = xe_ref[...]                                    # (12, L/2)
    xo = xo_ref[...]
    y1e, y1o = _poly_conv_k3(xe, xo, w12_ref[0], cb_ref[0])
    y2e, y2o = _poly_conv_k3(y1e, y1o, w12_ref[1], cb_ref[1])
    x = _poly_conv_s2(y2e, y2o, w3a_ref[0], cb_ref[2])  # (12, 737) for L=1500
    # TODO(synk): Dropout(p=0.2) omitted -- identity in inference/eval mode.

    # ---- Blocks 2-5: conv3 -> conv3 -> conv{24,48} stride 2 (selector) ------
    for blk in range(1, 5):
        w1 = w12_ref[2 * blk]
        w2 = w12_ref[2 * blk + 1]
        b1 = cb_ref[3 * blk]
        b2 = cb_ref[3 * blk + 1]
        b3 = cb_ref[3 * blk + 2]
        w3 = w3a_ref[blk] if blk < 4 else w3b_ref[...]
        x = _conv1d_leaky(x, w1, b1)
        x = _conv1d_leaky(x, w2, b2)
        x = _conv1d_s2_leaky(x, w3, b3, sel)
        # Dropout == identity (eval mode).

    # ---- Bidirectional GRU, gates packed gate-major, fused directions -------
    # PyTorch gate order r, z, n; h0 = 0; n = tanh(gi_n + r*(Whh_n h + b_hn)).
    Ls = x.shape[1]                                     # 9 for L_in = 1500
    H = 12

    # Hoisted input projections for both directions: (72, Ls), direction-major.
    gi = jnp.dot(gwih_ref[...], x, preferred_element_type=jnp.float32) \
        + gbih_ref[...]
    gi_f = gi[0:3 * H]
    gi_r = gi[3 * H:6 * H]
    # Time-flip the reverse half once, then repack gate-major (r_f,r_r,z_f,...).
    gi_rf = jnp.concatenate([gi_r[:, Ls - 1 - t:Ls - t] for t in range(Ls)],
                            axis=1)
    gi_gm = jnp.concatenate(
        [gi_f[0:H], gi_rf[0:H], gi_f[H:2 * H], gi_rf[H:2 * H],
         gi_f[2 * H:3 * H], gi_rf[2 * H:3 * H]], axis=0)        # (72, Ls)

    whh = gwhh_ref[...]                                 # (72, 24) block-diag, gate-major
    bhh = gbhh_ref[...]                                 # (72, 1)
    h = jnp.zeros((2 * H, 1), jnp.float32)              # [h_fwd; h_rev]
    out_f = [None] * Ls
    out_r = [None] * Ls
    for t in range(Ls):                                 # static unroll
        gh = jnp.dot(whh, h, preferred_element_type=jnp.float32) + bhh  # (72,1)
        gi_t = gi_gm[:, t:t + 1]
        r = jax.nn.sigmoid(gi_t[0:2 * H] + gh[0:2 * H])
        z = jax.nn.sigmoid(gi_t[2 * H:4 * H] + gh[2 * H:4 * H])
        n = jnp.tanh(gi_t[4 * H:6 * H] + r * gh[4 * H:6 * H])
        h = (1.0 - z) * n + z * h
        out_f[t] = h[0:H]
        out_r[Ls - 1 - t] = h[H:2 * H]

    h_all = jnp.concatenate(
        [jnp.concatenate(out_f, axis=1), jnp.concatenate(out_r, axis=1)],
        axis=0)                                         # (24, Ls)

    # ---- Attention (1x1 conv -> tanh -> 1x1 conv(no bias) -> softmax -> pool)
    a = jnp.tanh(jnp.dot(aw1_ref[...], h_all,
                         preferred_element_type=jnp.float32) + ab1_ref[...])
    s = jnp.dot(aw2_ref[...], a, preferred_element_type=jnp.float32)  # (1, Ls)
    s = s - jnp.max(s, axis=-1, keepdims=True)
    e = jnp.exp(s)
    at = e / jnp.sum(e, axis=-1, keepdims=True)
    pooled = jnp.sum(h_all * at, axis=-1, keepdims=True)            # (24, 1)

    # ---- eval-BatchNorm folded into Linear(24 -> 9) at init ------------------
    out = jnp.dot(lw_ref[...], pooled,
                  preferred_element_type=jnp.float32) + lb_ref[...]  # (9, 1)
    o_ref[...] = out


# ----------------------------------------------------------------------------
# Wrapper: one pallas_call for the whole network, grid over batch.
# ----------------------------------------------------------------------------
def phychal2020_forward(x, params):
    B, C, L = x.shape
    assert C == 12 and L % 2 == 0
    Lh = L // 2
    # Even/odd phase split done in plain XLA (free, outside the kernel) so the
    # block-1 stride-2 conv can be computed directly in polyphase form.
    xe = x[:, :, 0::2]
    xo = x[:, :, 1::2]

    ordered = (params["conv_w12"], params["conv_b"],
               params["conv_w3a"], params["conv_w3b"], params["sel"],
               params["gru_wih"], params["gru_bih"],
               params["gru_whh_gm"], params["gru_bhh_gm"],
               params["att_w1"], params["att_b1"], params["att_w2"],
               params["lin_w"], params["lin_b"])

    def const_spec(a):
        return pl.BlockSpec(a.shape, lambda b, n=a.ndim: (0,) * n)

    in_specs = [pl.BlockSpec((None, C, Lh), lambda b: (b, 0, 0)),
                pl.BlockSpec((None, C, Lh), lambda b: (b, 0, 0))]
    in_specs += [const_spec(a) for a in ordered]

    out = pl.pallas_call(
        _phychal_kernel,
        out_shape=jax.ShapeDtypeStruct((B, 9, 1), jnp.float32),
        grid=(B,),
        in_specs=in_specs,
        out_specs=pl.BlockSpec((None, 9, 1), lambda b: (b, 0, 0)),
        compiler_params=pltpu.CompilerParams(
            dimension_semantics=("parallel",)),
    )(xe, xo, *ordered)
    return out.reshape(B, 9)


# ----------------------------------------------------------------------------
# Deterministic parameter construction (synthetic weights, pre-packed).
# ----------------------------------------------------------------------------
def init_params(key):
    def nrm(k, shape, scale=0.1):
        return scale * jax.random.normal(k, shape, jnp.float32)

    keys = iter(jax.random.split(key, 64))

    def pack_conv(w):  # (Cout, Cin, K) -> (Cout, K*Cin), tap-major columns
        Cout, Cin, K = w.shape
        return jnp.transpose(w, (0, 2, 1)).reshape(Cout, K * Cin)

    # 5 ConvBlocks: kernels (3, 24) x4 and (3, 48) for block 5, all 12 channels.
    k3_list = [24, 24, 24, 24, 48]
    w12, bconv, w3a = [], [], []
    w3b = None
    for blk, k3 in enumerate(k3_list):
        w1, b1 = nrm(next(keys), (12, 12, 3)), nrm(next(keys), (12,))
        w2, b2 = nrm(next(keys), (12, 12, 3)), nrm(next(keys), (12,))
        w3, b3 = nrm(next(keys), (12, 12, k3)), nrm(next(keys), (12,))
        w12 += [pack_conv(w1), pack_conv(w2)]
        bconv += [b1.reshape(12, 1), b2.reshape(12, 1), b3.reshape(12, 1)]
        if blk < 4:
            w3a.append(pack_conv(w3))
        else:
            w3b = pack_conv(w3)

    params = {
        "conv_w12": jnp.stack(w12).astype(jnp.bfloat16),   # (10, 12, 36)
        "conv_b": jnp.stack(bconv),                        # (15, 12, 1) f32
        "conv_w3a": jnp.stack(w3a).astype(jnp.bfloat16),   # (4, 12, 288)
        "conv_w3b": w3b.astype(jnp.bfloat16),              # (12, 576)
    }

    # Precomputed 0/1 even-column selector (exact in bf16), shared by blocks 2-5.
    rows = lax.broadcasted_iota(jnp.int32, (2 * SEL_CHUNK - 1, SEL_CHUNK), 0)
    cols = lax.broadcasted_iota(jnp.int32, (2 * SEL_CHUNK - 1, SEL_CHUNK), 1)
    params["sel"] = (rows == 2 * cols).astype(jnp.bfloat16)        # (255, 128)

    # BiGRU(12 -> 12, 1 layer, bidirectional); PyTorch packing [r; z; n] rows.
    H = 12

    def gru_dir():
        return (nrm(next(keys), (3 * H, 12)), nrm(next(keys), (3 * H, H)),
                nrm(next(keys), (3 * H,)), nrm(next(keys), (3 * H,)))

    wih_f, whh_f, bih_f, bhh_f = gru_dir()
    wih_r, whh_r, bih_r, bhh_r = gru_dir()
    params["gru_wih"] = jnp.concatenate([wih_f, wih_r], axis=0)          # (72,12)
    params["gru_bih"] = jnp.concatenate([bih_f, bih_r]).reshape(6 * H, 1)

    # Hidden-to-hidden fused block-diagonal, gate-major rows (r_f,r_r,z_f,...).
    Z = jnp.zeros((H, H), jnp.float32)

    def gate_pair(g):
        wf = whh_f[g * H:(g + 1) * H]
        wr = whh_r[g * H:(g + 1) * H]
        return jnp.concatenate([jnp.concatenate([wf, Z], axis=1),
                                jnp.concatenate([Z, wr], axis=1)], axis=0)

    params["gru_whh_gm"] = jnp.concatenate(
        [gate_pair(0), gate_pair(1), gate_pair(2)], axis=0)              # (72,24)
    params["gru_bhh_gm"] = jnp.concatenate(
        [bhh_f[0:H], bhh_r[0:H], bhh_f[H:2 * H], bhh_r[H:2 * H],
         bhh_f[2 * H:3 * H], bhh_r[2 * H:3 * H]]).reshape(6 * H, 1)

    # Attention(24): conv1 has bias, conv2 is bias-free (matches reference).
    params["att_w1"] = nrm(next(keys), (24, 24, 1)).reshape(24, 24)
    params["att_b1"] = nrm(next(keys), (24,)).reshape(24, 1)
    params["att_w2"] = nrm(next(keys), (1, 24, 1)).reshape(1, 24)

    # Eval-mode BatchNorm1d(24) folded into Linear(24 -> 9).
    gamma = 1.0 + nrm(next(keys), (24,))
    beta = nrm(next(keys), (24,))
    run_mean = nrm(next(keys), (24,))
    run_var = 0.5 + jax.random.uniform(next(keys), (24,), jnp.float32)
    inv = gamma / jnp.sqrt(run_var + BN_EPS)
    bn_scale = inv
    bn_shift = beta - run_mean * inv
    lin_w = nrm(next(keys), (9, 24))
    lin_b = nrm(next(keys), (9,))
    params["lin_w"] = lin_w * bn_scale[None, :]                          # (9,24)
    params["lin_b"] = (lin_b + lin_w @ bn_shift).reshape(9, 1)           # (9,1)
    return params


if __name__ == "__main__":
    key = jax.random.PRNGKey(0)
    pkey, xkey = jax.random.split(key)
    params = init_params(pkey)

    # Smallest-ish input consistent with the architecture: 5 ConvBlocks with
    # (k=3, k=3, k=24/48 stride 2) need L >= ~1222; use B=2, C=12, L=1500,
    # which leaves a sequence length of 9 for the BiGRU/attention head.
    B, C, L = 2, 12, 1500
    x = jax.random.normal(xkey, (B, C, L), jnp.float32)

    fwd = jax.jit(phychal2020_forward)
    out = jax.block_until_ready(fwd(x, params))

    assert out.shape == (B, 9), out.shape
    assert bool(jnp.all(jnp.isfinite(out)))
    print("KERNEL_OK")
</pallas_src>

<mosaic_0001>
module attributes {stable_mosaic.version = 11 : i64} {
  func.func @_phychal_kernel(%arg0: i32, %arg1: memref<1x12x750xf32, #tpu.memory_space<vmem>>, %arg2: memref<1x12x750xf32, #tpu.memory_space<vmem>>, %arg3: memref<10x12x36xbf16, #tpu.memory_space<vmem>>, %arg4: memref<15x12x1xf32, #tpu.memory_space<vmem>>, %arg5: memref<4x12x288xbf16, #tpu.memory_space<vmem>>, %arg6: memref<12x576xbf16, #tpu.memory_space<vmem>>, %arg7: memref<255x128xbf16, #tpu.memory_space<vmem>>, %arg8: memref<72x12xf32, #tpu.memory_space<vmem>>, %arg9: memref<72x1xf32, #tpu.memory_space<vmem>>, %arg10: memref<72x24xf32, #tpu.memory_space<vmem>>, %arg11: memref<72x1xf32, #tpu.memory_space<vmem>>, %arg12: memref<24x24xf32, #tpu.memory_space<vmem>>, %arg13: memref<24x1xf32, #tpu.memory_space<vmem>>, %arg14: memref<1x24xf32, #tpu.memory_space<vmem>>, %arg15: memref<9x24xf32, #tpu.memory_space<vmem>>, %arg16: memref<9x1xf32, #tpu.memory_space<vmem>>, %arg17: memref<1x9x1xf32, #tpu.memory_space<vmem>>) attributes {dimension_semantics = [#tpu.dimension_semantics<parallel>], iteration_bounds = array<i64: 2>, scalar_prefetch = 0 : i64, scratch_operands = 0 : i64, tpu.core_type = #tpu.core_type<tc>, window_params = [{transform_indices = @transform_0, window_bounds = array<i64: 1, 12, 750>}, {transform_indices = @transform_1, window_bounds = array<i64: 1, 12, 750>}, {pipeline_mode = #tpu.pipeline_mode<synchronous>, transform_indices = @transform_2, window_bounds = array<i64: 10, 12, 36>}, {pipeline_mode = #tpu.pipeline_mode<synchronous>, transform_indices = @transform_3, window_bounds = array<i64: 15, 12, 1>}, {pipeline_mode = #tpu.pipeline_mode<synchronous>, transform_indices = @transform_4, window_bounds = array<i64: 4, 12, 288>}, {pipeline_mode = #tpu.pipeline_mode<synchronous>, transform_indices = @transform_5, window_bounds = array<i64: 12, 576>}, {pipeline_mode = #tpu.pipeline_mode<synchronous>, transform_indices = @transform_6, window_bounds = array<i64: 255, 128>}, {pipeline_mode = #tpu.pipeline_mode<synchronous>, transform_indices = @transform_7, window_bounds = array<i64: 72, 12>}, {pipeline_mode = #tpu.pipeline_mode<synchronous>, transform_indices = @transform_8, window_bounds = array<i64: 72, 1>}, {pipeline_mode = #tpu.pipeline_mode<synchronous>, transform_indices = @transform_9, window_bounds = array<i64: 72, 24>}, {pipeline_mode = #tpu.pipeline_mode<synchronous>, transform_indices = @transform_10, window_bounds = array<i64: 72, 1>}, {pipeline_mode = #tpu.pipeline_mode<synchronous>, transform_indices = @transform_11, window_bounds = array<i64: 24, 24>}, {pipeline_mode = #tpu.pipeline_mode<synchronous>, transform_indices = @transform_12, window_bounds = array<i64: 24, 1>}, {pipeline_mode = #tpu.pipeline_mode<synchronous>, transform_indices = @transform_13, window_bounds = array<i64: 1, 24>}, {pipeline_mode = #tpu.pipeline_mode<synchronous>, transform_indices = @transform_14, window_bounds = array<i64: 9, 24>}, {pipeline_mode = #tpu.pipeline_mode<synchronous>, transform_indices = @transform_15, window_bounds = array<i64: 9, 1>}, {transform_indices = @transform_16, window_bounds = array<i64: 1, 9, 1>}]} {
    %c0 = arith.constant 0 : index
    %c0_0 = arith.constant 0 : index
    %0 = vector.load %arg7[%c0, %c0_0] : memref<255x128xbf16, #tpu.memory_space<vmem>>, vector<255x128xbf16>
    %c0_1 = arith.constant 0 : index
    %c0_2 = arith.constant 0 : index
    %c0_3 = arith.constant 0 : index
    %1 = vector.load %arg1[%c0_1, %c0_2, %c0_3] : memref<1x12x750xf32, #tpu.memory_space<vmem>>, vector<1x12x750xf32>
    %2 = vector.shape_cast %1 : vector<1x12x750xf32> to vector<12x750xf32>
    %c0_4 = arith.constant 0 : index
    %c0_5 = arith.constant 0 : index
    %c0_6 = arith.constant 0 : index
    %3 = vector.load %arg2[%c0_4, %c0_5, %c0_6] : memref<1x12x750xf32, #tpu.memory_space<vmem>>, vector<1x12x750xf32>
    %4 = vector.shape_cast %3 : vector<1x12x750xf32> to vector<12x750xf32>
    %c0_7 = arith.constant 0 : index
    %c0_8 = arith.constant 0 : index
    %c0_9 = arith.constant 0 : index
    %5 = vector.load %arg3[%c0_7, %c0_8, %c0_9] : memref<10x12x36xbf16, #tpu.memory_space<vmem>>, vector<1x12x36xbf16>
    %6 = vector.shape_cast %5 : vector<1x12x36xbf16> to vector<12x36xbf16>
    %c0_10 = arith.constant 0 : index
    %c0_11 = arith.constant 0 : index
    %c0_12 = arith.constant 0 : index
    %7 = vector.load %arg4[%c0_10, %c0_11, %c0_12] : memref<15x12x1xf32, #tpu.memory_space<vmem>>, vector<1x12x1xf32>
    %8 = vector.shape_cast %7 : vector<1x12x1xf32> to vector<12x1xf32>
    %9 = arith.truncf %2 : vector<12x750xf32> to vector<12x750xbf16>
    %10 = arith.truncf %4 : vector<12x750xf32> to vector<12x750xbf16>
    %11 = vector.extract_strided_slice %9 {offsets = [0, 0], sizes = [12, 749], strides = [1, 1]} : vector<12x750xbf16> to vector<12x749xbf16>
    %12 = vector.extract_strided_slice %10 {offsets = [0, 0], sizes = [12, 749], strides = [1, 1]} : vector<12x750xbf16> to vector<12x749xbf16>
    %13 = vector.extract_strided_slice %9 {offsets = [0, 1], sizes = [12, 749], strides = [1, 1]} : vector<12x750xbf16> to vector<12x749xbf16>
    %14 = tpu.concatenate %11, %12, %13 in 0 : vector<12x749xbf16>, vector<12x749xbf16>, vector<12x749xbf16> -> vector<36x749xbf16>
    %15 = vector.extract_strided_slice %10 {offsets = [0, 0], sizes = [12, 749], strides = [1, 1]} : vector<12x750xbf16> to vector<12x749xbf16>
    %16 = vector.extract_strided_slice %9 {offsets = [0, 1], sizes = [12, 749], strides = [1, 1]} : vector<12x750xbf16> to vector<12x749xbf16>
    %17 = vector.extract_strided_slice %10 {offsets = [0, 1], sizes = [12, 749], strides = [1, 1]} : vector<12x750xbf16> to vector<12x749xbf16>
    %18 = tpu.concatenate %15, %16, %17 in 0 : vector<12x749xbf16>, vector<12x749xbf16>, vector<12x749xbf16> -> vector<36x749xbf16>
    %cst = arith.constant dense<0.000000e+00> : vector<12x749xf32>
    %19 = tpu.matmul %6, %14, %cst {dimension_numbers = #tpu.dot_dimension_numbers<[1], [0], [0], [1], [0, 0, 1, 1], [], []>} : vector<12x36xbf16>, vector<36x749xbf16>, vector<12x749xf32> -> vector<12x749xf32>
    %20 = vector.broadcast %8 : vector<12x1xf32> to vector<12x749xf32>
    %21 = arith.addf %19, %20 : vector<12x749xf32>
    %cst_13 = arith.constant 3.000000e-01 : f32
    %22 = vector.broadcast %cst_13 : f32 to vector<12x749xf32>
    %23 = arith.mulf %22, %21 : vector<12x749xf32>
    %24 = arith.maximumf %21, %23 : vector<12x749xf32>
    %cst_14 = arith.constant dense<0.000000e+00> : vector<12x749xf32>
    %25 = tpu.matmul %6, %18, %cst_14 {dimension_numbers = #tpu.dot_dimension_numbers<[1], [0], [0], [1], [0, 0, 1, 1], [], []>} : vector<12x36xbf16>, vector<36x749xbf16>, vector<12x749xf32> -> vector<12x749xf32>
    %26 = vector.broadcast %8 : vector<12x1xf32> to vector<12x749xf32>
    %27 = arith.addf %25, %26 : vector<12x749xf32>
    %cst_15 = arith.constant 3.000000e-01 : f32
    %28 = vector.broadcast %cst_15 : f32 to vector<12x749xf32>
    %29 = arith.mulf %28, %27 : vector<12x749xf32>
    %30 = arith.maximumf %27, %29 : vector<12x749xf32>
    %c1 = arith.constant 1 : index
    %c0_16 = arith.constant 0 : index
    %c0_17 = arith.constant 0 : index
    %31 = vector.load %arg3[%c1, %c0_16, %c0_17] : memref<10x12x36xbf16, #tpu.memory_space<vmem>>, vector<1x12x36xbf16>
    %32 = vector.shape_cast %31 : vector<1x12x36xbf16> to vector<12x36xbf16>
    %c1_18 = arith.constant 1 : index
    %c0_19 = arith.constant 0 : index
    %c0_20 = arith.constant 0 : index
    %33 = vector.load %arg4[%c1_18, %c0_19, %c0_20] : memref<15x12x1xf32, #tpu.memory_space<vmem>>, vector<1x12x1xf32>
    %34 = vector.shape_cast %33 : vector<1x12x1xf32> to vector<12x1xf32>
    %35 = arith.truncf %24 : vector<12x749xf32> to vector<12x749xbf16>
    %36 = arith.truncf %30 : vector<12x749xf32> to vector<12x749xbf16>
    %37 = vector.extract_strided_slice %35 {offsets = [0, 0], sizes = [12, 748], strides = [1, 1]} : vector<12x749xbf16> to vector<12x748xbf16>
    %38 = vector.extract_strided_slice %36 {offsets = [0, 0], sizes = [12, 748], strides = [1, 1]} : vector<12x749xbf16> to vector<12x748xbf16>
    %39 = vector.extract_strided_slice %35 {offsets = [0, 1], sizes = [12, 748], strides = [1, 1]} : vector<12x749xbf16> to vector<12x748xbf16>
    %40 = tpu.concatenate %37, %38, %39 in 0 : vector<12x748xbf16>, vector<12x748xbf16>, vector<12x748xbf16> -> vector<36x748xbf16>
    %41 = vector.extract_strided_slice %36 {offsets = [0, 0], sizes = [12, 748], strides = [1, 1]} : vector<12x749xbf16> to vector<12x748xbf16>
    %42 = vector.extract_strided_slice %35 {offsets = [0, 1], sizes = [12, 748], strides = [1, 1]} : vector<12x749xbf16> to vector<12x748xbf16>
    %43 = vector.extract_strided_slice %36 {offsets = [0, 1], sizes = [12, 748], strides = [1, 1]} : vector<12x749xbf16> to vector<12x748xbf16>
    %44 = tpu.concatenate %41, %42, %43 in 0 : vector<12x748xbf16>, vector<12x748xbf16>, vector<12x748xbf16> -> vector<36x748xbf16>
    %cst_21 = arith.constant dense<0.000000e+00> : vector<12x748xf32>
    %45 = tpu.matmul %32, %40, %cst_21 {dimension_numbers = #tpu.dot_dimension_numbers<[1], [0], [0], [1], [0, 0, 1, 1], [], []>} : vector<12x36xbf16>, vector<36x748xbf16>, vector<12x748xf32> -> vector<12x748xf32>
    %46 = vector.broadcast %34 : vector<12x1xf32> to vector<12x748xf32>
    %47 = arith.addf %45, %46 : vector<12x748xf32>
    %cst_22 = arith.constant 3.000000e-01 : f32
    %48 = vector.broadcast %cst_22 : f32 to vector<12x748xf32>
    %49 = arith.mulf %48, %47 : vector<12x748xf32>
    %50 = arith.maximumf %47, %49 : vector<12x748xf32>
    %cst_23 = arith.constant dense<0.000000e+00> : vector<12x748xf32>
    %51 = tpu.matmul %32, %44, %cst_23 {dimension_numbers = #tpu.dot_dimension_numbers<[1], [0], [0], [1], [0, 0, 1, 1], [], []>} : vector<12x36xbf16>, vector<36x748xbf16>, vector<12x748xf32> -> vector<12x748xf32>
    %52 = vector.broadcast %34 : vector<12x1xf32> to vector<12x748xf32>
    %53 = arith.addf %51, %52 : vector<12x748xf32>
    %cst_24 = arith.constant 3.000000e-01 : f32
    %54 = vector.broadcast %cst_24 : f32 to vector<12x748xf32>
    %55 = arith.mulf %54, %53 : vector<12x748xf32>
    %56 = arith.maximumf %53, %55 : vector<12x748xf32>
    %c0_25 = arith.constant 0 : index
    %c0_26 = arith.constant 0 : index
    %c0_27 = arith.constant 0 : index
    %57 = vector.load %arg5[%c0_25, %c0_26, %c0_27] : memref<4x12x288xbf16, #tpu.memory_space<vmem>>, vector<1x12x288xbf16>
    %58 = vector.shape_cast %57 : vector<1x12x288xbf16> to vector<12x288xbf16>
    %c2 = arith.constant 2 : index
    %c0_28 = arith.constant 0 : index
    %c0_29 = arith.constant 0 : index
    %59 = vector.load %arg4[%c2, %c0_28, %c0_29] : memref<15x12x1xf32, #tpu.memory_space<vmem>>, vector<1x12x1xf32>
    %60 = vector.shape_cast %59 : vector<1x12x1xf32> to vector<12x1xf32>
    %61 = arith.truncf %50 : vector<12x748xf32> to vector<12x748xbf16>
    %62 = arith.truncf %56 : vector<12x748xf32> to vector<12x748xbf16>
    %63 = vector.extract_strided_slice %61 {offsets = [0, 0], sizes = [12, 737], strides = [1, 1]} : vector<12x748xbf16> to vector<12x737xbf16>
    %64 = vector.extract_strided_slice %62 {offsets = [0, 0], sizes = [12, 737], strides = [1, 1]} : vector<12x748xbf16> to vector<12x737xbf16>
    %65 = vector.extract_strided_slice %61 {offsets = [0, 1], sizes = [12, 737], strides = [1, 1]} : vector<12x748xbf16> to vector<12x737xbf16>
    %66 = vector.extract_strided_slice %62 {offsets = [0, 1], sizes = [12, 737], strides = [1, 1]} : vector<12x748xbf16> to vector<12x737xbf16>
    %67 = vector.extract_strided_slice %61 {offsets = [0, 2], sizes = [12, 737], strides = [1, 1]} : vector<12x748xbf16> to vector<12x737xbf16>
    %68 = vector.extract_strided_slice %62 {offsets = [0, 2], sizes = [12, 737], strides = [1, 1]} : vector<12x748xbf16> to vector<12x737xbf16>
    %69 = vector.extract_strided_slice %61 {offsets = [0, 3], sizes = [12, 737], strides = [1, 1]} : vector<12x748xbf16> to vector<12x737xbf16>
    %70 = vector.extract_strided_slice %62 {offsets = [0, 3], sizes = [12, 737], strides = [1, 1]} : vector<12x748xbf16> to vector<12x737xbf16>
    %71 = vector.extract_strided_slice %61 {offsets = [0, 4], sizes = [12, 737], strides = [1, 1]} : vector<12x748xbf16> to vector<12x737xbf16>
    %72 = vector.extract_strided_slice %62 {offsets = [0, 4], sizes = [12, 737], strides = [1, 1]} : vector<12x748xbf16> to vector<12x737xbf16>
    %73 = vector.extract_strided_slice %61 {offsets = [0, 5], sizes = [12, 737], strides = [1, 1]} : vector<12x748xbf16> to vector<12x737xbf16>
    %74 = vector.extract_strided_slice %62 {offsets = [0, 5], sizes = [12, 737], strides = [1, 1]} : vector<12x748xbf16> to vector<12x737xbf16>
    %75 = vector.extract_strided_slice %61 {offsets = [0, 6], sizes = [12, 737], strides = [1, 1]} : vector<12x748xbf16> to vector<12x737xbf16>
    %76 = vector.extract_strided_slice %62 {offsets = [0, 6], sizes = [12, 737], strides = [1, 1]} : vector<12x748xbf16> to vector<12x737xbf16>
    %77 = vector.extract_strided_slice %61 {offsets = [0, 7], sizes = [12, 737], strides = [1, 1]} : vector<12x748xbf16> to vector<12x737xbf16>
    %78 = vector.extract_strided_slice %62 {offsets = [0, 7], sizes = [12, 737], strides = [1, 1]} : vector<12x748xbf16> to vector<12x737xbf16>
    %79 = vector.extract_strided_slice %61 {offsets = [0, 8], sizes = [12, 737], strides = [1, 1]} : vector<12x748xbf16> to vector<12x737xbf16>
    %80 = vector.extract_strided_slice %62 {offsets = [0, 8], sizes = [12, 737], strides = [1, 1]} : vector<12x748xbf16> to vector<12x737xbf16>
    %81 = vector.extract_strided_slice %61 {offsets = [0, 9], sizes = [12, 737], strides = [1, 1]} : vector<12x748xbf16> to vector<12x737xbf16>
    %82 = vector.extract_strided_slice %62 {offsets = [0, 9], sizes = [12, 737], strides = [1, 1]} : vector<12x748xbf16> to vector<12x737xbf16>
    %83 = vector.extract_strided_slice %61 {offsets = [0, 10], sizes = [12, 737], strides = [1, 1]} : vector<12x748xbf16> to vector<12x737xbf16>
    %84 = vector.extract_strided_slice %62 {offsets = [0, 10], sizes = [12, 737], strides = [1, 1]} : vector<12x748xbf16> to vector<12x737xbf16>
    %85 = vector.extract_strided_slice %61 {offsets = [0, 11], sizes = [12, 737], strides = [1, 1]} : vector<12x748xbf16> to vector<12x737xbf16>
    %86 = vector.extract_strided_slice %62 {offsets = [0, 11], sizes = [12, 737], strides = [1, 1]} : vector<12x748xbf16> to vector<12x737xbf16>
    %87 = tpu.concatenate %63, %64, %65, %66, %67, %68, %69, %70, %71, %72, %73, %74, %75, %76, %77, %78 in 0 : vector<12x737xbf16>, vector<12x737xbf16>, vector<12x737xbf16>, vector<12x737xbf16>, vector<12x737xbf16>, vector<12x737xbf16>, vector<12x737xbf16>, vector<12x737xbf16>, vector<12x737xbf16>, vector<12x737xbf16>, vector<12x737xbf16>, vector<12x737xbf16>, vector<12x737xbf16>, vector<12x737xbf16>, vector<12x737xbf16>, vector<12x737xbf16> -> vector<192x737xbf16>
    %88 = tpu.concatenate %79, %80, %81, %82, %83, %84, %85, %86 in 0 : vector<12x737xbf16>, vector<12x737xbf16>, vector<12x737xbf16>, vector<12x737xbf16>, vector<12x737xbf16>, vector<12x737xbf16>, vector<12x737xbf16>, vector<12x737xbf16> -> vector<96x737xbf16>
    %89 = tpu.concatenate %87, %88 in 0 : vector<192x737xbf16>, vector<96x737xbf16> -> vector<288x737xbf16>
    %cst_30 = arith.constant dense<0.000000e+00> : vector<12x737xf32>
    %90 = tpu.matmul %58, %89, %cst_30 {dimension_numbers = #tpu.dot_dimension_numbers<[1], [0], [0], [1], [0, 0, 1, 1], [], []>} : vector<12x288xbf16>, vector<288x737xbf16>, vector<12x737xf32> -> vector<12x737xf32>
    %91 = vector.broadcast %60 : vector<12x1xf32> to vector<12x737xf32>
    %92 = arith.addf %90, %91 : vector<12x737xf32>
    %cst_31 = arith.constant 3.000000e-01 : f32
    %93 = vector.broadcast %cst_31 : f32 to vector<12x737xf32>
    %94 = arith.mulf %93, %92 : vector<12x737xf32>
    %95 = arith.maximumf %92, %94 : vector<12x737xf32>
    %c2_32 = arith.constant 2 : index
    %c0_33 = arith.constant 0 : index
    %c0_34 = arith.constant 0 : index
    %96 = vector.load %arg3[%c2_32, %c0_33, %c0_34] : memref<10x12x36xbf16, #tpu.memory_space<vmem>>, vector<1x12x36xbf16>
    %97 = vector.shape_cast %96 : vector<1x12x36xbf16> to vector<12x36xbf16>
    %c3 = arith.constant 3 : index
    %c0_35 = arith.constant 0 : index
    %c0_36 = arith.constant 0 : index
    %98 = vector.load %arg3[%c3, %c0_35, %c0_36] : memref<10x12x36xbf16, #tpu.memory_space<vmem>>, vector<1x12x36xbf16>
    %99 = vector.shape_cast %98 : vector<1x12x36xbf16> to vector<12x36xbf16>
    %c3_37 = arith.constant 3 : index
    %c0_38 = arith.constant 0 : index
    %c0_39 = arith.constant 0 : index
    %100 = vector.load %arg4[%c3_37, %c0_38, %c0_39] : memref<15x12x1xf32, #tpu.memory_space<vmem>>, vector<1x12x1xf32>
    %101 = vector.shape_cast %100 : vector<1x12x1xf32> to vector<12x1xf32>
    %c4 = arith.constant 4 : index
    %c0_40 = arith.constant 0 : index
    %c0_41 = arith.constant 0 : index
    %102 = vector.load %arg4[%c4, %c0_40, %c0_41] : memref<15x12x1xf32, #tpu.memory_space<vmem>>, vector<1x12x1xf32>
    %103 = vector.shape_cast %102 : vector<1x12x1xf32> to vector<12x1xf32>
    %c5 = arith.constant 5 : index
    %c0_42 = arith.constant 0 : index
    %c0_43 = arith.constant 0 : index
    %104 = vector.load %arg4[%c5, %c0_42, %c0_43] : memref<15x12x1xf32, #tpu.memory_space<vmem>>, vector<1x12x1xf32>
    %105 = vector.shape_cast %104 : vector<1x12x1xf32> to vector<12x1xf32>
    %c1_44 = arith.constant 1 : index
    %c0_45 = arith.constant 0 : index
    %c0_46 = arith.constant 0 : index
    %106 = vector.load %arg5[%c1_44, %c0_45, %c0_46] : memref<4x12x288xbf16, #tpu.memory_space<vmem>>, vector<1x12x288xbf16>
    %107 = vector.shape_cast %106 : vector<1x12x288xbf16> to vector<12x288xbf16>
    %108 = arith.truncf %95 : vector<12x737xf32> to vector<12x737xbf16>
    %109 = vector.extract_strided_slice %108 {offsets = [0, 0], sizes = [12, 735], strides = [1, 1]} : vector<12x737xbf16> to vector<12x735xbf16>
    %110 = vector.extract_strided_slice %108 {offsets = [0, 1], sizes = [12, 735], strides = [1, 1]} : vector<12x737xbf16> to vector<12x735xbf16>
    %111 = vector.extract_strided_slice %108 {offsets = [0, 2], sizes = [12, 735], strides = [1, 1]} : vector<12x737xbf16> to vector<12x735xbf16>
    %112 = tpu.concatenate %109, %110, %111 in 0 : vector<12x735xbf16>, vector<12x735xbf16>, vector<12x735xbf16> -> vector<36x735xbf16>
    %cst_47 = arith.constant dense<0.000000e+00> : vector<12x735xf32>
    %113 = tpu.matmul %97, %112, %cst_47 {dimension_numbers = #tpu.dot_dimension_numbers<[1], [0], [0], [1], [0, 0, 1, 1], [], []>} : vector<12x36xbf16>, vector<36x735xbf16>, vector<12x735xf32> -> vector<12x735xf32>
    %114 = vector.broadcast %101 : vector<12x1xf32> to vector<12x735xf32>
    %115 = arith.addf %113, %114 : vector<12x735xf32>
    %cst_48 = arith.constant 3.000000e-01 : f32
    %116 = vector.broadcast %cst_48 : f32 to vector<12x735xf32>
    %117 = arith.mulf %116, %115 : vector<12x735xf32>
    %118 = arith.maximumf %115, %117 : vector<12x735xf32>
    %119 = arith.truncf %118 : vector<12x735xf32> to vector<12x735xbf16>
    %120 = vector.extract_strided_slice %119 {offsets = [0, 0], sizes = [12, 733], strides = [1, 1]} : vector<12x735xbf16> to vector<12x733xbf16>
    %121 = vector.extract_strided_slice %119 {offsets = [0, 1], sizes = [12, 733], strides = [1, 1]} : vector<12x735xbf16> to vector<12x733xbf16>
    %122 = vector.extract_strided_slice %119 {offsets = [0, 2], sizes = [12, 733], strides = [1, 1]} : vector<12x735xbf16> to vector<12x733xbf16>
    %123 = tpu.concatenate %120, %121, %122 in 0 : vector<12x733xbf16>, vector<12x733xbf16>, vector<12x733xbf16> -> vector<36x733xbf16>
    %cst_49 = arith.constant dense<0.000000e+00> : vector<12x733xf32>
    %124 = tpu.matmul %99, %123, %cst_49 {dimension_numbers = #tpu.dot_dimension_numbers<[1], [0], [0], [1], [0, 0, 1, 1], [], []>} : vector<12x36xbf16>, vector<36x733xbf16>, vector<12x733xf32> -> vector<12x733xf32>
    %125 = vector.broadcast %103 : vector<12x1xf32> to vector<12x733xf32>
    %126 = arith.addf %124, %125 : vector<12x733xf32>
    %cst_50 = arith.constant 3.000000e-01 : f32
    %127 = vector.broadcast %cst_50 : f32 to vector<12x733xf32>
    %128 = arith.mulf %127, %126 : vector<12x733xf32>
    %129 = arith.maximumf %126, %128 : vector<12x733xf32>
    %130 = arith.truncf %129 : vector<12x733xf32> to vector<12x733xbf16>
    %131 = vector.extract_strided_slice %130 {offsets = [0, 0], sizes = [12, 710], strides = [1, 1]} : vector<12x733xbf16> to vector<12x710xbf16>
    %132 = vector.extract_strided_slice %130 {offsets = [0, 1], sizes = [12, 710], strides = [1, 1]} : vector<12x733xbf16> to vector<12x710xbf16>
    %133 = vector.extract_strided_slice %130 {offsets = [0, 2], sizes = [12, 710], strides = [1, 1]} : vector<12x733xbf16> to vector<12x710xbf16>
    %134 = vector.extract_strided_slice %130 {offsets = [0, 3], sizes = [12, 710], strides = [1, 1]} : vector<12x733xbf16> to vector<12x710xbf16>
    %135 = vector.extract_strided_slice %130 {offsets = [0, 4], sizes = [12, 710], strides = [1, 1]} : vector<12x733xbf16> to vector<12x710xbf16>
    %136 = vector.extract_strided_slice %130 {offsets = [0, 5], sizes = [12, 710], strides = [1, 1]} : vector<12x733xbf16> to vector<12x710xbf16>
    %137 = vector.extract_strided_slice %130 {offsets = [0, 6], sizes = [12, 710], strides = [1, 1]} : vector<12x733xbf16> to vector<12x710xbf16>
    %138 = vector.extract_strided_slice %130 {offsets = [0, 7], sizes = [12, 710], strides = [1, 1]} : vector<12x733xbf16> to vector<12x710xbf16>
    %139 = vector.extract_strided_slice %130 {offsets = [0, 8], sizes = [12, 710], strides = [1, 1]} : vector<12x733xbf16> to vector<12x710xbf16>
    %140 = vector.extract_strided_slice %130 {offsets = [0, 9], sizes = [12, 710], strides = [1, 1]} : vector<12x733xbf16> to vector<12x710xbf16>
    %141 = vector.extract_strided_slice %130 {offsets = [0, 10], sizes = [12, 710], strides = [1, 1]} : vector<12x733xbf16> to vector<12x710xbf16>
    %142 = vector.extract_strided_slice %130 {offsets = [0, 11], sizes = [12, 710], strides = [1, 1]} : vector<12x733xbf16> to vector<12x710xbf16>
    %143 = vector.extract_strided_slice %130 {offsets = [0, 12], sizes = [12, 710], strides = [1, 1]} : vector<12x733xbf16> to vector<12x710xbf16>
    %144 = vector.extract_strided_slice %130 {offsets = [0, 13], sizes = [12, 710], strides = [1, 1]} : vector<12x733xbf16> to vector<12x710xbf16>
    %145 = vector.extract_strided_slice %130 {offsets = [0, 14], sizes = [12, 710], strides = [1, 1]} : vector<12x733xbf16> to vector<12x710xbf16>
    %146 = vector.extract_strided_slice %130 {offsets = [0, 15], sizes = [12, 710], strides = [1, 1]} : vector<12x733xbf16> to vector<12x710xbf16>
    %147 = vector.extract_strided_slice %130 {offsets = [0, 16], sizes = [12, 710], strides = [1, 1]} : vector<12x733xbf16> to vector<12x710xbf16>
    %148 = vector.extract_strided_slice %130 {offsets = [0, 17], sizes = [12, 710], strides = [1, 1]} : vector<12x733xbf16> to vector<12x710xbf16>
    %149 = vector.extract_strided_slice %130 {offsets = [0, 18], sizes = [12, 710], strides = [1, 1]} : vector<12x733xbf16> to vector<12x710xbf16>
    %150 = vector.extract_strided_slice %130 {offsets = [0, 19], sizes = [12, 710], strides = [1, 1]} : vector<12x733xbf16> to vector<12x710xbf16>
    %151 = vector.extract_strided_slice %130 {offsets = [0, 20], sizes = [12, 710], strides = [1, 1]} : vector<12x733xbf16> to vector<12x710xbf16>
    %152 = vector.extract_strided_slice %130 {offsets = [0, 21], sizes = [12, 710], strides = [1, 1]} : vector<12x733xbf16> to vector<12x710xbf16>
    %153 = vector.extract_strided_slice %130 {offsets = [0, 22], sizes = [12, 710], strides = [1, 1]} : vector<12x733xbf16> to vector<12x710xbf16>
    %154 = vector.extract_strided_slice %130 {offsets = [0, 23], sizes = [12, 710], strides = [1, 1]} : vector<12x733xbf16> to vector<12x710xbf16>
    %155 = tpu.concatenate %131, %132, %133, %134, %135, %136, %137, %138, %139, %140, %141, %142, %143, %144, %145, %146 in 0 : vector<12x710xbf16>, vector<12x710xbf16>, vector<12x710xbf16>, vector<12x710xbf16>, vector<12x710xbf16>, vector<12x710xbf16>, vector<12x710xbf16>, vector<12x710xbf16>, vector<12x710xbf16>, vector<12x710xbf16>, vector<12x710xbf16>, vector<12x710xbf16>, vector<12x710xbf16>, vector<12x710xbf16>, vector<12x710xbf16>, vector<12x710xbf16> -> vector<192x710xbf16>
    %156 = tpu.concatenate %147, %148, %149, %150, %151, %152, %153, %154 in 0 : vector<12x710xbf16>, vector<12x710xbf16>, vector<12x710xbf16>, vector<12x710xbf16>, vector<12x710xbf16>, vector<12x710xbf16>, vector<12x710xbf16>, vector<12x710xbf16> -> vector<96x710xbf16>
    %157 = tpu.concatenate %155, %156 in 0 : vector<192x710xbf16>, vector<96x710xbf16> -> vector<288x710xbf16>
    %cst_51 = arith.constant dense<0.000000e+00> : vector<12x710xf32>
    %158 = tpu.matmul %107, %157, %cst_51 {dimension_numbers = #tpu.dot_dimension_numbers<[1], [0], [0], [1], [0, 0, 1, 1], [], []>} : vector<12x288xbf16>, vector<288x710xbf16>, vector<12x710xf32> -> vector<12x710xf32>
    %159 = arith.truncf %158 : vector<12x710xf32> to vector<12x710xbf16>
    %160 = vector.extract_strided_slice %159 {offsets = [0, 0], sizes = [12, 255], strides = [1, 1]} : vector<12x710xbf16> to vector<12x255xbf16>
    %cst_52 = arith.constant dense<0.000000e+00> : vector<12x128xf32>
    %161 = tpu.matmul %160, %0, %cst_52 {dimension_numbers = #tpu.dot_dimension_numbers<[1], [0], [0], [1], [0, 0, 1, 1], [], []>} : vector<12x255xbf16>, vector<255x128xbf16>, vector<12x128xf32> -> vector<12x128xf32>
    %162 = vector.extract_strided_slice %159 {offsets = [0, 256], sizes = [12, 255], strides = [1, 1]} : vector<12x710xbf16> to vector<12x255xbf16>
    %cst_53 = arith.constant dense<0.000000e+00> : vector<12x128xf32>
    %163 = tpu.matmul %162, %0, %cst_53 {dimension_numbers = #tpu.dot_dimension_numbers<[1], [0], [0], [1], [0, 0, 1, 1], [], []>} : vector<12x255xbf16>, vector<255x128xbf16>, vector<12x128xf32> -> vector<12x128xf32>
    %164 = vector.extract_strided_slice %159 {offsets = [0, 512], sizes = [12, 197], strides = [1, 1]} : vector<12x710xbf16> to vector<12x197xbf16>
    %165 = vector.extract_strided_slice %0 {offsets = [0, 0], sizes = [197, 99], strides = [1, 1]} : vector<255x128xbf16> to vector<197x99xbf16>
    %cst_54 = arith.constant dense<0.000000e+00> : vector<12x99xf32>
    %166 = tpu.matmul %164, %165, %cst_54 {dimension_numbers = #tpu.dot_dimension_numbers<[1], [0], [0], [1], [0, 0, 1, 1], [], []>} : vector<12x197xbf16>, vector<197x99xbf16>, vector<12x99xf32> -> vector<12x99xf32>
    %167 = tpu.concatenate %161, %163, %166 in 1 : vector<12x128xf32>, vector<12x128xf32>, vector<12x99xf32> -> vector<12x355xf32>
    %168 = vector.broadcast %105 : vector<12x1xf32> to vector<12x355xf32>
    %169 = arith.addf %167, %168 : vector<12x355xf32>
    %cst_55 = arith.constant 3.000000e-01 : f32
    %170 = vector.broadcast %cst_55 : f32 to vector<12x355xf32>
    %171 = arith.mulf %170, %169 : vector<12x355xf32>
    %172 = arith.maximumf %169, %171 : vector<12x355xf32>
    %c4_56 = arith.constant 4 : index
    %c0_57 = arith.constant 0 : index
    %c0_58 = arith.constant 0 : index
    %173 = vector.load %arg3[%c4_56, %c0_57, %c0_58] : memref<10x12x36xbf16, #tpu.memory_space<vmem>>, vector<1x12x36xbf16>
    %174 = vector.shape_cast %173 : vector<1x12x36xbf16> to vector<12x36xbf16>
    %c5_59 = arith.constant 5 : index
    %c0_60 = arith.constant 0 : index
    %c0_61 = arith.constant 0 : index
    %175 = vector.load %arg3[%c5_59, %c0_60, %c0_61] : memref<10x12x36xbf16, #tpu.memory_space<vmem>>, vector<1x12x36xbf16>
    %176 = vector.shape_cast %175 : vector<1x12x36xbf16> to vector<12x36xbf16>
    %c6 = arith.constant 6 : index
    %c0_62 = arith.constant 0 : index
    %c0_63 = arith.constant 0 : index
    %177 = vector.load %arg4[%c6, %c0_62, %c0_63] : memref<15x12x1xf32, #tpu.memory_space<vmem>>, vector<1x12x1xf32>
    %178 = vector.shape_cast %177 : vector<1x12x1xf32> to vector<12x1xf32>
    %c7 = arith.constant 7 : index
    %c0_64 = arith.constant 0 : index
    %c0_65 = arith.constant 0 : index
    %179 = vector.load %arg4[%c7, %c0_64, %c0_65] : memref<15x12x1xf32, #tpu.memory_space<vmem>>, vector<1x12x1xf32>
    %180 = vector.shape_cast %179 : vector<1x12x1xf32> to vector<12x1xf32>
    %c8 = arith.constant 8 : index
    %c0_66 = arith.constant 0 : index
    %c0_67 = arith.constant 0 : index
    %181 = vector.load %arg4[%c8, %c0_66, %c0_67] : memref<15x12x1xf32, #tpu.memory_space<vmem>>, vector<1x12x1xf32>
    %182 = vector.shape_cast %181 : vector<1x12x1xf32> to vector<12x1xf32>
    %c2_68 = arith.constant 2 : index
    %c0_69 = arith.constant 0 : index
    %c0_70 = arith.constant 0 : index
    %183 = vector.load %arg5[%c2_68, %c0_69, %c0_70] : memref<4x12x288xbf16, #tpu.memory_space<vmem>>, vector<1x12x288xbf16>
    %184 = vector.shape_cast %183 : vector<1x12x288xbf16> to vector<12x288xbf16>
    %185 = arith.truncf %172 : vector<12x355xf32> to vector<12x355xbf16>
    %186 = vector.extract_strided_slice %185 {offsets = [0, 0], sizes = [12, 353], strides = [1, 1]} : vector<12x355xbf16> to vector<12x353xbf16>
    %187 = vector.extract_strided_slice %185 {offsets = [0, 1], sizes = [12, 353], strides = [1, 1]} : vector<12x355xbf16> to vector<12x353xbf16>
    %188 = vector.extract_strided_slice %185 {offsets = [0, 2], sizes = [12, 353], strides = [1, 1]} : vector<12x355xbf16> to vector<12x353xbf16>
    %189 = tpu.concatenate %186, %187, %188 in 0 : vector<12x353xbf16>, vector<12x353xbf16>, vector<12x353xbf16> -> vector<36x353xbf16>
    %cst_71 = arith.constant dense<0.000000e+00> : vector<12x353xf32>
    %190 = tpu.matmul %174, %189, %cst_71 {dimension_numbers = #tpu.dot_dimension_numbers<[1], [0], [0], [1], [0, 0, 1, 1], [], []>} : vector<12x36xbf16>, vector<36x353xbf16>, vector<12x353xf32> -> vector<12x353xf32>
    %191 = vector.broadcast %178 : vector<12x1xf32> to vector<12x353xf32>
    %192 = arith.addf %190, %191 : vector<12x353xf32>
    %cst_72 = arith.constant 3.000000e-01 : f32
    %193 = vector.broadcast %cst_72 : f32 to vector<12x353xf32>
    %194 = arith.mulf %193, %192 : vector<12x353xf32>
    %195 = arith.maximumf %192, %194 : vector<12x353xf32>
    %196 = arith.truncf %195 : vector<12x353xf32> to vector<12x353xbf16>
    %197 = vector.extract_strided_slice %196 {offsets = [0, 0], sizes = [12, 351], strides = [1, 1]} : vector<12x353xbf16> to vector<12x351xbf16>
    %198 = vector.extract_strided_slice %196 {offsets = [0, 1], sizes = [12, 351], strides = [1, 1]} : vector<12x353xbf16> to vector<12x351xbf16>
    %199 = vector.extract_strided_slice %196 {offsets = [0, 2], sizes = [12, 351], strides = [1, 1]} : vector<12x353xbf16> to vector<12x351xbf16>
    %200 = tpu.concatenate %197, %198, %199 in 0 : vector<12x351xbf16>, vector<12x351xbf16>, vector<12x351xbf16> -> vector<36x351xbf16>
    %cst_73 = arith.constant dense<0.000000e+00> : vector<12x351xf32>
    %201 = tpu.matmul %176, %200, %cst_73 {dimension_numbers = #tpu.dot_dimension_numbers<[1], [0], [0], [1], [0, 0, 1, 1], [], []>} : vector<12x36xbf16>, vector<36x351xbf16>, vector<12x351xf32> -> vector<12x351xf32>
    %202 = vector.broadcast %180 : vector<12x1xf32> to vector<12x351xf32>
    %203 = arith.addf %201, %202 : vector<12x351xf32>
    %cst_74 = arith.constant 3.000000e-01 : f32
    %204 = vector.broadcast %cst_74 : f32 to vector<12x351xf32>
    %205 = arith.mulf %204, %203 : vector<12x351xf32>
    %206 = arith.maximumf %203, %205 : vector<12x351xf32>
    %207 = arith.truncf %206 : vector<12x351xf32> to vector<12x351xbf16>
    %208 = vector.extract_strided_slice %207 {offsets = [0, 0], sizes = [12, 328], strides = [1, 1]} : vector<12x351xbf16> to vector<12x328xbf16>
    %209 = vector.extract_strided_slice %207 {offsets = [0, 1], sizes = [12, 328], strides = [1, 1]} : vector<12x351xbf16> to vector<12x328xbf16>
    %210 = vector.extract_strided_slice %207 {offsets = [0, 2], sizes = [12, 328], strides = [1, 1]} : vector<12x351xbf16> to vector<12x328xbf16>
    %211 = vector.extract_strided_slice %207 {offsets = [0, 3], sizes = [12, 328], strides = [1, 1]} : vector<12x351xbf16> to vector<12x328xbf16>
    %212 = vector.extract_strided_slice %207 {offsets = [0, 4], sizes = [12, 328], strides = [1, 1]} : vector<12x351xbf16> to vector<12x328xbf16>
    %213 = vector.extract_strided_slice %207 {offsets = [0, 5], sizes = [12, 328], strides = [1, 1]} : vector<12x351xbf16> to vector<12x328xbf16>
    %214 = vector.extract_strided_slice %207 {offsets = [0, 6], sizes = [12, 328], strides = [1, 1]} : vector<12x351xbf16> to vector<12x328xbf16>
    %215 = vector.extract_strided_slice %207 {offsets = [0, 7], sizes = [12, 328], strides = [1, 1]} : vector<12x351xbf16> to vector<12x328xbf16>
    %216 = vector.extract_strided_slice %207 {offsets = [0, 8], sizes = [12, 328], strides = [1, 1]} : vector<12x351xbf16> to vector<12x328xbf16>
    %217 = vector.extract_strided_slice %207 {offsets = [0, 9], sizes = [12, 328], strides = [1, 1]} : vector<12x351xbf16> to vector<12x328xbf16>
    %218 = vector.extract_strided_slice %207 {offsets = [0, 10], sizes = [12, 328], strides = [1, 1]} : vector<12x351xbf16> to vector<12x328xbf16>
    %219 = vector.extract_strided_slice %207 {offsets = [0, 11], sizes = [12, 328], strides = [1, 1]} : vector<12x351xbf16> to vector<12x328xbf16>
    %220 = vector.extract_strided_slice %207 {offsets = [0, 12], sizes = [12, 328], strides = [1, 1]} : vector<12x351xbf16> to vector<12x328xbf16>
    %221 = vector.extract_strided_slice %207 {offsets = [0, 13], sizes = [12, 328], strides = [1, 1]} : vector<12x351xbf16> to vector<12x328xbf16>
    %222 = vector.extract_strided_slice %207 {offsets = [0, 14], sizes = [12, 328], strides = [1, 1]} : vector<12x351xbf16> to vector<12x328xbf16>
    %223 = vector.extract_strided_slice %207 {offsets = [0, 15], sizes = [12, 328], strides = [1, 1]} : vector<12x351xbf16> to vector<12x328xbf16>
    %224 = vector.extract_strided_slice %207 {offsets = [0, 16], sizes = [12, 328], strides = [1, 1]} : vector<12x351xbf16> to vector<12x328xbf16>
    %225 = vector.extract_strided_slice %207 {offsets = [0, 17], sizes = [12, 328], strides = [1, 1]} : vector<12x351xbf16> to vector<12x328xbf16>
    %226 = vector.extract_strided_slice %207 {offsets = [0, 18], sizes = [12, 328], strides = [1, 1]} : vector<12x351xbf16> to vector<12x328xbf16>
    %227 = vector.extract_strided_slice %207 {offsets = [0, 19], sizes = [12, 328], strides = [1, 1]} : vector<12x351xbf16> to vector<12x328xbf16>
    %228 = vector.extract_strided_slice %207 {offsets = [0, 20], sizes = [12, 328], strides = [1, 1]} : vector<12x351xbf16> to vector<12x328xbf16>
    %229 = vector.extract_strided_slice %207 {offsets = [0, 21], sizes = [12, 328], strides = [1, 1]} : vector<12x351xbf16> to vector<12x328xbf16>
    %230 = vector.extract_strided_slice %207 {offsets = [0, 22], sizes = [12, 328], strides = [1, 1]} : vector<12x351xbf16> to vector<12x328xbf16>
    %231 = vector.extract_strided_slice %207 {offsets = [0, 23], sizes = [12, 328], strides = [1, 1]} : vector<12x351xbf16> to vector<12x328xbf16>
    %232 = tpu.concatenate %208, %209, %210, %211, %212, %213, %214, %215, %216, %217, %218, %219, %220, %221, %222, %223 in 0 : vector<12x328xbf16>, vector<12x328xbf16>, vector<12x328xbf16>, vector<12x328xbf16>, vector<12x328xbf16>, vector<12x328xbf16>, vector<12x328xbf16>, vector<12x328xbf16>, vector<12x328xbf16>, vector<12x328xbf16>, vector<12x328xbf16>, vector<12x328xbf16>, vector<12x328xbf16>, vector<12x328xbf16>, vector<12x328xbf16>, vector<12x328xbf16> -> vector<192x328xbf16>
    %233 = tpu.concatenate %224, %225, %226, %227, %228, %229, %230, %231 in 0 : vector<12x328xbf16>, vector<12x328xbf16>, vector<12x328xbf16>, vector<12x328xbf16>, vector<12x328xbf16>, vector<12x328xbf16>, vector<12x328xbf16>, vector<12x328xbf16> -> vector<96x328xbf16>
    %234 = tpu.concatenate %232, %233 in 0 : vector<192x328xbf16>, vector<96x328xbf16> -> vector<288x328xbf16>
    %cst_75 = arith.constant dense<0.000000e+00> : vector<12x328xf32>
    %235 = tpu.matmul %184, %234, %cst_75 {dimension_numbers = #tpu.dot_dimension_numbers<[1], [0], [0], [1], [0, 0, 1, 1], [], []>} : vector<12x288xbf16>, vector<288x328xbf16>, vector<12x328xf32> -> vector<12x328xf32>
    %236 = arith.truncf %235 : vector<12x328xf32> to vector<12x328xbf16>
    %237 = vector.extract_strided_slice %236 {offsets = [0, 0], sizes = [12, 255], strides = [1, 1]} : vector<12x328xbf16> to vector<12x255xbf16>
    %cst_76 = arith.constant dense<0.000000e+00> : vector<12x128xf32>
    %238 = tpu.matmul %237, %0, %cst_76 {dimension_numbers = #tpu.dot_dimension_numbers<[1], [0], [0], [1], [0, 0, 1, 1], [], []>} : vector<12x255xbf16>, vector<255x128xbf16>, vector<12x128xf32> -> vector<12x128xf32>
    %239 = vector.extract_strided_slice %236 {offsets = [0, 256], sizes = [12, 71], strides = [1, 1]} : vector<12x328xbf16> to vector<12x71xbf16>
    %240 = vector.extract_strided_slice %0 {offsets = [0, 0], sizes = [71, 36], strides = [1, 1]} : vector<255x128xbf16> to vector<71x36xbf16>
    %cst_77 = arith.constant dense<0.000000e+00> : vector<12x36xf32>
    %241 = tpu.matmul %239, %240, %cst_77 {dimension_numbers = #tpu.dot_dimension_numbers<[1], [0], [0], [1], [0, 0, 1, 1], [], []>} : vector<12x71xbf16>, vector<71x36xbf16>, vector<12x36xf32> -> vector<12x36xf32>
    %242 = tpu.concatenate %238, %241 in 1 : vector<12x128xf32>, vector<12x36xf32> -> vector<12x164xf32>
    %243 = vector.broadcast %182 : vector<12x1xf32> to vector<12x164xf32>
    %244 = arith.addf %242, %243 : vector<12x164xf32>
    %cst_78 = arith.constant 3.000000e-01 : f32
    %245 = vector.broadcast %cst_78 : f32 to vector<12x164xf32>
    %246 = arith.mulf %245, %244 : vector<12x164xf32>
    %247 = arith.maximumf %244, %246 : vector<12x164xf32>
    %c6_79 = arith.constant 6 : index
    %c0_80 = arith.constant 0 : index
    %c0_81 = arith.constant 0 : index
    %248 = vector.load %arg3[%c6_79, %c0_80, %c0_81] : memref<10x12x36xbf16, #tpu.memory_space<vmem>>, vector<1x12x36xbf16>
    %249 = vector.shape_cast %248 : vector<1x12x36xbf16> to vector<12x36xbf16>
    %c7_82 = arith.constant 7 : index
    %c0_83 = arith.constant 0 : index
    %c0_84 = arith.constant 0 : index
    %250 = vector.load %arg3[%c7_82, %c0_83, %c0_84] : memref<10x12x36xbf16, #tpu.memory_space<vmem>>, vector<1x12x36xbf16>
    %251 = vector.shape_cast %250 : vector<1x12x36xbf16> to vector<12x36xbf16>
    %c9 = arith.constant 9 : index
    %c0_85 = arith.constant 0 : index
    %c0_86 = arith.constant 0 : index
    %252 = vector.load %arg4[%c9, %c0_85, %c0_86] : memref<15x12x1xf32, #tpu.memory_space<vmem>>, vector<1x12x1xf32>
    %253 = vector.shape_cast %252 : vector<1x12x1xf32> to vector<12x1xf32>
    %c10 = arith.constant 10 : index
    %c0_87 = arith.constant 0 : index
    %c0_88 = arith.constant 0 : index
    %254 = vector.load %arg4[%c10, %c0_87, %c0_88] : memref<15x12x1xf32, #tpu.memory_space<vmem>>, vector<1x12x1xf32>
    %255 = vector.shape_cast %254 : vector<1x12x1xf32> to vector<12x1xf32>
    %c11 = arith.constant 11 : index
    %c0_89 = arith.constant 0 : index
    %c0_90 = arith.constant 0 : index
    %256 = vector.load %arg4[%c11, %c0_89, %c0_90] : memref<15x12x1xf32, #tpu.memory_space<vmem>>, vector<1x12x1xf32>
    %257 = vector.shape_cast %256 : vector<1x12x1xf32> to vector<12x1xf32>
    %c3_91 = arith.constant 3 : index
    %c0_92 = arith.constant 0 : index
    %c0_93 = arith.constant 0 : index
    %258 = vector.load %arg5[%c3_91, %c0_92, %c0_93] : memref<4x12x288xbf16, #tpu.memory_space<vmem>>, vector<1x12x288xbf16>
    %259 = vector.shape_cast %258 : vector<1x12x288xbf16> to vector<12x288xbf16>
    %260 = arith.truncf %247 : vector<12x164xf32> to vector<12x164xbf16>
    %261 = vector.extract_strided_slice %260 {offsets = [0, 0], sizes = [12, 162], strides = [1, 1]} : vector<12x164xbf16> to vector<12x162xbf16>
    %262 = vector.extract_strided_slice %260 {offsets = [0, 1], sizes = [12, 162], strides = [1, 1]} : vector<12x164xbf16> to vector<12x162xbf16>
    %263 = vector.extract_strided_slice %260 {offsets = [0, 2], sizes = [12, 162], strides = [1, 1]} : vector<12x164xbf16> to vector<12x162xbf16>
    %264 = tpu.concatenate %261, %262, %263 in 0 : vector<12x162xbf16>, vector<12x162xbf16>, vector<12x162xbf16> -> vector<36x162xbf16>
    %cst_94 = arith.constant dense<0.000000e+00> : vector<12x162xf32>
    %265 = tpu.matmul %249, %264, %cst_94 {dimension_numbers = #tpu.dot_dimension_numbers<[1], [0], [0], [1], [0, 0, 1, 1], [], []>} : vector<12x36xbf16>, vector<36x162xbf16>, vector<12x162xf32> -> vector<12x162xf32>
    %266 = vector.broadcast %253 : vector<12x1xf32> to vector<12x162xf32>
    %267 = arith.addf %265, %266 : vector<12x162xf32>
    %cst_95 = arith.constant 3.000000e-01 : f32
    %268 = vector.broadcast %cst_95 : f32 to vector<12x162xf32>
    %269 = arith.mulf %268, %267 : vector<12x162xf32>
    %270 = arith.maximumf %267, %269 : vector<12x162xf32>
    %271 = arith.truncf %270 : vector<12x162xf32> to vector<12x162xbf16>
    %272 = vector.extract_strided_slice %271 {offsets = [0, 0], sizes = [12, 160], strides = [1, 1]} : vector<12x162xbf16> to vector<12x160xbf16>
    %273 = vector.extract_strided_slice %271 {offsets = [0, 1], sizes = [12, 160], strides = [1, 1]} : vector<12x162xbf16> to vector<12x160xbf16>
    %274 = vector.extract_strided_slice %271 {offsets = [0, 2], sizes = [12, 160], strides = [1, 1]} : vector<12x162xbf16> to vector<12x160xbf16>
    %275 = tpu.concatenate %272, %273, %274 in 0 : vector<12x160xbf16>, vector<12x160xbf16>, vector<12x160xbf16> -> vector<36x160xbf16>
    %cst_96 = arith.constant dense<0.000000e+00> : vector<12x160xf32>
    %276 = tpu.matmul %251, %275, %cst_96 {dimension_numbers = #tpu.dot_dimension_numbers<[1], [0], [0], [1], [0, 0, 1, 1], [], []>} : vector<12x36xbf16>, vector<36x160xbf16>, vector<12x160xf32> -> vector<12x160xf32>
    %277 = vector.broadcast %255 : vector<12x1xf32> to vector<12x160xf32>
    %278 = arith.addf %276, %277 : vector<12x160xf32>
    %cst_97 = arith.constant 3.000000e-01 : f32
    %279 = vector.broadcast %cst_97 : f32 to vector<12x160xf32>
    %280 = arith.mulf %279, %278 : vector<12x160xf32>
    %281 = arith.maximumf %278, %280 : vector<12x160xf32>
    %282 = arith.truncf %281 : vector<12x160xf32> to vector<12x160xbf16>
    %283 = vector.extract_strided_slice %282 {offsets = [0, 0], sizes = [12, 137], strides = [1, 1]} : vector<12x160xbf16> to vector<12x137xbf16>
    %284 = vector.extract_strided_slice %282 {offsets = [0, 1], sizes = [12, 137], strides = [1, 1]} : vector<12x160xbf16> to vector<12x137xbf16>
    %285 = vector.extract_strided_slice %282 {offsets = [0, 2], sizes = [12, 137], strides = [1, 1]} : vector<12x160xbf16> to vector<12x137xbf16>
    %286 = vector.extract_strided_slice %282 {offsets = [0, 3], sizes = [12, 137], strides = [1, 1]} : vector<12x160xbf16> to vector<12x137xbf16>
    %287 = vector.extract_strided_slice %282 {offsets = [0, 4], sizes = [12, 137], strides = [1, 1]} : vector<12x160xbf16> to vector<12x137xbf16>
    %288 = vector.extract_strided_slice %282 {offsets = [0, 5], sizes = [12, 137], strides = [1, 1]} : vector<12x160xbf16> to vector<12x137xbf16>
    %289 = vector.extract_strided_slice %282 {offsets = [0, 6], sizes = [12, 137], strides = [1, 1]} : vector<12x160xbf16> to vector<12x137xbf16>
    %290 = vector.extract_strided_slice %282 {offsets = [0, 7], sizes = [12, 137], strides = [1, 1]} : vector<12x160xbf16> to vector<12x137xbf16>
    %291 = vector.extract_strided_slice %282 {offsets = [0, 8], sizes = [12, 137], strides = [1, 1]} : vector<12x160xbf16> to vector<12x137xbf16>
    %292 = vector.extract_strided_slice %282 {offsets = [0, 9], sizes = [12, 137], strides = [1, 1]} : vector<12x160xbf16> to vector<12x137xbf16>
    %293 = vector.extract_strided_slice %282 {offsets = [0, 10], sizes = [12, 137], strides = [1, 1]} : vector<12x160xbf16> to vector<12x137xbf16>
    %294 = vector.extract_strided_slice %282 {offsets = [0, 11], sizes = [12, 137], strides = [1, 1]} : vector<12x160xbf16> to vector<12x137xbf16>
    %295 = vector.extract_strided_slice %282 {offsets = [0, 12], sizes = [12, 137], strides = [1, 1]} : vector<12x160xbf16> to vector<12x137xbf16>
    %296 = vector.extract_strided_slice %282 {offsets = [0, 13], sizes = [12, 137], strides = [1, 1]} : vector<12x160xbf16> to vector<12x137xbf16>
    %297 = vector.extract_strided_slice %282 {offsets = [0, 14], sizes = [12, 137], strides = [1, 1]} : vector<12x160xbf16> to vector<12x137xbf16>
    %298 = vector.extract_strided_slice %282 {offsets = [0, 15], sizes = [12, 137], strides = [1, 1]} : vector<12x160xbf16> to vector<12x137xbf16>
    %299 = vector.extract_strided_slice %282 {offsets = [0, 16], sizes = [12, 137], strides = [1, 1]} : vector<12x160xbf16> to vector<12x137xbf16>
    %300 = vector.extract_strided_slice %282 {offsets = [0, 17], sizes = [12, 137], strides = [1, 1]} : vector<12x160xbf16> to vector<12x137xbf16>
    %301 = vector.extract_strided_slice %282 {offsets = [0, 18], sizes = [12, 137], strides = [1, 1]} : vector<12x160xbf16> to vector<12x137xbf16>
    %302 = vector.extract_strided_slice %282 {offsets = [0, 19], sizes = [12, 137], strides = [1, 1]} : vector<12x160xbf16> to vector<12x137xbf16>
    %303 = vector.extract_strided_slice %282 {offsets = [0, 20], sizes = [12, 137], strides = [1, 1]} : vector<12x160xbf16> to vector<12x137xbf16>
    %304 = vector.extract_strided_slice %282 {offsets = [0, 21], sizes = [12, 137], strides = [1, 1]} : vector<12x160xbf16> to vector<12x137xbf16>
    %305 = vector.extract_strided_slice %282 {offsets = [0, 22], sizes = [12, 137], strides = [1, 1]} : vector<12x160xbf16> to vector<12x137xbf16>
    %306 = vector.extract_strided_slice %282 {offsets = [0, 23], sizes = [12, 137], strides = [1, 1]} : vector<12x160xbf16> to vector<12x137xbf16>
    %307 = tpu.concatenate %283, %284, %285, %286, %287, %288, %289, %290, %291, %292, %293, %294, %295, %296, %297, %298 in 0 : vector<12x137xbf16>, vector<12x137xbf16>, vector<12x137xbf16>, vector<12x137xbf16>, vector<12x137xbf16>, vector<12x137xbf16>, vector<12x137xbf16>, vector<12x137xbf16>, vector<12x137xbf16>, vector<12x137xbf16>, vector<12x137xbf16>, vector<12x137xbf16>, vector<12x137xbf16>, vector<12x137xbf16>, vector<12x137xbf16>, vector<12x137xbf16> -> vector<192x137xbf16>
    %308 = tpu.concatenate %299, %300, %301, %302, %303, %304, %305, %306 in 0 : vector<12x137xbf16>, vector<12x137xbf16>, vector<12x137xbf16>, vector<12x137xbf16>, vector<12x137xbf16>, vector<12x137xbf16>, vector<12x137xbf16>, vector<12x137xbf16> -> vector<96x137xbf16>
    %309 = tpu.concatenate %307, %308 in 0 : vector<192x137xbf16>, vector<96x137xbf16> -> vector<288x137xbf16>
    %cst_98 = arith.constant dense<0.000000e+00> : vector<12x137xf32>
    %310 = tpu.matmul %259, %309, %cst_98 {dimension_numbers = #tpu.dot_dimension_numbers<[1], [0], [0], [1], [0, 0, 1, 1], [], []>} : vector<12x288xbf16>, vector<288x137xbf16>, vector<12x137xf32> -> vector<12x137xf32>
    %311 = arith.truncf %310 : vector<12x137xf32> to vector<12x137xbf16>
    %312 = vector.extract_strided_slice %0 {offsets = [0, 0], sizes = [137, 69], strides = [1, 1]} : vector<255x128xbf16> to vector<137x69xbf16>
    %cst_99 = arith.constant dense<0.000000e+00> : vector<12x69xf32>
    %313 = tpu.matmul %311, %312, %cst_99 {dimension_numbers = #tpu.dot_dimension_numbers<[1], [0], [0], [1], [0, 0, 1, 1], [], []>} : vector<12x137xbf16>, vector<137x69xbf16>, vector<12x69xf32> -> vector<12x69xf32>
    %314 = vector.broadcast %257 : vector<12x1xf32> to vector<12x69xf32>
    %315 = arith.addf %313, %314 : vector<12x69xf32>
    %cst_100 = arith.constant 3.000000e-01 : f32
    %316 = vector.broadcast %cst_100 : f32 to vector<12x69xf32>
    %317 = arith.mulf %316, %315 : vector<12x69xf32>
    %318 = arith.maximumf %315, %317 : vector<12x69xf32>
    %c8_101 = arith.constant 8 : index
    %c0_102 = arith.constant 0 : index
    %c0_103 = arith.constant 0 : index
    %319 = vector.load %arg3[%c8_101, %c0_102, %c0_103] : memref<10x12x36xbf16, #tpu.memory_space<vmem>>, vector<1x12x36xbf16>
    %320 = vector.shape_cast %319 : vector<1x12x36xbf16> to vector<12x36xbf16>
    %c9_104 = arith.constant 9 : index
    %c0_105 = arith.constant 0 : index
    %c0_106 = arith.constant 0 : index
    %321 = vector.load %arg3[%c9_104, %c0_105, %c0_106] : memref<10x12x36xbf16, #tpu.memory_space<vmem>>, vector<1x12x36xbf16>
    %322 = vector.shape_cast %321 : vector<1x12x36xbf16> to vector<12x36xbf16>
    %c12 = arith.constant 12 : index
    %c0_107 = arith.constant 0 : index
    %c0_108 = arith.constant 0 : index
    %323 = vector.load %arg4[%c12, %c0_107, %c0_108] : memref<15x12x1xf32, #tpu.memory_space<vmem>>, vector<1x12x1xf32>
    %324 = vector.shape_cast %323 : vector<1x12x1xf32> to vector<12x1xf32>
    %c13 = arith.constant 13 : index
    %c0_109 = arith.constant 0 : index
    %c0_110 = arith.constant 0 : index
    %325 = vector.load %arg4[%c13, %c0_109, %c0_110] : memref<15x12x1xf32, #tpu.memory_space<vmem>>, vector<1x12x1xf32>
    %326 = vector.shape_cast %325 : vector<1x12x1xf32> to vector<12x1xf32>
    %c14 = arith.constant 14 : index
    %c0_111 = arith.constant 0 : index
    %c0_112 = arith.constant 0 : index
    %327 = vector.load %arg4[%c14, %c0_111, %c0_112] : memref<15x12x1xf32, #tpu.memory_space<vmem>>, vector<1x12x1xf32>
    %328 = vector.shape_cast %327 : vector<1x12x1xf32> to vector<12x1xf32>
    %c0_113 = arith.constant 0 : index
    %c0_114 = arith.constant 0 : index
    %329 = vector.load %arg6[%c0_113, %c0_114] : memref<12x576xbf16, #tpu.memory_space<vmem>>, vector<12x576xbf16>
    %330 = arith.truncf %318 : vector<12x69xf32> to vector<12x69xbf16>
    %331 = vector.extract_strided_slice %330 {offsets = [0, 0], sizes = [12, 67], strides = [1, 1]} : vector<12x69xbf16> to vector<12x67xbf16>
    %332 = vector.extract_strided_slice %330 {offsets = [0, 1], sizes = [12, 67], strides = [1, 1]} : vector<12x69xbf16> to vector<12x67xbf16>
    %333 = vector.extract_strided_slice %330 {offsets = [0, 2], sizes = [12, 67], strides = [1, 1]} : vector<12x69xbf16> to vector<12x67xbf16>
    %334 = tpu.concatenate %331, %332, %333 in 0 : vector<12x67xbf16>, vector<12x67xbf16>, vector<12x67xbf16> -> vector<36x67xbf16>
    %cst_115 = arith.constant dense<0.000000e+00> : vector<12x67xf32>
    %335 = tpu.matmul %320, %334, %cst_115 {dimension_numbers = #tpu.dot_dimension_numbers<[1], [0], [0], [1], [0, 0, 1, 1], [], []>} : vector<12x36xbf16>, vector<36x67xbf16>, vector<12x67xf32> -> vector<12x67xf32>
    %336 = vector.broadcast %324 : vector<12x1xf32> to vector<12x67xf32>
    %337 = arith.addf %335, %336 : vector<12x67xf32>
    %cst_116 = arith.constant 3.000000e-01 : f32
    %338 = vector.broadcast %cst_116 : f32 to vector<12x67xf32>
    %339 = arith.mulf %338, %337 : vector<12x67xf32>
    %340 = arith.maximumf %337, %339 : vector<12x67xf32>
    %341 = arith.truncf %340 : vector<12x67xf32> to vector<12x67xbf16>
    %342 = vector.extract_strided_slice %341 {offsets = [0, 0], sizes = [12, 65], strides = [1, 1]} : vector<12x67xbf16> to vector<12x65xbf16>
    %343 = vector.extract_strided_slice %341 {offsets = [0, 1], sizes = [12, 65], strides = [1, 1]} : vector<12x67xbf16> to vector<12x65xbf16>
    %344 = vector.extract_strided_slice %341 {offsets = [0, 2], sizes = [12, 65], strides = [1, 1]} : vector<12x67xbf16> to vector<12x65xbf16>
    %345 = tpu.concatenate %342, %343, %344 in 0 : vector<12x65xbf16>, vector<12x65xbf16>, vector<12x65xbf16> -> vector<36x65xbf16>
    %cst_117 = arith.constant dense<0.000000e+00> : vector<12x65xf32>
    %346 = tpu.matmul %322, %345, %cst_117 {dimension_numbers = #tpu.dot_dimension_numbers<[1], [0], [0], [1], [0, 0, 1, 1], [], []>} : vector<12x36xbf16>, vector<36x65xbf16>, vector<12x65xf32> -> vector<12x65xf32>
    %347 = vector.broadcast %326 : vector<12x1xf32> to vector<12x65xf32>
    %348 = arith.addf %346, %347 : vector<12x65xf32>
    %cst_118 = arith.constant 3.000000e-01 : f32
    %349 = vector.broadcast %cst_118 : f32 to vector<12x65xf32>
    %350 = arith.mulf %349, %348 : vector<12x65xf32>
    %351 = arith.maximumf %348, %350 : vector<12x65xf32>
    %352 = arith.truncf %351 : vector<12x65xf32> to vector<12x65xbf16>
    %353 = vector.extract_strided_slice %352 {offsets = [0, 0], sizes = [12, 18], strides = [1, 1]} : vector<12x65xbf16> to vector<12x18xbf16>
    %354 = vector.extract_strided_slice %352 {offsets = [0, 1], sizes = [12, 18], strides = [1, 1]} : vector<12x65xbf16> to vector<12x18xbf16>
    %355 = vector.extract_strided_slice %352 {offsets = [0, 2], sizes = [12, 18], strides = [1, 1]} : vector<12x65xbf16> to vector<12x18xbf16>
    %356 = vector.extract_strided_slice %352 {offsets = [0, 3], sizes = [12, 18], strides = [1, 1]} : vector<12x65xbf16> to vector<12x18xbf16>
    %357 = vector.extract_strided_slice %352 {offsets = [0, 4], sizes = [12, 18], strides = [1, 1]} : vector<12x65xbf16> to vector<12x18xbf16>
    %358 = vector.extract_strided_slice %352 {offsets = [0, 5], sizes = [12, 18], strides = [1, 1]} : vector<12x65xbf16> to vector<12x18xbf16>
    %359 = vector.extract_strided_slice %352 {offsets = [0, 6], sizes = [12, 18], strides = [1, 1]} : vector<12x65xbf16> to vector<12x18xbf16>
    %360 = vector.extract_strided_slice %352 {offsets = [0, 7], sizes = [12, 18], strides = [1, 1]} : vector<12x65xbf16> to vector<12x18xbf16>
    %361 = vector.extract_strided_slice %352 {offsets = [0, 8], sizes = [12, 18], strides = [1, 1]} : vector<12x65xbf16> to vector<12x18xbf16>
    %362 = vector.extract_strided_slice %352 {offsets = [0, 9], sizes = [12, 18], strides = [1, 1]} : vector<12x65xbf16> to vector<12x18xbf16>
    %363 = vector.extract_strided_slice %352 {offsets = [0, 10], sizes = [12, 18], strides = [1, 1]} : vector<12x65xbf16> to vector<12x18xbf16>
    %364 = vector.extract_strided_slice %352 {offsets = [0, 11], sizes = [12, 18], strides = [1, 1]} : vector<12x65xbf16> to vector<12x18xbf16>
    %365 = vector.extract_strided_slice %352 {offsets = [0, 12], sizes = [12, 18], strides = [1, 1]} : vector<12x65xbf16> to vector<12x18xbf16>
    %366 = vector.extract_strided_slice %352 {offsets = [0, 13], sizes = [12, 18], strides = [1, 1]} : vector<12x65xbf16> to vector<12x18xbf16>
    %367 = vector.extract_strided_slice %352 {offsets = [0, 14], sizes = [12, 18], strides = [1, 1]} : vector<12x65xbf16> to vector<12x18xbf16>
    %368 = vector.extract_strided_slice %352 {offsets = [0, 15], sizes = [12, 18], strides = [1, 1]} : vector<12x65xbf16> to vector<12x18xbf16>
    %369 = vector.extract_strided_slice %352 {offsets = [0, 16], sizes = [12, 18], strides = [1, 1]} : vector<12x65xbf16> to vector<12x18xbf16>
    %370 = vector.extract_strided_slice %352 {offsets = [0, 17], sizes = [12, 18], strides = [1, 1]} : vector<12x65xbf16> to vector<12x18xbf16>
    %371 = vector.extract_strided_slice %352 {offsets = [0, 18], sizes = [12, 18], strides = [1, 1]} : vector<12x65xbf16> to vector<12x18xbf16>
    %372 = vector.extract_strided_slice %352 {offsets = [0, 19], sizes = [12, 18], strides = [1, 1]} : vector<12x65xbf16> to vector<12x18xbf16>
    %373 = vector.extract_strided_slice %352 {offsets = [0, 20], sizes = [12, 18], strides = [1, 1]} : vector<12x65xbf16> to vector<12x18xbf16>
    %374 = vector.extract_strided_slice %352 {offsets = [0, 21], sizes = [12, 18], strides = [1, 1]} : vector<12x65xbf16> to vector<12x18xbf16>
    %375 = vector.extract_strided_slice %352 {offsets = [0, 22], sizes = [12, 18], strides = [1, 1]} : vector<12x65xbf16> to vector<12x18xbf16>
    %376 = vector.extract_strided_slice %352 {offsets = [0, 23], sizes = [12, 18], strides = [1, 1]} : vector<12x65xbf16> to vector<12x18xbf16>
    %377 = vector.extract_strided_slice %352 {offsets = [0, 24], sizes = [12, 18], strides = [1, 1]} : vector<12x65xbf16> to vector<12x18xbf16>
    %378 = vector.extract_strided_slice %352 {offsets = [0, 25], sizes = [12, 18], strides = [1, 1]} : vector<12x65xbf16> to vector<12x18xbf16>
    %379 = vector.extract_strided_slice %352 {offsets = [0, 26], sizes = [12, 18], strides = [1, 1]} : vector<12x65xbf16> to vector<12x18xbf16>
    %380 = vector.extract_strided_slice %352 {offsets = [0, 27], sizes = [12, 18], strides = [1, 1]} : vector<12x65xbf16> to vector<12x18xbf16>
    %381 = vector.extract_strided_slice %352 {offsets = [0, 28], sizes = [12, 18], strides = [1, 1]} : vector<12x65xbf16> to vector<12x18xbf16>
    %382 = vector.extract_strided_slice %352 {offsets = [0, 29], sizes = [12, 18], strides = [1, 1]} : vector<12x65xbf16> to vector<12x18xbf16>
    %383 = vector.extract_strided_slice %352 {offsets = [0, 30], sizes = [12, 18], strides = [1, 1]} : vector<12x65xbf16> to vector<12x18xbf16>
    %384 = vector.extract_strided_slice %352 {offsets = [0, 31], sizes = [12, 18], strides = [1, 1]} : vector<12x65xbf16> to vector<12x18xbf16>
    %385 = vector.extract_strided_slice %352 {offsets = [0, 32], sizes = [12, 18], strides = [1, 1]} : vector<12x65xbf16> to vector<12x18xbf16>
    %386 = vector.extract_strided_slice %352 {offsets = [0, 33], sizes = [12, 18], strides = [1, 1]} : vector<12x65xbf16> to vector<12x18xbf16>
    %387 = vector.extract_strided_slice %352 {offsets = [0, 34], sizes = [12, 18], strides = [1, 1]} : vector<12x65xbf16> to vector<12x18xbf16>
    %388 = vector.extract_strided_slice %352 {offsets = [0, 35], sizes = [12, 18], strides = [1, 1]} : vector<12x65xbf16> to vector<12x18xbf16>
    %389 = vector.extract_strided_slice %352 {offsets = [0, 36], sizes = [12, 18], strides = [1, 1]} : vector<12x65xbf16> to vector<12x18xbf16>
    %390 = vector.extract_strided_slice %352 {offsets = [0, 37], sizes = [12, 18], strides = [1, 1]} : vector<12x65xbf16> to vector<12x18xbf16>
    %391 = vector.extract_strided_slice %352 {offsets = [0, 38], sizes = [12, 18], strides = [1, 1]} : vector<12x65xbf16> to vector<12x18xbf16>
    %392 = vector.extract_strided_slice %352 {offsets = [0, 39], sizes = [12, 18], strides = [1, 1]} : vector<12x65xbf16> to vector<12x18xbf16>
    %393 = vector.extract_strided_slice %352 {offsets = [0, 40], sizes = [12, 18], strides = [1, 1]} : vector<12x65xbf16> to vector<12x18xbf16>
    %394 = vector.extract_strided_slice %352 {offsets = [0, 41], sizes = [12, 18], strides = [1, 1]} : vector<12x65xbf16> to vector<12x18xbf16>
    %395 = vector.extract_strided_slice %352 {offsets = [0, 42], sizes = [12, 18], strides = [1, 1]} : vector<12x65xbf16> to vector<12x18xbf16>
    %396 = vector.extract_strided_slice %352 {offsets = [0, 43], sizes = [12, 18], strides = [1, 1]} : vector<12x65xbf16> to vector<12x18xbf16>
    %397 = vector.extract_strided_slice %352 {offsets = [0, 44], sizes = [12, 18], strides = [1, 1]} : vector<12x65xbf16> to vector<12x18xbf16>
    %398 = vector.extract_strided_slice %352 {offsets = [0, 45], sizes = [12, 18], strides = [1, 1]} : vector<12x65xbf16> to vector<12x18xbf16>
    %399 = vector.extract_strided_slice %352 {offsets = [0, 46], sizes = [12, 18], strides = [1, 1]} : vector<12x65xbf16> to vector<12x18xbf16>
    %400 = vector.extract_strided_slice %352 {offsets = [0, 47], sizes = [12, 18], strides = [1, 1]} : vector<12x65xbf16> to vector<12x18xbf16>
    %401 = tpu.concatenate %353, %354, %355, %356, %357, %358, %359, %360, %361, %362, %363, %364, %365, %366, %367, %368 in 0 : vector<12x18xbf16>, vector<12x18xbf16>, vector<12x18xbf16>, vector<12x18xbf16>, vector<12x18xbf16>, vector<12x18xbf16>, vector<12x18xbf16>, vector<12x18xbf16>, vector<12x18xbf16>, vector<12x18xbf16>, vector<12x18xbf16>, vector<12x18xbf16>, vector<12x18xbf16>, vector<12x18xbf16>, vector<12x18xbf16>, vector<12x18xbf16> -> vector<192x18xbf16>
    %402 = tpu.concatenate %369, %370, %371, %372, %373, %374, %375, %376, %377, %378, %379, %380, %381, %382, %383, %384 in 0 : vector<12x18xbf16>, vector<12x18xbf16>, vector<12x18xbf16>, vector<12x18xbf16>, vector<12x18xbf16>, vector<12x18xbf16>, vector<12x18xbf16>, vector<12x18xbf16>, vector<12x18xbf16>, vector<12x18xbf16>, vector<12x18xbf16>, vector<12x18xbf16>, vector<12x18xbf16>, vector<12x18xbf16>, vector<12x18xbf16>, vector<12x18xbf16> -> vector<192x18xbf16>
    %403 = tpu.concatenate %385, %386, %387, %388, %389, %390, %391, %392, %393, %394, %395, %396, %397, %398, %399, %400 in 0 : vector<12x18xbf16>, vector<12x18xbf16>, vector<12x18xbf16>, vector<12x18xbf16>, vector<12x18xbf16>, vector<12x18xbf16>, vector<12x18xbf16>, vector<12x18xbf16>, vector<12x18xbf16>, vector<12x18xbf16>, vector<12x18xbf16>, vector<12x18xbf16>, vector<12x18xbf16>, vector<12x18xbf16>, vector<12x18xbf16>, vector<12x18xbf16> -> vector<192x18xbf16>
    %404 = tpu.concatenate %401, %402, %403 in 0 : vector<192x18xbf16>, vector<192x18xbf16>, vector<192x18xbf16> -> vector<576x18xbf16>
    %cst_119 = arith.constant dense<0.000000e+00> : vector<12x18xf32>
    %405 = tpu.matmul %329, %404, %cst_119 {dimension_numbers = #tpu.dot_dimension_numbers<[1], [0], [0], [1], [0, 0, 1, 1], [], []>} : vector<12x576xbf16>, vector<576x18xbf16>, vector<12x18xf32> -> vector<12x18xf32>
    %406 = arith.truncf %405 : vector<12x18xf32> to vector<12x18xbf16>
    %407 = vector.extract_strided_slice %406 {offsets = [0, 0], sizes = [12, 17], strides = [1, 1]} : vector<12x18xbf16> to vector<12x17xbf16>
    %408 = vector.extract_strided_slice %0 {offsets = [0, 0], sizes = [17, 9], strides = [1, 1]} : vector<255x128xbf16> to vector<17x9xbf16>
    %cst_120 = arith.constant dense<0.000000e+00> : vector<12x9xf32>
    %409 = tpu.matmul %407, %408, %cst_120 {dimension_numbers = #tpu.dot_dimension_numbers<[1], [0], [0], [1], [0, 0, 1, 1], [], []>} : vector<12x17xbf16>, vector<17x9xbf16>, vector<12x9xf32> -> vector<12x9xf32>
    %410 = vector.broadcast %328 : vector<12x1xf32> to vector<12x9xf32>
    %411 = arith.addf %409, %410 : vector<12x9xf32>
    %cst_121 = arith.constant 3.000000e-01 : f32
    %412 = vector.broadcast %cst_121 : f32 to vector<12x9xf32>
    %413 = arith.mulf %412, %411 : vector<12x9xf32>
    %414 = arith.maximumf %411, %413 : vector<12x9xf32>
    %c0_122 = arith.constant 0 : index
    %c0_123 = arith.constant 0 : index
    %415 = vector.load %arg8[%c0_122, %c0_123] : memref<72x12xf32, #tpu.memory_space<vmem>>, vector<72x12xf32>
    %cst_124 = arith.constant dense<0.000000e+00> : vector<72x9xf32>
    %416 = tpu.matmul %415, %414, %cst_124 {dimension_numbers = #tpu.dot_dimension_numbers<[1], [0], [0], [1], [0, 0, 1, 1], [], []>} : vector<72x12xf32>, vector<12x9xf32>, vector<72x9xf32> -> vector<72x9xf32>
    %c0_125 = arith.constant 0 : index
    %c0_126 = arith.constant 0 : index
    %417 = vector.load %arg9[%c0_125, %c0_126] : memref<72x1xf32, #tpu.memory_space<vmem>>, vector<72x1xf32>
    %418 = vector.broadcast %417 : vector<72x1xf32> to vector<72x9xf32>
    %419 = arith.addf %416, %418 : vector<72x9xf32>
    %420 = vector.extract_strided_slice %419 {offsets = [0, 0], sizes = [36, 9], strides = [1, 1]} : vector<72x9xf32> to vector<36x9xf32>
    %421 = vector.extract_strided_slice %419 {offsets = [36, 0], sizes = [36, 9], strides = [1, 1]} : vector<72x9xf32> to vector<36x9xf32>
    %422 = vector.extract_strided_slice %421 {offsets = [0, 8], sizes = [36, 1], strides = [1, 1]} : vector<36x9xf32> to vector<36x1xf32>
    %423 = vector.extract_strided_slice %421 {offsets = [0, 7], sizes = [36, 1], strides = [1, 1]} : vector<36x9xf32> to vector<36x1xf32>
    %424 = vector.extract_strided_slice %421 {offsets = [0, 6], sizes = [36, 1], strides = [1, 1]} : vector<36x9xf32> to vector<36x1xf32>
    %425 = vector.extract_strided_slice %421 {offsets = [0, 5], sizes = [36, 1], strides = [1, 1]} : vector<36x9xf32> to vector<36x1xf32>
    %426 = vector.extract_strided_slice %421 {offsets = [0, 4], sizes = [36, 1], strides = [1, 1]} : vector<36x9xf32> to vector<36x1xf32>
    %427 = vector.extract_strided_slice %421 {offsets = [0, 3], sizes = [36, 1], strides = [1, 1]} : vector<36x9xf32> to vector<36x1xf32>
    %428 = vector.extract_strided_slice %421 {offsets = [0, 2], sizes = [36, 1], strides = [1, 1]} : vector<36x9xf32> to vector<36x1xf32>
    %429 = vector.extract_strided_slice %421 {offsets = [0, 1], sizes = [36, 1], strides = [1, 1]} : vector<36x9xf32> to vector<36x1xf32>
    %430 = vector.extract_strided_slice %421 {offsets = [0, 0], sizes = [36, 1], strides = [1, 1]} : vector<36x9xf32> to vector<36x1xf32>
    %431 = tpu.concatenate %422, %423, %424, %425, %426, %427, %428, %429, %430 in 1 : vector<36x1xf32>, vector<36x1xf32>, vector<36x1xf32>, vector<36x1xf32>, vector<36x1xf32>, vector<36x1xf32>, vector<36x1xf32>, vector<36x1xf32>, vector<36x1xf32> -> vector<36x9xf32>
    %432 = vector.extract_strided_slice %420 {offsets = [0, 0], sizes = [12, 9], strides = [1, 1]} : vector<36x9xf32> to vector<12x9xf32>
    %433 = vector.extract_strided_slice %431 {offsets = [0, 0], sizes = [12, 9], strides = [1, 1]} : vector<36x9xf32> to vector<12x9xf32>
    %434 = vector.extract_strided_slice %420 {offsets = [12, 0], sizes = [12, 9], strides = [1, 1]} : vector<36x9xf32> to vector<12x9xf32>
    %435 = vector.extract_strided_slice %431 {offsets = [12, 0], sizes = [12, 9], strides = [1, 1]} : vector<36x9xf32> to vector<12x9xf32>
    %436 = vector.extract_strided_slice %420 {offsets = [24, 0], sizes = [12, 9], strides = [1, 1]} : vector<36x9xf32> to vector<12x9xf32>
    %437 = vector.extract_strided_slice %431 {offsets = [24, 0], sizes = [12, 9], strides = [1, 1]} : vector<36x9xf32> to vector<12x9xf32>
    %438 = tpu.concatenate %432, %433, %434, %435, %436, %437 in 0 : vector<12x9xf32>, vector<12x9xf32>, vector<12x9xf32>, vector<12x9xf32>, vector<12x9xf32>, vector<12x9xf32> -> vector<72x9xf32>
    %c0_127 = arith.constant 0 : index
    %c0_128 = arith.constant 0 : index
    %439 = vector.load %arg10[%c0_127, %c0_128] : memref<72x24xf32, #tpu.memory_space<vmem>>, vector<72x24xf32>
    %c0_129 = arith.constant 0 : index
    %c0_130 = arith.constant 0 : index
    %440 = vector.load %arg11[%c0_129, %c0_130] : memref<72x1xf32, #tpu.memory_space<vmem>>, vector<72x1xf32>
    %cst_131 = arith.constant 0.000000e+00 : f32
    %441 = vector.broadcast %cst_131 : f32 to vector<24x1xf32>
    %cst_132 = arith.constant dense<0.000000e+00> : vector<72x1xf32>
    %442 = tpu.matmul %439, %441, %cst_132 {dimension_numbers = #tpu.dot_dimension_numbers<[1], [0], [0], [1], [0, 0, 1, 1], [], []>} : vector<72x24xf32>, vector<24x1xf32>, vector<72x1xf32> -> vector<72x1xf32>
    %443 = arith.addf %442, %440 : vector<72x1xf32>
    %444 = vector.extract_strided_slice %438 {offsets = [0, 0], sizes = [72, 1], strides = [1, 1]} : vector<72x9xf32> to vector<72x1xf32>
    %445 = vector.extract_strided_slice %444 {offsets = [0, 0], sizes = [24, 1], strides = [1, 1]} : vector<72x1xf32> to vector<24x1xf32>
    %446 = vector.extract_strided_slice %443 {offsets = [0, 0], sizes = [24, 1], strides = [1, 1]} : vector<72x1xf32> to vector<24x1xf32>
    %447 = arith.addf %445, %446 : vector<24x1xf32>
    %448 = arith.negf %447 : vector<24x1xf32>
    %449 = math.exp %448 : vector<24x1xf32>
    %cst_133 = arith.constant 1.000000e+00 : f32
    %450 = vector.broadcast %cst_133 : f32 to vector<24x1xf32>
    %451 = arith.addf %450, %449 : vector<24x1xf32>
    %452 = arith.divf %450, %451 : vector<24x1xf32>
    %453 = vector.extract_strided_slice %444 {offsets = [24, 0], sizes = [24, 1], strides = [1, 1]} : vector<72x1xf32> to vector<24x1xf32>
    %454 = vector.extract_strided_slice %443 {offsets = [24, 0], sizes = [24, 1], strides = [1, 1]} : vector<72x1xf32> to vector<24x1xf32>
    %455 = arith.addf %453, %454 : vector<24x1xf32>
    %456 = arith.negf %455 : vector<24x1xf32>
    %457 = math.exp %456 : vector<24x1xf32>
    %cst_134 = arith.constant 1.000000e+00 : f32
    %458 = vector.broadcast %cst_134 : f32 to vector<24x1xf32>
    %459 = arith.addf %458, %457 : vector<24x1xf32>
    %460 = arith.divf %458, %459 : vector<24x1xf32>
    %461 = vector.extract_strided_slice %444 {offsets = [48, 0], sizes = [24, 1], strides = [1, 1]} : vector<72x1xf32> to vector<24x1xf32>
    %462 = vector.extract_strided_slice %443 {offsets = [48, 0], sizes = [24, 1], strides = [1, 1]} : vector<72x1xf32> to vector<24x1xf32>
    %463 = arith.mulf %452, %462 : vector<24x1xf32>
    %464 = arith.addf %461, %463 : vector<24x1xf32>
    %465 = math.tanh %464 : vector<24x1xf32>
    %cst_135 = arith.constant 1.000000e+00 : f32
    %466 = vector.broadcast %cst_135 : f32 to vector<24x1xf32>
    %467 = arith.subf %466, %460 : vector<24x1xf32>
    %468 = arith.mulf %467, %465 : vector<24x1xf32>
    %469 = arith.mulf %460, %441 : vector<24x1xf32>
    %470 = arith.addf %468, %469 : vector<24x1xf32>
    %471 = vector.extract_strided_slice %470 {offsets = [0, 0], sizes = [12, 1], strides = [1, 1]} : vector<24x1xf32> to vector<12x1xf32>
    %472 = vector.extract_strided_slice %470 {offsets = [12, 0], sizes = [12, 1], strides = [1, 1]} : vector<24x1xf32> to vector<12x1xf32>
    %cst_136 = arith.constant dense<0.000000e+00> : vector<72x1xf32>
    %473 = tpu.matmul %439, %470, %cst_136 {dimension_numbers = #tpu.dot_dimension_numbers<[1], [0], [0], [1], [0, 0, 1, 1], [], []>} : vector<72x24xf32>, vector<24x1xf32>, vector<72x1xf32> -> vector<72x1xf32>
    %474 = arith.addf %473, %440 : vector<72x1xf32>
    %475 = vector.extract_strided_slice %438 {offsets = [0, 1], sizes = [72, 1], strides = [1, 1]} : vector<72x9xf32> to vector<72x1xf32>
    %476 = vector.extract_strided_slice %475 {offsets = [0, 0], sizes = [24, 1], strides = [1, 1]} : vector<72x1xf32> to vector<24x1xf32>
    %477 = vector.extract_strided_slice %474 {offsets = [0, 0], sizes = [24, 1], strides = [1, 1]} : vector<72x1xf32> to vector<24x1xf32>
    %478 = arith.addf %476, %477 : vector<24x1xf32>
    %479 = arith.negf %478 : vector<24x1xf32>
    %480 = math.exp %479 : vector<24x1xf32>
    %cst_137 = arith.constant 1.000000e+00 : f32
    %481 = vector.broadcast %cst_137 : f32 to vector<24x1xf32>
    %482 = arith.addf %481, %480 : vector<24x1xf32>
    %483 = arith.divf %481, %482 : vector<24x1xf32>
    %484 = vector.extract_strided_slice %475 {offsets = [24, 0], sizes = [24, 1], strides = [1, 1]} : vector<72x1xf32> to vector<24x1xf32>
    %485 = vector.extract_strided_slice %474 {offsets = [24, 0], sizes = [24, 1], strides = [1, 1]} : vector<72x1xf32> to vector<24x1xf32>
    %486 = arith.addf %484, %485 : vector<24x1xf32>
    %487 = arith.negf %486 : vector<24x1xf32>
    %488 = math.exp %487 : vector<24x1xf32>
    %cst_138 = arith.constant 1.000000e+00 : f32
    %489 = vector.broadcast %cst_138 : f32 to vector<24x1xf32>
    %490 = arith.addf %489, %488 : vector<24x1xf32>
    %491 = arith.divf %489, %490 : vector<24x1xf32>
    %492 = vector.extract_strided_slice %475 {offsets = [48, 0], sizes = [24, 1], strides = [1, 1]} : vector<72x1xf32> to vector<24x1xf32>
    %493 = vector.extract_strided_slice %474 {offsets = [48, 0], sizes = [24, 1], strides = [1, 1]} : vector<72x1xf32> to vector<24x1xf32>
    %494 = arith.mulf %483, %493 : vector<24x1xf32>
    %495 = arith.addf %492, %494 : vector<24x1xf32>
    %496 = math.tanh %495 : vector<24x1xf32>
    %cst_139 = arith.constant 1.000000e+00 : f32
    %497 = vector.broadcast %cst_139 : f32 to vector<24x1xf32>
    %498 = arith.subf %497, %491 : vector<24x1xf32>
    %499 = arith.mulf %498, %496 : vector<24x1xf32>
    %500 = arith.mulf %491, %470 : vector<24x1xf32>
    %501 = arith.addf %499, %500 : vector<24x1xf32>
    %502 = vector.extract_strided_slice %501 {offsets = [0, 0], sizes = [12, 1], strides = [1, 1]} : vector<24x1xf32> to vector<12x1xf32>
    %503 = vector.extract_strided_slice %501 {offsets = [12, 0], sizes = [12, 1], strides = [1, 1]} : vector<24x1xf32> to vector<12x1xf32>
    %cst_140 = arith.constant dense<0.000000e+00> : vector<72x1xf32>
    %504 = tpu.matmul %439, %501, %cst_140 {dimension_numbers = #tpu.dot_dimension_numbers<[1], [0], [0], [1], [0, 0, 1, 1], [], []>} : vector<72x24xf32>, vector<24x1xf32>, vector<72x1xf32> -> vector<72x1xf32>
    %505 = arith.addf %504, %440 : vector<72x1xf32>
    %506 = vector.extract_strided_slice %438 {offsets = [0, 2], sizes = [72, 1], strides = [1, 1]} : vector<72x9xf32> to vector<72x1xf32>
    %507 = vector.extract_strided_slice %506 {offsets = [0, 0], sizes = [24, 1], strides = [1, 1]} : vector<72x1xf32> to vector<24x1xf32>
    %508 = vector.extract_strided_slice %505 {offsets = [0, 0], sizes = [24, 1], strides = [1, 1]} : vector<72x1xf32> to vector<24x1xf32>
    %509 = arith.addf %507, %508 : vector<24x1xf32>
    %510 = arith.negf %509 : vector<24x1xf32>
    %511 = math.exp %510 : vector<24x1xf32>
    %cst_141 = arith.constant 1.000000e+00 : f32
    %512 = vector.broadcast %cst_141 : f32 to vector<24x1xf32>
    %513 = arith.addf %512, %511 : vector<24x1xf32>
    %514 = arith.divf %512, %513 : vector<24x1xf32>
    %515 = vector.extract_strided_slice %506 {offsets = [24, 0], sizes = [24, 1], strides = [1, 1]} : vector<72x1xf32> to vector<24x1xf32>
    %516 = vector.extract_strided_slice %505 {offsets = [24, 0], sizes = [24, 1], strides = [1, 1]} : vector<72x1xf32> to vector<24x1xf32>
    %517 = arith.addf %515, %516 : vector<24x1xf32>
    %518 = arith.negf %517 : vector<24x1xf32>
    %519 = math.exp %518 : vector<24x1xf32>
    %cst_142 = arith.constant 1.000000e+00 : f32
    %520 = vector.broadcast %cst_142 : f32 to vector<24x1xf32>
    %521 = arith.addf %520, %519 : vector<24x1xf32>
    %522 = arith.divf %520, %521 : vector<24x1xf32>
    %523 = vector.extract_strided_slice %506 {offsets = [48, 0], sizes = [24, 1], strides = [1, 1]} : vector<72x1xf32> to vector<24x1xf32>
    %524 = vector.extract_strided_slice %505 {offsets = [48, 0], sizes = [24, 1], strides = [1, 1]} : vector<72x1xf32> to vector<24x1xf32>
    %525 = arith.mulf %514, %524 : vector<24x1xf32>
    %526 = arith.addf %523, %525 : vector<24x1xf32>
    %527 = math.tanh %526 : vector<24x1xf32>
    %cst_143 = arith.constant 1.000000e+00 : f32
    %528 = vector.broadcast %cst_143 : f32 to vector<24x1xf32>
    %529 = arith.subf %528, %522 : vector<24x1xf32>
    %530 = arith.mulf %529, %527 : vector<24x1xf32>
    %531 = arith.mulf %522, %501 : vector<24x1xf32>
    %532 = arith.addf %530, %531 : vector<24x1xf32>
    %533 = vector.extract_strided_slice %532 {offsets = [0, 0], sizes = [12, 1], strides = [1, 1]} : vector<24x1xf32> to vector<12x1xf32>
    %534 = vector.extract_strided_slice %532 {offsets = [12, 0], sizes = [12, 1], strides = [1, 1]} : vector<24x1xf32> to vector<12x1xf32>
    %cst_144 = arith.constant dense<0.000000e+00> : vector<72x1xf32>
    %535 = tpu.matmul %439, %532, %cst_144 {dimension_numbers = #tpu.dot_dimension_numbers<[1], [0], [0], [1], [0, 0, 1, 1], [], []>} : vector<72x24xf32>, vector<24x1xf32>, vector<72x1xf32> -> vector<72x1xf32>
    %536 = arith.addf %535, %440 : vector<72x1xf32>
    %537 = vector.extract_strided_slice %438 {offsets = [0, 3], sizes = [72, 1], strides = [1, 1]} : vector<72x9xf32> to vector<72x1xf32>
    %538 = vector.extract_strided_slice %537 {offsets = [0, 0], sizes = [24, 1], strides = [1, 1]} : vector<72x1xf32> to vector<24x1xf32>
    %539 = vector.extract_strided_slice %536 {offsets = [0, 0], sizes = [24, 1], strides = [1, 1]} : vector<72x1xf32> to vector<24x1xf32>
    %540 = arith.addf %538, %539 : vector<24x1xf32>
    %541 = arith.negf %540 : vector<24x1xf32>
    %542 = math.exp %541 : vector<24x1xf32>
    %cst_145 = arith.constant 1.000000e+00 : f32
    %543 = vector.broadcast %cst_145 : f32 to vector<24x1xf32>
    %544 = arith.addf %543, %542 : vector<24x1xf32>
    %545 = arith.divf %543, %544 : vector<24x1xf32>
    %546 = vector.extract_strided_slice %537 {offsets = [24, 0], sizes = [24, 1], strides = [1, 1]} : vector<72x1xf32> to vector<24x1xf32>
    %547 = vector.extract_strided_slice %536 {offsets = [24, 0], sizes = [24, 1], strides = [1, 1]} : vector<72x1xf32> to vector<24x1xf32>
    %548 = arith.addf %546, %547 : vector<24x1xf32>
    %549 = arith.negf %548 : vector<24x1xf32>
    %550 = math.exp %549 : vector<24x1xf32>
    %cst_146 = arith.constant 1.000000e+00 : f32
    %551 = vector.broadcast %cst_146 : f32 to vector<24x1xf32>
    %552 = arith.addf %551, %550 : vector<24x1xf32>
    %553 = arith.divf %551, %552 : vector<24x1xf32>
    %554 = vector.extract_strided_slice %537 {offsets = [48, 0], sizes = [24, 1], strides = [1, 1]} : vector<72x1xf32> to vector<24x1xf32>
    %555 = vector.extract_strided_slice %536 {offsets = [48, 0], sizes = [24, 1], strides = [1, 1]} : vector<72x1xf32> to vector<24x1xf32>
    %556 = arith.mulf %545, %555 : vector<24x1xf32>
    %557 = arith.addf %554, %556 : vector<24x1xf32>
    %558 = math.tanh %557 : vector<24x1xf32>
    %cst_147 = arith.constant 1.000000e+00 : f32
    %559 = vector.broadcast %cst_147 : f32 to vector<24x1xf32>
    %560 = arith.subf %559, %553 : vector<24x1xf32>
    %561 = arith.mulf %560, %558 : vector<24x1xf32>
    %562 = arith.mulf %553, %532 : vector<24x1xf32>
    %563 = arith.addf %561, %562 : vector<24x1xf32>
    %564 = vector.extract_strided_slice %563 {offsets = [0, 0], sizes = [12, 1], strides = [1, 1]} : vector<24x1xf32> to vector<12x1xf32>
    %565 = vector.extract_strided_slice %563 {offsets = [12, 0], sizes = [12, 1], strides = [1, 1]} : vector<24x1xf32> to vector<12x1xf32>
    %cst_148 = arith.constant dense<0.000000e+00> : vector<72x1xf32>
    %566 = tpu.matmul %439, %563, %cst_148 {dimension_numbers = #tpu.dot_dimension_numbers<[1], [0], [0], [1], [0, 0, 1, 1], [], []>} : vector<72x24xf32>, vector<24x1xf32>, vector<72x1xf32> -> vector<72x1xf32>
    %567 = arith.addf %566, %440 : vector<72x1xf32>
    %568 = vector.extract_strided_slice %438 {offsets = [0, 4], sizes = [72, 1], strides = [1, 1]} : vector<72x9xf32> to vector<72x1xf32>
    %569 = vector.extract_strided_slice %568 {offsets = [0, 0], sizes = [24, 1], strides = [1, 1]} : vector<72x1xf32> to vector<24x1xf32>
    %570 = vector.extract_strided_slice %567 {offsets = [0, 0], sizes = [24, 1], strides = [1, 1]} : vector<72x1xf32> to vector<24x1xf32>
    %571 = arith.addf %569, %570 : vector<24x1xf32>
    %572 = arith.negf %571 : vector<24x1xf32>
    %573 = math.exp %572 : vector<24x1xf32>
    %cst_149 = arith.constant 1.000000e+00 : f32
    %574 = vector.broadcast %cst_149 : f32 to vector<24x1xf32>
    %575 = arith.addf %574, %573 : vector<24x1xf32>
    %576 = arith.divf %574, %575 : vector<24x1xf32>
    %577 = vector.extract_strided_slice %568 {offsets = [24, 0], sizes = [24, 1], strides = [1, 1]} : vector<72x1xf32> to vector<24x1xf32>
    %578 = vector.extract_strided_slice %567 {offsets = [24, 0], sizes = [24, 1], strides = [1, 1]} : vector<72x1xf32> to vector<24x1xf32>
    %579 = arith.addf %577, %578 : vector<24x1xf32>
    %580 = arith.negf %579 : vector<24x1xf32>
    %581 = math.exp %580 : vector<24x1xf32>
    %cst_150 = arith.constant 1.000000e+00 : f32
    %582 = vector.broadcast %cst_150 : f32 to vector<24x1xf32>
    %583 = arith.addf %582, %581 : vector<24x1xf32>
    %584 = arith.divf %582, %583 : vector<24x1xf32>
    %585 = vector.extract_strided_slice %568 {offsets = [48, 0], sizes = [24, 1], strides = [1, 1]} : vector<72x1xf32> to vector<24x1xf32>
    %586 = vector.extract_strided_slice %567 {offsets = [48, 0], sizes = [24, 1], strides = [1, 1]} : vector<72x1xf32> to vector<24x1xf32>
    %587 = arith.mulf %576, %586 : vector<24x1xf32>
    %588 = arith.addf %585, %587 : vector<24x1xf32>
    %589 = math.tanh %588 : vector<24x1xf32>
    %cst_151 = arith.constant 1.000000e+00 : f32
    %590 = vector.broadcast %cst_151 : f32 to vector<24x1xf32>
    %591 = arith.subf %590, %584 : vector<24x1xf32>
    %592 = arith.mulf %591, %589 : vector<24x1xf32>
    %593 = arith.mulf %584, %563 : vector<24x1xf32>
    %594 = arith.addf %592, %593 : vector<24x1xf32>
    %595 = vector.extract_strided_slice %594 {offsets = [0, 0], sizes = [12, 1], strides = [1, 1]} : vector<24x1xf32> to vector<12x1xf32>
    %596 = vector.extract_strided_slice %594 {offsets = [12, 0], sizes = [12, 1], strides = [1, 1]} : vector<24x1xf32> to vector<12x1xf32>
    %cst_152 = arith.constant dense<0.000000e+00> : vector<72x1xf32>
    %597 = tpu.matmul %439, %594, %cst_152 {dimension_numbers = #tpu.dot_dimension_numbers<[1], [0], [0], [1], [0, 0, 1, 1], [], []>} : vector<72x24xf32>, vector<24x1xf32>, vector<72x1xf32> -> vector<72x1xf32>
    %598 = arith.addf %597, %440 : vector<72x1xf32>
    %599 = vector.extract_strided_slice %438 {offsets = [0, 5], sizes = [72, 1], strides = [1, 1]} : vector<72x9xf32> to vector<72x1xf32>
    %600 = vector.extract_strided_slice %599 {offsets = [0, 0], sizes = [24, 1], strides = [1, 1]} : vector<72x1xf32> to vector<24x1xf32>
    %601 = vector.extract_strided_slice %598 {offsets = [0, 0], sizes = [24, 1], strides = [1, 1]} : vector<72x1xf32> to vector<24x1xf32>
    %602 = arith.addf %600, %601 : vector<24x1xf32>
    %603 = arith.negf %602 : vector<24x1xf32>
    %604 = math.exp %603 : vector<24x1xf32>
    %cst_153 = arith.constant 1.000000e+00 : f32
    %605 = vector.broadcast %cst_153 : f32 to vector<24x1xf32>
    %606 = arith.addf %605, %604 : vector<24x1xf32>
    %607 = arith.divf %605, %606 : vector<24x1xf32>
    %608 = vector.extract_strided_slice %599 {offsets = [24, 0], sizes = [24, 1], strides = [1, 1]} : vector<72x1xf32> to vector<24x1xf32>
    %609 = vector.extract_strided_slice %598 {offsets = [24, 0], sizes = [24, 1], strides = [1, 1]} : vector<72x1xf32> to vector<24x1xf32>
    %610 = arith.addf %608, %609 : vector<24x1xf32>
    %611 = arith.negf %610 : vector<24x1xf32>
    %612 = math.exp %611 : vector<24x1xf32>
    %cst_154 = arith.constant 1.000000e+00 : f32
    %613 = vector.broadcast %cst_154 : f32 to vector<24x1xf32>
    %614 = arith.addf %613, %612 : vector<24x1xf32>
    %615 = arith.divf %613, %614 : vector<24x1xf32>
    %616 = vector.extract_strided_slice %599 {offsets = [48, 0], sizes = [24, 1], strides = [1, 1]} : vector<72x1xf32> to vector<24x1xf32>
    %617 = vector.extract_strided_slice %598 {offsets = [48, 0], sizes = [24, 1], strides = [1, 1]} : vector<72x1xf32> to vector<24x1xf32>
    %618 = arith.mulf %607, %617 : vector<24x1xf32>
    %619 = arith.addf %616, %618 : vector<24x1xf32>
    %620 = math.tanh %619 : vector<24x1xf32>
    %cst_155 = arith.constant 1.000000e+00 : f32
    %621 = vector.broadcast %cst_155 : f32 to vector<24x1xf32>
    %622 = arith.subf %621, %615 : vector<24x1xf32>
    %623 = arith.mulf %622, %620 : vector<24x1xf32>
    %624 = arith.mulf %615, %594 : vector<24x1xf32>
    %625 = arith.addf %623, %624 : vector<24x1xf32>
    %626 = vector.extract_strided_slice %625 {offsets = [0, 0], sizes = [12, 1], strides = [1, 1]} : vector<24x1xf32> to vector<12x1xf32>
    %627 = vector.extract_strided_slice %625 {offsets = [12, 0], sizes = [12, 1], strides = [1, 1]} : vector<24x1xf32> to vector<12x1xf32>
    %cst_156 = arith.constant dense<0.000000e+00> : vector<72x1xf32>
    %628 = tpu.matmul %439, %625, %cst_156 {dimension_numbers = #tpu.dot_dimension_numbers<[1], [0], [0], [1], [0, 0, 1, 1], [], []>} : vector<72x24xf32>, vector<24x1xf32>, vector<72x1xf32> -> vector<72x1xf32>
    %629 = arith.addf %628, %440 : vector<72x1xf32>
    %630 = vector.extract_strided_slice %438 {offsets = [0, 6], sizes = [72, 1], strides = [1, 1]} : vector<72x9xf32> to vector<72x1xf32>
    %631 = vector.extract_strided_slice %630 {offsets = [0, 0], sizes = [24, 1], strides = [1, 1]} : vector<72x1xf32> to vector<24x1xf32>
    %632 = vector.extract_strided_slice %629 {offsets = [0, 0], sizes = [24, 1], strides = [1, 1]} : vector<72x1xf32> to vector<24x1xf32>
    %633 = arith.addf %631, %632 : vector<24x1xf32>
    %634 = arith.negf %633 : vector<24x1xf32>
    %635 = math.exp %634 : vector<24x1xf32>
    %cst_157 = arith.constant 1.000000e+00 : f32
    %636 = vector.broadcast %cst_157 : f32 to vector<24x1xf32>
    %637 = arith.addf %636, %635 : vector<24x1xf32>
    %638 = arith.divf %636, %637 : vector<24x1xf32>
    %639 = vector.extract_strided_slice %630 {offsets = [24, 0], sizes = [24, 1], strides = [1, 1]} : vector<72x1xf32> to vector<24x1xf32>
    %640 = vector.extract_strided_slice %629 {offsets = [24, 0], sizes = [24, 1], strides = [1, 1]} : vector<72x1xf32> to vector<24x1xf32>
    %641 = arith.addf %639, %640 : vector<24x1xf32>
    %642 = arith.negf %641 : vector<24x1xf32>
    %643 = math.exp %642 : vector<24x1xf32>
    %cst_158 = arith.constant 1.000000e+00 : f32
    %644 = vector.broadcast %cst_158 : f32 to vector<24x1xf32>
    %645 = arith.addf %644, %643 : vector<24x1xf32>
    %646 = arith.divf %644, %645 : vector<24x1xf32>
    %647 = vector.extract_strided_slice %630 {offsets = [48, 0], sizes = [24, 1], strides = [1, 1]} : vector<72x1xf32> to vector<24x1xf32>
    %648 = vector.extract_strided_slice %629 {offsets = [48, 0], sizes = [24, 1], strides = [1, 1]} : vector<72x1xf32> to vector<24x1xf32>
    %649 = arith.mulf %638, %648 : vector<24x1xf32>
    %650 = arith.addf %647, %649 : vector<24x1xf32>
    %651 = math.tanh %650 : vector<24x1xf32>
    %cst_159 = arith.constant 1.000000e+00 : f32
    %652 = vector.broadcast %cst_159 : f32 to vector<24x1xf32>
    %653 = arith.subf %652, %646 : vector<24x1xf32>
    %654 = arith.mulf %653, %651 : vector<24x1xf32>
    %655 = arith.mulf %646, %625 : vector<24x1xf32>
    %656 = arith.addf %654, %655 : vector<24x1xf32>
    %657 = vector.extract_strided_slice %656 {offsets = [0, 0], sizes = [12, 1], strides = [1, 1]} : vector<24x1xf32> to vector<12x1xf32>
    %658 = vector.extract_strided_slice %656 {offsets = [12, 0], sizes = [12, 1], strides = [1, 1]} : vector<24x1xf32> to vector<12x1xf32>
    %cst_160 = arith.constant dense<0.000000e+00> : vector<72x1xf32>
    %659 = tpu.matmul %439, %656, %cst_160 {dimension_numbers = #tpu.dot_dimension_numbers<[1], [0], [0], [1], [0, 0, 1, 1], [], []>} : vector<72x24xf32>, vector<24x1xf32>, vector<72x1xf32> -> vector<72x1xf32>
    %660 = arith.addf %659, %440 : vector<72x1xf32>
    %661 = vector.extract_strided_slice %438 {offsets = [0, 7], sizes = [72, 1], strides = [1, 1]} : vector<72x9xf32> to vector<72x1xf32>
    %662 = vector.extract_strided_slice %661 {offsets = [0, 0], sizes = [24, 1], strides = [1, 1]} : vector<72x1xf32> to vector<24x1xf32>
    %663 = vector.extract_strided_slice %660 {offsets = [0, 0], sizes = [24, 1], strides = [1, 1]} : vector<72x1xf32> to vector<24x1xf32>
    %664 = arith.addf %662, %663 : vector<24x1xf32>
    %665 = arith.negf %664 : vector<24x1xf32>
    %666 = math.exp %665 : vector<24x1xf32>
    %cst_161 = arith.constant 1.000000e+00 : f32
    %667 = vector.broadcast %cst_161 : f32 to vector<24x1xf32>
    %668 = arith.addf %667, %666 : vector<24x1xf32>
    %669 = arith.divf %667, %668 : vector<24x1xf32>
    %670 = vector.extract_strided_slice %661 {offsets = [24, 0], sizes = [24, 1], strides = [1, 1]} : vector<72x1xf32> to vector<24x1xf32>
    %671 = vector.extract_strided_slice %660 {offsets = [24, 0], sizes = [24, 1], strides = [1, 1]} : vector<72x1xf32> to vector<24x1xf32>
    %672 = arith.addf %670, %671 : vector<24x1xf32>
    %673 = arith.negf %672 : vector<24x1xf32>
    %674 = math.exp %673 : vector<24x1xf32>
    %cst_162 = arith.constant 1.000000e+00 : f32
    %675 = vector.broadcast %cst_162 : f32 to vector<24x1xf32>
    %676 = arith.addf %675, %674 : vector<24x1xf32>
    %677 = arith.divf %675, %676 : vector<24x1xf32>
    %678 = vector.extract_strided_slice %661 {offsets = [48, 0], sizes = [24, 1], strides = [1, 1]} : vector<72x1xf32> to vector<24x1xf32>
    %679 = vector.extract_strided_slice %660 {offsets = [48, 0], sizes = [24, 1], strides = [1, 1]} : vector<72x1xf32> to vector<24x1xf32>
    %680 = arith.mulf %669, %679 : vector<24x1xf32>
    %681 = arith.addf %678, %680 : vector<24x1xf32>
    %682 = math.tanh %681 : vector<24x1xf32>
    %cst_163 = arith.constant 1.000000e+00 : f32
    %683 = vector.broadcast %cst_163 : f32 to vector<24x1xf32>
    %684 = arith.subf %683, %677 : vector<24x1xf32>
    %685 = arith.mulf %684, %682 : vector<24x1xf32>
    %686 = arith.mulf %677, %656 : vector<24x1xf32>
    %687 = arith.addf %685, %686 : vector<24x1xf32>
    %688 = vector.extract_strided_slice %687 {offsets = [0, 0], sizes = [12, 1], strides = [1, 1]} : vector<24x1xf32> to vector<12x1xf32>
    %689 = vector.extract_strided_slice %687 {offsets = [12, 0], sizes = [12, 1], strides = [1, 1]} : vector<24x1xf32> to vector<12x1xf32>
    %cst_164 = arith.constant dense<0.000000e+00> : vector<72x1xf32>
    %690 = tpu.matmul %439, %687, %cst_164 {dimension_numbers = #tpu.dot_dimension_numbers<[1], [0], [0], [1], [0, 0, 1, 1], [], []>} : vector<72x24xf32>, vector<24x1xf32>, vector<72x1xf32> -> vector<72x1xf32>
    %691 = arith.addf %690, %440 : vector<72x1xf32>
    %692 = vector.extract_strided_slice %438 {offsets = [0, 8], sizes = [72, 1], strides = [1, 1]} : vector<72x9xf32> to vector<72x1xf32>
    %693 = vector.extract_strided_slice %692 {offsets = [0, 0], sizes = [24, 1], strides = [1, 1]} : vector<72x1xf32> to vector<24x1xf32>
    %694 = vector.extract_strided_slice %691 {offsets = [0, 0], sizes = [24, 1], strides = [1, 1]} : vector<72x1xf32> to vector<24x1xf32>
    %695 = arith.addf %693, %694 : vector<24x1xf32>
    %696 = arith.negf %695 : vector<24x1xf32>
    %697 = math.exp %696 : vector<24x1xf32>
    %cst_165 = arith.constant 1.000000e+00 : f32
    %698 = vector.broadcast %cst_165 : f32 to vector<24x1xf32>
    %699 = arith.addf %698, %697 : vector<24x1xf32>
    %700 = arith.divf %698, %699 : vector<24x1xf32>
    %701 = vector.extract_strided_slice %692 {offsets = [24, 0], sizes = [24, 1], strides = [1, 1]} : vector<72x1xf32> to vector<24x1xf32>
    %702 = vector.extract_strided_slice %691 {offsets = [24, 0], sizes = [24, 1], strides = [1, 1]} : vector<72x1xf32> to vector<24x1xf32>
    %703 = arith.addf %701, %702 : vector<24x1xf32>
    %704 = arith.negf %703 : vector<24x1xf32>
    %705 = math.exp %704 : vector<24x1xf32>
    %cst_166 = arith.constant 1.000000e+00 : f32
    %706 = vector.broadcast %cst_166 : f32 to vector<24x1xf32>
    %707 = arith.addf %706, %705 : vector<24x1xf32>
    %708 = arith.divf %706, %707 : vector<24x1xf32>
    %709 = vector.extract_strided_slice %692 {offsets = [48, 0], sizes = [24, 1], strides = [1, 1]} : vector<72x1xf32> to vector<24x1xf32>
    %710 = vector.extract_strided_slice %691 {offsets = [48, 0], sizes = [24, 1], strides = [1, 1]} : vector<72x1xf32> to vector<24x1xf32>
    %711 = arith.mulf %700, %710 : vector<24x1xf32>
    %712 = arith.addf %709, %711 : vector<24x1xf32>
    %713 = math.tanh %712 : vector<24x1xf32>
    %cst_167 = arith.constant 1.000000e+00 : f32
    %714 = vector.broadcast %cst_167 : f32 to vector<24x1xf32>
    %715 = arith.subf %714, %708 : vector<24x1xf32>
    %716 = arith.mulf %715, %713 : vector<24x1xf32>
    %717 = arith.mulf %708, %687 : vector<24x1xf32>
    %718 = arith.addf %716, %717 : vector<24x1xf32>
    %719 = vector.extract_strided_slice %718 {offsets = [0, 0], sizes = [12, 1], strides = [1, 1]} : vector<24x1xf32> to vector<12x1xf32>
    %720 = vector.extract_strided_slice %718 {offsets = [12, 0], sizes = [12, 1], strides = [1, 1]} : vector<24x1xf32> to vector<12x1xf32>
    %721 = tpu.concatenate %471, %502, %533, %564, %595, %626, %657, %688, %719 in 1 : vector<12x1xf32>, vector<12x1xf32>, vector<12x1xf32>, vector<12x1xf32>, vector<12x1xf32>, vector<12x1xf32>, vector<12x1xf32>, vector<12x1xf32>, vector<12x1xf32> -> vector<12x9xf32>
    %722 = tpu.concatenate %720, %689, %658, %627, %596, %565, %534, %503, %472 in 1 : vector<12x1xf32>, vector<12x1xf32>, vector<12x1xf32>, vector<12x1xf32>, vector<12x1xf32>, vector<12x1xf32>, vector<12x1xf32>, vector<12x1xf32>, vector<12x1xf32> -> vector<12x9xf32>
    %723 = tpu.concatenate %721, %722 in 0 : vector<12x9xf32>, vector<12x9xf32> -> vector<24x9xf32>
    %c0_168 = arith.constant 0 : index
    %c0_169 = arith.constant 0 : index
    %724 = vector.load %arg12[%c0_168, %c0_169] : memref<24x24xf32, #tpu.memory_space<vmem>>, vector<24x24xf32>
    %cst_170 = arith.constant dense<0.000000e+00> : vector<24x9xf32>
    %725 = tpu.matmul %724, %723, %cst_170 {dimension_numbers = #tpu.dot_dimension_numbers<[1], [0], [0], [1], [0, 0, 1, 1], [], []>} : vector<24x24xf32>, vector<24x9xf32>, vector<24x9xf32> -> vector<24x9xf32>
    %c0_171 = arith.constant 0 : index
    %c0_172 = arith.constant 0 : index
    %726 = vector.load %arg13[%c0_171, %c0_172] : memref<24x1xf32, #tpu.memory_space<vmem>>, vector<24x1xf32>
    %727 = vector.broadcast %726 : vector<24x1xf32> to vector<24x9xf32>
    %728 = arith.addf %725, %727 : vector<24x9xf32>
    %729 = math.tanh %728 : vector<24x9xf32>
    %c0_173 = arith.constant 0 : index
    %c0_174 = arith.constant 0 : index
    %730 = vector.load %arg14[%c0_173, %c0_174] : memref<1x24xf32, #tpu.memory_space<vmem>>, vector<1x24xf32>
    %cst_175 = arith.constant dense<0.000000e+00> : vector<1x9xf32>
    %731 = tpu.matmul %730, %729, %cst_175 {dimension_numbers = #tpu.dot_dimension_numbers<[1], [0], [0], [1], [0, 0, 1, 1], [], []>} : vector<1x24xf32>, vector<24x9xf32>, vector<1x9xf32> -> vector<1x9xf32>
    %cst_176 = arith.constant dense<0xFF800000> : vector<1xf32>
    %732 = vector.multi_reduction <maximumf>, %731, %cst_176 [1] : vector<1x9xf32> to vector<1xf32>
    %733 = vector.shape_cast %732 : vector<1xf32> to vector<1x1xf32>
    %734 = vector.broadcast %733 : vector<1x1xf32> to vector<1x9xf32>
    %735 = arith.subf %731, %734 : vector<1x9xf32>
    %736 = math.exp %735 : vector<1x9xf32>
    %cst_177 = arith.constant dense<0.000000e+00> : vector<1xf32>
    %737 = vector.multi_reduction <add>, %736, %cst_177 [1] : vector<1x9xf32> to vector<1xf32>
    %738 = vector.shape_cast %737 : vector<1xf32> to vector<1x1xf32>
    %739 = vector.broadcast %738 : vector<1x1xf32> to vector<1x9xf32>
    %740 = arith.divf %736, %739 : vector<1x9xf32>
    %741 = vector.broadcast %740 : vector<1x9xf32> to vector<24x9xf32>
    %742 = arith.mulf %723, %741 : vector<24x9xf32>
    %cst_178 = arith.constant dense<0.000000e+00> : vector<24xf32>
    %743 = vector.multi_reduction <add>, %742, %cst_178 [1] : vector<24x9xf32> to vector<24xf32>
    %744 = vector.shape_cast %743 : vector<24xf32> to vector<24x1xf32>
    %c0_179 = arith.constant 0 : index
    %c0_180 = arith.constant 0 : index
    %745 = vector.load %arg15[%c0_179, %c0_180] : memref<9x24xf32, #tpu.memory_space<vmem>>, vector<9x24xf32>
    %cst_181 = arith.constant dense<0.000000e+00> : vector<9x1xf32>
    %746 = tpu.matmul %745, %744, %cst_181 {dimension_numbers = #tpu.dot_dimension_numbers<[1], [0], [0], [1], [0, 0, 1, 1], [], []>} : vector<9x24xf32>, vector<24x1xf32>, vector<9x1xf32> -> vector<9x1xf32>
    %c0_182 = arith.constant 0 : index
    %c0_183 = arith.constant 0 : index
    %747 = vector.load %arg16[%c0_182, %c0_183] : memref<9x1xf32, #tpu.memory_space<vmem>>, vector<9x1xf32>
    %748 = arith.addf %746, %747 : vector<9x1xf32>
    %c0_184 = arith.constant 0 : index
    %c0_185 = arith.constant 0 : index
    %c0_186 = arith.constant 0 : index
    %749 = vector.load %arg17[%c0_184, %c0_185, %c0_186] : memref<1x9x1xf32, #tpu.memory_space<vmem>>, vector<1x9x1xf32>
    %750 = vector.shape_cast %749 : vector<1x9x1xf32> to vector<9x1xf32>
    %751 = vector.shape_cast %748 : vector<9x1xf32> to vector<1x9x1xf32>
    tpu.vector_store %arg17[%c0_184, %c0_185, %c0_186], %751 {strides = array<i32>} : memref<1x9x1xf32, #tpu.memory_space<vmem>>, vector<1x9x1xf32>,
    return
  }
  func.func @transform_0(%arg0: i32) -> (i32, i32, i32) {
    %c0_i32 = arith.constant 0 : i32
    %c0_i32_0 = arith.constant 0 : i32
    %c0_i32_1 = arith.constant 0 : i32
    return %arg0, %c0_i32, %c0_i32_0 : i32, i32, i32
  }
  func.func @transform_1(%arg0: i32) -> (i32, i32, i32) {
    %c0_i32 = arith.constant 0 : i32
    %c0_i32_0 = arith.constant 0 : i32
    %c0_i32_1 = arith.constant 0 : i32
    return %arg0, %c0_i32, %c0_i32_0 : i32, i32, i32
  }
  func.func @transform_2(%arg0: i32) -> (i32, i32, i32) {
    %c0_i32 = arith.constant 0 : i32
    %c0_i32_0 = arith.constant 0 : i32
    %c0_i32_1 = arith.constant 0 : i32
    %c0_i32_2 = arith.constant 0 : i32
    return %c0_i32, %c0_i32_0, %c0_i32_1 : i32, i32, i32
  }
  func.func @transform_3(%arg0: i32) -> (i32, i32, i32) {
    %c0_i32 = arith.constant 0 : i32
    %c0_i32_0 = arith.constant 0 : i32
    %c0_i32_1 = arith.constant 0 : i32
    %c0_i32_2 = arith.constant 0 : i32
    return %c0_i32, %c0_i32_0, %c0_i32_1 : i32, i32, i32
  }
  func.func @transform_4(%arg0: i32) -> (i32, i32, i32) {
    %c0_i32 = arith.constant 0 : i32
    %c0_i32_0 = arith.constant 0 : i32
    %c0_i32_1 = arith.constant 0 : i32
    %c0_i32_2 = arith.constant 0 : i32
    return %c0_i32, %c0_i32_0, %c0_i32_1 : i32, i32, i32
  }
  func.func @transform_5(%arg0: i32) -> (i32, i32) {
    %c0_i32 = arith.constant 0 : i32
    %c0_i32_0 = arith.constant 0 : i32
    %c0_i32_1 = arith.constant 0 : i32
    return %c0_i32, %c0_i32_0 : i32, i32
  }
  func.func @transform_6(%arg0: i32) -> (i32, i32) {
    %c0_i32 = arith.constant 0 : i32
    %c0_i32_0 = arith.constant 0 : i32
    %c0_i32_1 = arith.constant 0 : i32
    return %c0_i32, %c0_i32_0 : i32, i32
  }
  func.func @transform_7(%arg0: i32) -> (i32, i32) {
    %c0_i32 = arith.constant 0 : i32
    %c0_i32_0 = arith.constant 0 : i32
    %c0_i32_1 = arith.constant 0 : i32
    return %c0_i32, %c0_i32_0 : i32, i32
  }
  func.func @transform_8(%arg0: i32) -> (i32, i32) {
    %c0_i32 = arith.constant 0 : i32
    %c0_i32_0 = arith.constant 0 : i32
    %c0_i32_1 = arith.constant 0 : i32
    return %c0_i32, %c0_i32_0 : i32, i32
  }
  func.func @transform_9(%arg0: i32) -> (i32, i32) {
    %c0_i32 = arith.constant 0 : i32
    %c0_i32_0 = arith.constant 0 : i32
    %c0_i32_1 = arith.constant 0 : i32
    return %c0_i32, %c0_i32_0 : i32, i32
  }
  func.func @transform_10(%arg0: i32) -> (i32, i32) {
    %c0_i32 = arith.constant 0 : i32
    %c0_i32_0 = arith.constant 0 : i32
    %c0_i32_1 = arith.constant 0 : i32
    return %c0_i32, %c0_i32_0 : i32, i32
  }
  func.func @transform_11(%arg0: i32) -> (i32, i32) {
    %c0_i32 = arith.constant 0 : i32
    %c0_i32_0 = arith.constant 0 : i32
    %c0_i32_1 = arith.constant 0 : i32
    return %c0_i32, %c0_i32_0 : i32, i32
  }
  func.func @transform_12(%arg0: i32) -> (i32, i32) {
    %c0_i32 = arith.constant 0 : i32
    %c0_i32_0 = arith.constant 0 : i32
    %c0_i32_1 = arith.constant 0 : i32
    return %c0_i32, %c0_i32_0 : i32, i32
  }
  func.func @transform_13(%arg0: i32) -> (i32, i32) {
    %c0_i32 = arith.constant 0 : i32
    %c0_i32_0 = arith.constant 0 : i32
    %c0_i32_1 = arith.constant 0 : i32
    return %c0_i32, %c0_i32_0 : i32, i32
  }
  func.func @transform_14(%arg0: i32) -> (i32, i32) {
    %c0_i32 = arith.constant 0 : i32
    %c0_i32_0 = arith.constant 0 : i32
    %c0_i32_1 = arith.constant 0 : i32
    return %c0_i32, %c0_i32_0 : i32, i32
  }
  func.func @transform_15(%arg0: i32) -> (i32, i32) {
    %c0_i32 = arith.constant 0 : i32
    %c0_i32_0 = arith.constant 0 : i32
    %c0_i32_1 = arith.constant 0 : i32
    return %c0_i32, %c0_i32_0 : i32, i32
  }
  func.func @transform_16(%arg0: i32) -> (i32, i32, i32) {
    %c0_i32 = arith.constant 0 : i32
    %c0_i32_0 = arith.constant 0 : i32
    %c0_i32_1 = arith.constant 0 : i32
    return %arg0, %c0_i32, %c0_i32_0 : i32, i32, i32
  }
}

</mosaic_0001>

<bundles_post_ra>
// kernel: phychal2020_forward.1
= control target key start
LH: loop header
LB: loop body
LE: loop exit
PB: predicated region body
PF: predicated region fallthrough
CT: control target
= control target key end

     0   :  { %s11354_s21 = smov 0   ;;  %s15737_s0 = inlined_call_operand.vmem [shape: f32[2,12,750], index: 0, kind: input, shape index: {}]   ;;  %s15738_s1 = inlined_call_operand.vmem [shape: f32[2,12,750], index: 1, kind: input, shape index: {}]   ;;  %s15739_s2 = inlined_call_operand.vmem [shape: bf16[10,12,36], index: 2, kind: input, shape index: {}]   ;;  %s15740_s3 = inlined_call_operand.vmem [shape: f32[15,12,1], index: 3, kind: input, shape index: {}]   ;;  %s15741_s4 = inlined_call_operand.vmem [shape: bf16[4,12,288], index: 4, kind: input, shape index: {}]   ;;  %s15742_s5 = inlined_call_operand.vmem [shape: bf16[12,576], index: 5, kind: input, shape index: {}]   ;;  %s15743_s6 = inlined_call_operand.vmem [shape: bf16[255,128], index: 6, kind: input, shape index: {}]   ;;  %s15744_s7 = inlined_call_operand.vmem [shape: f32[72,12], index: 7, kind: input, shape index: {}]   ;;  %s15745_s8 = inlined_call_operand.vmem [shape: f32[72,1], index: 8, kind: input, shape index: {}]   ;;  %s15746_s9 = inlined_call_operand.vmem [shape: f32[72,24], index: 9, kind: input, shape index: {}]   ;;  %s15747_s10 = inlined_call_operand.vmem [shape: f32[72,1], index: 10, kind: input, shape index: {}]   ;;  %s15748_s11 = inlined_call_operand.vmem [shape: f32[24,24], index: 11, kind: input, shape index: {}]   ;;  %s15749_s12 = inlined_call_operand.vmem [shape: f32[24,1], index: 12, kind: input, shape index: {}]   ;;  %s15750_s13 = inlined_call_operand.vmem [shape: f32[1,24], index: 13, kind: input, shape index: {}]   ;;  %s15751_s14 = inlined_call_operand.vmem [shape: f32[9,24], index: 14, kind: input, shape index: {}]   ;;  %s15752_s15 = inlined_call_operand.vmem [shape: f32[9,1], index: 15, kind: input, shape index: {}]   ;;  %s15753_s16 = inlined_call_operand.vmem [shape: f32[2,9,1], index: 16, kind: output, shape index: {}]  }
   0x1   :  { %15811 = sst [smem:[#allocation5_spill]] %s15737_s0 }
   0x2   :  { %15812 = sst [smem:[#allocation6_spill]] %s15738_s1 }
   0x3   :  { %15813 = sst [smem:[#allocation7_spill]] %s15744_s7 }
   0x4   :  { %15814 = sst [smem:[#allocation8_spill]] %s15747_s10 }
   0x5   :  { %15815 = sst [smem:[#allocation9_spill]] %s15748_s11 }
   0x6   :  { %15816 = sst [smem:[#allocation10_spill]] %s15749_s12 }
   0x7   :  { %15817 = sst [smem:[#allocation11_spill]] %s15750_s13 }
   0x8   :  { %15818 = sst [smem:[#allocation12_spill]] %s15751_s14 }
   0x9   :  { %15819 = sst [smem:[#allocation13_spill]] %s15752_s15 }
   0xa   :  { %15820 = sst [smem:[#allocation14_spill]] %s15753_s16 }
   0xb LB: > { %15821 = sst [smem:[#allocation2_spill]] %s11236_s21  ;;  %s9620_s22 = sadd.s32 4294967295, %s11236_s21   ;;  %s11236_s21 = sphi %s11354_s21, %s26_s21  }
   0xc   : > { %p9624_p0 = scmp.ge.s32.totalorder %s11236_s21, 1  ;;  %p472_p1 = scmp.lt.s32.totalorder %s11236_s21, 3 }
   0xe   : > { %p473_p2 = pnand %p9624_p0, %p472_p1 }
  0x10   : > { %476 = sbr.rel (%p473_p2) target bundleno = 12948 (0x3294), region = 84 }
  0x17   : > { %p527_p3 = scmp.lt.s32.totalorder %s9620_s22, 1  ;;  %s15823_s26 = sld [smem:[#allocation5_spill]]  ;;  %vm657_vm0 = vcmask 1045504   ;;  %v11239_v50 = vmov 0   ;;  %v601_v63 = vld [vmem:[%s15740_s3] sm:$0xff]  ;;  %vm651_vm1 = vcmask 1039360  }
  0x18   : > { %s15824_s1 = sld [smem:[#allocation6_spill]]  ;;  %s15772_s0 = smov 127   ;;  %853 = vmatprep.mubr.bf16.mxu0 %v11239_v50  ;;  %896 = vmatprep.mubr.bf16.mxu1 %v11239_v50  ;;  %vm682_vm2 = vcmask 1043456   ;;  %vm808_vm3 = vcmask 1041408   ;;  %vm15784_vm4 = vcmask 293888   ;;  %vm1771_vm5 = vcmask 1031168  }
  0x19   : > { %s15910_s22 = smov (!%p527_p3, %s9620_s22), 1  ;;  %10810 = vset.pattern.permute.xlu0 %v11239_v50  ;;  %10811 = vset.pattern.permute.xlu1 %v11239_v50  ;;  %s15758_s17 = smov 126   ;;  %vm1806_vm6 = vcmask 1022976   ;;  %vm15792_vm7 = vcmask 1014784   ;;  %vm15800_vm8 = vcmask 1006592   ;;  %vm15788_vm9 = vcmask 998400  }
  0x1a   : > { %15822 = sst [smem:[#allocation3_spill]] %s15910_s22  ;;  %s10770_s23 = smul.u32 96, %s15910_s22  ;;  %vm15789_vm10 = vcmask 990208   ;;  %vm2317_vm11 = vcmask 982016   ;;  %vm15785_vm12 = vcmask 261120   ;;  %vm3459_vm13 = vcmask 973824  }
  0x1b   : > { %s15766_s18 = smov 124   ;;  %s15776_s19 = smov 125   ;;  %vm3477_vm14 = vcmask 965632   ;;  %vm15786_vm15 = vcmask 957440  }
  0x1c   : > { %s15778_s20 = smov 122   ;;  %s15768_s24 = smov 121  }
  0x1d   : > { %s531_s27 = scalar_lea.vmem %s15823_s26, %s10770_s23  ;;  %s15756_s25 = smov 120  }
  0x1e   : > { %v576_v0 = vld [vmem:[%s531_s27 + $0x8] sm:$0xff]  ;;  %v582_v1 = vld [vmem:[%s531_s27 + $0x38] sm:$0xf]  ;;  %v575_v2 = vld [vmem:[%s531_s27] sm:$0xff]  ;;  %s11371_s30 = scalar_lea.vmem %s15824_s1, %s10770_s23  ;;  %s15760_s23 = smov 123  }
  0x1f   : > { %v604_v3 = vpack.c.bf16 %v582_v1, %v576_v0  ;;  %v581_v4 = vld [vmem:[%s531_s27 + $0x30] sm:$0xf]  ;;  %v583_v6 = vld [vmem:[%s531_s27 + $0x40] sm:$0xf]  ;;  %v578_v9 = vld [vmem:[%s531_s27 + $0x18] sm:$0xff]  ;;  %s15754_s28 = smov 116  }
  0x20   : > { %v577_v5 = vld [vmem:[%s531_s27 + $0x10] sm:$0xff]  ;;  %v603_v7 = vpack.c.bf16 %v581_v4, %v575_v2  ;;  %v584_v10 = vld [vmem:[%s531_s27 + $0x48] sm:$0xf]  ;;  %v579_v11 = vld [vmem:[%s531_s27 + $0x20] sm:$0xff]  ;;  %s15762_s29 = smov 118   ;;  %s15764_s26 = smov 114  }
  0x21   : > { %v605_v8 = vpack.c.bf16 %v583_v6, %v577_v5  ;;  %v634_v12 = vrot.slane %v604_v3, 4  ;;  %v11373_v13 = vpack.c.bf16 %v584_v10, %v578_v9  ;;  %v585_v14 = vld [vmem:[%s531_s27 + $0x50] sm:$0xf]  ;;  %v588_v15 = vld [vmem:[%s11371_s30 + $0x8] sm:$0xff]  ;;  %v586_v21 = vld [vmem:[%s531_s27 + $0x58] sm:$0xf] }
  0x22   : > { %v633_v16 = vrot.slane %v603_v7, 4  ;;  %v580_v18 = vld [vmem:[%s531_s27 + $0x28] sm:$0xff]  ;;  %v589_v19 = vld [vmem:[%s11371_s30 + $0x10] sm:$0xff]  ;;  %v11378_v20 = vpack.c.bf16 %v585_v14, %v579_v11  ;;  %v594_v22 = vld [vmem:[%s11371_s30 + $0x38] sm:$0xf]  ;;  %v702_v36 = vrot.slane %v604_v3, 2 }
  0x23   : > { %v635_v17 = vrot.slane %v605_v8, 4  ;;  %641 = vrot.lane.b32.xlu0 %v634_v12, %s15772_s0  ;;  %v595_v23 = vld [vmem:[%s11371_s30 + $0x40] sm:$0xf]  ;;  %v636_v24 = vrot.slane %v11373_v13, 4  ;;  %v11384_v25 = vpack.c.bf16 %v594_v22, %v588_v15  ;;  %v593_v27 = vld [vmem:[%s11371_s30 + $0x30] sm:$0xf]  ;;  %v11394_v32 = vpack.c.bf16 %v586_v21, %v580_v18 }
  0x24   : > { %639 = vrot.lane.b32.xlu1 %v633_v16, %s15772_s0  ;;  %v587_v26 = vld [vmem:[%s11371_s30] sm:$0xff]  ;;  %v590_v28 = vld [vmem:[%s11371_s30 + $0x18] sm:$0xff]  ;;  %v11389_v29 = vpack.c.bf16 %v595_v23, %v589_v19  ;;  %v596_v31 = vld [vmem:[%s11371_s30 + $0x48] sm:$0xf]  ;;  %v637_v35 = vrot.slane %v11378_v20, 4  ;;  %v703_v39 = vrot.slane %v605_v8, 2 }
  0x25   : > { %v11391_v30 = vpack.c.bf16 %v593_v27, %v587_v26  ;;  %v11396_v33 = vpack.c.bf16 %v596_v31, %v590_v28  ;;  %v622_v34 = vrot.slane %v11384_v25, 2  ;;  %v701_v40 = vrot.slane %v603_v7, 2  ;;  %v591_v52 = vld [vmem:[%s11371_s30 + $0x20] sm:$0xff]  ;;  %v597_v53 = vld [vmem:[%s11371_s30 + $0x50] sm:$0xf]  ;;  %v592_v54 = vld [vmem:[%s11371_s30 + $0x28] sm:$0xff] }
  0x26   : > { %v623_v38 = vrot.slane %v11389_v29, 2  ;;  %v704_v43 = vrot.slane %v11373_v13, 2  ;;  %v638_v46 = vrot.slane %v11394_v32, 4  ;;  %v725_v47 = vrot.slane %v11384_v25, 4  ;;  %v598_v56 = vld [vmem:[%s11371_s30 + $0x58] sm:$0xf] }
  0x27   : > { %643 = vrot.lane.b32.xlu0 %v635_v17, %s15772_s0  ;;  %v621_v37 = vrot.slane %v11391_v30, 2  ;;  %v664_v41 = vsel %vm657_vm0, %v604_v3, %v622_v34  ;;  %v624_v42 = vrot.slane %v11396_v33, 2  ;;  %v726_v48 = vrot.slane %v11389_v29, 4  ;;  %v602_v0 = vld [vmem:[%s15740_s3 + $0x8] sm:$0xf]  ;;  %s15782_s30 = smov 119  }
  0x28   : > { %645 = vrot.lane.b32.xlu1 %v636_v24, %s15772_s0  ;;  %821 = vmatprep.subr.bf16.mxu0 %v664_v41  ;;  %v668_v45 = vsel %vm657_vm0, %v605_v8, %v623_v38  ;;  %v724_v51 = vrot.slane %v11391_v30, 4  ;;  %v705_v55 = vrot.slane %v11378_v20, 2  ;;  %v706_v57 = vrot.slane %v11394_v32, 2  ;;  %v11485_v19 = vld [vmem:[%s15739_s2] sm:$0x3f]   ;;  %s15780_s27 = smov 117  }
  0x29   : > { %v660_v44 = vsel %vm657_vm0, %v603_v7, %v621_v37  ;;  %v672_v49 = vsel %vm657_vm0, %v11373_v13, %v624_v42  ;;  %v11442_v58 = vpack.c.bf16 %v597_v53, %v591_v52  ;;  %v727_v59 = vrot.slane %v11396_v33, 4  ;;  %s15839_s1 = smov 117   ;;  %s15850_s11 = smov 125  }
  0x2a   : > { %822 = vmatpush1.bf16.msra.mxu0 %v660_v44  ;;  %864 = vmatprep.subr.bf16.mxu1 %v672_v49  ;;  %v11446_v60 = vpack.c.bf16 %v598_v56, %v592_v54  ;;  %s15851_s13 = smov 122   ;;  %s15852_s14 = smov 112  }
  0x2b   : > { %647 = vrot.lane.b32.xlu0 %v637_v35, %s15772_s0  ;;  %865 = vmatpush1.bf16.msra.mxu1 %v668_v45  ;;  %v728_v61 = vrot.slane %v11442_v58, 4  ;;  %v625_v14 = vrot.slane %v11442_v58, 2  ;;  %s15896_s16 = sld [smem:[#allocation8_spill]]  ;;  %s11261_s7 = smov 4  }
  0x2c   : > { %709 = vrot.lane.b32.xlu1 %v702_v36, %s15772_s0  ;;  %v729_v62 = vrot.slane %v11446_v60, 4  ;;  %v626_v8 = vrot.slane %v11446_v60, 2  ;;  %s11262_s10 = smov 2   ;;  %s11265_s12 = smov 1  }
  0x2d   : > { %v676_v24 = vsel %vm657_vm0, %v11378_v20, %v625_v14  ;;  %s15903_s21 = sld [smem:[#allocation11_spill]]  ;;  %s15904_s22 = sld [smem:[#allocation3_spill]] }
  0x2e   : > { %v680_v16 = vsel %vm657_vm0, %v11394_v32, %v626_v8 }
  0x2f   : > { %711 = vrot.lane.b32.xlu0 %v703_v39, %s15772_s0 }
  0x30   : > { %707 = vrot.lane.b32.xlu1 %v701_v40, %s15772_s0 }
  0x33   : > { %649 = vrot.lane.b32.xlu0 %v638_v46, %s15772_s0 }
  0x34   : > { %732 = vrot.lane.b32.xlu1 %v725_v47, %s15772_s0 }
  0x37   : > { %734 = vrot.lane.b32.xlu0 %v726_v48, %s15772_s0 }
  0x38   : > { %730 = vrot.lane.b32.xlu1 %v724_v51, %s15772_s0 }
  0x3b   : > { %713 = vrot.lane.b32.xlu0 %v704_v43, %s15772_s0 }
  0x3c   : > { %715 = vrot.lane.b32.xlu1 %v705_v55, %s15772_s0 }
  0x3f   : > { %717 = vrot.lane.b32.xlu0 %v706_v57, %s15772_s0 }
  0x40   : > { %736 = vrot.lane.b32.xlu1 %v727_v59, %s15772_s0 }
  0x43   : > { %738 = vrot.lane.b32.xlu0 %v728_v61, %s15772_s0 }
  0x44   : > { %740 = vrot.lane.b32.xlu1 %v729_v62, %s15772_s0 }
  0x47   : > { %791 = vperm.xlu0 %10810, %v601_v63  }
  0x48   : > { %796 = vperm.xlu1 %10811, %v602_v0  }
  0x95   : > { %v642_v1 = vpop.permute.xlu0 %641 }
  0x96   : > { %v640_v2 = vpop.permute.xlu1 %639 }
  0x97   : > { %v652_v3 = vsel %vm651_vm1, %v640_v2, %v642_v1 }
  0x98   : > { %v684_v9 = vsel %vm682_vm2, %v621_v37, %v652_v3  ;;  %v809_v17 = vsel %vm808_vm3, %v652_v3, 0 }
  0x99   : > { %v644_v4 = vpop.permute.xlu0 %643 }
  0x9a   : > { %v653_v5 = vsel %vm651_vm1, %v642_v1, %v644_v4  ;;  %v646_v6 = vpop.permute.xlu1 %645 }
  0x9b   : > { %v687_v7 = vsel %vm682_vm2, %v622_v34, %v653_v5  ;;  %v654_v10 = vsel %vm651_vm1, %v644_v4, %v646_v6 }
  0x9c   : > { %823 = vmatprep.subr.bf16.mxu0 %v687_v7  ;;  %v690_v18 = vsel %vm682_vm2, %v623_v38, %v654_v10  ;;  %v813_v28 = vsel %vm808_vm3, %v654_v10, 0 }
  0x9d   : > { %v648_v11 = vpop.permute.xlu0 %647  ;;  %824 = vmatpush1.bf16.msra.mxu0 %v684_v9 }
  0x9e   : > { %v655_v12 = vsel %vm651_vm1, %v646_v6, %v648_v11  ;;  %v710_v13 = vpop.permute.xlu1 %709  ;;  %9630 = vmatprep.subr.msk.bf16.mxu0 %vm808_vm3, %v653_v5 }
  0x9f   : > { %v693_v15 = vsel %vm682_vm2, %v624_v42, %v655_v12 }
  0xa0   : > { %866 = vmatprep.subr.bf16.mxu1 %v693_v15 }
  0xa1   : > { %v712_v21 = vpop.permute.xlu0 %711  ;;  %826 = vmatpush1.bf16.msra.mxu0 %v809_v17  ;;  %867 = vmatpush1.bf16.msra.mxu1 %v690_v18 }
  0xa2   : > { %v720_v22 = vsel %vm651_vm1, %v710_v13, %v712_v21  ;;  %v708_v23 = vpop.permute.xlu1 %707  ;;  %9632 = vmatprep.subr.msk.bf16.mxu1 %vm808_vm3, %v655_v12  ;;  %907 = vmatprep.subr.bf16.mxu0 %v680_v16 }
  0xa3   : > { %v719_v26 = vsel %vm651_vm1, %v708_v23, %v710_v13  ;;  %v753_v27 = vsel %vm657_vm0, %v11384_v25, %v720_v22 }
  0xa4   : > { %9631 = vmatmul.mubr.msk.bf16.vlgmr.msra.gmra.mrb[0].mxu0 %vm15784_vm4, %v11485_v19  ;;  %v749_v20 = vsel %vm657_vm0, %v11391_v30, %v719_v26 }
  0xa5   : > { %v650_v31 = vpop.permute.xlu0 %649  ;;  %869 = vmatpush1.bf16.msra.mxu1 %v813_v28  ;;  %908 = vmatpush1.bf16.msra.mxu0 %v676_v24 }
  0xa6   : > { %v733_v32 = vpop.permute.xlu1 %732  ;;  %v699_v34 = vsel %vm682_vm2, %v626_v8, %v650_v31  ;;  %986 = vmatprep.subr.bf16.mxu1 %v753_v27  ;;  %v656_v35 = vsel %vm651_vm1, %v648_v11, %v650_v31  ;;  %939 = vmatprep.mubr.bf16.mxu0 %v11239_v50 }
  0xa7   : > { %909 = vmatprep.subr.bf16.mxu0 %v699_v34  ;;  %v696_v25 = vsel %vm682_vm2, %v625_v14, %v656_v35  ;;  %v817_v40 = vsel %vm808_vm3, %v656_v35, 0 }
  0xa8   : > { %9633 = vmatmul.mubr.msk.bf16.vlgmr.msra.gmra.mrb[0].mxu1 %vm15784_vm4, %v11485_v19 }
  0xa9   : > { %v735_v36 = vpop.permute.xlu0 %734  ;;  %910 = vmatpush1.bf16.msra.mxu0 %v696_v25  ;;  %987 = vmatpush1.bf16.msra.mxu1 %v749_v20 }
  0xaa   : > { %v743_v37 = vsel %vm651_vm1, %v733_v32, %v735_v36  ;;  %v731_v38 = vpop.permute.xlu1 %730  ;;  %9634 = vmatprep.subr.msk.bf16.mxu0 %vm808_vm3, %v650_v31  ;;  %1018 = vmatprep.mubr.bf16.mxu1 %v11239_v50 }
  0xab   : > { %v742_v30 = vsel %vm651_vm1, %v731_v38, %v733_v32  ;;  %v775_v39 = vsel %vm682_vm2, %v720_v22, %v743_v37 }
  0xac   : > { %988 = vmatprep.subr.bf16.mxu1 %v775_v39  ;;  %v772_v41 = vsel %vm682_vm2, %v719_v26, %v742_v30  ;;  %v974_v43 = vsel %vm808_vm3, %v742_v30, 0 }
  0xad   : > { %v714_v42 = vpop.permute.xlu0 %713  ;;  %912 = vmatpush1.bf16.msra.mxu0 %v817_v40  ;;  %989 = vmatpush1.bf16.msra.mxu1 %v772_v41 }
  0xae   : > { %v721_v44 = vsel %vm651_vm1, %v712_v21, %v714_v42  ;;  %v716_v45 = vpop.permute.xlu1 %715  ;;  %9636 = vmatprep.subr.msk.bf16.mxu1 %vm808_vm3, %v743_v37 }
  0xaf   : > { %v722_v46 = vsel %vm651_vm1, %v714_v42, %v716_v45  ;;  %v757_v47 = vsel %vm657_vm0, %v11389_v29, %v721_v44 }
  0xb0   : > { %9635 = vmatmul.mubr.msk.bf16.vlgmr.msra.gmra.mrb[4].mxu0 %vm15784_vm4, %v11485_v19  ;;  %v761_v48 = vsel %vm657_vm0, %v11396_v33, %v722_v46 }
  0xb1   : > { %1029 = vmatprep.subr.bf16.mxu0 %v761_v48  ;;  %v718_v49 = vpop.permute.xlu0 %717  ;;  %991 = vmatpush1.bf16.msra.mxu1 %v974_v43 }
  0xb2   : > { %1030 = vmatpush1.bf16.msra.mxu0 %v757_v47  ;;  %v737_v51 = vpop.permute.xlu1 %736  ;;  %v769_v52 = vsel %vm657_vm0, %v11446_v60, %v718_v49  ;;  %v723_v53 = vsel %vm651_vm1, %v716_v45, %v718_v49  ;;  %1061 = vmatprep.mubr.bf16.mxu0 %v11239_v50 }
  0xb3   : > { %1072 = vmatprep.subr.bf16.mxu1 %v769_v52  ;;  %v765_v29 = vsel %vm657_vm0, %v11442_v58, %v723_v53  ;;  %v744_v33 = vsel %vm651_vm1, %v735_v36, %v737_v51 }
  0xb4   : > { %9637 = vmatmul.mubr.msk.bf16.vlgmr.msra.gmra.mrb[4].mxu1 %vm15784_vm4, %v11485_v19  ;;  %v778_v58 = vsel %vm682_vm2, %v721_v44, %v744_v33  ;;  %v978_v63 = vsel %vm808_vm3, %v744_v33, 0 }
  0xb5   : > { %v739_v54 = vpop.permute.xlu0 %738  ;;  %1073 = vmatpush1.bf16.msra.mxu1 %v765_v29  ;;  %1104 = vmatprep.mubr.bf16.mxu1 %v11239_v50 }
  0xb6   : > { %v745_v55 = vsel %vm651_vm1, %v737_v51, %v739_v54  ;;  %v741_v56 = vpop.permute.xlu1 %740 }
  0xb7   : > { %v781_v57 = vsel %vm682_vm2, %v722_v46, %v745_v55  ;;  %v787_v59 = vsel %vm682_vm2, %v718_v49, %v741_v56  ;;  %v746_v60 = vsel %vm651_vm1, %v739_v54, %v741_v56 }
  0xb8   : > { %1031 = vmatprep.subr.bf16.mxu0 %v781_v57  ;;  %1074 = vmatprep.subr.bf16.mxu1 %v787_v59  ;;  %v784_v61 = vsel %vm682_vm2, %v723_v53, %v746_v60  ;;  %v982_v62 = vsel %vm808_vm3, %v746_v60, 0 }
  0xb9   : > { %1032 = vmatpush1.bf16.msra.mxu0 %v778_v58  ;;  %1075 = vmatpush1.bf16.msra.mxu1 %v784_v61 }
  0xba   : > { %9638 = vmatprep.subr.msk.bf16.mxu0 %vm808_vm3, %v745_v55  ;;  %9640 = vmatprep.subr.msk.bf16.mxu1 %vm808_vm3, %v741_v56 }
  0xbd   : > { %1034 = vmatpush1.bf16.msra.mxu0 %v978_v63  ;;  %1077 = vmatpush1.bf16.msra.mxu1 %v982_v62 }
  0xc0   : > { %9639 = vmatmul.mubr.msk.bf16.vlgmr.msra.gmra.mrb[8].mxu0 %vm15784_vm4, %v11485_v19  ;;  %9641 = vmatmul.mubr.msk.bf16.vlgmr.msra.gmra.mrb[8].mxu1 %vm15784_vm4, %v11485_v19 }
  0xc1   : > { %1390 = vmatprep.mubr.bf16.mxu0 %v11239_v50  ;;  %1433 = vmatprep.mubr.bf16.mxu1 %v11239_v50 }
  0xc6   : > { %v11548_v0 = vpop.permute.xlu0 %791 }
  0xc7   : > { %v11550_v2 = vpop.permute.xlu1 %796 }
 0x177   : > { %v855_v1 = vpop.f32.mrb[0].mxu0 }
 0x178   : > { %v856_v3 = vadd.f32 %v855_v1, %v11548_v0  ;;  %v857_v4 = vpop.f32.mrb[1].mxu0 }
 0x179   : > { %v858_v5 = vadd.f32 %v857_v4, %v11548_v0  ;;  %v859_v6 = vpop.f32.mrb[2].mxu0 }
 0x17a   : > { %v950_v7 = vmul.f32 0.3, %v856_v3  ;;  %v861_v8 = vpop.f32.mrb[3].mxu0  ;;  %v860_v9 = vadd.f32 %v859_v6, %v11550_v2 }
 0x17b   : > { %v951_v10 = vmul.f32 0.3, %v858_v5  ;;  %v862_v11 = vadd.f32 %v861_v8, %v11550_v2  ;;  %v898_v12 = vpop.f32.mrb[0].mxu1 }
 0x17c   : > { %v899_v13 = vadd.f32 %v898_v12, %v11548_v0  ;;  %v900_v14 = vpop.f32.mrb[1].mxu1  ;;  %v956_v15 = vmul.f32 0.3, %v860_v9  ;;  %v962_v19 = vmax.f32 %v856_v3, %v950_v7 }
 0x17d   : > { %v957_v16 = vmul.f32 0.3, %v862_v11  ;;  %v901_v17 = vadd.f32 %v900_v14, %v11548_v0  ;;  %v902_v18 = vpop.f32.mrb[2].mxu1  ;;  %v963_v26 = vmax.f32 %v858_v5, %v951_v10 }
 0x17e   : > { %v952_v21 = vmul.f32 0.3, %v899_v13  ;;  %v903_v22 = vadd.f32 %v902_v18, %v11550_v2  ;;  %v904_v23 = vpop.f32.mrb[3].mxu1  ;;  %v968_v24 = vmax.f32 %v860_v9, %v956_v15 }
 0x17f   : > { %v969_v27 = vmax.f32 %v862_v11, %v957_v16  ;;  %v953_v28 = vmul.f32 0.3, %v901_v17  ;;  %v905_v31 = vadd.f32 %v904_v23, %v11550_v2 }
 0x180   : > { %v958_v32 = vmul.f32 0.3, %v903_v22  ;;  %v11560_v34 = vpack.c.bf16 %v968_v24, %v962_v19  ;;  %v964_v25 = vmax.f32 %v899_v13, %v952_v21 }
 0x181   : > { %v11562_v35 = vpack.c.bf16 %v969_v27, %v963_v26  ;;  %v959_v20 = vmul.f32 0.3, %v905_v31  ;;  %v965_v38 = vmax.f32 %v901_v17, %v953_v28 }
 0x182   : > { %v970_v36 = vmax.f32 %v903_v22, %v958_v32  ;;  %v1175_v37 = vrot.slane %v11560_v34, 4 }
 0x183   : > { %v971_v30 = vmax.f32 %v905_v31, %v959_v20  ;;  %v941_v39 = vpop.f32.mrb[4].mxu0  ;;  %v1176_v51 = vrot.slane %v11562_v35, 4  ;;  %v1241_v58 = vrot.slane %v11562_v35, 2 }
 0x184   : > { %v11565_v40 = vpack.c.bf16 %v970_v36, %v964_v25  ;;  %v942_v41 = vadd.f32 %v941_v39, %v11548_v0  ;;  %v943_v42 = vpop.f32.mrb[5].mxu0  ;;  %1181 = vrot.lane.b32.xlu1 %v1175_v37, %s15772_s0  ;;  %v1240_v36 = vrot.slane %v11560_v34, 2 }
 0x185   : > { %v11569_v43 = vpack.c.bf16 %v971_v30, %v965_v38  ;;  %v944_v44 = vadd.f32 %v943_v42, %v11548_v0  ;;  %v945_v45 = vpop.f32.mrb[6].mxu0 }
 0x186   : > { %v954_v46 = vmul.f32 0.3, %v942_v41  ;;  %v946_v47 = vadd.f32 %v945_v45, %v11550_v2  ;;  %v947_v48 = vpop.f32.mrb[7].mxu0  ;;  %v1177_v49 = vrot.slane %v11565_v40, 4  ;;  %v1242_v60 = vrot.slane %v11565_v40, 2 }
 0x187   : > { %v955_v52 = vmul.f32 0.3, %v944_v44  ;;  %v948_v53 = vadd.f32 %v947_v48, %v11550_v2  ;;  %v1020_v29 = vpop.f32.mrb[4].mxu1  ;;  %v1178_v14 = vrot.slane %v11569_v43, 4  ;;  %v1243_v15 = vrot.slane %v11569_v43, 2 }
 0x188   : > { %v960_v33 = vmul.f32 0.3, %v946_v47  ;;  %v1021_v54 = vadd.f32 %v1020_v29, %v11548_v0  ;;  %v1022_v55 = vpop.f32.mrb[5].mxu1  ;;  %1185 = vrot.lane.b32.xlu0 %v1177_v49, %s15772_s0  ;;  %1183 = vrot.lane.b32.xlu1 %v1176_v51, %s15772_s0  ;;  %v966_v61 = vmax.f32 %v942_v41, %v954_v46 }
 0x189   : > { %v961_v56 = vmul.f32 0.3, %v948_v53  ;;  %v1023_v57 = vadd.f32 %v1022_v55, %v11548_v0  ;;  %v1024_v59 = vpop.f32.mrb[6].mxu1  ;;  %v967_v4 = vmax.f32 %v944_v44, %v955_v52 }
 0x18a   : > { %v972_v62 = vmax.f32 %v946_v47, %v960_v33  ;;  %v1115_v63 = vmul.f32 0.3, %v1021_v54  ;;  %v1025_v1 = vadd.f32 %v1024_v59, %v11550_v2  ;;  %v1026_v3 = vpop.f32.mrb[7].mxu1 }
 0x18b   : > { %v973_v5 = vmax.f32 %v948_v53, %v961_v56  ;;  %v1116_v6 = vmul.f32 0.3, %v1023_v57  ;;  %v1027_v7 = vadd.f32 %v1026_v3, %v11550_v2 }
 0x18c   : > { %v11584_v8 = vpack.c.bf16 %v972_v62, %v966_v61  ;;  %v1121_v9 = vmul.f32 0.3, %v1025_v1  ;;  %1250 = vrot.lane.b32.xlu0 %v1242_v60, %s15772_s0  ;;  %1248 = vrot.lane.b32.xlu1 %v1241_v58, %s15772_s0  ;;  %v1127_v12 = vmax.f32 %v1021_v54, %v1115_v63 }
 0x18d   : > { %v11588_v10 = vpack.c.bf16 %v973_v5, %v967_v4  ;;  %v1122_v11 = vmul.f32 0.3, %v1027_v7  ;;  %v1128_v16 = vmax.f32 %v1023_v57, %v1116_v6 }
 0x18e   : > { %v1133_v13 = vmax.f32 %v1025_v1, %v1121_v9  ;;  %v1244_v21 = vrot.slane %v11584_v8, 2  ;;  %v1179_v22 = vrot.slane %v11584_v8, 4 }
 0x18f   : > { %v1134_v17 = vmax.f32 %v1027_v7, %v1122_v11  ;;  %v1180_v25 = vrot.slane %v11588_v10, 4 }
 0x190   : > { %v11592_v18 = vpack.c.bf16 %v1133_v13, %v1127_v12  ;;  %1187 = vrot.lane.b32.xlu0 %v1178_v14, %s15772_s0  ;;  %1252 = vrot.lane.b32.xlu1 %v1243_v15, %s15772_s0  ;;  %v1245_v14 = vrot.slane %v11588_v10, 2 }
 0x191   : > { %v11596_v19 = vpack.c.bf16 %v1134_v17, %v1128_v16 }
 0x192   : > { %v1163_v23 = vrot.slane %v11592_v18, 2  ;;  %v1263_v13 = vrot.slane %v11592_v18, 4 }
 0x193   : > { %v1063_v24 = vpop.f32.mrb[8].mxu0  ;;  %v1106_v26 = vpop.f32.mrb[8].mxu1  ;;  %v1164_v27 = vrot.slane %v11596_v19, 2  ;;  %v1264_v54 = vrot.slane %v11596_v19, 4 }
 0x194   : > { %v1064_v28 = vadd.f32 %v1063_v24, %v11548_v0  ;;  %v1107_v31 = vadd.f32 %v1106_v26, %v11548_v0  ;;  %v1065_v32 = vpop.f32.mrb[9].mxu0  ;;  %v1108_v20 = vpop.f32.mrb[9].mxu1  ;;  %1254 = vrot.lane.b32.xlu0 %v1244_v21, %s15772_s0  ;;  %1189 = vrot.lane.b32.xlu1 %v1179_v22, %s15772_s0  ;;  %v1200_v42 = vsel %vm657_vm0, %v11560_v34, %v1163_v23 }
 0x195   : > { %v1066_v37 = vadd.f32 %v1065_v32, %v11548_v0  ;;  %v1109_v38 = vadd.f32 %v1108_v20, %v11548_v0  ;;  %v1067_v30 = vpop.f32.mrb[10].mxu0  ;;  %v1110_v39 = vpop.f32.mrb[10].mxu1  ;;  %v1204_v41 = vsel %vm657_vm0, %v11562_v35, %v1164_v27 }
 0x196   : > { %v1117_v44 = vmul.f32 0.3, %v1064_v28  ;;  %v1119_v45 = vmul.f32 0.3, %v1107_v31  ;;  %v1068_v46 = vadd.f32 %v1067_v30, %v11550_v2  ;;  %v1111_v47 = vadd.f32 %v1110_v39, %v11550_v2  ;;  %v1069_v48 = vpop.f32.mrb[11].mxu0  ;;  %v1112_v0 = vpop.f32.mrb[11].mxu1  ;;  %1358 = vmatprep.subr.bf16.mxu0 %v1204_v41 }
 0x197   : > { %v1118_v49 = vmul.f32 0.3, %v1066_v37  ;;  %v1120_v51 = vmul.f32 0.3, %v1109_v38  ;;  %v1070_v52 = vadd.f32 %v1069_v48, %v11550_v2  ;;  %v1113_v35 = vadd.f32 %v1112_v0, %v11550_v2  ;;  %1359 = vmatpush1.bf16.msra.mxu0 %v1200_v42 }
 0x198   : > { %v1123_v53 = vmul.f32 0.3, %v1068_v46  ;;  %v1125_v29 = vmul.f32 0.3, %v1111_v47  ;;  %1191 = vrot.lane.b32.xlu0 %v1180_v25, %s15772_s0  ;;  %1246 = vrot.lane.b32.xlu1 %v1240_v36, %s15772_s0  ;;  %v1129_v55 = vmax.f32 %v1064_v28, %v1117_v44  ;;  %v1131_v56 = vmax.f32 %v1107_v31, %v1119_v45  ;;  %v11672_v36 = vld [vmem:[%s15739_s2 + $0x8] sm:$0x3f]  }
 0x199   : > { %v1124_v34 = vmul.f32 0.3, %v1070_v52  ;;  %v1126_v33 = vmul.f32 0.3, %v1113_v35  ;;  %v1130_v60 = vmax.f32 %v1066_v37, %v1118_v49  ;;  %v1132_v58 = vmax.f32 %v1109_v38, %v1120_v51 }
 0x19a   : > { %v1135_v57 = vmax.f32 %v1068_v46, %v1123_v53  ;;  %v1137_v59 = vmax.f32 %v1111_v47, %v1125_v29 }
 0x19b   : > { %v1136_v61 = vmax.f32 %v1070_v52, %v1124_v34  ;;  %v1138_v62 = vmax.f32 %v1113_v35, %v1126_v33 }
 0x19c   : > { %v11625_v2 = vpack.c.bf16 %v1135_v57, %v1129_v55  ;;  %v11627_v63 = vpack.c.bf16 %v1137_v59, %v1131_v56  ;;  %1271 = vrot.lane.b32.xlu0 %v1264_v54, %s15772_s0 }
 0x19d   : > { %v11630_v1 = vpack.c.bf16 %v1136_v61, %v1130_v60  ;;  %v11632_v3 = vpack.c.bf16 %v1138_v62, %v1132_v58 }
 0x19e   : > { %v1265_v4 = vrot.slane %v11625_v2, 4  ;;  %v1165_v5 = vrot.slane %v11625_v2, 2  ;;  %v1267_v12 = vrot.slane %v11627_v63, 4 }
 0x19f   : > { %v1266_v6 = vrot.slane %v11630_v1, 4  ;;  %v1166_v7 = vrot.slane %v11630_v1, 2  ;;  %v1268_v15 = vrot.slane %v11632_v3, 4  ;;  %v1168_v20 = vrot.slane %v11632_v3, 2 }
 0x1a0   : > { %1273 = vrot.lane.b32.xlu1 %v1265_v4, %s15772_s0  ;;  %v1208_v11 = vsel %vm657_vm0, %v11565_v40, %v1165_v5  ;;  %v9644_v40 = vld [vmem:[%s15740_s3 + $0x10] sm:$0xff] }
 0x1a1   : > { %1275 = vrot.lane.b32.xlu0 %v1266_v6, %s15772_s0  ;;  %v1212_v9 = vsel %vm657_vm0, %v11569_v43, %v1166_v7  ;;  %v9645_v43 = vld [vmem:[%s15740_s3 + $0x18] sm:$0xf]  ;;  %v1220_v38 = vsel %vm657_vm0, %v11588_v10, %v1168_v20 }
 0x1a2   : > { %1401 = vmatprep.subr.bf16.mxu1 %v1212_v9 }
 0x1a3   : > { %1402 = vmatpush1.bf16.msra.mxu1 %v1208_v11 }
 0x1a4   : > { %1277 = vrot.lane.b32.xlu1 %v1267_v12, %s15772_s0 }
 0x1a5   : > { %1269 = vrot.lane.b32.xlu0 %v1263_v13, %s15772_s0 }
 0x1a8   : > { %1256 = vrot.lane.b32.xlu1 %v1245_v14, %s15772_s0 }
 0x1a9   : > { %1279 = vrot.lane.b32.xlu0 %v1268_v15, %s15772_s0 }
 0x1ac   : > { %1330 = vperm.xlu1 %10811, %v9644_v40  }
 0x1ad   : > { %1335 = vperm.xlu0 %10810, %v9645_v43  }
 0x1f6   : > { %v1182_v16 = vpop.permute.xlu1 %1181 }
 0x1fa   : > { %v1186_v17 = vpop.permute.xlu0 %1185  ;;  %v1184_v21 = vpop.permute.xlu1 %1183 }
 0x1fb   : > { %v1193_v22 = vsel %vm651_vm1, %v1182_v16, %v1184_v21  ;;  %v1194_v24 = vsel %vm651_vm1, %v1184_v21, %v1186_v17 }
 0x1fc   : > { %v1226_v26 = vsel %vm682_vm2, %v1164_v27, %v1194_v24  ;;  %v1223_v28 = vsel %vm682_vm2, %v1163_v23, %v1193_v22  ;;  %v1346_v25 = vsel %vm808_vm3, %v1193_v22, 0  ;;  %v1167_v27 = vrot.slane %v11627_v63, 2 }
 0x1fd   : > { %1360 = vmatprep.subr.bf16.mxu0 %v1226_v26 }
 0x1fe   : > { %v1251_v31 = vpop.permute.xlu0 %1250  ;;  %1361 = vmatpush1.bf16.msra.mxu0 %v1223_v28  ;;  %v1249_v32 = vpop.permute.xlu1 %1248  ;;  %v1216_v30 = vsel %vm657_vm0, %v11584_v8, %v1167_v27 }
 0x1ff   : > { %9647 = vmatprep.subr.msk.bf16.mxu0 %vm808_vm3, %v1194_v24  ;;  %v1259_v47 = vsel %vm651_vm1, %v1249_v32, %v1251_v31 }
 0x200   : > { %v1292_v29 = vsel %vm657_vm0, %v11596_v19, %v1259_v47 }
 0x202   : > { %v1188_v37 = vpop.permute.xlu0 %1187  ;;  %1363 = vmatpush1.bf16.msra.mxu0 %v1346_v25  ;;  %v1253_v23 = vpop.permute.xlu1 %1252 }
 0x203   : > { %1444 = vmatprep.subr.bf16.mxu0 %v1220_v38  ;;  %v1195_v39 = vsel %vm651_vm1, %v1186_v17, %v1188_v37  ;;  %v1260_v33 = vsel %vm651_vm1, %v1251_v31, %v1253_v23 }
 0x204   : > { %v1229_v10 = vsel %vm682_vm2, %v1165_v5, %v1195_v39  ;;  %v1350_v51 = vsel %vm808_vm3, %v1195_v39, 0  ;;  %v1296_v60 = vsel %vm657_vm0, %v11625_v2, %v1260_v33 }
 0x205   : > { %9648 = vmatmul.mubr.msk.bf16.vlgmr.msra.gmra.mrb[12].mxu0 %vm15784_vm4, %v11672_v36 }
 0x206   : > { %v11682_v41 = vpop.permute.xlu0 %1254  ;;  %1445 = vmatpush1.bf16.msra.mxu0 %v1216_v30  ;;  %v1190_v42 = vpop.permute.xlu1 %1189  ;;  %1476 = vmatprep.mubr.bf16.mxu0 %v11239_v50 }
 0x207   : > { %v1196_v44 = vsel %vm651_vm1, %v1188_v37, %v1190_v42  ;;  %v1261_v52 = vsel %vm651_vm1, %v1253_v23, %v11682_v41 }
 0x208   : > { %v1232_v45 = vsel %vm682_vm2, %v1166_v7, %v1196_v44  ;;  %v1300_v55 = vsel %vm657_vm0, %v11630_v1, %v1261_v52 }
 0x209   : > { %1403 = vmatprep.subr.bf16.mxu1 %v1232_v45 }
 0x20a   : > { %v1192_v46 = vpop.permute.xlu0 %1191  ;;  %1404 = vmatpush1.bf16.msra.mxu1 %v1229_v10  ;;  %v1247_v8 = vpop.permute.xlu1 %1246 }
 0x20b   : > { %9649 = vmatprep.subr.msk.bf16.mxu1 %vm808_vm3, %v1196_v44  ;;  %v1238_v48 = vsel %vm682_vm2, %v1168_v20, %v1192_v46  ;;  %v1197_v0 = vsel %vm651_vm1, %v1190_v42, %v1192_v46  ;;  %v1258_v35 = vsel %vm651_vm1, %v1247_v8, %v1249_v32 }
 0x20c   : > { %1446 = vmatprep.subr.bf16.mxu0 %v1238_v48  ;;  %v1235_v49 = vsel %vm682_vm2, %v1167_v27, %v1197_v0  ;;  %v1354_v34 = vsel %vm808_vm3, %v1197_v0, 0  ;;  %v1288_v54 = vsel %vm657_vm0, %v11592_v18, %v1258_v35 }
 0x20d   : > { %1447 = vmatpush1.bf16.msra.mxu0 %v1235_v49 }
 0x20e   : > { %v1272_v53 = vpop.permute.xlu0 %1271  ;;  %1406 = vmatpush1.bf16.msra.mxu1 %v1350_v51  ;;  %9651 = vmatprep.subr.msk.bf16.mxu0 %vm808_vm3, %v1192_v46 }
 0x20f   : > { %1523 = vmatprep.subr.bf16.mxu1 %v1292_v29 }
 0x211   : > { %9650 = vmatmul.mubr.msk.bf16.vlgmr.msra.gmra.mrb[12].mxu1 %vm15784_vm4, %v11672_v36  ;;  %1449 = vmatpush1.bf16.msra.mxu0 %v1354_v34 }
 0x212   : > { %1524 = vmatpush1.bf16.msra.mxu1 %v1288_v54  ;;  %1566 = vmatprep.subr.bf16.mxu0 %v1300_v55  ;;  %v1274_v56 = vpop.permute.xlu1 %1273 }
 0x213   : > { %v1282_v19 = vsel %vm651_vm1, %v1272_v53, %v1274_v56  ;;  %v1276_v57 = vpop.permute.xlu0 %1275  ;;  %1555 = vmatprep.mubr.bf16.mxu1 %v11239_v50 }
 0x214   : > { %9652 = vmatmul.mubr.msk.bf16.vlgmr.msra.gmra.mrb[16].mxu0 %vm15784_vm4, %v11672_v36  ;;  %v1314_v59 = vsel %vm682_vm2, %v1259_v47, %v1282_v19  ;;  %v1283_v18 = vsel %vm651_vm1, %v1274_v56, %v1276_v57 }
 0x215   : > { %1525 = vmatprep.subr.bf16.mxu1 %v1314_v59  ;;  %1567 = vmatpush1.bf16.msra.mxu0 %v1296_v60  ;;  %v1317_v6 = vsel %vm682_vm2, %v1260_v33, %v1283_v18  ;;  %v1515_v9 = vsel %vm808_vm3, %v1283_v18, 0 }
 0x216   : > { %v1278_v58 = vpop.permute.xlu1 %1277  ;;  %1598 = vmatprep.mubr.bf16.mxu0 %v11239_v50 }
 0x217   : > { %v1284_v61 = vsel %vm651_vm1, %v1276_v57, %v1278_v58  ;;  %v1270_v62 = vpop.permute.xlu0 %1269 }
 0x218   : > { %v1281_v1 = vsel %vm651_vm1, %v1270_v62, %v1272_v53  ;;  %v1320_v4 = vsel %vm682_vm2, %v1261_v52, %v1284_v61 }
 0x219   : > { %1568 = vmatprep.subr.bf16.mxu0 %v1320_v4  ;;  %v1311_v5 = vsel %vm682_vm2, %v1258_v35, %v1281_v1  ;;  %v1511_v7 = vsel %vm808_vm3, %v1281_v1, 0 }
 0x21a   : > { %1526 = vmatpush1.bf16.msra.mxu1 %v1311_v5  ;;  %1569 = vmatpush1.bf16.msra.mxu0 %v1317_v6  ;;  %v1257_v2 = vpop.permute.xlu1 %1256 }
 0x21b   : > { %9653 = vmatprep.subr.msk.bf16.mxu1 %vm808_vm3, %v1282_v19  ;;  %9655 = vmatprep.subr.msk.bf16.mxu0 %vm808_vm3, %v1284_v61  ;;  %v1308_v11 = vsel %vm657_vm0, %v11632_v3, %v1257_v2  ;;  %v1262_v12 = vsel %vm651_vm1, %v11682_v41, %v1257_v2  ;;  %v1280_v13 = vpop.permute.xlu0 %1279 }
 0x21c   : > { %v1304_v14 = vsel %vm657_vm0, %v11627_v63, %v1262_v12  ;;  %v1326_v15 = vsel %vm682_vm2, %v1257_v2, %v1280_v13  ;;  %v1285_v40 = vsel %vm651_vm1, %v1278_v58, %v1280_v13 }
 0x21d   : > { %v1323_v3 = vsel %vm682_vm2, %v1262_v12, %v1285_v40  ;;  %v1519_v43 = vsel %vm808_vm3, %v1285_v40, 0 }
 0x21e   : > { %1528 = vmatpush1.bf16.msra.mxu1 %v1511_v7  ;;  %1571 = vmatpush1.bf16.msra.mxu0 %v1515_v9 }
 0x21f   : > { %1609 = vmatprep.subr.bf16.mxu1 %v1308_v11 }
 0x221   : > { %9654 = vmatmul.mubr.msk.bf16.vlgmr.msra.gmra.mrb[16].mxu1 %vm15784_vm4, %v11672_v36  ;;  %9656 = vmatmul.mubr.msk.bf16.vlgmr.msra.gmra.mrb[20].mxu0 %vm15784_vm4, %v11672_v36 }
 0x222   : > { %1610 = vmatpush1.bf16.msra.mxu1 %v1304_v14  ;;  %1641 = vmatprep.mubr.bf16.mxu1 %v11239_v50 }
 0x223   : > { %1611 = vmatprep.subr.bf16.mxu1 %v1326_v15 }
 0x226   : > { %1612 = vmatpush1.bf16.msra.mxu1 %v1323_v3 }
 0x227   : > { %9657 = vmatprep.subr.msk.bf16.mxu1 %vm808_vm3, %v1280_v13 }
 0x22a   : > { %1614 = vmatpush1.bf16.msra.mxu1 %v1519_v43 }
 0x22b   : > { %v11744_v63 = vpop.permute.xlu1 %1330 }
 0x22c   : > { %v11747_v22 = vpop.permute.xlu0 %1335 }
 0x22d   : > { %9658 = vmatmul.mubr.msk.bf16.vlgmr.msra.gmra.mrb[20].mxu1 %vm15784_vm4, %v11672_v36 }
 0x2d8   : > { %v1392_v16 = vpop.f32.mrb[12].mxu0 }
 0x2d9   : > { %v1393_v17 = vadd.f32 %v1392_v16, %v11744_v63  ;;  %v1394_v21 = vpop.f32.mrb[13].mxu0 }
 0x2da   : > { %v1395_v24 = vadd.f32 %v1394_v21, %v11744_v63  ;;  %v1396_v26 = vpop.f32.mrb[14].mxu0 }
 0x2db   : > { %v1487_v28 = vmul.f32 0.3, %v1393_v17  ;;  %v1397_v31 = vadd.f32 %v1396_v26, %v11747_v22  ;;  %v1398_v32 = vpop.f32.mrb[15].mxu0 }
 0x2dc   : > { %v1488_v20 = vmul.f32 0.3, %v1395_v24  ;;  %v1399_v25 = vadd.f32 %v1398_v32, %v11747_v22 }
 0x2dd   : > { %v1493_v27 = vmul.f32 0.3, %v1397_v31  ;;  %v1499_v37 = vmax.f32 %v1393_v17, %v1487_v28 }
 0x2de   : > { %v1494_v36 = vmul.f32 0.3, %v1399_v25  ;;  %v1500_v38 = vmax.f32 %v1395_v24, %v1488_v20 }
 0x2df   : > { %v1505_v23 = vmax.f32 %v1397_v31, %v1493_v27 }
 0x2e0   : > { %v1506_v30 = vmax.f32 %v1399_v25, %v1494_v36 }
 0x2e1   : > { %v11752_v39 = vpack.c.bf16 %v1505_v23, %v1499_v37 }
 0x2e2   : > { %v11754_v41 = vpack.c.bf16 %v1506_v30, %v1500_v38 }
 0x2e3   : > { %1759 = vrot.lane.b32.xlu1 %v11752_v39, %s15758_s17  ;;  %v11759_v42 = vrot.slane %v11752_v39, 4 }
 0x2e4   : > { %v1435_v44 = vpop.f32.mrb[12].mxu1 }
 0x2e5   : > { %v1436_v45 = vadd.f32 %v1435_v44, %v11744_v63  ;;  %v1437_v10 = vpop.f32.mrb[13].mxu1  ;;  %1719 = vrot.lane.b32.xlu0 %v11759_v42, %s15772_s0 }
 0x2e6   : > { %v1438_v46 = vadd.f32 %v1437_v10, %v11744_v63  ;;  %v1439_v47 = vpop.f32.mrb[14].mxu1 }
 0x2e7   : > { %v1489_v8 = vmul.f32 0.3, %v1436_v45  ;;  %v1440_v48 = vadd.f32 %v1439_v47, %v11747_v22  ;;  %v1441_v0 = vpop.f32.mrb[15].mxu1  ;;  %v1478_v49 = vpop.f32.mrb[16].mxu0  ;;  %1829 = vrot.lane.b32.xlu1 %v11752_v39, %s15766_s18 }
 0x2e8   : > { %v1490_v51 = vmul.f32 0.3, %v1438_v46  ;;  %v1442_v52 = vadd.f32 %v1441_v0, %v11747_v22  ;;  %v1479_v35 = vadd.f32 %v1478_v49, %v11744_v63  ;;  %v1480_v53 = vpop.f32.mrb[17].mxu0 }
 0x2e9   : > { %v1495_v29 = vmul.f32 0.3, %v1440_v48  ;;  %v1481_v34 = vadd.f32 %v1480_v53, %v11744_v63  ;;  %v1482_v33 = vpop.f32.mrb[18].mxu0  ;;  %1794 = vrot.lane.b32.xlu0 %v11759_v42, %s15776_s19  ;;  %v1501_v57 = vmax.f32 %v1436_v45, %v1489_v8 }
 0x2ea   : > { %v1496_v54 = vmul.f32 0.3, %v1442_v52  ;;  %v1491_v55 = vmul.f32 0.3, %v1479_v35  ;;  %v1483_v56 = vadd.f32 %v1482_v33, %v11747_v22  ;;  %v1484_v19 = vpop.f32.mrb[19].mxu0  ;;  %v1502_v58 = vmax.f32 %v1438_v46, %v1490_v51 }
 0x2eb   : > { %v1507_v59 = vmax.f32 %v1440_v48, %v1495_v29  ;;  %v1492_v60 = vmul.f32 0.3, %v1481_v34  ;;  %v1485_v18 = vadd.f32 %v1484_v19, %v11747_v22  ;;  %1899 = vrot.lane.b32.xlu1 %v11752_v39, %s15778_s20 }
 0x2ec   : > { %v1508_v61 = vmax.f32 %v1442_v52, %v1496_v54  ;;  %v1497_v62 = vmul.f32 0.3, %v1483_v56  ;;  %v1503_v6 = vmax.f32 %v1479_v35, %v1491_v55 }
 0x2ed   : > { %v11777_v1 = vpack.c.bf16 %v1507_v59, %v1501_v57  ;;  %v1498_v4 = vmul.f32 0.3, %v1485_v18  ;;  %v1504_v7 = vmax.f32 %v1481_v34, %v1492_v60 }
 0x2ee   : > { %v11779_v5 = vpack.c.bf16 %v1508_v61, %v1502_v58  ;;  %v1509_v2 = vmax.f32 %v1483_v56, %v1497_v62  ;;  %v1714_v61 = vrot.slane %v11754_v41, 4 }
 0x2ef   : > { %v1510_v9 = vmax.f32 %v1485_v18, %v1498_v4  ;;  %1761 = vrot.lane.b32.xlu1 %v11754_v41, %s15758_s17  ;;  %1763 = vrot.lane.b32.xlu0 %v11777_v1, %s15758_s17  ;;  %v1715_v44 = vrot.slane %v11777_v1, 4 }
 0x2f0   : > { %v11785_v11 = vpack.c.bf16 %v1509_v2, %v1503_v6 }
 0x2f1   : > { %v11787_v12 = vpack.c.bf16 %v1510_v9, %v1504_v7 }
 0x2f3   : > { %1831 = vrot.lane.b32.xlu1 %v11754_v41, %s15766_s18  ;;  %1833 = vrot.lane.b32.xlu0 %v11777_v1, %s15766_s18 }
 0x2f4   : > { %v1557_v13 = vpop.f32.mrb[16].mxu1  ;;  %v1600_v14 = vpop.f32.mrb[20].mxu0 }
 0x2f5   : > { %v1558_v15 = vadd.f32 %v1557_v13, %v11744_v63  ;;  %v1601_v40 = vadd.f32 %v1600_v14, %v11744_v63  ;;  %v1559_v3 = vpop.f32.mrb[17].mxu1  ;;  %v1602_v43 = vpop.f32.mrb[21].mxu0 }
 0x2f6   : > { %v1560_v16 = vadd.f32 %v1559_v3, %v11744_v63  ;;  %v1603_v17 = vadd.f32 %v1602_v43, %v11744_v63  ;;  %v1561_v21 = vpop.f32.mrb[18].mxu1  ;;  %v1604_v24 = vpop.f32.mrb[22].mxu0 }
 0x2f7   : > { %v1652_v26 = vmul.f32 0.3, %v1558_v15  ;;  %v1654_v28 = vmul.f32 0.3, %v1601_v40  ;;  %v1562_v31 = vadd.f32 %v1561_v21, %v11747_v22  ;;  %v1605_v32 = vadd.f32 %v1604_v24, %v11747_v22  ;;  %v1563_v20 = vpop.f32.mrb[19].mxu1  ;;  %v1606_v25 = vpop.f32.mrb[23].mxu0  ;;  %1901 = vrot.lane.b32.xlu1 %v11754_v41, %s15778_s20  ;;  %1903 = vrot.lane.b32.xlu0 %v11777_v1, %s15778_s20 }
 0x2f8   : > { %v1653_v27 = vmul.f32 0.3, %v1560_v16  ;;  %v1655_v36 = vmul.f32 0.3, %v1603_v17  ;;  %v1564_v37 = vadd.f32 %v1563_v20, %v11747_v22  ;;  %v1607_v23 = vadd.f32 %v1606_v25, %v11747_v22 }
 0x2f9   : > { %v1658_v38 = vmul.f32 0.3, %v1562_v31  ;;  %v1660_v30 = vmul.f32 0.3, %v1605_v32  ;;  %v1664_v45 = vmax.f32 %v1558_v15, %v1652_v26  ;;  %v1666_v47 = vmax.f32 %v1601_v40, %v1654_v28 }
 0x2fa   : > { %v1659_v10 = vmul.f32 0.3, %v1564_v37  ;;  %v1661_v46 = vmul.f32 0.3, %v1607_v23  ;;  %v1665_v0 = vmax.f32 %v1560_v16, %v1653_v27  ;;  %v1667_v49 = vmax.f32 %v1603_v17, %v1655_v36 }
 0x2fb   : > { %v1670_v8 = vmax.f32 %v1562_v31, %v1658_v38  ;;  %v1672_v48 = vmax.f32 %v1605_v32, %v1660_v30  ;;  %1864 = vrot.lane.b32.xlu1 %v11759_v42, %s15760_s23  ;;  %1723 = vrot.lane.b32.xlu0 %v1715_v44, %s15772_s0  ;;  %v11898_v24 = vrot.slane %v11785_v11, 4  ;;  %v11901_v26 = vrot.slane %v11787_v12, 4 }
 0x2fc   : > { %v1671_v51 = vmax.f32 %v1564_v37, %v1659_v10  ;;  %v1673_v52 = vmax.f32 %v1607_v23, %v1661_v46 }
 0x2fd   : > { %v1689_v35 = vpack.c.bf16 %v1670_v8, %v1664_v45  ;;  %v1691_v53 = vpack.c.bf16 %v1672_v48, %v1666_v47 }
 0x2fe   : > { %v1690_v29 = vpack.c.bf16 %v1671_v51, %v1665_v0  ;;  %v11809_v34 = vpack.c.bf16 %v1673_v52, %v1667_v49 }
 0x2ff   : > { %1934 = vrot.lane.b32.xlu1 %v11759_v42, %s15768_s24  ;;  %1798 = vrot.lane.b32.xlu0 %v1715_v44, %s15776_s19  ;;  %v11814_v33 = vrot.slane %v1689_v35, 2  ;;  %v11816_v54 = vrot.slane %v1691_v53, 2  ;;  %v1736_v43 = vrot.slane %v1689_v35, 6  ;;  %v1738_v17 = vrot.slane %v1691_v53, 6 }
 0x300   : > { %v11818_v55 = vrot.slane %v1690_v29, 2  ;;  %v11821_v56 = vrot.slane %v11809_v34, 2  ;;  %v1643_v19 = vpop.f32.mrb[20].mxu1  ;;  %v11892_v21 = vrot.slane %v11809_v34, 6 }
 0x301   : > { %v1644_v57 = vadd.f32 %v1643_v19, %v11744_v63  ;;  %v1645_v59 = vpop.f32.mrb[21].mxu1  ;;  %v1971_v7 = vsel %vm657_vm0, %v11752_v39, %v11814_v33  ;;  %v11859_v39 = vrot.slane %v11779_v5, 4 }
 0x302   : > { %v1646_v60 = vadd.f32 %v1645_v59, %v11744_v63  ;;  %v1647_v18 = vpop.f32.mrb[22].mxu1  ;;  %v11828_v42 = vsel %vm657_vm0, %v11754_v41, %v11818_v55  ;;  %v11833_v58 = vsel %vm657_vm0, %v11779_v5, %v11821_v56  ;;  %v1979_v41 = vsel %vm657_vm0, %v11777_v1, %v11816_v54 }
 0x303   : > { %v1656_v62 = vmul.f32 0.3, %v1644_v57  ;;  %v1648_v4 = vadd.f32 %v1647_v18, %v11747_v22  ;;  %v1649_v6 = vpop.f32.mrb[23].mxu1  ;;  %2413 = vmatprep.subr.bf16.mxu0 %v11828_v42  ;;  %2499 = vmatprep.subr.bf16.mxu1 %v11833_v58  ;;  %v1737_v1 = vrot.slane %v1690_v29, 6 }
 0x304   : > { %v1657_v63 = vmul.f32 0.3, %v1646_v60  ;;  %v1650_v2 = vadd.f32 %v1649_v6, %v11747_v22  ;;  %1721 = vrot.lane.b32.xlu1 %v1714_v61, %s15772_s0  ;;  %1868 = vrot.lane.b32.xlu0 %v1715_v44, %s15760_s23 }
 0x305   : > { %v1662_v9 = vmul.f32 0.3, %v1648_v4  ;;  %2414 = vmatpush1.bf16.msra.mxu0 %v1971_v7  ;;  %2500 = vmatpush1.bf16.msra.mxu1 %v1979_v41  ;;  %v1668_v14 = vmax.f32 %v1644_v57, %v1656_v62 }
 0x306   : > { %v1663_v13 = vmul.f32 0.3, %v1650_v2  ;;  %v1669_v40 = vmax.f32 %v1646_v60, %v1657_v63 }
 0x307   : > { %v1674_v15 = vmax.f32 %v1648_v4, %v1662_v9 }
 0x308   : > { %v1675_v22 = vmax.f32 %v1650_v2, %v1663_v13  ;;  %1796 = vrot.lane.b32.xlu1 %v1714_v61, %s15776_s19  ;;  %1938 = vrot.lane.b32.xlu0 %v1715_v44, %s15768_s24 }
 0x309   : > { %v1693_v3 = vpack.c.bf16 %v1674_v15, %v1668_v14 }
 0x30a   : > { %v1694_v16 = vpack.c.bf16 %v1675_v22, %v1669_v40 }
 0x30b   : > { %v11930_v20 = vrot.slane %v1693_v3, 6  ;;  %v11940_v36 = vrot.slane %v1693_v3, 2 }
 0x30c   : > { %1866 = vrot.lane.b32.xlu1 %v1714_v61, %s15760_s23  ;;  %1742 = vrot.lane.b32.xlu0 %v1736_v43, %s15772_s0  ;;  %v11942_v37 = vrot.slane %v1694_v16, 2  ;;  %v11950_v30 = vrot.slane %v1694_v16, 6 }
 0x310   : > { %1936 = vrot.lane.b32.xlu1 %v1714_v61, %s15768_s24  ;;  %1777 = vrot.lane.b32.xlu0 %v11814_v33, %s15758_s17 }
 0x314   : > { %1765 = vrot.lane.b32.xlu1 %v11779_v5, %s15758_s17  ;;  %1812 = vrot.lane.b32.xlu0 %v1736_v43, %s15776_s19 }
 0x318   : > { %1725 = vrot.lane.b32.xlu1 %v11859_v39, %s15772_s0  ;;  %1847 = vrot.lane.b32.xlu0 %v11814_v33, %s15766_s18 }
 0x31c   : > { %1800 = vrot.lane.b32.xlu1 %v11859_v39, %s15776_s19  ;;  %1882 = vrot.lane.b32.xlu0 %v1736_v43, %s15760_s23 }
 0x320   : > { %1744 = vrot.lane.b32.xlu1 %v1737_v1, %s15772_s0  ;;  %1917 = vrot.lane.b32.xlu0 %v11814_v33, %s15778_s20 }
 0x324   : > { %1781 = vrot.lane.b32.xlu1 %v11816_v54, %s15758_s17  ;;  %1952 = vrot.lane.b32.xlu0 %v1736_v43, %s15768_s24 }
 0x328   : > { %1814 = vrot.lane.b32.xlu1 %v1737_v1, %s15776_s19  ;;  %1746 = vrot.lane.b32.xlu0 %v1738_v17, %s15772_s0 }
 0x32c   : > { %1849 = vrot.lane.b32.xlu1 %v11818_v55, %s15766_s18  ;;  %1779 = vrot.lane.b32.xlu0 %v11818_v55, %s15758_s17 }
 0x330   : > { %1886 = vrot.lane.b32.xlu1 %v1738_v17, %s15760_s23  ;;  %1816 = vrot.lane.b32.xlu0 %v1738_v17, %s15776_s19 }
 0x334   : > { %1919 = vrot.lane.b32.xlu1 %v11818_v55, %s15778_s20  ;;  %1851 = vrot.lane.b32.xlu0 %v11816_v54, %s15766_s18 }
 0x338   : > { %1956 = vrot.lane.b32.xlu1 %v1738_v17, %s15768_s24  ;;  %1884 = vrot.lane.b32.xlu0 %v1737_v1, %s15760_s23 }
 0x33c   : > { %2245 = vrot.lane.b32.xlu1 %v1971_v7, %s15756_s25  ;;  %1921 = vrot.lane.b32.xlu0 %v11816_v54, %s15778_s20 }
 0x340   : > { %1748 = vrot.lane.b32.xlu1 %v11892_v21, %s15772_s0  ;;  %1954 = vrot.lane.b32.xlu0 %v1737_v1, %s15768_s24 }
 0x344   : > { %1727 = vrot.lane.b32.xlu1 %v11898_v24, %s15772_s0  ;;  %1729 = vrot.lane.b32.xlu0 %v11901_v26, %s15772_s0 }
 0x348   : > { %1767 = vrot.lane.b32.xlu1 %v11785_v11, %s15758_s17  ;;  %1783 = vrot.lane.b32.xlu0 %v11821_v56, %s15758_s17 }
 0x34c   : > { %1804 = vrot.lane.b32.xlu1 %v11901_v26, %s15776_s19  ;;  %1769 = vrot.lane.b32.xlu0 %v11787_v12, %s15758_s17 }
 0x350   : > { %1818 = vrot.lane.b32.xlu1 %v11892_v21, %s15776_s19  ;;  %1802 = vrot.lane.b32.xlu0 %v11898_v24, %s15776_s19 }
 0x354   : > { %1835 = vrot.lane.b32.xlu1 %v11779_v5, %s15766_s18  ;;  %1837 = vrot.lane.b32.xlu0 %v11785_v11, %s15766_s18 }
 0x355   : > { %v11923_v28 = vpop.permute.xlu1 %1759 }
 0x357   : > { %v1720_v31 = vpop.permute.xlu0 %1719 }
 0x358   : > { %2247 = vrot.lane.b32.xlu1 %v11828_v42, %s15756_s25  ;;  %2249 = vrot.lane.b32.xlu0 %v1979_v41, %s15756_s25 }
 0x359   : > { %v11928_v32 = vpop.permute.xlu1 %1829 }
 0x35b   : > { %v11936_v25 = vpop.permute.xlu0 %1794 }
 0x35c   : > { %1853 = vrot.lane.b32.xlu1 %v11821_v56, %s15766_s18  ;;  %1750 = vrot.lane.b32.xlu0 %v11930_v20, %s15772_s0 }
 0x35d   : > { %v11938_v27 = vpop.permute.xlu1 %1899 }
 0x360   : > { %1785 = vrot.lane.b32.xlu1 %v11940_v36, %s15758_s17  ;;  %1787 = vrot.lane.b32.xlu0 %v11942_v37, %s15758_s17 }
 0x361   : > { %v1762_v23 = vpop.permute.xlu1 %1761  ;;  %v11948_v38 = vpop.permute.xlu0 %1763 }
 0x362   : > { %v1772_v16 = vsel %vm1771_vm5, %v11923_v28, %v1762_v23  ;;  %v1773_v1 = vsel %vm1771_vm5, %v1762_v23, %v11948_v38 }
 0x364   : > { %1820 = vrot.lane.b32.xlu1 %v11930_v20, %s15776_s19  ;;  %1822 = vrot.lane.b32.xlu0 %v11950_v30, %s15776_s19 }
 0x365   : > { %v11956_v44 = vpop.permute.xlu1 %1831  ;;  %v11958_v45 = vpop.permute.xlu0 %1833 }
 0x368   : > { %1752 = vrot.lane.b32.xlu1 %v11950_v30, %s15772_s0 }
 0x369   : > { %v11962_v10 = vpop.permute.xlu1 %1901  ;;  %v11964_v46 = vpop.permute.xlu0 %1903 }
 0x36d   : > { %v11966_v47 = vpop.permute.xlu1 %1864  ;;  %v1724_v8 = vpop.permute.xlu0 %1723 }
 0x371   : > { %v11968_v48 = vpop.permute.xlu1 %1934  ;;  %v11970_v0 = vpop.permute.xlu0 %1798 }
 0x376   : > { %v1722_v49 = vpop.permute.xlu1 %1721  ;;  %v11972_v51 = vpop.permute.xlu0 %1868 }
 0x377   : > { %v1731_v52 = vsel %vm651_vm1, %v1720_v31, %v1722_v49  ;;  %v1732_v35 = vsel %vm651_vm1, %v1722_v49, %v1724_v8 }
 0x378   : > { %v1994_v53 = vsel %vm682_vm2, %v11814_v33, %v1731_v52  ;;  %v1997_v29 = vsel %vm682_vm2, %v11818_v55, %v1732_v35 }
 0x379   : > { %2257 = vrot.lane.b32.xlu0 %v1994_v53, %s15756_s25  ;;  %2415 = vmatprep.subr.bf16.mxu0 %v1997_v29 }
 0x37a   : > { %v1797_v34 = vpop.permute.xlu1 %1796  ;;  %2416 = vmatpush1.bf16.msra.mxu0 %v1994_v53  ;;  %v11981_v19 = vpop.permute.xlu0 %1938 }
 0x37d   : > { %2259 = vrot.lane.b32.xlu0 %v1997_v29, %s15756_s25  ;;  %v1807_v29 = vsel %vm1806_vm6, %v11936_v25, %v1797_v34  ;;  %v1843_v25 = vsel %vm15792_vm7, %v11956_v44, %v11958_v45 }
 0x37e   : > { %v11984_v57 = vpop.permute.xlu1 %1866  ;;  %v1743_v59 = vpop.permute.xlu0 %1742 }
 0x382   : > { %v11986_v60 = vpop.permute.xlu1 %1936  ;;  %v1778_v18 = vpop.permute.xlu0 %1777 }
 0x386   : > { %v11988_v42 = vpop.permute.xlu1 %1765  ;;  %v1813_v33 = vpop.permute.xlu0 %1812 }
 0x38a   : > { %v11990_v61 = vpop.permute.xlu1 %1725  ;;  %v1848_v55 = vpop.permute.xlu0 %1847 }
 0x38b   : > { %v11994_v62 = vsel %vm651_vm1, %v1724_v8, %v11990_v61 }
 0x38c   : > { %v11999_v4 = vsel %vm682_vm2, %v11816_v54, %v11994_v62 }
 0x38d   : > { %2261 = vrot.lane.b32.xlu1 %v11999_v4, %s15756_s25 }
 0x38e   : > { %v12003_v6 = vpop.permute.xlu1 %1800  ;;  %v12005_v63 = vpop.permute.xlu0 %1882 }
 0x392   : > { %v1745_v2 = vpop.permute.xlu1 %1744  ;;  %v12007_v7 = vpop.permute.xlu0 %1917 }
 0x393   : > { %v1754_v13 = vsel %vm651_vm1, %v1743_v59, %v1745_v2 }
 0x394   : > { %v2012_v22 = vsel %vm808_vm3, %v1731_v52, %v1754_v13  ;;  %v1808_v52 = vsel %vm1806_vm6, %v1797_v34, %v11970_v0 }
 0x396   : > { %v12009_v41 = vpop.permute.xlu1 %1781  ;;  %v12011_v9 = vpop.permute.xlu0 %1952 }
 0x39a   : > { %v1815_v14 = vpop.permute.xlu1 %1814  ;;  %v12014_v15 = vpop.permute.xlu0 %1746 }
 0x39b   : > { %v1755_v54 = vsel %vm651_vm1, %v1745_v2, %v12014_v15  ;;  %v1824_v13 = vsel %vm1806_vm6, %v1813_v33, %v1815_v14 }
 0x39c   : > { %v2015_v40 = vsel %vm808_vm3, %v1732_v35, %v1755_v54 }
 0x39d   : > { %2271 = vrot.lane.b32.xlu1 %v2015_v40, %s15756_s25  ;;  %2417 = vmatprep.subr.bf16.mxu0 %v2015_v40 }
 0x39e   : > { %v1850_v3 = vpop.permute.xlu1 %1849  ;;  %2418 = vmatpush1.bf16.msra.mxu0 %v2012_v22  ;;  %v1780_v43 = vpop.permute.xlu0 %1779 }
 0x39f   : > { %v1789_v17 = vsel %vm1771_vm5, %v1778_v18, %v1780_v43  ;;  %v1790_v31 = vsel %vm1771_vm5, %v1780_v43, %v12009_v41 }
 0x3a0   : > { %v2035_v8 = vsel %vm657_vm0, %v1773_v1, %v1790_v31  ;;  %v2031_v49 = vsel %vm657_vm0, %v1772_v16, %v1789_v17  ;;  %v2057_v35 = vsel %vm682_vm2, %v1790_v31, %v1808_v52  ;;  %v2054_v18 = vsel %vm682_vm2, %v1789_v17, %v1807_v29 }
 0x3a1   : > { %2269 = vrot.lane.b32.xlu1 %v2012_v22, %s15756_s25  ;;  %2283 = vrot.lane.b32.xlu0 %v2035_v8, %s15756_s25  ;;  %v2072_v22 = vsel %vm808_vm3, %v1807_v29, %v1824_v13  ;;  %v1842_v16 = vsel %vm15792_vm7, %v11928_v32, %v11956_v44  ;;  %v1878_v1 = vsel %vm15800_vm8, %v11984_v57, %v11972_v51 }
 0x3a2   : > { %2419 = vmatprep.subr.bf16.mxu0 %v2035_v8  ;;  %v12034_v28 = vpop.permute.xlu1 %1886  ;;  %v12036_v23 = vpop.permute.xlu0 %1816  ;;  %v1877_v32 = vsel %vm15800_vm8, %v11966_v47, %v11984_v57  ;;  %v12092_v47 = vld [vmem:[%s15741_s4 + $0x4] ss:$12 sps:$4 sm:$0x3f]  }
 0x3a3   : > { %2420 = vmatpush1.bf16.msra.mxu0 %v2031_v49  ;;  %v1825_v53 = vsel %vm1806_vm6, %v1815_v14, %v12036_v23  ;;  %v1859_v14 = vsel %vm15792_vm7, %v1848_v55, %v1850_v3  ;;  %2445 = vmatprep.mubr.bf16.mxu0 %v12092_v47 }
 0x3a4   : > { %2421 = vmatprep.subr.bf16.mxu0 %v2057_v35  ;;  %v2075_v54 = vsel %vm808_vm3, %v1808_v52, %v1825_v53  ;;  %v2091_v31 = vsel %vm657_vm0, %v1842_v16, %v1859_v14  ;;  %2531 = vmatprep.mubr.bf16.mxu1 %v12092_v47 }
 0x3a5   : > { %2295 = vrot.lane.b32.xlu1 %v2057_v35, %s15756_s25  ;;  %2281 = vrot.lane.b32.xlu0 %v2031_v49, %s15756_s25  ;;  %v2114_v49 = vsel %vm682_vm2, %v1859_v14, %v1877_v32 }
 0x3a6   : > { %v1920_v59 = vpop.permute.xlu1 %1919  ;;  %v12046_v2 = vpop.permute.xlu0 %1851 }
 0x3a7   : > { %2422 = vmatpush1.bf16.msra.mxu0 %v2054_v18  ;;  %v1860_v40 = vsel %vm15792_vm7, %v1850_v3, %v12046_v2 }
 0x3a8   : > { %2423 = vmatprep.subr.bf16.mxu0 %v2075_v54  ;;  %v2095_v43 = vsel %vm657_vm0, %v1843_v25, %v1860_v40  ;;  %v2117_v55 = vsel %vm682_vm2, %v1860_v40, %v1878_v1 }
 0x3a9   : > { %2293 = vrot.lane.b32.xlu1 %v2054_v18, %s15756_s25  ;;  %2307 = vrot.lane.b32.xlu0 %v2075_v54, %s15756_s25 }
 0x3aa   : > { %v12057_v34 = vpop.permute.xlu1 %1956  ;;  %v1885_v33 = vpop.permute.xlu0 %1884 }
 0x3ab   : > { %2424 = vmatpush1.bf16.msra.mxu0 %v2072_v22  ;;  %v1895_v3 = vsel %vm15800_vm8, %v1885_v33, %v12034_v28  ;;  %v1894_v35 = vsel %vm15800_vm8, %v12005_v63, %v1885_v33  ;;  %v1913_v63 = vsel %vm15788_vm9, %v11962_v10, %v11964_v46  ;;  %v1912_v33 = vsel %vm15788_vm9, %v11938_v27, %v11962_v10 }
 0x3ac   : > { %2425 = vmatprep.subr.bf16.mxu0 %v2095_v43  ;;  %v2135_v29 = vsel %vm808_vm3, %v1878_v1, %v1895_v3  ;;  %v2132_v13 = vsel %vm808_vm3, %v1877_v32, %v1894_v35  ;;  %v1774_v27 = vsel %vm1771_vm5, %v11948_v38, %v11988_v42  ;;  %v1809_v10 = vsel %vm1806_vm6, %v11970_v0, %v12003_v6 }
 0x3ad   : > { %2305 = vrot.lane.b32.xlu0 %v2072_v22, %s15756_s25  ;;  %v1947_v38 = vsel %vm15789_vm10, %v11968_v48, %v11986_v60 }
 0x3ae   : > { %v12069_v17 = vpop.permute.xlu1 %2245  ;;  %v12072_v8 = vpop.permute.xlu0 %1921 }
 0x3af   : > { %2426 = vmatpush1.bf16.msra.mxu0 %v2091_v31  ;;  %v1930_v57 = vsel %vm15788_vm9, %v1920_v59, %v12072_v8 }
 0x3b0   : > { %2427 = vmatprep.subr.bf16.mxu0 %v2117_v55  ;;  %v2155_v25 = vsel %vm657_vm0, %v1913_v63, %v1930_v57 }
 0x3b2   : > { %v12080_v44 = vpop.permute.xlu1 %1748  ;;  %v1955_v52 = vpop.permute.xlu0 %1954 }
 0x3b3   : > { %v1756_v53 = vsel %vm651_vm1, %v12014_v15, %v12080_v44  ;;  %2428 = vmatpush1.bf16.msra.mxu0 %v2114_v49  ;;  %v1965_v1 = vsel %vm15789_vm10, %v1955_v52, %v12057_v34  ;;  %v1964_v3 = vsel %vm15789_vm10, %v12011_v9, %v1955_v52 }
 0x3b4   : > { %2429 = vmatprep.subr.bf16.mxu0 %v2135_v29  ;;  %v12098_v18 = vsel %vm808_vm3, %v11994_v62, %v1756_v53  ;;  %v1929_v62 = vsel %vm15788_vm9, %v12007_v7, %v1920_v59 }
 0x3b5   : > { %2273 = vrot.lane.b32.xlu0 %v12098_v18, %s15756_s25  ;;  %v2151_v59 = vsel %vm657_vm0, %v1912_v33, %v1929_v62 }
 0x3b6   : > { %v12106_v15 = vpop.permute.xlu1 %1727  ;;  %v12109_v54 = vpop.permute.xlu0 %1729 }
 0x3b7   : > { %v1734_v40 = vsel %vm651_vm1, %v11990_v61, %v12106_v15  ;;  %2430 = vmatpush1.bf16.msra.mxu0 %v2132_v13  ;;  %v1948_v61 = vsel %vm15789_vm10, %v11986_v60, %v11981_v19  ;;  %v2192_v60 = vsel %vm808_vm3, %v1947_v38, %v1964_v3  ;;  %v9659_v3 = vld [vmem:[%s15740_s3 + $0x20] sm:$0xff] }
 0x3b8   : > { %2431 = vmatprep.subr.bf16.mxu0 %v2155_v25  ;;  %v12120_v22 = vsel %vm682_vm2, %v11821_v56, %v1734_v40  ;;  %v2177_v16 = vsel %vm682_vm2, %v1930_v57, %v1948_v61  ;;  %v2195_v32 = vsel %vm808_vm3, %v1948_v61, %v1965_v1 }
 0x3b9   : > { %2501 = vmatprep.subr.bf16.mxu1 %v12120_v22  ;;  %1855 = vrot.lane.b32.xlu0 %v11940_v36, %s15766_s18 }
 0x3ba   : > { %v12131_v7 = vpop.permute.xlu1 %1767  ;;  %2502 = vmatpush1.bf16.msra.mxu1 %v11999_v4  ;;  %v1784_v14 = vpop.permute.xlu0 %1783 }
 0x3bb   : > { %2432 = vmatpush1.bf16.msra.mxu0 %v2151_v59  ;;  %v1791_v43 = vsel %vm1771_vm5, %v12009_v41, %v1784_v14  ;;  %v2174_v41 = vsel %vm682_vm2, %v1929_v62, %v1947_v38 }
 0x3bc   : > { %2433 = vmatprep.subr.bf16.mxu0 %v2177_v16  ;;  %v2060_v4 = vsel %vm682_vm2, %v1791_v43, %v1809_v10  ;;  %v2039_v31 = vsel %vm657_vm0, %v1774_v27, %v1791_v43 }
 0x3bd   : > { %2297 = vrot.lane.b32.xlu0 %v2060_v4, %s15756_s25  ;;  %2285 = vrot.lane.b32.xlu1 %v2039_v31, %s15756_s25 }
 0x3be   : > { %v12153_v0 = vpop.permute.xlu1 %1804  ;;  %v12156_v55 = vpop.permute.xlu0 %1769 }
 0x3bf   : > { %2434 = vmatpush1.bf16.msra.mxu0 %v2174_v41 }
 0x3c0   : > { %2435 = vmatprep.subr.bf16.mxu0 %v2195_v32 }
 0x3c1   : > { %1872 = vrot.lane.b32.xlu0 %v11898_v24, %s15760_s23  ;;  %1870 = vrot.lane.b32.xlu1 %v11859_v39, %s15760_s23 }
 0x3c2   : > { %v1819_v48 = vpop.permute.xlu1 %1818  ;;  %v12166_v49 = vpop.permute.xlu0 %1802 }
 0x3c3   : > { %2436 = vmatpush1.bf16.msra.mxu0 %v2192_v60  ;;  %v1826_v35 = vsel %vm1806_vm6, %v12036_v23, %v1819_v48 }
 0x3c4   : > { %v2078_v53 = vsel %vm808_vm3, %v1809_v10, %v1826_v35 }
 0x3c5   : > { %1890 = vrot.lane.b32.xlu0 %v11930_v20, %s15760_s23  ;;  %1888 = vrot.lane.b32.xlu1 %v11892_v21, %s15760_s23 }
 0x3c6   : > { %v12174_v9 = vpop.permute.xlu1 %1835  ;;  %v12176_v52 = vpop.permute.xlu0 %1837 }
 0x3c9   : > { %1907 = vrot.lane.b32.xlu0 %v11785_v11, %s15778_s20  ;;  %2309 = vrot.lane.b32.xlu1 %v2078_v53, %s15756_s25 }
 0x3ca   : > { %v2248_v29 = vpop.permute.xlu1 %2247  ;;  %v12182_v23 = vpop.permute.xlu0 %2249 }
 0x3cb   : > { %v2319_v57 = vsel %vm2317_vm11, %v2248_v29, %v12182_v23  ;;  %v2318_v63 = vsel %vm2317_vm11, %v12069_v17, %v2248_v29 }
 0x3cc   : > { %2437 = vmatprep.subr.bf16.mxu0 %v2319_v57 }
 0x3cd   : > { %1925 = vrot.lane.b32.xlu0 %v11940_v36, %s15778_s20  ;;  %1905 = vrot.lane.b32.xlu1 %v11779_v5, %s15778_s20  ;;  %v1775_v5 = vsel %vm1771_vm5, %v11988_v42, %v12131_v7 }
 0x3ce   : > { %2438 = vmatpush1.bf16.msra.mxu0 %v2318_v63  ;;  %v12192_v13 = vpop.permute.xlu1 %1853  ;;  %v1751_v62 = vpop.permute.xlu0 %1750 }
 0x3cf   : > { %v1757_v25 = vsel %vm651_vm1, %v12080_v44, %v1751_v62 }
 0x3d0   : > { %v2021_v33 = vsel %vm808_vm3, %v1734_v40, %v1757_v25 }
 0x3d1   : > { %1857 = vrot.lane.b32.xlu0 %v11942_v37, %s15766_s18  ;;  %1923 = vrot.lane.b32.xlu1 %v11821_v56, %s15778_s20  ;;  %v1810_v56 = vsel %vm1806_vm6, %v12003_v6, %v12166_v49 }
 0x3d2   : > { %2503 = vmatprep.subr.bf16.mxu1 %v2021_v33  ;;  %v1786_v17 = vpop.permute.xlu1 %1785  ;;  %v1788_v6 = vpop.permute.xlu0 %1787 }
 0x3d3   : > { %v1792_v61 = vsel %vm1771_vm5, %v1784_v14, %v1786_v17  ;;  %2504 = vmatpush1.bf16.msra.mxu1 %v12098_v18  ;;  %v12280_v14 = vsel %vm682_vm2, %v11942_v37, %v12109_v54 }
 0x3d4   : > { %v2043_v44 = vsel %vm657_vm0, %v1775_v5, %v1792_v61  ;;  %v2063_v42 = vsel %vm682_vm2, %v1792_v61, %v1810_v56  ;;  %v1844_v61 = vsel %vm15792_vm7, %v11958_v45, %v12174_v9  ;;  %v12368_v45 = vld [vmem:[%s15741_s4] ss:$12 sps:$4 sm:$0x3f]  }
 0x3d5   : > { %1942 = vrot.lane.b32.xlu0 %v11898_v24, %s15768_s24  ;;  %1839 = vrot.lane.b32.xlu1 %v11787_v12, %s15766_s18 }
 0x3d6   : > { %2505 = vmatprep.subr.bf16.mxu1 %v2043_v44  ;;  %v1821_v40 = vpop.permute.xlu1 %1820 }
 0x3d7   : > { %2506 = vmatpush1.bf16.msra.mxu1 %v2039_v31  ;;  %v1827_v59 = vsel %vm1806_vm6, %v1819_v48, %v1821_v40 }
 0x3d8   : > { %2507 = vmatprep.subr.bf16.mxu1 %v2063_v42  ;;  %v2081_v24 = vsel %vm808_vm3, %v1810_v56, %v1827_v59 }
 0x3d9   : > { %1958 = vrot.lane.b32.xlu0 %v11892_v21, %s15768_s24  ;;  %1940 = vrot.lane.b32.xlu1 %v11859_v39, %s15768_s24  ;;  %v12232_v39 = vsel %vm657_vm0, %v11785_v11, %v11940_v36  ;;  %v1735_v11 = vsel %vm651_vm1, %v12106_v15, %v12109_v54 }
 0x3da   : > { %v1753_v21 = vpop.permute.xlu1 %1752  ;;  %v12252_v18 = vsel %vm682_vm2, %v11940_v36, %v1735_v11  ;;  %v12268_v36 = vsel %vm657_vm0, %v11787_v12, %v11942_v37 }
 0x3db   : > { %2508 = vmatpush1.bf16.msra.mxu1 %v2060_v4  ;;  %v12303_v1 = vsel %vm808_vm3, %v12109_v54, %v1753_v21  ;;  %v12307_v4 = vsel %vm657_vm0, %v12156_v55, %v1788_v6  ;;  %v9660_v54 = vld [vmem:[%s15740_s3 + $0x28] sm:$0xf] }
 0x3dc   : > { %2509 = vmatprep.subr.bf16.mxu1 %v2081_v24 }
 0x3dd   : > { %1892 = vrot.lane.b32.xlu0 %v11950_v30, %s15760_s23  ;;  %1874 = vrot.lane.b32.xlu1 %v11901_v26, %s15760_s23 }
 0x3df   : > { %2510 = vmatpush1.bf16.msra.mxu1 %v2078_v53 }
 0x3e1   : > { %1927 = vrot.lane.b32.xlu0 %v11942_v37, %s15778_s20  ;;  %1960 = vrot.lane.b32.xlu1 %v11930_v20, %s15768_s24  ;;  %v1758_v20 = vsel %vm651_vm1, %v1751_v62, %v1753_v21  ;;  %v1861_v62 = vsel %vm15792_vm7, %v12046_v2, %v12192_v13 }
 0x3e2   : > { %v2099_v2 = vsel %vm657_vm0, %v1844_v61, %v1861_v62 }
 0x3e5   : > { %2253 = vrot.lane.b32.xlu0 %v12232_v39, %s15756_s25  ;;  %1909 = vrot.lane.b32.xlu1 %v11787_v12, %s15778_s20  ;;  %v1811_v12 = vsel %vm1806_vm6, %v12166_v49, %v12153_v0 }
 0x3e9   : > { %2263 = vrot.lane.b32.xlu0 %v12120_v22, %s15756_s25  ;;  %2251 = vrot.lane.b32.xlu1 %v11833_v58, %s15756_s25  ;;  %v12255_v58 = vsel %vm808_vm3, %v1735_v11, %v1758_v20  ;;  %v1823_v22 = vpop.permute.xlu0 %1822 }
 0x3ea   : > { %v1828_v31 = vsel %vm1806_vm6, %v1821_v40, %v1823_v22  ;;  %v12316_v38 = vsel %vm808_vm3, %v12153_v0, %v1823_v22 }
 0x3eb   : > { %v12319_v41 = vsel %vm808_vm3, %v1811_v12, %v1828_v31 }
 0x3ed   : > { %1962 = vrot.lane.b32.xlu0 %v11950_v30, %s15768_s24  ;;  %1944 = vrot.lane.b32.xlu1 %v11901_v26, %s15768_s24  ;;  %v1793_v26 = vsel %vm1771_vm5, %v1786_v17, %v1788_v6  ;;  %v1776_v30 = vsel %vm1771_vm5, %v12131_v7, %v12156_v55  ;;  %v2258_v7 = vpop.permute.xlu0 %2257  ;;  %v12330_v55 = vsel %vm682_vm2, %v1788_v6, %v12153_v0 }
 0x3ee   : > { %v12271_v15 = vsel %vm657_vm0, %v1776_v30, %v1793_v26  ;;  %v12289_v27 = vsel %vm682_vm2, %v1793_v26, %v1811_v12  ;;  %v1845_v17 = vsel %vm15792_vm7, %v12174_v9, %v12176_v52 }
 0x3f1   : > { %2265 = vrot.lane.b32.xlu1 %v12252_v18, %s15756_s25  ;;  %2277 = vrot.lane.b32.xlu0 %v12255_v58, %s15756_s25  ;;  %v2260_v37 = vpop.permute.xlu0 %2259 }
 0x3f2   : > { %v2323_v16 = vsel %vm2317_vm11, %v2258_v7, %v2260_v37 }
 0x3f5   : > { %2255 = vrot.lane.b32.xlu1 %v12268_v36, %s15756_s25  ;;  %2289 = vrot.lane.b32.xlu0 %v12271_v15, %s15756_s25 }
 0x3f9   : > { %2275 = vrot.lane.b32.xlu1 %v2021_v33, %s15756_s25  ;;  %2267 = vrot.lane.b32.xlu0 %v12280_v14, %s15756_s25 }
 0x3fd   : > { %2287 = vrot.lane.b32.xlu1 %v2043_v44, %s15756_s25  ;;  %2301 = vrot.lane.b32.xlu0 %v12289_v27, %s15756_s25 }
 0x3ff   : > { %v12294_v10 = vpop.permute.xlu1 %2261 }
 0x400   : > { %v2324_v43 = vsel %vm2317_vm11, %v2260_v37, %v12294_v10 }
 0x401   : > { %2299 = vrot.lane.b32.xlu1 %v2063_v42, %s15756_s25  ;;  %2311 = vrot.lane.b32.xlu0 %v2081_v24, %s15756_s25 }
 0x402   : > { %2439 = vmatprep.subr.bf16.mxu0 %v2324_v43 }
 0x403   : > { %2440 = vmatpush1.bf16.msra.mxu0 %v2323_v16 }
 0x405   : > { %2279 = vrot.lane.b32.xlu1 %v12303_v1, %s15756_s25  ;;  %2291 = vrot.lane.b32.xlu0 %v12307_v4, %s15756_s25 }
 0x409   : > { %2315 = vrot.lane.b32.xlu0 %v12316_v38, %s15756_s25  ;;  %2313 = vrot.lane.b32.xlu1 %v12319_v41, %s15756_s25 }
 0x40d   : > { %2391 = vperm.xlu0 %10810, %v9660_v54   ;;  %2303 = vrot.lane.b32.xlu1 %v12330_v55, %s15756_s25 }
 0x40f   : > { %v2272_v60 = vpop.permute.xlu1 %2271 }
 0x411   : > { %2386 = vperm.xlu1 %10811, %v9659_v3  }
 0x413   : > { %v2284_v32 = vpop.permute.xlu0 %2283  ;;  %v2270_v35 = vpop.permute.xlu1 %2269 }
 0x414   : > { %v2328_v63 = vsel %vm2317_vm11, %v2270_v35, %v2272_v60 }
 0x417   : > { %v2282_v48 = vpop.permute.xlu0 %2281  ;;  %v2296_v29 = vpop.permute.xlu1 %2295 }
 0x418   : > { %v2333_v59 = vsel %vm2317_vm11, %v2282_v48, %v2284_v32 }
 0x41b   : > { %v2308_v49 = vpop.permute.xlu0 %2307  ;;  %v2294_v25 = vpop.permute.xlu1 %2293 }
 0x41c   : > { %v2338_v11 = vsel %vm2317_vm11, %v2294_v25, %v2296_v29 }
 0x41f   : > { %v2306_v53 = vpop.permute.xlu0 %2305 }
 0x420   : > { %v2343_v54 = vsel %vm2317_vm11, %v2306_v53, %v2308_v49 }
 0x427   : > { %v12337_v57 = vpop.permute.xlu0 %2273 }
 0x428   : > { %v2329_v0 = vsel %vm2317_vm11, %v2272_v60, %v12337_v57 }
 0x429   : > { %2441 = vmatprep.subr.bf16.mxu0 %v2329_v0 }
 0x42a   : > { %2442 = vmatpush1.bf16.msra.mxu0 %v2328_v63 }
 0x42b   : > { %v12345_v33 = vpop.permute.xlu0 %1855 }
 0x42c   : > { %v1862_v5 = vsel %vm15792_vm7, %v12192_v13, %v12345_v33 }
 0x42d   : > { %v2103_v44 = vsel %vm657_vm0, %v1845_v17, %v1862_v5 }
 0x42e   : > { %2511 = vmatprep.subr.bf16.mxu1 %v2103_v44 }
 0x42f   : > { %v12358_v56 = vpop.permute.xlu1 %2285  ;;  %2512 = vmatpush1.bf16.msra.mxu1 %v2099_v2  ;;  %v12360_v40 = vpop.permute.xlu0 %2297 }
 0x430   : > { %v2334_v42 = vsel %vm2317_vm11, %v2284_v32, %v12358_v56  ;;  %v2339_v9 = vsel %vm2317_vm11, %v2296_v29, %v12360_v40 }
 0x431   : > { %2443 = vmatprep.subr.bf16.mxu0 %v2334_v42 }
 0x432   : > { %2444 = vmatpush1.bf16.msra.mxu0 %v2333_v59 }
 0x433   : > { %v1871_v13 = vpop.permute.xlu1 %1870  ;;  %2456 = vmatprep.subr.bf16.mxu0 %v2339_v9  ;;  %v12372_v24 = vpop.permute.xlu0 %1872 }
 0x434   : > { %v1879_v21 = vsel %vm15800_vm8, %v11972_v51, %v1871_v13  ;;  %v1880_v20 = vsel %vm15800_vm8, %v1871_v13, %v12372_v24 }
 0x435   : > { %2446 = vmatmul.mubr.bf16.vlgmr.msra.gmra.mrb[24].mxu0 %v12368_v45  ;;  %v2123_v6 = vsel %vm682_vm2, %v1862_v5, %v1880_v20  ;;  %v2120_v26 = vsel %vm682_vm2, %v1861_v62, %v1879_v21 }
 0x436   : > { %2457 = vmatpush1.bf16.msra.mxu0 %v2338_v11  ;;  %2513 = vmatprep.subr.bf16.mxu1 %v2123_v6 }
 0x437   : > { %v1889_v30 = vpop.permute.xlu1 %1888  ;;  %2514 = vmatpush1.bf16.msra.mxu1 %v2120_v26  ;;  %v12382_v22 = vpop.permute.xlu0 %1890  ;;  %2488 = vmatprep.mubr.bf16.mxu0 %v11239_v50 }
 0x438   : > { %v1896_v51 = vsel %vm15800_vm8, %v12034_v28, %v1889_v30  ;;  %v1897_v7 = vsel %vm15800_vm8, %v1889_v30, %v12382_v22  ;;  %v12401_v28 = vld [vmem:[%s15741_s4 + $0x8] ss:$12 sps:$4 sm:$0x3f]  }
 0x439   : > { %v2141_v12 = vsel %vm808_vm3, %v1880_v20, %v1897_v7  ;;  %v2138_v37 = vsel %vm808_vm3, %v1879_v21, %v1896_v51 }
 0x43a   : > { %2515 = vmatprep.subr.bf16.mxu1 %v2141_v12 }
 0x43b   : > { %v12391_v43 = vpop.permute.xlu1 %2309  ;;  %2516 = vmatpush1.bf16.msra.mxu1 %v2138_v37  ;;  %v12393_v16 = vpop.permute.xlu0 %1907 }
 0x43c   : > { %v2344_v31 = vsel %vm2317_vm11, %v2308_v49, %v12391_v43 }
 0x43d   : > { %2458 = vmatprep.subr.bf16.mxu0 %v2344_v31 }
 0x43e   : > { %2459 = vmatpush1.bf16.msra.mxu0 %v2343_v54 }
 0x43f   : > { %v1906_v3 = vpop.permute.xlu1 %1905  ;;  %2585 = vmatprep.subr.bf16.mxu0 %v12268_v36  ;;  %v12404_v32 = vpop.permute.xlu0 %1925 }
 0x440   : > { %v1914_v49 = vsel %vm15788_vm9, %v11964_v46, %v1906_v3  ;;  %v1915_v35 = vsel %vm15788_vm9, %v1906_v3, %v12393_v16 }
 0x441   : > { %9664 = vmatmul.mubr.msk.bf16.vlgmr.msra.gmra.mrb[24].mxu0 %vm15785_vm12, %v12401_v28 }
 0x442   : > { %2586 = vmatpush1.bf16.msra.mxu0 %v12232_v39  ;;  %2617 = vmatprep.mubr.bf16.mxu0 %v12092_v47 }
 0x443   : > { %v1924_v48 = vpop.permute.xlu1 %1923  ;;  %2587 = vmatprep.subr.bf16.mxu0 %v12280_v14  ;;  %v1858_v60 = vpop.permute.xlu0 %1857 }
 0x444   : > { %v1931_v36 = vsel %vm15788_vm9, %v12072_v8, %v1924_v48  ;;  %v1932_v53 = vsel %vm15788_vm9, %v1924_v48, %v12404_v32 }
 0x445   : > { %v2163_v39 = vsel %vm657_vm0, %v1915_v35, %v1932_v53  ;;  %v2159_v47 = vsel %vm657_vm0, %v1914_v49, %v1931_v36 }
 0x446   : > { %2517 = vmatprep.subr.bf16.mxu1 %v2163_v39  ;;  %2588 = vmatpush1.bf16.msra.mxu0 %v12252_v18 }
 0x447   : > { %v1840_v14 = vpop.permute.xlu1 %1839  ;;  %2518 = vmatpush1.bf16.msra.mxu1 %v2159_v47  ;;  %2589 = vmatprep.subr.bf16.mxu0 %v12303_v1  ;;  %v12423_v46 = vpop.permute.xlu0 %1942 }
 0x44a   : > { %2590 = vmatpush1.bf16.msra.mxu0 %v12255_v58 }
 0x44b   : > { %v1941_v29 = vpop.permute.xlu1 %1940  ;;  %2591 = vmatprep.subr.bf16.mxu0 %v12307_v4  ;;  %v1959_v8 = vpop.permute.xlu0 %1958 }
 0x44c   : > { %v1949_v0 = vsel %vm15789_vm10, %v11981_v19, %v1941_v29  ;;  %v1950_v63 = vsel %vm15789_vm10, %v1941_v29, %v12423_v46  ;;  %v1966_v19 = vsel %vm15789_vm10, %v12057_v34, %v1959_v8 }
 0x44d   : > { %v2183_v18 = vsel %vm682_vm2, %v1932_v53, %v1950_v63  ;;  %v2180_v62 = vsel %vm682_vm2, %v1931_v36, %v1949_v0 }
 0x44e   : > { %2519 = vmatprep.subr.bf16.mxu1 %v2183_v18  ;;  %2592 = vmatpush1.bf16.msra.mxu0 %v12271_v15  ;;  %v1846_v15 = vsel %vm15792_vm7, %v12176_v52, %v1840_v14 }
 0x44f   : > { %v1875_v1 = vpop.permute.xlu1 %1874  ;;  %2520 = vmatpush1.bf16.msra.mxu1 %v2180_v62  ;;  %2593 = vmatprep.subr.bf16.mxu0 %v12330_v55  ;;  %v1893_v58 = vpop.permute.xlu0 %1892  ;;  %v2198_v55 = vsel %vm808_vm3, %v1949_v0, %v1966_v19 }
 0x450   : > { %v2129_v2 = vsel %vm682_vm2, %v1858_v60, %v1875_v1  ;;  %v1881_v52 = vsel %vm15800_vm8, %v12372_v24, %v1875_v1  ;;  %v2147_v21 = vsel %vm808_vm3, %v1875_v1, %v1893_v58 }
 0x452   : > { %2594 = vmatpush1.bf16.msra.mxu0 %v12289_v27  ;;  %v2111_v27 = vsel %vm657_vm0, %v1840_v14, %v1858_v60 }
 0x453   : > { %v1961_v4 = vpop.permute.xlu1 %1960  ;;  %2595 = vmatprep.subr.bf16.mxu0 %v12316_v38  ;;  %v1928_v25 = vpop.permute.xlu0 %1927  ;;  %v1863_v38 = vsel %vm15792_vm7, %v12345_v33, %v1858_v60  ;;  %v1898_v33 = vsel %vm15800_vm8, %v12382_v22, %v1893_v58 }
 0x454   : > { %v1967_v17 = vsel %vm15789_vm10, %v1959_v8, %v1961_v4  ;;  %v2107_v44 = vsel %vm657_vm0, %v1846_v15, %v1863_v38  ;;  %v2126_v13 = vsel %vm682_vm2, %v1863_v38, %v1881_v52  ;;  %v2144_v11 = vsel %vm808_vm3, %v1881_v52, %v1898_v33 }
 0x455   : > { %v2201_v5 = vsel %vm808_vm3, %v1950_v63, %v1967_v17  ;;  %v1933_v51 = vsel %vm15788_vm9, %v12404_v32, %v1928_v25 }
 0x456   : > { %2521 = vmatprep.subr.bf16.mxu1 %v2201_v5  ;;  %2596 = vmatpush1.bf16.msra.mxu0 %v12319_v41 }
 0x457   : > { %v1910_v61 = vpop.permute.xlu1 %1909  ;;  %2522 = vmatpush1.bf16.msra.mxu1 %v2198_v55  ;;  %2597 = vmatprep.subr.bf16.mxu0 %v2111_v27  ;;  %v2254_v34 = vpop.permute.xlu0 %2253 }
 0x458   : > { %v1916_v6 = vsel %vm15788_vm9, %v12393_v16, %v1910_v61 }
 0x459   : > { %v2167_v12 = vsel %vm657_vm0, %v1916_v6, %v1933_v51 }
 0x45a   : > { %2598 = vmatpush1.bf16.msra.mxu0 %v2107_v44 }
 0x45b   : > { %v2252_v41 = vpop.permute.xlu1 %2251  ;;  %2599 = vmatprep.subr.bf16.mxu0 %v2129_v2  ;;  %v2264_v42 = vpop.permute.xlu0 %2263 }
 0x45c   : > { %v2321_v59 = vsel %vm2317_vm11, %v2252_v41, %v2254_v34  ;;  %v2320_v9 = vsel %vm2317_vm11, %v12182_v23, %v2252_v41  ;;  %v2171_v23 = vsel %vm657_vm0, %v1910_v61, %v1928_v25  ;;  %v2325_v7 = vsel %vm2317_vm11, %v12294_v10, %v2264_v42 }
 0x45d   : > { %2523 = vmatprep.subr.bf16.mxu1 %v2321_v59 }
 0x45e   : > { %2524 = vmatpush1.bf16.msra.mxu1 %v2320_v9  ;;  %2600 = vmatpush1.bf16.msra.mxu0 %v2126_v13 }
 0x45f   : > { %v1945_v20 = vpop.permute.xlu1 %1944  ;;  %2601 = vmatprep.subr.bf16.mxu0 %v2147_v21  ;;  %v1963_v24 = vpop.permute.xlu0 %1962 }
 0x460   : > { %v2189_v37 = vsel %vm682_vm2, %v1928_v25, %v1945_v20  ;;  %v1951_v16 = vsel %vm15789_vm10, %v12423_v46, %v1945_v20  ;;  %v1968_v32 = vsel %vm15789_vm10, %v1961_v4, %v1963_v24  ;;  %v2207_v48 = vsel %vm808_vm3, %v1945_v20, %v1963_v24 }
 0x461   : > { %v2186_v3 = vsel %vm682_vm2, %v1933_v51, %v1951_v16  ;;  %v2204_v36 = vsel %vm808_vm3, %v1951_v16, %v1968_v32 }
 0x462   : > { %2602 = vmatpush1.bf16.msra.mxu0 %v2144_v11 }
 0x463   : > { %v2266_v26 = vpop.permute.xlu1 %2265  ;;  %2603 = vmatprep.subr.bf16.mxu0 %v2171_v23  ;;  %v2278_v30 = vpop.permute.xlu0 %2277 }
 0x464   : > { %v2326_v22 = vsel %vm2317_vm11, %v2264_v42, %v2266_v26 }
 0x465   : > { %2525 = vmatprep.subr.bf16.mxu1 %v2326_v22 }
 0x466   : > { %2526 = vmatpush1.bf16.msra.mxu1 %v2325_v7  ;;  %2604 = vmatpush1.bf16.msra.mxu0 %v2167_v12 }
 0x467   : > { %v2256_v31 = vpop.permute.xlu1 %2255  ;;  %2605 = vmatprep.subr.bf16.mxu0 %v2189_v37  ;;  %v2290_v54 = vpop.permute.xlu0 %2289 }
 0x468   : > { %v2322_v46 = vsel %vm2317_vm11, %v2254_v34, %v2256_v31 }
 0x46a   : > { %2606 = vmatpush1.bf16.msra.mxu0 %v2186_v3 }
 0x46b   : > { %v2276_v10 = vpop.permute.xlu1 %2275  ;;  %2607 = vmatprep.subr.bf16.mxu0 %v2207_v48  ;;  %v2268_v60 = vpop.permute.xlu0 %2267 }
 0x46c   : > { %v2331_v49 = vsel %vm2317_vm11, %v2276_v10, %v2278_v30  ;;  %v2330_v35 = vsel %vm2317_vm11, %v12337_v57, %v2276_v10  ;;  %v2327_v63 = vsel %vm2317_vm11, %v2266_v26, %v2268_v60 }
 0x46d   : > { %2527 = vmatprep.subr.bf16.mxu1 %v2331_v49 }
 0x46e   : > { %2528 = vmatpush1.bf16.msra.mxu1 %v2330_v35  ;;  %2608 = vmatpush1.bf16.msra.mxu0 %v2204_v36 }
 0x46f   : > { %v2288_v53 = vpop.permute.xlu1 %2287  ;;  %2609 = vmatprep.subr.bf16.mxu0 %v2256_v31  ;;  %v2302_v39 = vpop.permute.xlu0 %2301 }
 0x470   : > { %v2336_v47 = vsel %vm2317_vm11, %v2288_v53, %v2290_v54  ;;  %v2335_v14 = vsel %vm2317_vm11, %v12358_v56, %v2288_v53 }
 0x471   : > { %2529 = vmatprep.subr.bf16.mxu1 %v2336_v47 }
 0x472   : > { %2530 = vmatpush1.bf16.msra.mxu1 %v2335_v14  ;;  %2610 = vmatpush1.bf16.msra.mxu0 %v2322_v46 }
 0x473   : > { %v2300_v29 = vpop.permute.xlu1 %2299  ;;  %2611 = vmatprep.subr.bf16.mxu0 %v2268_v60  ;;  %v2312_v57 = vpop.permute.xlu0 %2311 }
 0x474   : > { %v2341_v8 = vsel %vm2317_vm11, %v2300_v29, %v2302_v39  ;;  %v2340_v0 = vsel %vm2317_vm11, %v12360_v40, %v2300_v29  ;;  %v2345_v40 = vsel %vm2317_vm11, %v12391_v43, %v2312_v57 }
 0x475   : > { %2532 = vmatmul.mubr.bf16.vlgmr.msra.gmra.mrb[24].mxu1 %v12368_v45  ;;  %2542 = vmatprep.subr.bf16.mxu1 %v2341_v8 }
 0x476   : > { %2543 = vmatpush1.bf16.msra.mxu1 %v2340_v0  ;;  %2612 = vmatpush1.bf16.msra.mxu0 %v2327_v63 }
 0x477   : > { %v2280_v56 = vpop.permute.xlu1 %2279  ;;  %2574 = vmatprep.mubr.bf16.mxu1 %v11239_v50  ;;  %v2292_v62 = vpop.permute.xlu0 %2291 }
 0x478   : > { %2613 = vmatprep.subr.bf16.mxu0 %v2280_v56  ;;  %v2332_v18 = vsel %vm2317_vm11, %v2278_v30, %v2280_v56  ;;  %v2337_v19 = vsel %vm2317_vm11, %v2290_v54, %v2292_v62 }
 0x47a   : > { %2614 = vmatpush1.bf16.msra.mxu0 %v2332_v18 }
 0x47b   : > { %v2314_v1 = vpop.permute.xlu1 %2313  ;;  %2615 = vmatprep.subr.bf16.mxu0 %v2292_v62  ;;  %v2316_v17 = vpop.permute.xlu0 %2315 }
 0x47c   : > { %v2346_v58 = vsel %vm2317_vm11, %v2312_v57, %v2314_v1  ;;  %v2347_v43 = vsel %vm2317_vm11, %v2314_v1, %v2316_v17 }
 0x47d   : > { %2544 = vmatprep.subr.bf16.mxu1 %v2346_v58 }
 0x47e   : > { %2545 = vmatpush1.bf16.msra.mxu1 %v2345_v40  ;;  %2616 = vmatpush1.bf16.msra.mxu0 %v2337_v19 }
 0x47f   : > { %v2304_v4 = vpop.permute.xlu1 %2303 }
 0x480   : > { %2628 = vmatprep.subr.bf16.mxu0 %v2304_v4  ;;  %v2342_v25 = vsel %vm2317_vm11, %v2302_v39, %v2304_v4 }
 0x481   : > { %9665 = vmatmul.mubr.msk.bf16.vlgmr.msra.gmra.mrb[24].mxu1 %vm15785_vm12, %v12401_v28  ;;  %2618 = vmatmul.mubr.bf16.vlgmr.msra.gmra.mrb[28].mxu0 %v12368_v45 }
 0x482   : > { %2629 = vmatpush1.bf16.msra.mxu0 %v2342_v25  ;;  %2660 = vmatprep.mubr.bf16.mxu0 %v11239_v50 }
 0x483   : > { %2630 = vmatprep.subr.bf16.mxu0 %v2316_v17  ;;  %2877 = vmatprep.mubr.bf16.mxu1 %v11239_v50 }
 0x486   : > { %2631 = vmatpush1.bf16.msra.mxu0 %v2347_v43 }
 0x48c   : > { %v2392_v61 = vpop.permute.xlu0 %2391 }
 0x48d   : > { %9666 = vmatmul.mubr.msk.bf16.vlgmr.msra.gmra.mrb[28].mxu0 %vm15785_vm12, %v12401_v28  ;;  %vm15787_vm12 = vcmask 949248  }
 0x490   : > { %v2387_v5 = vpop.permute.xlu1 %2386 }
 0x514   : > { %v2490_v15 = vpop.f32.mrb[24].mxu0 }
 0x515   : > { %v10726_v55 = vadd.f32 %v2490_v15, %v2387_v5  ;;  %v2492_v27 = vpop.f32.mrb[25].mxu0 }
 0x516   : > { %v10727_v34 = vadd.f32 %v2492_v27, %v2387_v5  ;;  %v2494_v45 = vpop.f32.mrb[26].mxu0 }
 0x517   : > { %v2671_v38 = vmul.f32 0.3, %v10726_v55  ;;  %v10728_v44 = vadd.f32 %v2494_v45, %v2392_v61  ;;  %v2496_v2 = vpop.f32.mrb[27].mxu0  ;;  %v9672_v45 = vld [vmem:[%s15740_s3 + $0x38] sm:$0xf] }
 0x518   : > { %v2672_v52 = vmul.f32 0.3, %v10727_v34  ;;  %v10729_v41 = vadd.f32 %v2496_v2, %v2392_v61 }
 0x519   : > { %v2677_v42 = vmul.f32 0.3, %v10728_v44  ;;  %v2683_v9 = vmax.f32 %v10726_v55, %v2671_v38 }
 0x51a   : > { %v2678_v59 = vmul.f32 0.3, %v10729_v41  ;;  %v2684_v33 = vmax.f32 %v10727_v34, %v2672_v52 }
 0x51b   : > { %v2689_v13 = vmax.f32 %v10728_v44, %v2677_v42 }
 0x51c   : > { %v2690_v21 = vmax.f32 %v10729_v41, %v2678_v59 }
 0x51d   : > { %v12503_v20 = vpack.c.bf16 %v2689_v13, %v2683_v9 }
 0x51e   : > { %v12505_v28 = vpack.c.bf16 %v2690_v21, %v2684_v33 }
 0x51f   : > { %v2727_v24 = vrot.slane %v12503_v20, 2  ;;  %v2750_v19 = vrot.slane %v12503_v20, 4 }
 0x520   : > { %v2728_v11 = vrot.slane %v12505_v28, 2  ;;  %v2751_v0 = vrot.slane %v12505_v28, 4 }
 0x521   : > { %2733 = vrot.lane.b32.xlu1 %v2727_v24, %s15772_s0 }
 0x525   : > { %2735 = vrot.lane.b32.xlu1 %v2728_v11, %s15772_s0 }
 0x554   : > { %v2576_v6 = vpop.f32.mrb[24].mxu1 }
 0x555   : > { %v10730_v23 = vadd.f32 %v2576_v6, %v2387_v5  ;;  %v2578_v26 = vpop.f32.mrb[25].mxu1 }
 0x556   : > { %v10731_v30 = vadd.f32 %v2578_v26, %v2387_v5  ;;  %v2580_v22 = vpop.f32.mrb[26].mxu1 }
 0x557   : > { %v2673_v51 = vmul.f32 0.3, %v10730_v23  ;;  %v10732_v7 = vadd.f32 %v2580_v22, %v2392_v61  ;;  %v2582_v12 = vpop.f32.mrb[27].mxu1  ;;  %v10853_v22 = vld [vmem:[%s15739_s2 + $0x10] sm:$0x3f]  }
 0x558   : > { %v2674_v37 = vmul.f32 0.3, %v10731_v30  ;;  %v10733_v16 = vadd.f32 %v2582_v12, %v2392_v61 }
 0x559   : > { %v2679_v31 = vmul.f32 0.3, %v10732_v7  ;;  %v2685_v3 = vmax.f32 %v10730_v23, %v2673_v51 }
 0x55a   : > { %v2680_v54 = vmul.f32 0.3, %v10733_v16  ;;  %v2686_v48 = vmax.f32 %v10731_v30, %v2674_v37 }
 0x55b   : > { %v2691_v32 = vmax.f32 %v10732_v7, %v2679_v31 }
 0x55c   : > { %v2692_v10 = vmax.f32 %v10733_v16, %v2680_v54 }
 0x55d   : > { %v12511_v60 = vpack.c.bf16 %v2691_v32, %v2685_v3 }
 0x55e   : > { %v12513_v49 = vpack.c.bf16 %v2692_v10, %v2686_v48 }
 0x55f   : > { %v2729_v35 = vrot.slane %v12511_v60, 2  ;;  %v2752_v36 = vrot.slane %v12511_v60, 4 }
 0x560   : > { %v2662_v53 = vpop.f32.mrb[28].mxu0  ;;  %v2730_v63 = vrot.slane %v12513_v49, 2  ;;  %v2753_v4 = vrot.slane %v12513_v49, 4 }
 0x561   : > { %v10734_v39 = vadd.f32 %v2662_v53, %v2387_v5  ;;  %v2664_v47 = vpop.f32.mrb[29].mxu0  ;;  %2737 = vrot.lane.b32.xlu0 %v2729_v35, %s15772_s0  ;;  %2760 = vrot.lane.b32.xlu1 %v2752_v36, %s15758_s17 }
 0x562   : > { %v10735_v14 = vadd.f32 %v2664_v47, %v2387_v5  ;;  %v2666_v46 = vpop.f32.mrb[30].mxu0 }
 0x563   : > { %v2675_v29 = vmul.f32 0.3, %v10734_v39  ;;  %v10736_v57 = vadd.f32 %v2666_v46, %v2392_v61  ;;  %v2668_v8 = vpop.f32.mrb[31].mxu0 }
 0x564   : > { %v2676_v56 = vmul.f32 0.3, %v10735_v14  ;;  %v10737_v18 = vadd.f32 %v2668_v8, %v2392_v61  ;;  %v9671_v61 = vld [vmem:[%s15740_s3 + $0x30] sm:$0xff] }
 0x565   : > { %v2681_v62 = vmul.f32 0.3, %v10736_v57  ;;  %2758 = vrot.lane.b32.xlu0 %v2751_v0, %s15758_s17  ;;  %2739 = vrot.lane.b32.xlu1 %v2730_v63, %s15772_s0  ;;  %v2687_v58 = vmax.f32 %v10734_v39, %v2675_v29 }
 0x566   : > { %v2682_v1 = vmul.f32 0.3, %v10737_v18  ;;  %v2688_v25 = vmax.f32 %v10735_v14, %v2676_v56 }
 0x567   : > { %v2693_v40 = vmax.f32 %v10736_v57, %v2681_v62 }
 0x568   : > { %v2694_v17 = vmax.f32 %v10737_v18, %v2682_v1 }
 0x569   : > { %v12525_v43 = vpack.c.bf16 %v2693_v40, %v2687_v58  ;;  %2756 = vrot.lane.b32.xlu0 %v2750_v19, %s15758_s17  ;;  %2762 = vrot.lane.b32.xlu1 %v2753_v4, %s15758_s17 }
 0x56a   : > { %v2720_v5 = vpack.c.bf16 %v2694_v17, %v2688_v25 }
 0x56b   : > { %v2731_v15 = vrot.slane %v12525_v43, 2  ;;  %v2754_v27 = vrot.slane %v12525_v43, 4 }
 0x56c   : > { %v2732_v55 = vrot.slane %v2720_v5, 2  ;;  %v2755_v34 = vrot.slane %v2720_v5, 4 }
 0x56d   : > { %2741 = vrot.lane.b32.xlu0 %v2731_v15, %s15772_s0 }
 0x56e   : > { %2743 = vrot.lane.b32.xlu1 %v2732_v55, %s15772_s0 }
 0x571   : > { %2764 = vrot.lane.b32.xlu0 %v2754_v27, %s15758_s17 }
 0x572   : > { %2817 = vperm.xlu1 %10811, %v9671_v61  }
 0x575   : > { %2766 = vrot.lane.b32.xlu0 %v2755_v34, %s15758_s17 }
 0x579   : > { %2822 = vperm.xlu0 %10810, %v9672_v45  }
 0x593   : > { %v2734_v38 = vpop.permute.xlu1 %2733 }
 0x597   : > { %v2736_v44 = vpop.permute.xlu1 %2735 }
 0x598   : > { %v2745_v2 = vsel %vm651_vm1, %v2734_v38, %v2736_v44 }
 0x599   : > { %v2775_v59 = vsel %vm657_vm0, %v12503_v20, %v2745_v2 }
 0x5d3   : > { %v2738_v52 = vpop.permute.xlu0 %2737  ;;  %v2761_v9 = vpop.permute.xlu1 %2760 }
 0x5d4   : > { %v2746_v41 = vsel %vm651_vm1, %v2736_v44, %v2738_v52 }
 0x5d5   : > { %v2779_v42 = vsel %vm657_vm0, %v12505_v28, %v2746_v41 }
 0x5d6   : > { %2845 = vmatprep.subr.bf16.mxu1 %v2779_v42 }
 0x5d7   : > { %v2759_v13 = vpop.permute.xlu0 %2758  ;;  %2846 = vmatpush1.bf16.msra.mxu1 %v2775_v59  ;;  %v2740_v6 = vpop.permute.xlu1 %2739 }
 0x5d8   : > { %v2769_v33 = vsel %vm1771_vm5, %v2759_v13, %v2761_v9  ;;  %v2747_v51 = vsel %vm651_vm1, %v2738_v52, %v2740_v6 }
 0x5d9   : > { %v2801_v21 = vsel %vm682_vm2, %v2746_v41, %v2769_v33  ;;  %v2783_v16 = vsel %vm657_vm0, %v12511_v60, %v2747_v51 }
 0x5da   : > { %2847 = vmatprep.subr.bf16.mxu1 %v2801_v21 }
 0x5db   : > { %v2757_v24 = vpop.permute.xlu0 %2756  ;;  %v2763_v7 = vpop.permute.xlu1 %2762 }
 0x5dc   : > { %v2768_v11 = vsel %vm1771_vm5, %v2757_v24, %v2759_v13  ;;  %v2770_v54 = vsel %vm1771_vm5, %v2761_v9, %v2763_v7 }
 0x5dd   : > { %v2798_v23 = vsel %vm682_vm2, %v2745_v2, %v2768_v11  ;;  %v2833_v26 = vsel %vm808_vm3, %v2768_v11, 0  ;;  %v2804_v3 = vsel %vm682_vm2, %v2747_v51, %v2770_v54  ;;  %v2837_v48 = vsel %vm808_vm3, %v2770_v54, 0 }
 0x5de   : > { %2848 = vmatpush1.bf16.msra.mxu1 %v2798_v23 }
 0x5df   : > { %v2742_v28 = vpop.permute.xlu0 %2741  ;;  %9682 = vmatprep.subr.msk.bf16.mxu1 %vm808_vm3, %v2769_v33 }
 0x5e0   : > { %v2748_v20 = vsel %vm651_vm1, %v2740_v6, %v2742_v28  ;;  %v2744_v32 = vpop.permute.xlu1 %2743 }
 0x5e1   : > { %v2787_v30 = vsel %vm657_vm0, %v12513_v49, %v2748_v20  ;;  %v2795_v10 = vsel %vm657_vm0, %v2720_v5, %v2744_v32  ;;  %v2749_v60 = vsel %vm651_vm1, %v2742_v28, %v2744_v32 }
 0x5e2   : > { %2850 = vmatpush1.bf16.msra.mxu1 %v2833_v26  ;;  %v2791_v35 = vsel %vm657_vm0, %v12525_v43, %v2749_v60 }
 0x5e3   : > { %v2765_v12 = vpop.permute.xlu0 %2764  ;;  %2888 = vmatprep.subr.bf16.mxu1 %v2787_v30 }
 0x5e4   : > { %v2771_v37 = vsel %vm1771_vm5, %v2763_v7, %v2765_v12 }
 0x5e5   : > { %9683 = vmatmul.mubr.msk.bf16.vlgmr.msra.gmra.mrb[28].mxu1 %vm15784_vm4, %v10853_v22  ;;  %v2807_v31 = vsel %vm682_vm2, %v2748_v20, %v2771_v37 }
 0x5e6   : > { %2889 = vmatpush1.bf16.msra.mxu1 %v2783_v16  ;;  %2920 = vmatprep.mubr.bf16.mxu1 %v11239_v50 }
 0x5e7   : > { %2890 = vmatprep.subr.bf16.mxu1 %v2807_v31  ;;  %v2767_v49 = vpop.permute.xlu0 %2766 }
 0x5e8   : > { %v2813_v36 = vsel %vm682_vm2, %v2744_v32, %v2767_v49  ;;  %v2772_v53 = vsel %vm1771_vm5, %v2765_v12, %v2767_v49 }
 0x5e9   : > { %v2810_v39 = vsel %vm682_vm2, %v2749_v60, %v2772_v53  ;;  %v2841_v47 = vsel %vm808_vm3, %v2772_v53, 0 }
 0x5ea   : > { %2891 = vmatpush1.bf16.msra.mxu1 %v2804_v3 }
 0x5eb   : > { %9684 = vmatprep.subr.msk.bf16.mxu1 %vm808_vm3, %v2771_v37 }
 0x5ee   : > { %2893 = vmatpush1.bf16.msra.mxu1 %v2837_v48 }
 0x5ef   : > { %2931 = vmatprep.subr.bf16.mxu1 %v2795_v10 }
 0x5f1   : > { %9685 = vmatmul.mubr.msk.bf16.vlgmr.msra.gmra.mrb[32].mxu1 %vm15784_vm4, %v10853_v22  ;;  %v2818_v14 = vpop.permute.xlu1 %2817 }
 0x5f2   : > { %2932 = vmatpush1.bf16.msra.mxu1 %v2791_v35  ;;  %2963 = vmatprep.mubr.bf16.mxu1 %v11239_v50 }
 0x5f3   : > { %2933 = vmatprep.subr.bf16.mxu1 %v2813_v36 }
 0x5f6   : > { %2934 = vmatpush1.bf16.msra.mxu1 %v2810_v39 }
 0x5f7   : > { %9686 = vmatprep.subr.msk.bf16.mxu1 %vm808_vm3, %v2767_v49 }
 0x5f8   : > { %v2823_v8 = vpop.permute.xlu0 %2822 }
 0x5fa   : > { %2936 = vmatpush1.bf16.msra.mxu1 %v2841_v47 }
 0x5fd   : > { %9687 = vmatmul.mubr.msk.bf16.vlgmr.msra.gmra.mrb[36].mxu1 %vm15784_vm4, %v10853_v22 }
 0x5fe   : > { %3160 = vmatprep.mubr.bf16.mxu1 %v11239_v50 }
 0x6b8   : > { %v2879_v46 = vpop.f32.mrb[28].mxu1 }
 0x6b9   : > { %v2880_v29 = vadd.f32 %v2879_v46, %v2818_v14  ;;  %v2881_v57 = vpop.f32.mrb[29].mxu1 }
 0x6ba   : > { %v2882_v0 = vadd.f32 %v2881_v57, %v2818_v14  ;;  %v2883_v63 = vpop.f32.mrb[30].mxu1 }
 0x6bb   : > { %v2974_v56 = vmul.f32 0.3, %v2880_v29  ;;  %v2884_v18 = vadd.f32 %v2883_v63, %v2823_v8  ;;  %v2885_v62 = vpop.f32.mrb[31].mxu1  ;;  %v9674_v63 = vld [vmem:[%s15740_s3 + $0x48] sm:$0xf] }
 0x6bc   : > { %v2975_v1 = vmul.f32 0.3, %v2882_v0  ;;  %v2886_v58 = vadd.f32 %v2885_v62, %v2823_v8 }
 0x6bd   : > { %v2980_v40 = vmul.f32 0.3, %v2884_v18  ;;  %v2986_v4 = vmax.f32 %v2880_v29, %v2974_v56 }
 0x6be   : > { %v2981_v19 = vmul.f32 0.3, %v2886_v58  ;;  %v2987_v17 = vmax.f32 %v2882_v0, %v2975_v1 }
 0x6bf   : > { %v2992_v25 = vmax.f32 %v2884_v18, %v2980_v40 }
 0x6c0   : > { %v2993_v43 = vmax.f32 %v2886_v58, %v2981_v19 }
 0x6c1   : > { %v12583_v5 = vpack.c.bf16 %v2992_v25, %v2986_v4 }
 0x6c2   : > { %v12585_v15 = vpack.c.bf16 %v2993_v43, %v2987_v17 }
 0x6c3   : > { %v3010_v55 = vrot.slane %v12583_v5, 2  ;;  %v3033_v35 = vrot.slane %v12583_v5, 4 }
 0x6c4   : > { %v2922_v27 = vpop.f32.mrb[32].mxu1  ;;  %v3011_v41 = vrot.slane %v12585_v15, 2  ;;  %v3034_v31 = vrot.slane %v12585_v15, 4 }
 0x6c5   : > { %v2923_v61 = vadd.f32 %v2922_v27, %v2818_v14  ;;  %v2924_v34 = vpop.f32.mrb[33].mxu1  ;;  %3016 = vrot.lane.b32.xlu1 %v3010_v55, %s15772_s0 }
 0x6c6   : > { %v2925_v45 = vadd.f32 %v2924_v34, %v2818_v14  ;;  %v2926_v38 = vpop.f32.mrb[34].mxu1 }
 0x6c7   : > { %v2976_v44 = vmul.f32 0.3, %v2923_v61  ;;  %v2927_v2 = vadd.f32 %v2926_v38, %v2823_v8  ;;  %v2928_v52 = vpop.f32.mrb[35].mxu1 }
 0x6c8   : > { %v2977_v42 = vmul.f32 0.3, %v2925_v45  ;;  %v2929_v59 = vadd.f32 %v2928_v52, %v2823_v8 }
 0x6c9   : > { %v2982_v9 = vmul.f32 0.3, %v2927_v2  ;;  %3018 = vrot.lane.b32.xlu1 %v3011_v41, %s15772_s0  ;;  %v2988_v33 = vmax.f32 %v2923_v61, %v2976_v44  ;;  %v10854_v44 = vld [vmem:[%s15739_s2 + $0x18] sm:$0x3f]  }
 0x6ca   : > { %v2983_v13 = vmul.f32 0.3, %v2929_v59  ;;  %v2989_v24 = vmax.f32 %v2925_v45, %v2977_v42 }
 0x6cb   : > { %v2994_v21 = vmax.f32 %v2927_v2, %v2982_v9 }
 0x6cc   : > { %v2995_v11 = vmax.f32 %v2929_v59, %v2983_v13 }
 0x6cd   : > { %v12591_v6 = vpack.c.bf16 %v2994_v21, %v2988_v33 }
 0x6ce   : > { %v12593_v23 = vpack.c.bf16 %v2995_v11, %v2989_v24 }
 0x6cf   : > { %v3012_v28 = vrot.slane %v12591_v6, 2  ;;  %v3035_v20 = vrot.slane %v12591_v6, 4 }
 0x6d0   : > { %v2965_v26 = vpop.f32.mrb[36].mxu1  ;;  %v3013_v54 = vrot.slane %v12593_v23, 2  ;;  %v3036_v36 = vrot.slane %v12593_v23, 4 }
 0x6d1   : > { %v2966_v30 = vadd.f32 %v2965_v26, %v2818_v14  ;;  %v2967_v22 = vpop.f32.mrb[37].mxu1  ;;  %3020 = vrot.lane.b32.xlu0 %v3012_v28, %s15772_s0  ;;  %3043 = vrot.lane.b32.xlu1 %v3035_v20, %s15758_s17 }
 0x6d2   : > { %v2968_v51 = vadd.f32 %v2967_v22, %v2818_v14  ;;  %v2969_v7 = vpop.f32.mrb[38].mxu1 }
 0x6d3   : > { %v2978_v12 = vmul.f32 0.3, %v2966_v30  ;;  %v2970_v37 = vadd.f32 %v2969_v7, %v2823_v8  ;;  %v2971_v16 = vpop.f32.mrb[39].mxu1 }
 0x6d4   : > { %v2979_v3 = vmul.f32 0.3, %v2968_v51  ;;  %v2972_v32 = vadd.f32 %v2971_v16, %v2823_v8  ;;  %v9673_v8 = vld [vmem:[%s15740_s3 + $0x40] sm:$0xff] }
 0x6d5   : > { %v2984_v48 = vmul.f32 0.3, %v2970_v37  ;;  %3041 = vrot.lane.b32.xlu0 %v3034_v31, %s15758_s17  ;;  %3022 = vrot.lane.b32.xlu1 %v3013_v54, %s15772_s0  ;;  %v2990_v60 = vmax.f32 %v2966_v30, %v2978_v12 }
 0x6d6   : > { %v2985_v10 = vmul.f32 0.3, %v2972_v32  ;;  %v2991_v53 = vmax.f32 %v2968_v51, %v2979_v3 }
 0x6d7   : > { %v2996_v49 = vmax.f32 %v2970_v37, %v2984_v48 }
 0x6d8   : > { %v2997_v39 = vmax.f32 %v2972_v32, %v2985_v10 }
 0x6d9   : > { %v12605_v47 = vpack.c.bf16 %v2996_v49, %v2990_v60  ;;  %3039 = vrot.lane.b32.xlu0 %v3033_v35, %s15758_s17  ;;  %3045 = vrot.lane.b32.xlu1 %v3036_v36, %s15758_s17 }
 0x6da   : > { %v3003_v14 = vpack.c.bf16 %v2997_v39, %v2991_v53 }
 0x6db   : > { %v3014_v46 = vrot.slane %v12605_v47, 2  ;;  %v3037_v57 = vrot.slane %v12605_v47, 4 }
 0x6dc   : > { %v3015_v29 = vrot.slane %v3003_v14, 2  ;;  %v3038_v0 = vrot.slane %v3003_v14, 4 }
 0x6dd   : > { %3024 = vrot.lane.b32.xlu0 %v3014_v46, %s15772_s0 }
 0x6de   : > { %3026 = vrot.lane.b32.xlu1 %v3015_v29, %s15772_s0 }
 0x6e1   : > { %3047 = vrot.lane.b32.xlu0 %v3037_v57, %s15758_s17 }
 0x6e2   : > { %3100 = vperm.xlu1 %10811, %v9673_v8  }
 0x6e5   : > { %3049 = vrot.lane.b32.xlu0 %v3038_v0, %s15758_s17 }
 0x6e9   : > { %3105 = vperm.xlu0 %10810, %v9674_v63  }
 0x737   : > { %v3017_v56 = vpop.permute.xlu1 %3016 }
 0x73b   : > { %v3019_v18 = vpop.permute.xlu1 %3018 }
 0x73c   : > { %v3028_v62 = vsel %vm651_vm1, %v3017_v56, %v3019_v18 }
 0x73d   : > { %v3058_v19 = vsel %vm657_vm0, %v12583_v5, %v3028_v62 }
 0x743   : > { %v3021_v1 = vpop.permute.xlu0 %3020  ;;  %v3044_v4 = vpop.permute.xlu1 %3043 }
 0x744   : > { %v3029_v58 = vsel %vm651_vm1, %v3019_v18, %v3021_v1 }
 0x745   : > { %v3062_v40 = vsel %vm657_vm0, %v12585_v15, %v3029_v58 }
 0x746   : > { %3128 = vmatprep.subr.bf16.mxu1 %v3062_v40 }
 0x747   : > { %v3042_v25 = vpop.permute.xlu0 %3041  ;;  %3129 = vmatpush1.bf16.msra.mxu1 %v3058_v19  ;;  %v3023_v61 = vpop.permute.xlu1 %3022 }
 0x748   : > { %v3052_v17 = vsel %vm1771_vm5, %v3042_v25, %v3044_v4  ;;  %v3030_v2 = vsel %vm651_vm1, %v3021_v1, %v3023_v61 }
 0x749   : > { %v3084_v43 = vsel %vm682_vm2, %v3029_v58, %v3052_v17  ;;  %v3066_v59 = vsel %vm657_vm0, %v12591_v6, %v3030_v2 }
 0x74a   : > { %3130 = vmatprep.subr.bf16.mxu1 %v3084_v43 }
 0x74b   : > { %v3040_v55 = vpop.permute.xlu0 %3039  ;;  %v3046_v52 = vpop.permute.xlu1 %3045 }
 0x74c   : > { %v3051_v27 = vsel %vm1771_vm5, %v3040_v55, %v3042_v25  ;;  %v3053_v13 = vsel %vm1771_vm5, %v3044_v4, %v3046_v52 }
 0x74d   : > { %v3081_v34 = vsel %vm682_vm2, %v3028_v62, %v3051_v27  ;;  %v3116_v45 = vsel %vm808_vm3, %v3051_v27, 0  ;;  %v3087_v33 = vsel %vm682_vm2, %v3030_v2, %v3053_v13  ;;  %v3120_v24 = vsel %vm808_vm3, %v3053_v13, 0 }
 0x74e   : > { %3131 = vmatpush1.bf16.msra.mxu1 %v3081_v34 }
 0x74f   : > { %v3025_v15 = vpop.permute.xlu0 %3024  ;;  %9689 = vmatprep.subr.msk.bf16.mxu1 %vm808_vm3, %v3052_v17 }
 0x750   : > { %v3031_v5 = vsel %vm651_vm1, %v3023_v61, %v3025_v15  ;;  %v3027_v21 = vpop.permute.xlu1 %3026 }
 0x751   : > { %v3070_v38 = vsel %vm657_vm0, %v12593_v23, %v3031_v5  ;;  %v3078_v11 = vsel %vm657_vm0, %v3003_v14, %v3027_v21  ;;  %v3032_v6 = vsel %vm651_vm1, %v3025_v15, %v3027_v21 }
 0x752   : > { %3133 = vmatpush1.bf16.msra.mxu1 %v3116_v45  ;;  %v3074_v28 = vsel %vm657_vm0, %v12605_v47, %v3032_v6 }
 0x753   : > { %v3048_v41 = vpop.permute.xlu0 %3047  ;;  %3171 = vmatprep.subr.bf16.mxu1 %v3070_v38 }
 0x754   : > { %v3054_v42 = vsel %vm1771_vm5, %v3046_v52, %v3048_v41 }
 0x755   : > { %9690 = vmatmul.mubr.msk.bf16.vlgmr.msra.gmra.mrb[40].mxu1 %vm15784_vm4, %v10854_v44  ;;  %v3090_v9 = vsel %vm682_vm2, %v3031_v5, %v3054_v42 }
 0x756   : > { %3172 = vmatpush1.bf16.msra.mxu1 %v3066_v59  ;;  %3203 = vmatprep.mubr.bf16.mxu1 %v11239_v50 }
 0x757   : > { %3173 = vmatprep.subr.bf16.mxu1 %v3090_v9  ;;  %v3050_v23 = vpop.permute.xlu0 %3049 }
 0x758   : > { %v3096_v20 = vsel %vm682_vm2, %v3027_v21, %v3050_v23  ;;  %v3055_v26 = vsel %vm1771_vm5, %v3048_v41, %v3050_v23 }
 0x759   : > { %v3093_v30 = vsel %vm682_vm2, %v3032_v6, %v3055_v26  ;;  %v3124_v22 = vsel %vm808_vm3, %v3055_v26, 0 }
 0x75a   : > { %3174 = vmatpush1.bf16.msra.mxu1 %v3087_v33 }
 0x75b   : > { %9691 = vmatprep.subr.msk.bf16.mxu1 %vm808_vm3, %v3054_v42 }
 0x75e   : > { %3176 = vmatpush1.bf16.msra.mxu1 %v3120_v24 }
 0x75f   : > { %3214 = vmatprep.subr.bf16.mxu1 %v3078_v11 }
 0x761   : > { %9692 = vmatmul.mubr.msk.bf16.vlgmr.msra.gmra.mrb[44].mxu1 %vm15784_vm4, %v10854_v44  ;;  %v3101_v51 = vpop.permute.xlu1 %3100 }
 0x762   : > { %3215 = vmatpush1.bf16.msra.mxu1 %v3074_v28  ;;  %3246 = vmatprep.mubr.bf16.mxu1 %v11239_v50 }
 0x763   : > { %3216 = vmatprep.subr.bf16.mxu1 %v3096_v20 }
 0x766   : > { %3217 = vmatpush1.bf16.msra.mxu1 %v3093_v30 }
 0x767   : > { %9693 = vmatprep.subr.msk.bf16.mxu1 %vm808_vm3, %v3050_v23 }
 0x768   : > { %v3106_v16 = vpop.permute.xlu0 %3105 }
 0x76a   : > { %3219 = vmatpush1.bf16.msra.mxu1 %v3124_v22 }
 0x76d   : > { %9694 = vmatmul.mubr.msk.bf16.vlgmr.msra.gmra.mrb[48].mxu1 %vm15784_vm4, %v10854_v44  ;;  %vm3531_vm4 = vcmask 941056  }
 0x828   : > { %v3162_v7 = vpop.f32.mrb[40].mxu1 }
 0x829   : > { %v3163_v12 = vadd.f32 %v3162_v7, %v3101_v51  ;;  %v3164_v37 = vpop.f32.mrb[41].mxu1 }
 0x82a   : > { %v3165_v31 = vadd.f32 %v3164_v37, %v3101_v51  ;;  %v3166_v54 = vpop.f32.mrb[42].mxu1 }
 0x82b   : > { %v3257_v3 = vmul.f32 0.3, %v3163_v12  ;;  %v3167_v32 = vadd.f32 %v3166_v54, %v3106_v16  ;;  %v3168_v48 = vpop.f32.mrb[43].mxu1 }
 0x82c   : > { %v3258_v10 = vmul.f32 0.3, %v3165_v31  ;;  %v3169_v60 = vadd.f32 %v3168_v48, %v3106_v16 }
 0x82d   : > { %v3263_v49 = vmul.f32 0.3, %v3167_v32  ;;  %v3269_v36 = vmax.f32 %v3163_v12, %v3257_v3 }
 0x82e   : > { %v3264_v35 = vmul.f32 0.3, %v3169_v60  ;;  %v3270_v39 = vmax.f32 %v3165_v31, %v3258_v10 }
 0x82f   : > { %v3275_v53 = vmax.f32 %v3167_v32, %v3263_v49 }
 0x830   : > { %v3276_v47 = vmax.f32 %v3169_v60, %v3264_v35 }
 0x831   : > { %v12662_v14 = vpack.c.bf16 %v3275_v53, %v3269_v36 }
 0x832   : > { %v12664_v46 = vpack.c.bf16 %v3276_v47, %v3270_v39 }
 0x833   : > { %3362 = vrot.lane.b32.xlu1 %v12662_v14, %s15766_s18  ;;  %v3293_v29 = vrot.slane %v12662_v14, 2  ;;  %v3316_v58 = vrot.slane %v12662_v14, 4  ;;  %v3339_v55 = vrot.slane %v12662_v14, 6 }
 0x834   : > { %v3205_v57 = vpop.f32.mrb[44].mxu1  ;;  %v3294_v20 = vrot.slane %v12664_v46, 2  ;;  %v3317_v26 = vrot.slane %v12664_v46, 4  ;;  %v3340_v30 = vrot.slane %v12664_v46, 6 }
 0x835   : > { %v3206_v8 = vadd.f32 %v3205_v57, %v3101_v51  ;;  %v3207_v0 = vpop.f32.mrb[45].mxu1  ;;  %3299 = vrot.lane.b32.xlu0 %v3293_v29, %s15772_s0 }
 0x836   : > { %v3208_v63 = vadd.f32 %v3207_v0, %v3101_v51  ;;  %v3209_v56 = vpop.f32.mrb[46].mxu1 }
 0x837   : > { %v3259_v18 = vmul.f32 0.3, %v3206_v8  ;;  %v3210_v62 = vadd.f32 %v3209_v56, %v3106_v16  ;;  %v3211_v1 = vpop.f32.mrb[47].mxu1  ;;  %3430 = vrot.lane.b32.xlu1 %v12662_v14, %s15756_s25 }
 0x838   : > { %v3260_v40 = vmul.f32 0.3, %v3208_v63  ;;  %v3212_v19 = vadd.f32 %v3211_v1, %v3106_v16 }
 0x839   : > { %v3265_v4 = vmul.f32 0.3, %v3210_v62  ;;  %3322 = vrot.lane.b32.xlu0 %v3316_v58, %s15758_s17  ;;  %v3271_v17 = vmax.f32 %v3206_v8, %v3259_v18 }
 0x83a   : > { %v3266_v25 = vmul.f32 0.3, %v3212_v19  ;;  %v3272_v27 = vmax.f32 %v3208_v63, %v3260_v40 }
 0x83b   : > { %v3277_v43 = vmax.f32 %v3210_v62, %v3265_v4  ;;  %3501 = vrot.lane.b32.xlu1 %v12662_v14, %s15754_s28 }
 0x83c   : > { %v3278_v61 = vmax.f32 %v3212_v19, %v3266_v25 }
 0x83d   : > { %v12677_v34 = vpack.c.bf16 %v3277_v43, %v3271_v17  ;;  %3345 = vrot.lane.b32.xlu0 %v3339_v55, %s15776_s19 }
 0x83e   : > { %v12680_v15 = vpack.c.bf16 %v3278_v61, %v3272_v27 }
 0x83f   : > { %3364 = vrot.lane.b32.xlu1 %v12664_v46, %s15766_s18  ;;  %v3295_v22 = vrot.slane %v12677_v34, 2  ;;  %v3341_v7 = vrot.slane %v12677_v34, 6 }
 0x840   : > { %v3248_v5 = vpop.f32.mrb[48].mxu1  ;;  %v3296_v12 = vrot.slane %v12680_v15, 2  ;;  %v12745_v37 = vrot.slane %v12680_v15, 4 }
 0x841   : > { %v3249_v45 = vadd.f32 %v3248_v5, %v3101_v51  ;;  %v3250_v38 = vpop.f32.mrb[49].mxu1  ;;  %3379 = vrot.lane.b32.xlu0 %v3293_v29, %s15760_s23 }
 0x842   : > { %v3251_v44 = vadd.f32 %v3250_v38, %v3101_v51  ;;  %v3252_v2 = vpop.f32.mrb[50].mxu1  ;;  %v3318_v51 = vrot.slane %v12677_v34, 4 }
 0x843   : > { %v3261_v52 = vmul.f32 0.3, %v3249_v45  ;;  %v3253_v41 = vadd.f32 %v3252_v2, %v3106_v16  ;;  %v3254_v42 = vpop.f32.mrb[51].mxu1  ;;  %3432 = vrot.lane.b32.xlu1 %v12664_v46, %s15756_s25  ;;  %s15770_s25 = smov 113  }
 0x844   : > { %v3262_v59 = vmul.f32 0.3, %v3251_v44  ;;  %v3255_v9 = vadd.f32 %v3254_v42, %v3106_v16  ;;  %v12751_v16 = vrot.slane %v12680_v15, 6 }
 0x845   : > { %v3267_v13 = vmul.f32 0.3, %v3253_v41  ;;  %3396 = vrot.lane.b32.xlu0 %v3316_v58, %s15778_s20  ;;  %v3273_v21 = vmax.f32 %v3249_v45, %v3261_v52 }
 0x846   : > { %v3268_v33 = vmul.f32 0.3, %v3255_v9  ;;  %v3274_v11 = vmax.f32 %v3251_v44, %v3262_v59 }
 0x847   : > { %v3279_v24 = vmax.f32 %v3253_v41, %v3267_v13  ;;  %3503 = vrot.lane.b32.xlu1 %v12664_v46, %s15754_s28  ;;  %s15774_s28 = smov 115  }
 0x848   : > { %v3280_v6 = vmax.f32 %v3255_v9, %v3268_v33 }
 0x849   : > { %v12690_v23 = vpack.c.bf16 %v3279_v24, %v3273_v21  ;;  %3413 = vrot.lane.b32.xlu0 %v3339_v55, %s15768_s24 }
 0x84a   : > { %v12693_v28 = vpack.c.bf16 %v3280_v6, %v3274_v11 }
 0x84b   : > { %3465 = vrot.lane.b32.xlu1 %v3316_v58, %s15762_s29  ;;  %v12775_v48 = vrot.slane %v12690_v23, 2  ;;  %v12784_v49 = vrot.slane %v12690_v23, 6  ;;  %v12797_v39 = vrot.slane %v12690_v23, 4 }
 0x84c   : > { %v12812_v8 = vrot.slane %v12693_v28, 2  ;;  %v12823_v56 = vrot.slane %v12693_v28, 4  ;;  %v12834_v1 = vrot.slane %v12693_v28, 6 }
 0x84d   : > { %3447 = vrot.lane.b32.xlu0 %v3293_v29, %s15782_s30 }
 0x84f   : > { %3537 = vrot.lane.b32.xlu1 %v3316_v58, %s15764_s26 }
 0x851   : > { %3483 = vrot.lane.b32.xlu0 %v3339_v55, %s15780_s27 }
 0x853   : > { %3301 = vrot.lane.b32.xlu1 %v3294_v20, %s15772_s0 }
 0x855   : > { %3519 = vrot.lane.b32.xlu0 %v3293_v29, %s15774_s28 }
 0x857   : > { %3324 = vrot.lane.b32.xlu1 %v3317_v26, %s15758_s17  ;;  %s15825_s17 = smov 120  }
 0x859   : > { %3555 = vrot.lane.b32.xlu0 %v3339_v55, %s15770_s25 }
 0x85b   : > { %3347 = vrot.lane.b32.xlu1 %v3340_v30, %s15776_s19 }
 0x85d   : > { %3381 = vrot.lane.b32.xlu0 %v3294_v20, %s15760_s23  ;;  %s15826_s23 = smov 116  }
 0x85f   : > { %3398 = vrot.lane.b32.xlu1 %v3317_v26, %s15778_s20 }
 0x861   : > { %3485 = vrot.lane.b32.xlu0 %v3340_v30, %s15780_s27 }
 0x863   : > { %3415 = vrot.lane.b32.xlu1 %v3340_v30, %s15768_s24 }
 0x865   : > { %3557 = vrot.lane.b32.xlu0 %v3340_v30, %s15770_s25 }
 0x867   : > { %3449 = vrot.lane.b32.xlu1 %v3294_v20, %s15782_s30 }
 0x869   : > { %3366 = vrot.lane.b32.xlu0 %v12677_v34, %s15766_s18 }
 0x86b   : > { %3467 = vrot.lane.b32.xlu1 %v3317_v26, %s15762_s29  ;;  %s15827_s29 = smov 126  }
 0x86d   : > { %3434 = vrot.lane.b32.xlu0 %v12677_v34, %s15825_s17 }
 0x86f   : > { %3521 = vrot.lane.b32.xlu1 %v3294_v20, %s15774_s28 }
 0x871   : > { %3505 = vrot.lane.b32.xlu0 %v12677_v34, %s15826_s23 }
 0x873   : > { %3539 = vrot.lane.b32.xlu1 %v3317_v26, %s15764_s26  ;;  %s15828_s26 = smov 123  }
 0x875   : > { %3303 = vrot.lane.b32.xlu0 %v3295_v22, %s15772_s0 }
 0x877   : > { %3368 = vrot.lane.b32.xlu1 %v12680_v15, %s15766_s18  ;;  %s15829_s18 = smov 118  }
 0x879   : > { %3326 = vrot.lane.b32.xlu0 %v3318_v51, %s15827_s29 }
 0x87b   : > { %3436 = vrot.lane.b32.xlu1 %v12680_v15, %s15825_s17 }
 0x87d   : > { %3349 = vrot.lane.b32.xlu0 %v3341_v7, %s15776_s19 }
 0x87f   : > { %3507 = vrot.lane.b32.xlu1 %v12680_v15, %s15826_s23 }
 0x881   : > { %3400 = vrot.lane.b32.xlu0 %v3318_v51, %s15778_s20 }
 0x883   : > { %3383 = vrot.lane.b32.xlu1 %v3295_v22, %s15828_s26 }
 0x885   : > { %3417 = vrot.lane.b32.xlu0 %v3341_v7, %s15768_s24  ;;  %s15830_s24 = smov 114  }
 0x887   : > { %3487 = vrot.lane.b32.xlu1 %v3341_v7, %s15780_s27 }
 0x889   : > { %3451 = vrot.lane.b32.xlu0 %v3295_v22, %s15782_s30 }
 0x88b   : > { %3559 = vrot.lane.b32.xlu1 %v3341_v7, %s15770_s25  ;;  %s15831_s25 = smov 121  }
 0x88d   : > { %3469 = vrot.lane.b32.xlu0 %v3318_v51, %s15829_s18 }
 0x88f   : > { %3305 = vrot.lane.b32.xlu1 %v3296_v12, %s15772_s0  ;;  %s15832_s0 = smov 124  }
 0x891   : > { %3523 = vrot.lane.b32.xlu0 %v3295_v22, %s15774_s28 }
 0x893   : > { %3328 = vrot.lane.b32.xlu1 %v12745_v37, %s15827_s29 }
 0x895   : > { %3541 = vrot.lane.b32.xlu0 %v3318_v51, %s15830_s24 }
 0x897   : > { %3351 = vrot.lane.b32.xlu1 %v12751_v16, %s15776_s19 }
 0x899   : > { %3385 = vrot.lane.b32.xlu0 %v3296_v12, %s15828_s26 }
 0x89b   : > { %3402 = vrot.lane.b32.xlu1 %v12745_v37, %s15778_s20 }
 0x89d   : > { %3471 = vrot.lane.b32.xlu0 %v12745_v37, %s15829_s18 }
 0x89f   : > { %3419 = vrot.lane.b32.xlu1 %v12751_v16, %s15831_s25 }
 0x8a1   : > { %3370 = vrot.lane.b32.xlu0 %v12690_v23, %s15832_s0 }
 0x8a3   : > { %3453 = vrot.lane.b32.xlu1 %v3296_v12, %s15782_s30 }
 0x8a5   : > { %v3363_v31 = vpop.permute.xlu1 %3362  ;;  %3438 = vrot.lane.b32.xlu0 %v12690_v23, %s15825_s17 }
 0x8a7   : > { %3489 = vrot.lane.b32.xlu1 %v12751_v16, %s15780_s27  ;;  %v3300_v54 = vpop.permute.xlu0 %3299 }
 0x8a9   : > { %v12769_v3 = vpop.permute.xlu1 %3430  ;;  %3509 = vrot.lane.b32.xlu0 %v12690_v23, %s15826_s23 }
 0x8ab   : > { %3525 = vrot.lane.b32.xlu1 %v3296_v12, %s15774_s28  ;;  %v3323_v32 = vpop.permute.xlu0 %3322  ;;  %s15833_s28 = smov 127  }
 0x8ad   : > { %v12777_v10 = vpop.permute.xlu1 %3501  ;;  %3387 = vrot.lane.b32.xlu0 %v12775_v48, %s15828_s26 }
 0x8af   : > { %3372 = vrot.lane.b32.xlu1 %v12693_v28, %s15832_s0  ;;  %v3346_v60 = vpop.permute.xlu0 %3345 }
 0x8b1   : > { %v12786_v35 = vpop.permute.xlu1 %3364  ;;  %3421 = vrot.lane.b32.xlu0 %v12784_v49, %s15831_s25 }
 0x8b2   : > { %v3374_v45 = vsel %vm15792_vm7, %v3363_v31, %v12786_v35 }
 0x8b3   : > { %3307 = vrot.lane.b32.xlu1 %v12775_v48, %s15833_s28  ;;  %v3380_v36 = vpop.permute.xlu0 %3379 }
 0x8b5   : > { %v12792_v53 = vpop.permute.xlu1 %3432  ;;  %3455 = vrot.lane.b32.xlu0 %v12775_v48, %s15782_s30  ;;  %s15834_s30 = smov 115  }
 0x8b7   : > { %3330 = vrot.lane.b32.xlu1 %v12797_v39, %s15827_s29  ;;  %v12801_v47 = vpop.permute.xlu0 %3396 }
 0x8b9   : > { %v12803_v29 = vpop.permute.xlu1 %3503  ;;  %3491 = vrot.lane.b32.xlu0 %v12784_v49, %s15780_s27  ;;  %s15838_s27 = smov 119  }
 0x8bb   : > { %3353 = vrot.lane.b32.xlu1 %v12784_v49, %s15776_s19  ;;  %v12809_v57 = vpop.permute.xlu0 %3413 }
 0x8bd   : > { %v12814_v0 = vpop.permute.xlu1 %3465  ;;  %3309 = vrot.lane.b32.xlu0 %v12812_v8, %s15833_s28 }
 0x8bf   : > { %3404 = vrot.lane.b32.xlu1 %v12797_v39, %s15778_s20  ;;  %v12820_v63 = vpop.permute.xlu0 %3447 }
 0x8c1   : > { %v12825_v18 = vpop.permute.xlu1 %3537  ;;  %3332 = vrot.lane.b32.xlu0 %v12823_v56, %s15827_s29 }
 0x8c3   : > { %3473 = vrot.lane.b32.xlu1 %v12797_v39, %s15829_s18  ;;  %v12831_v62 = vpop.permute.xlu0 %3483 }
 0x8c5   : > { %v3302_v58 = vpop.permute.xlu1 %3301  ;;  %3355 = vrot.lane.b32.xlu0 %v12834_v1, %s15776_s19  ;;  %s15793_s19 = smov 112  }
 0x8c6   : > { %v3311_v4 = vsel %vm651_vm1, %v3300_v54, %v3302_v58 }
 0x8c7   : > { %3389 = vrot.lane.b32.xlu1 %v12812_v8, %s15828_s26  ;;  %v12840_v40 = vpop.permute.xlu0 %3519  ;;  %v3575_v27 = vsel %vm657_vm0, %v12662_v14, %v3311_v4 }
 0x8c9   : > { %v3325_v19 = vpop.permute.xlu1 %3324  ;;  %3406 = vrot.lane.b32.xlu0 %v12823_v56, %s15778_s20  ;;  %s15835_s20 = smov 113  }
 0x8ca   : > { %v3334_v25 = vsel %vm1771_vm5, %v3323_v32, %v3325_v19 }
 0x8cb   : > { %3423 = vrot.lane.b32.xlu1 %v12834_v1, %s15831_s25  ;;  %v12848_v17 = vpop.permute.xlu0 %3555  ;;  %v3598_v43 = vsel %vm682_vm2, %v3311_v4, %v3334_v25 }
 0x8cd   : > { %v3348_v55 = vpop.permute.xlu1 %3347  ;;  %3861 = vrot.lane.b32.xlu0 %v3598_v43, %s15793_s19 }
 0x8ce   : > { %v3357_v61 = vsel %vm1806_vm6, %v3346_v60, %v3348_v55 }
 0x8cf   : > { %3849 = vrot.lane.b32.xlu1 %v3575_v27, %s15793_s19  ;;  %v3382_v5 = vpop.permute.xlu0 %3381  ;;  %v3616_v52 = vsel %vm808_vm3, %v3334_v25, %v3357_v61 }
 0x8d0   : > { %v3391_v38 = vsel %vm15800_vm8, %v3380_v36, %v3382_v5 }
 0x8d1   : > { %v3399_v44 = vpop.permute.xlu1 %3398  ;;  %v3635_v2 = vsel %vm657_vm0, %v3374_v45, %v3391_v38 }
 0x8d2   : > { %3885 = vrot.lane.b32.xlu0 %v3635_v2, %s15793_s19 }
 0x8d3   : > { %3873 = vrot.lane.b32.xlu1 %v3616_v52, %s15793_s19  ;;  %v12863_v14 = vpop.permute.xlu0 %3485 }
 0x8d5   : > { %v3416_v41 = vpop.permute.xlu1 %3415 }
 0x8d7   : > { %v12865_v42 = vpop.permute.xlu0 %3557 }
 0x8d9   : > { %v3450_v59 = vpop.permute.xlu1 %3449 }
 0x8db   : > { %v12867_v9 = vpop.permute.xlu0 %3366 }
 0x8dd   : > { %v12869_v13 = vpop.permute.xlu1 %3467 }
 0x8df   : > { %v12871_v33 = vpop.permute.xlu0 %3434 }
 0x8e1   : > { %v12873_v21 = vpop.permute.xlu1 %3521 }
 0x8e3   : > { %v12875_v24 = vpop.permute.xlu0 %3505 }
 0x8e5   : > { %v12877_v11 = vpop.permute.xlu1 %3539 }
 0x8e7   : > { %v3304_v6 = vpop.permute.xlu0 %3303 }
 0x8e8   : > { %v3312_v20 = vsel %vm651_vm1, %v3302_v58, %v3304_v6  ;;  %v3375_v58 = vsel %vm15792_vm7, %v12786_v35, %v12867_v9 }
 0x8e9   : > { %v12880_v26 = vpop.permute.xlu1 %3368  ;;  %v3579_v30 = vsel %vm657_vm0, %v12664_v46, %v3312_v20 }
 0x8ea   : > { %3851 = vrot.lane.b32.xlu1 %v3579_v30, %s15793_s19  ;;  %4006 = vmatprep.subr.bf16.mxu0 %v3579_v30 }
 0x8eb   : > { %4007 = vmatpush1.bf16.msra.mxu0 %v3575_v27  ;;  %v3327_v22 = vpop.permute.xlu0 %3326 }
 0x8ec   : > { %v3335_v51 = vsel %vm1771_vm5, %v3325_v19, %v3327_v22 }
 0x8ed   : > { %v12886_v7 = vpop.permute.xlu1 %3436  ;;  %v3601_v12 = vsel %vm682_vm2, %v3312_v20, %v3335_v51 }
 0x8ee   : > { %3863 = vrot.lane.b32.xlu0 %v3601_v12, %s15793_s19  ;;  %4008 = vmatprep.subr.bf16.mxu0 %v3601_v12 }
 0x8ef   : > { %4009 = vmatpush1.bf16.msra.mxu0 %v3598_v43  ;;  %v12890_v31 = vpop.permute.xlu0 %3349 }
 0x8f0   : > { %v3358_v46 = vsel %vm1806_vm6, %v3348_v55, %v12890_v31  ;;  %v3408_v55 = vsel %vm15788_vm9, %v12801_v47, %v3399_v44 }
 0x8f1   : > { %v12894_v54 = vpop.permute.xlu1 %3507  ;;  %v3619_v32 = vsel %vm808_vm3, %v3335_v51, %v3358_v46  ;;  %v12923_v45 = vsel %vm682_vm2, %v3391_v38, %v3408_v55  ;;  %v3443_v38 = vsel %vm2317_vm11, %v12792_v53, %v12871_v33 }
 0x8f2   : > { %3875 = vrot.lane.b32.xlu1 %v3619_v32, %s15793_s19  ;;  %4010 = vmatprep.subr.bf16.mxu0 %v3619_v32  ;;  %v3442_v32 = vsel %vm2317_vm11, %v12769_v3, %v12792_v53 }
 0x8f3   : > { %4011 = vmatpush1.bf16.msra.mxu0 %v3616_v52  ;;  %v12898_v60 = vpop.permute.xlu0 %3400  ;;  %v3425_v52 = vsel %vm15789_vm10, %v12809_v57, %v3416_v41 }
 0x8f4   : > { %v3409_v43 = vsel %vm15788_vm9, %v3399_v44, %v12898_v60  ;;  %v12942_v57 = vsel %vm808_vm3, %v3408_v55, %v3425_v52  ;;  %v3496_v52 = vsel %vm15786_vm15, %v12831_v62, %v12863_v14 }
 0x8f5   : > { %v12900_v36 = vpop.permute.xlu1 %3383 }
 0x8f6   : > { %v3392_v19 = vsel %vm15800_vm8, %v3382_v5, %v12900_v36 }
 0x8f7   : > { %v12907_v4 = vpop.permute.xlu0 %3417  ;;  %v3639_v25 = vsel %vm657_vm0, %v3375_v58, %v3392_v19  ;;  %v3661_v35 = vsel %vm682_vm2, %v3392_v19, %v3409_v43 }
 0x8f8   : > { %3887 = vrot.lane.b32.xlu0 %v3639_v25, %s15793_s19  ;;  %4012 = vmatprep.subr.bf16.mxu0 %v3639_v25  ;;  %v3426_v61 = vsel %vm15789_vm10, %v3416_v41, %v12907_v4  ;;  %v3460_v41 = vsel %vm3459_vm13, %v12820_v63, %v3450_v59 }
 0x8f9   : > { %v12915_v27 = vpop.permute.xlu1 %3487  ;;  %4013 = vmatpush1.bf16.msra.mxu0 %v3635_v2  ;;  %v12931_v47 = vsel %vm808_vm3, %v3409_v43, %v3426_v61  ;;  %v3695_v58 = vsel %vm657_vm0, %v3442_v32, %v3460_v41 }
 0x8fa   : > { %4014 = vmatprep.subr.bf16.mxu0 %v3661_v35 }
 0x8fb   : > { %v12920_v5 = vpop.permute.xlu0 %3451 }
 0x8fc   : > { %v3461_v44 = vsel %vm3459_vm13, %v3450_v59, %v12920_v5 }
 0x8fd   : > { %v12927_v20 = vpop.permute.xlu1 %3559  ;;  %4015 = vmatpush1.bf16.msra.mxu0 %v12923_v45  ;;  %v3699_v51 = vsel %vm657_vm0, %v3443_v38, %v3461_v44 }
 0x8fe   : > { %4016 = vmatprep.subr.bf16.mxu0 %v12931_v47 }
 0x8ff   : > { %v12936_v2 = vpop.permute.xlu0 %3469 }
 0x900   : > { %v3479_v12 = vsel %vm3477_vm14, %v12869_v13, %v12936_v2 }
 0x901   : > { %v12946_v30 = vpop.permute.xlu1 %3305  ;;  %4017 = vmatpush1.bf16.msra.mxu0 %v12942_v57  ;;  %v3721_v3 = vsel %vm682_vm2, %v3461_v44, %v3479_v12 }
 0x902   : > { %v3313_v46 = vsel %vm651_vm1, %v3304_v6, %v12946_v30  ;;  %4018 = vmatprep.subr.bf16.mxu0 %v3699_v51  ;;  %v3478_v6 = vsel %vm3477_vm14, %v12814_v0, %v12869_v13  ;;  %v3497_v0 = vsel %vm15786_vm15, %v12863_v14, %v12915_v27  ;;  %v3532_v14 = vsel %vm3531_vm4, %v12840_v40, %v12873_v21 }
 0x903   : > { %v12958_v63 = vpop.permute.xlu0 %3523  ;;  %v12962_v59 = vsel %vm657_vm0, %v12677_v34, %v3313_v46  ;;  %v12978_v34 = vld [vmem:[%s15741_s4 + $0x1c] ss:$12 sps:$4 sm:$0x3f]   ;;  %v3718_v13 = vsel %vm682_vm2, %v3460_v41, %v3478_v6  ;;  %v3739_v55 = vsel %vm808_vm3, %v3479_v12, %v3497_v0  ;;  %v3515_v41 = vsel %vm15787_vm12, %v12803_v29, %v12875_v24 }
 0x904   : > { %3853 = vrot.lane.b32.xlu0 %v12962_v59, %s15793_s19  ;;  %4038 = vmatprep.mubr.bf16.mxu0 %v12978_v34  ;;  %v3533_v61 = vsel %vm3531_vm4, %v12873_v21, %v12958_v63  ;;  %v3736_v62 = vsel %vm808_vm3, %v3478_v6, %v3496_v52  ;;  %vm15802_vm15 = vcmask 932864  }
 0x905   : > { %v12970_v19 = vpop.permute.xlu1 %3328  ;;  %4019 = vmatpush1.bf16.msra.mxu0 %v3695_v58  ;;  %4124 = vmatprep.mubr.bf16.mxu1 %v12978_v34  ;;  %v3759_v12 = vsel %vm657_vm0, %v3515_v41, %v3533_v61  ;;  %v3550_v32 = vsel %vm15802_vm15, %v12825_v18, %v12877_v11 }
 0x906   : > { %v3336_v53 = vsel %vm1771_vm5, %v3327_v22, %v12970_v19  ;;  %4020 = vmatprep.subr.bf16.mxu0 %v3721_v3  ;;  %v3778_v18 = vsel %vm682_vm2, %v3532_v14, %v3550_v32 }
 0x907   : > { %v12980_v25 = vpop.permute.xlu0 %3541  ;;  %v12983_v43 = vsel %vm682_vm2, %v3313_v46, %v3336_v53  ;;  %v3514_v46 = vsel %vm15787_vm12, %v12777_v10, %v12803_v29  ;;  %vm15801_vm12 = vcmask 924672  }
 0x908   : > { %3527 = vrot.lane.b32.xlu0 %v12775_v48, %s15834_s30  ;;  %3865 = vrot.lane.b32.xlu1 %v12983_v43, %s15793_s19 }
 0x909   : > { %v12993_v22 = vpop.permute.xlu1 %3351  ;;  %4021 = vmatpush1.bf16.msra.mxu0 %v3718_v13 }
 0x90a   : > { %v3359_v48 = vsel %vm1806_vm6, %v12890_v31, %v12993_v22  ;;  %4022 = vmatprep.subr.bf16.mxu0 %v3739_v55 }
 0x90b   : > { %v13007_v44 = vpop.permute.xlu0 %3385  ;;  %v13010_v38 = vsel %vm808_vm3, %v3336_v53, %v3359_v48  ;;  %v3568_v53 = vsel %vm15801_vm12, %v12848_v17, %v12865_v42 }
 0x90c   : > { %v3393_v31 = vsel %vm15800_vm8, %v12900_v36, %v13007_v44  ;;  %3877 = vrot.lane.b32.xlu0 %v13010_v38, %s15793_s19  ;;  %3899 = vrot.lane.b32.xlu1 %v3661_v35, %s15793_s19  ;;  %v3376_v36 = vsel %vm15792_vm7, %v12867_v9, %v12880_v26  ;;  %v3551_v35 = vsel %vm15802_vm15, %v12877_v11, %v12980_v25 }
 0x90d   : > { %v13025_v51 = vpop.permute.xlu1 %3402  ;;  %4023 = vmatpush1.bf16.msra.mxu0 %v3736_v62  ;;  %v13040_v21 = vsel %vm657_vm0, %v3376_v36, %v3393_v31  ;;  %v3755_v9 = vsel %vm657_vm0, %v3514_v46, %v3532_v14  ;;  %v3781_v10 = vsel %vm682_vm2, %v3533_v61, %v3551_v35 }
 0x90e   : > { %4024 = vmatprep.subr.bf16.mxu0 %v3759_v12  ;;  %v3410_v6 = vsel %vm15788_vm9, %v12898_v60, %v13025_v51 }
 0x90f   : > { %v13037_v40 = vpop.permute.xlu0 %3471  ;;  %v3664_v60 = vsel %vm682_vm2, %v3393_v31, %v3410_v6 }
 0x910   : > { %3543 = vrot.lane.b32.xlu0 %v12745_v37, %s15830_s24  ;;  %3889 = vrot.lane.b32.xlu1 %v13040_v21, %s15793_s19  ;;  %v3569_v37 = vsel %vm15801_vm12, %v12865_v42, %v12927_v20 }
 0x911   : > { %v13050_v58 = vpop.permute.xlu1 %3419  ;;  %4025 = vmatpush1.bf16.msra.mxu0 %v3755_v9  ;;  %v3799_v3 = vsel %vm808_vm3, %v3551_v35, %v3569_v37 }
 0x912   : > { %4026 = vmatprep.subr.bf16.mxu0 %v3781_v10 }
 0x913   : > { %v13053_v29 = vpop.permute.xlu0 %3370 }
 0x914   : > { %3911 = vrot.lane.b32.xlu0 %v12931_v47, %s15793_s19  ;;  %3897 = vrot.lane.b32.xlu1 %v12923_v45, %s15793_s19  ;;  %v3427_v45 = vsel %vm15789_vm10, %v12907_v4, %v13050_v58  ;;  %v3796_v47 = vsel %vm808_vm3, %v3550_v32, %v3568_v53  ;;  %v3377_v12 = vsel %vm15792_vm7, %v12880_v26, %v13053_v29 }
 0x915   : > { %v13066_v11 = vpop.permute.xlu1 %3453  ;;  %4027 = vmatpush1.bf16.msra.mxu0 %v3778_v18  ;;  %v13087_v17 = vsel %vm808_vm3, %v3410_v6, %v3427_v45 }
 0x916   : > { %4028 = vmatprep.subr.bf16.mxu0 %v3799_v3  ;;  %v3462_v45 = vsel %vm3459_vm13, %v12920_v5, %v13066_v11  ;;  %v3444_v5 = vsel %vm2317_vm11, %v12871_v33, %v12886_v7  ;;  %v3480_v33 = vsel %vm3477_vm14, %v12936_v2, %v13037_v40 }
 0x917   : > { %v13072_v0 = vpop.permute.xlu0 %3438 }
 0x918   : > { %3901 = vrot.lane.b32.xlu0 %v3664_v60, %s15793_s19  ;;  %3545 = vrot.lane.b32.xlu1 %v12797_v39, %s15830_s24  ;;  %v3445_v53 = vsel %vm2317_vm11, %v12886_v7, %v13072_v0 }
 0x919   : > { %v13082_v13 = vpop.permute.xlu1 %3489  ;;  %4029 = vmatpush1.bf16.msra.mxu0 %v3796_v47 }
 0x91b   : > { %v13084_v55 = vpop.permute.xlu0 %3509 }
 0x91c   : > { %3909 = vrot.lane.b32.xlu0 %v12942_v57, %s15793_s19  ;;  %3913 = vrot.lane.b32.xlu1 %v13087_v17, %s15793_s19 }
 0x91d   : > { %v13093_v42 = vpop.permute.xlu1 %3525 }
 0x91f   : > { %v3388_v4 = vpop.permute.xlu0 %3387 }
 0x920   : > { %3563 = vrot.lane.b32.xlu0 %v12784_v49, %s15835_s20  ;;  %3561 = vrot.lane.b32.xlu1 %v12751_v16, %s15835_s20 }
 0x921   : > { %v13099_v39 = vpop.permute.xlu1 %3372 }
 0x923   : > { %v13101_v61 = vpop.permute.xlu0 %3421 }
 0x924   : > { %v3428_v32 = vsel %vm15789_vm10, %v13050_v58, %v13101_v61 }
 0x925   : > { %v3308_v48 = vpop.permute.xlu1 %3307 }
 0x926   : > { %v3314_v57 = vsel %vm651_vm1, %v12946_v30, %v3308_v48 }
 0x927   : > { %v13105_v52 = vpop.permute.xlu0 %3455  ;;  %v3587_v41 = vsel %vm657_vm0, %v12680_v15, %v3314_v57  ;;  %v3394_v15 = vsel %vm15800_vm8, %v13007_v44, %v3388_v4 }
 0x928   : > { %4092 = vmatprep.subr.bf16.mxu1 %v3587_v41  ;;  %3855 = vrot.lane.b32.xlu1 %v3587_v41, %s15793_s19  ;;  %v3647_v44 = vsel %vm657_vm0, %v3377_v12, %v3394_v15  ;;  %v3463_v18 = vsel %vm3459_vm13, %v13066_v11, %v13105_v52 }
 0x929   : > { %v3331_v49 = vpop.permute.xlu1 %3330  ;;  %4093 = vmatpush1.bf16.msra.mxu1 %v12962_v59  ;;  %v3707_v47 = vsel %vm657_vm0, %v3445_v53, %v3463_v18 }
 0x92a   : > { %v3337_v16 = vsel %vm1771_vm5, %v12970_v19, %v3331_v49 }
 0x92b   : > { %v13113_v31 = vpop.permute.xlu0 %3491  ;;  %v3607_v62 = vsel %vm682_vm2, %v3314_v57, %v3337_v16 }
 0x92c   : > { %4094 = vmatprep.subr.bf16.mxu1 %v3607_v62  ;;  %3867 = vrot.lane.b32.xlu1 %v3607_v62, %s15793_s19 }
 0x92d   : > { %v3354_v30 = vpop.permute.xlu1 %3353  ;;  %4095 = vmatpush1.bf16.msra.mxu1 %v12983_v43 }
 0x92e   : > { %v3360_v14 = vsel %vm1806_vm6, %v12993_v22, %v3354_v30 }
 0x92f   : > { %v13122_v59 = vpop.permute.xlu0 %3309  ;;  %v3625_v19 = vsel %vm808_vm3, %v3337_v16, %v3360_v14  ;;  %v3724_v16 = vsel %vm682_vm2, %v3462_v45, %v3480_v33 }
 0x930   : > { %4096 = vmatprep.subr.bf16.mxu1 %v3625_v19  ;;  %3879 = vrot.lane.b32.xlu1 %v3625_v19, %s15793_s19  ;;  %v3315_v43 = vsel %vm651_vm1, %v3308_v48, %v13122_v59 }
 0x931   : > { %v3405_v36 = vpop.permute.xlu1 %3404  ;;  %4097 = vmatpush1.bf16.msra.mxu1 %v13010_v38  ;;  %v13135_v22 = vsel %vm657_vm0, %v12690_v23, %v3315_v43 }
 0x932   : > { %v3411_v35 = vsel %vm15788_vm9, %v13025_v51, %v3405_v36  ;;  %4098 = vmatprep.subr.bf16.mxu1 %v3647_v44  ;;  %3857 = vrot.lane.b32.xlu0 %v13135_v22, %s15793_s19 }
 0x933   : > { %v13141_v26 = vpop.permute.xlu0 %3332  ;;  %v3667_v23 = vsel %vm682_vm2, %v3394_v15, %v3411_v35  ;;  %v9676_v15 = vld [vmem:[%s15740_s3 + $0x58] sm:$0xf] }
 0x934   : > { %3891 = vrot.lane.b32.xlu1 %v3647_v44, %s15793_s19  ;;  %v3338_v38 = vsel %vm1771_vm5, %v3331_v49, %v13141_v26 }
 0x935   : > { %v13146_v46 = vpop.permute.xlu1 %3473  ;;  %4099 = vmatpush1.bf16.msra.mxu1 %v13040_v21  ;;  %v13151_v9 = vsel %vm682_vm2, %v3315_v43, %v3338_v38  ;;  %v3685_v21 = vsel %vm808_vm3, %v3411_v35, %v3428_v32 }
 0x936   : > { %4100 = vmatprep.subr.bf16.mxu1 %v3667_v23  ;;  %3869 = vrot.lane.b32.xlu0 %v13151_v9, %s15793_s19  ;;  %v3481_v48 = vsel %vm3477_vm14, %v13037_v40, %v13146_v46 }
 0x937   : > { %v3356_v51 = vpop.permute.xlu0 %3355  ;;  %v3727_v57 = vsel %vm682_vm2, %v3463_v18, %v3481_v48 }
 0x938   : > { %v3361_v10 = vsel %vm1806_vm6, %v3354_v30, %v3356_v51  ;;  %3903 = vrot.lane.b32.xlu1 %v3667_v23, %s15793_s19  ;;  %v13243_v40 = vsel %vm808_vm3, %v13141_v26, %v3356_v51  ;;  %v3534_v23 = vsel %vm3531_vm4, %v12958_v63, %v13093_v42 }
 0x939   : > { %v3390_v37 = vpop.permute.xlu1 %3389  ;;  %4101 = vmatpush1.bf16.msra.mxu1 %v3664_v60  ;;  %v13162_v6 = vsel %vm808_vm3, %v3338_v38, %v3361_v10  ;;  %v3378_v60 = vsel %vm15792_vm7, %v13053_v29, %v13099_v39 }
 0x93a   : > { %4102 = vmatprep.subr.bf16.mxu1 %v3685_v21  ;;  %3881 = vrot.lane.b32.xlu0 %v13162_v6, %s15793_s19  ;;  %v3395_v58 = vsel %vm15800_vm8, %v3388_v4, %v3390_v37 }
 0x93b   : > { %v3407_v3 = vpop.permute.xlu0 %3406  ;;  %v13183_v4 = vsel %vm657_vm0, %v3378_v60, %v3395_v58 }
 0x93c   : > { %3915 = vrot.lane.b32.xlu1 %v3685_v21, %s15793_s19  ;;  %v3412_v29 = vsel %vm15788_vm9, %v3405_v36, %v3407_v3  ;;  %vm15836_vm9 = vcmask 957440  }
 0x93d   : > { %4103 = vmatpush1.bf16.msra.mxu1 %v13087_v17  ;;  %v3424_v11 = vpop.permute.xlu1 %3423  ;;  %v3703_v17 = vsel %vm657_vm0, %v3444_v5, %v3462_v45  ;;  %v13199_v41 = vsel %vm682_vm2, %v3395_v58, %v3412_v29  ;;  %v3499_v7 = vsel %vm15836_vm9, %v13082_v13, %v13113_v31 }
 0x93e   : > { %4104 = vmatprep.subr.bf16.mxu1 %v3707_v47  ;;  %3893 = vrot.lane.b32.xlu0 %v13183_v4, %s15793_s19  ;;  %v3429_v49 = vsel %vm15789_vm10, %v13101_v61, %v3424_v11  ;;  %vm15837_vm10 = vmmov %vm15836_vm9  ;;  %v3745_v62 = vsel %vm808_vm3, %v3481_v48, %v3499_v7  ;;  %vm15799_vm9 = vcmask 916480  }
 0x93f   : > { %v3498_v61 = vsel %vm15837_vm10, %v12915_v27, %v13082_v13  ;;  %v13219_v30 = vsel %vm808_vm3, %v3412_v29, %v3429_v49  ;;  %v13235_v27 = vsel %vm657_vm0, %v12693_v28, %v13122_v59  ;;  %v13271_v13 = vsel %vm808_vm3, %v3407_v3, %v3424_v11  ;;  %v3862_v14 = vpop.permute.xlu0 %3861  ;;  %v13317_v29 = vld [vmem:[%s15741_s4 + $0x18] ss:$12 sps:$4 sm:$0x3f]  }
 0x940   : > { %3440 = vrot.lane.b32.xlu1 %v12693_v28, %s15825_s17  ;;  %v3742_v2 = vsel %vm808_vm3, %v3480_v33, %v3498_v61  ;;  %vm15840_vm10 = vcmask 949248  }
 0x941   : > { %4105 = vmatpush1.bf16.msra.mxu1 %v3703_v17  ;;  %v3517_v10 = vsel %vm15840_vm10, %v12894_v54, %v13084_v55  ;;  %vm15841_vm7 = vmmov %vm15840_vm10 }
 0x942   : > { %4106 = vmatprep.subr.bf16.mxu1 %v3727_v57  ;;  %3905 = vrot.lane.b32.xlu0 %v13199_v41, %s15793_s19  ;;  %v3516_v18 = vsel %vm15841_vm7, %v12875_v24, %v12894_v54  ;;  %vm15842_vm7 = vcmask 261120  }
 0x943   : > { %vm15843_vm10 = vmmov %vm15842_vm7 }
 0x944   : > { %3475 = vrot.lane.b32.xlu1 %v12823_v56, %s15829_s18  ;;  %v3886_v19 = vpop.permute.xlu0 %3885 }
 0x945   : > { %4107 = vmatpush1.bf16.msra.mxu1 %v3724_v16 }
 0x946   : > { %4108 = vmatprep.subr.bf16.mxu1 %v3745_v62  ;;  %3917 = vrot.lane.b32.xlu0 %v13219_v30, %s15793_s19 }
 0x948   : > { %3511 = vrot.lane.b32.xlu1 %v12693_v28, %s15826_s23  ;;  %v13257_v28 = vsel %vm682_vm2, %v13122_v59, %v13141_v26  ;;  %v3850_v59 = vpop.permute.xlu1 %3849 }
 0x949   : > { %4109 = vmatpush1.bf16.msra.mxu1 %v3742_v2 }
 0x94a   : > { %3457 = vrot.lane.b32.xlu0 %v12812_v8, %s15838_s27 }
 0x94c   : > { %3547 = vrot.lane.b32.xlu1 %v12823_v56, %s15830_s24  ;;  %v13250_v56 = vsel %vm682_vm2, %v3390_v37, %v3407_v3  ;;  %v3874_v12 = vpop.permute.xlu1 %3873  ;;  %v3763_v3 = vsel %vm657_vm0, %v3516_v18, %v3534_v23  ;;  %v13404_v18 = vld [vmem:[%s15743_s6 + $0x40] sm:$0xff]  }
 0x94e   : > { %3493 = vrot.lane.b32.xlu0 %v12834_v1, %s15839_s1 }
 0x950   : > { %3859 = vrot.lane.b32.xlu1 %v13235_v27, %s15793_s19 }
 0x952   : > { %3529 = vrot.lane.b32.xlu0 %v12812_v8, %s15834_s30  ;;  %v9675_v8 = vld [vmem:[%s15740_s3 + $0x50] sm:$0xff] }
 0x954   : > { %3883 = vrot.lane.b32.xlu1 %v13243_v40, %s15793_s19 }
 0x956   : > { %3565 = vrot.lane.b32.xlu0 %v12834_v1, %s15835_s20  ;;  %v13266_v1 = vsel %vm657_vm0, %v13099_v39, %v3390_v37 }
 0x958   : > { %3907 = vrot.lane.b32.xlu1 %v13250_v56, %s15793_s19 }
 0x95a   : > { %3871 = vrot.lane.b32.xlu0 %v13257_v28, %s15793_s19 }
 0x95c   : > { %4515 = vperm.xlu1 %10811, %v9675_v8   ;;  %v3852_v43 = vpop.permute.xlu1 %3851 }
 0x95d   : > { %v3922_v38 = vsel %vm15799_vm9, %v3850_v59, %v3852_v43 }
 0x95e   : > { %3895 = vrot.lane.b32.xlu0 %v13266_v1, %s15793_s19 }
 0x960   : > { %v3864_v39 = vpop.permute.xlu0 %3863 }
 0x961   : > { %v3927_v63 = vsel %vm15799_vm9, %v3862_v14, %v3864_v39  ;;  %v13342_v14 = vld [vmem:[%s15741_s4 + $0x20] ss:$12 sps:$4 sm:$0x3f]  }
 0x962   : > { %3919 = vrot.lane.b32.xlu0 %v13271_v13, %s15793_s19  ;;  %s15895_s19 = sld [smem:[#allocation7_spill]] }
 0x964   : > { %v3876_v44 = vpop.permute.xlu1 %3875 }
 0x965   : > { %v3932_v45 = vsel %vm15799_vm9, %v3874_v12, %v3876_v44 }
 0x966   : > { %4520 = vperm.xlu0 %10810, %v9676_v15  }
 0x96a   : > { %v3888_v36 = vpop.permute.xlu0 %3887 }
 0x96b   : > { %v3937_v48 = vsel %vm15799_vm9, %v3886_v19, %v3888_v36 }
 0x976   : > { %v13278_v35 = vpop.permute.xlu0 %3853 }
 0x977   : > { %v3923_v26 = vsel %vm15799_vm9, %v3852_v43, %v13278_v35 }
 0x978   : > { %4030 = vmatprep.subr.bf16.mxu0 %v3923_v26 }
 0x979   : > { %4031 = vmatpush1.bf16.msra.mxu0 %v3922_v38 }
 0x97a   : > { %v13286_v51 = vpop.permute.xlu1 %3865  ;;  %v13288_v32 = vpop.permute.xlu0 %3527 }
 0x97b   : > { %v3535_v37 = vsel %vm3531_vm4, %v13093_v42, %v13288_v32  ;;  %v3928_v21 = vsel %vm15799_vm9, %v3864_v39, %v13286_v51 }
 0x97c   : > { %4032 = vmatprep.subr.bf16.mxu0 %v3928_v21  ;;  %v3767_v58 = vsel %vm657_vm0, %v3517_v10, %v3535_v37 }
 0x97d   : > { %4033 = vmatpush1.bf16.msra.mxu0 %v3927_v63  ;;  %4110 = vmatprep.subr.bf16.mxu1 %v3767_v58 }
 0x97e   : > { %v3900_v53 = vpop.permute.xlu1 %3899  ;;  %4111 = vmatpush1.bf16.msra.mxu1 %v3763_v3  ;;  %v13304_v60 = vpop.permute.xlu0 %3877 }
 0x97f   : > { %v3933_v42 = vsel %vm15799_vm9, %v3876_v44, %v13304_v60 }
 0x980   : > { %4034 = vmatprep.subr.bf16.mxu0 %v3933_v42 }
 0x981   : > { %4035 = vmatpush1.bf16.msra.mxu0 %v3932_v45 }
 0x982   : > { %v13309_v24 = vpop.permute.xlu1 %3889  ;;  %v3544_v54 = vpop.permute.xlu0 %3543 }
 0x983   : > { %v3938_v47 = vsel %vm15799_vm9, %v3888_v36, %v13309_v24  ;;  %v3552_v17 = vsel %vm15802_vm15, %v12980_v25, %v3544_v54 }
 0x984   : > { %4036 = vmatprep.subr.bf16.mxu0 %v3938_v47  ;;  %v3784_v62 = vsel %vm682_vm2, %v3534_v23, %v3552_v17  ;;  %v13421_v47 = vld [vmem:[%s15743_s6] sm:$0xff]  }
 0x985   : > { %4037 = vmatpush1.bf16.msra.mxu0 %v3937_v48 }
 0x986   : > { %v3898_v5 = vpop.permute.xlu1 %3897  ;;  %v3912_v11 = vpop.permute.xlu0 %3911 }
 0x987   : > { %v3942_v16 = vsel %vm15799_vm9, %v3898_v5, %v3900_v53  ;;  %v546_v5 = vld [vmem:[%s15743_s6 + $0xc] sm:$0xf] }
 0x988   : > { %4039 = vmatmul.mubr.bf16.vlgmr.msra.gmra.mrb[32].mxu0 %v13317_v29 }
 0x989   : > { %4081 = vmatprep.mubr.bf16.mxu0 %v11239_v50 }
 0x98a   : > { %v13323_v57 = vpop.permute.xlu1 %3545  ;;  %v13325_v49 = vpop.permute.xlu0 %3901 }
 0x98b   : > { %v3553_v33 = vsel %vm15802_vm15, %v3544_v54, %v13323_v57  ;;  %v3943_v7 = vsel %vm15799_vm9, %v3900_v53, %v13325_v49 }
 0x98c   : > { %4049 = vmatprep.subr.bf16.mxu0 %v3943_v7  ;;  %v3787_v61 = vsel %vm682_vm2, %v3535_v37, %v3553_v33 }
 0x98d   : > { %4050 = vmatpush1.bf16.msra.mxu0 %v3942_v16  ;;  %4112 = vmatprep.subr.bf16.mxu1 %v3787_v61 }
 0x98e   : > { %v13334_v25 = vpop.permute.xlu1 %3913  ;;  %4113 = vmatpush1.bf16.msra.mxu1 %v3784_v62  ;;  %v3910_v2 = vpop.permute.xlu0 %3909 }
 0x98f   : > { %v3947_v8 = vsel %vm15799_vm9, %v3910_v2, %v3912_v11  ;;  %v3948_v15 = vsel %vm15799_vm9, %v3912_v11, %v13334_v25  ;;  %v13459_v2 = vld [vmem:[%s15743_s6 + $0x10] sm:$0xff]  }
 0x990   : > { %4051 = vmatprep.subr.bf16.mxu0 %v3948_v15 }
 0x991   : > { %4052 = vmatpush1.bf16.msra.mxu0 %v3947_v8  ;;  %v13465_v8 = vld [vmem:[%s15743_s6 + $0x58] sm:$0xff]  }
 0x992   : > { %v3562_v59 = vpop.permute.xlu1 %3561  ;;  %4178 = vmatprep.subr.bf16.mxu0 %v13235_v27  ;;  %v13345_v19 = vpop.permute.xlu0 %3563 }
 0x993   : > { %v3570_v12 = vsel %vm15801_vm12, %v12927_v20, %v3562_v59  ;;  %v3571_v39 = vsel %vm15801_vm12, %v3562_v59, %v13345_v19  ;;  %v568_v59 = vld [vmem:[%s15743_s6 + $0x64] sm:$0xf] }
 0x994   : > { %9698 = vmatmul.mubr.msk.bf16.vlgmr.msra.gmra.mrb[32].mxu0 %vm15842_vm7, %v13342_v14  ;;  %v3805_v43 = vsel %vm808_vm3, %v3553_v33, %v3571_v39  ;;  %v3802_v36 = vsel %vm808_vm3, %v3552_v17, %v3570_v12  ;;  %vm15844_vm7 = vcmask 957440  }
 0x995   : > { %4114 = vmatprep.subr.bf16.mxu1 %v3805_v43  ;;  %4179 = vmatpush1.bf16.msra.mxu0 %v13135_v22 }
 0x996   : > { %4115 = vmatpush1.bf16.msra.mxu1 %v3802_v36  ;;  %4180 = vmatprep.subr.bf16.mxu0 %v13257_v28 }
 0x997   : > { %4210 = vmatprep.mubr.bf16.mxu0 %v12978_v34 }
 0x999   : > { %4181 = vmatpush1.bf16.msra.mxu0 %v13151_v9 }
 0x99a   : > { %v3856_v20 = vpop.permute.xlu1 %3855  ;;  %4182 = vmatprep.subr.bf16.mxu0 %v13243_v40 }
 0x99d   : > { %4183 = vmatpush1.bf16.msra.mxu0 %v13162_v6  ;;  %v3924_v6 = vsel %vm15799_vm9, %v13278_v35, %v3856_v20 }
 0x99e   : > { %v3868_v27 = vpop.permute.xlu1 %3867  ;;  %4184 = vmatprep.subr.bf16.mxu0 %v13266_v1 }
 0x9a1   : > { %4185 = vmatpush1.bf16.msra.mxu0 %v13183_v4 }
 0x9a2   : > { %v3880_v44 = vpop.permute.xlu1 %3879  ;;  %4186 = vmatprep.subr.bf16.mxu0 %v13250_v56 }
 0x9a4   : > { %v13364_v22 = vpop.permute.xlu0 %3857 }
 0x9a5   : > { %4187 = vmatpush1.bf16.msra.mxu0 %v13199_v41  ;;  %v3925_v34 = vsel %vm15799_vm9, %v3856_v20, %v13364_v22  ;;  %v3929_v41 = vsel %vm15799_vm9, %v13286_v51, %v3868_v27 }
 0x9a6   : > { %v3892_v9 = vpop.permute.xlu1 %3891  ;;  %4116 = vmatprep.subr.bf16.mxu1 %v3925_v34  ;;  %4188 = vmatprep.subr.bf16.mxu0 %v13271_v13  ;;  %v3934_v13 = vsel %vm15799_vm9, %v13304_v60, %v3880_v44 }
 0x9a7   : > { %4117 = vmatpush1.bf16.msra.mxu1 %v3924_v6  ;;  %v3939_v38 = vsel %vm15799_vm9, %v13309_v24, %v3892_v9 }
 0x9a8   : > { %v13372_v40 = vpop.permute.xlu0 %3869 }
 0x9a9   : > { %4189 = vmatpush1.bf16.msra.mxu0 %v13219_v30  ;;  %v3930_v4 = vsel %vm15799_vm9, %v3868_v27, %v13372_v40  ;;  %v551_v27 = vld [vmem:[%s15743_s6 + $0x20] sm:$0xf] }
 0x9aa   : > { %4118 = vmatprep.subr.bf16.mxu1 %v3930_v4  ;;  %v3904_v56 = vpop.permute.xlu1 %3903 }
 0x9ab   : > { %4119 = vmatpush1.bf16.msra.mxu1 %v3929_v41  ;;  %v3944_v10 = vsel %vm15799_vm9, %v13325_v49, %v3904_v56 }
 0x9ac   : > { %v13379_v28 = vpop.permute.xlu0 %3881 }
 0x9ad   : > { %v3935_v1 = vsel %vm15799_vm9, %v3880_v44, %v13379_v28  ;;  %v552_v44 = vld [vmem:[%s15743_s6 + $0x24] sm:$0xf] }
 0x9ae   : > { %4120 = vmatprep.subr.bf16.mxu1 %v3935_v1  ;;  %v3916_v26 = vpop.permute.xlu1 %3915  ;;  %v13502_v41 = vcombine.low %v551_v27, %v552_v44 }
 0x9af   : > { %4121 = vmatpush1.bf16.msra.mxu1 %v3934_v13  ;;  %v3949_v58 = vsel %vm15799_vm9, %v13334_v25, %v3916_v26  ;;  %v10872_v13 = vld [vmem:[%s15743_s6 + $0x70] sm:$0xff]  }
 0x9b0   : > { %v13385_v30 = vpop.permute.xlu0 %3893 }
 0x9b1   : > { %v3940_v35 = vsel %vm15799_vm9, %v3892_v9, %v13385_v30 }
 0x9b2   : > { %4122 = vmatprep.subr.bf16.mxu1 %v3940_v35  ;;  %v3441_v37 = vpop.permute.xlu1 %3440 }
 0x9b3   : > { %4123 = vmatpush1.bf16.msra.mxu1 %v3939_v38  ;;  %v3446_v53 = vsel %vm2317_vm11, %v13072_v0, %v3441_v37  ;;  %v13426_v0 = vld [vmem:[%s15743_s6 + $0x48] sm:$0xff]  }
 0x9b4   : > { %v13391_v23 = vpop.permute.xlu0 %3905 }
 0x9b5   : > { %v3945_v51 = vsel %vm15799_vm9, %v3904_v56, %v13391_v23  ;;  %v13508_v56 = vld [vmem:[%s15743_s6 + $0x68] sm:$0xff]  }
 0x9b6   : > { %4125 = vmatmul.mubr.bf16.vlgmr.msra.gmra.mrb[52].mxu1 %v13317_v29  ;;  %4135 = vmatprep.subr.bf16.mxu1 %v3945_v51  ;;  %v3476_v45 = vpop.permute.xlu1 %3475 }
 0x9b7   : > { %4136 = vmatpush1.bf16.msra.mxu1 %v3944_v10  ;;  %4167 = vmatprep.mubr.bf16.mxu1 %v11239_v50  ;;  %v3482_v11 = vsel %vm3477_vm14, %v13146_v46, %v3476_v45  ;;  %v13449_v46 = vld [vmem:[%s15743_s6 + $0x50] sm:$0xff]  }
 0x9b8   : > { %v13399_v21 = vpop.permute.xlu0 %3917 }
 0x9b9   : > { %v3950_v63 = vsel %vm15799_vm9, %v3916_v26, %v13399_v21 }
 0x9ba   : > { %4137 = vmatprep.subr.bf16.mxu1 %v3950_v63  ;;  %v3512_v16 = vpop.permute.xlu1 %3511 }
 0x9bb   : > { %4138 = vmatpush1.bf16.msra.mxu1 %v3949_v58  ;;  %v13536_v58 = vld [vmem:[%s15743_s6 + $0x30] sm:$0xff]  }
 0x9bc   : > { %v3458_v3 = vpop.permute.xlu0 %3457  ;;  %9952 = vmatprep.subr.bf16.mxu1 %v13404_v18 }
 0x9bd   : > { %v3715_v60 = vsel %vm657_vm0, %v3441_v37, %v3458_v3  ;;  %v3464_v42 = vsel %vm3459_vm13, %v13105_v52, %v3458_v3  ;;  %v3733_v54 = vsel %vm682_vm2, %v3458_v3, %v3476_v45  ;;  %v545_v52 = vld [vmem:[%s15743_s6 + $0x8] sm:$0xf]  ;;  %v11255_v3 = vmov 65535  }
 0x9be   : > { %4190 = vmatprep.subr.bf16.mxu0 %v3715_v60  ;;  %v3711_v24 = vsel %vm657_vm0, %v3446_v53, %v3464_v42  ;;  %v3730_v17 = vsel %vm682_vm2, %v3464_v42, %v3482_v11  ;;  %v13443_v7 = vcombine.low %v545_v52, %v546_v5  ;;  %v3548_v12 = vpop.permute.xlu1 %3547  ;;  %v10875_v42 = vld [vmem:[%s15743_s6 + $0x38] sm:$0xff]  }
 0x9bf   : > { %4191 = vmatpush1.bf16.msra.mxu0 %v3711_v24  ;;  %v3554_v34 = vsel %vm15802_vm15, %v13323_v57, %v3548_v12 }
 0x9c0   : > { %4192 = vmatprep.subr.bf16.mxu0 %v3733_v54  ;;  %v3494_v48 = vpop.permute.xlu0 %3493 }
 0x9c1   : > { %v3500_v49 = vsel %vm15844_vm7, %v13113_v31, %v3494_v48  ;;  %v3751_v33 = vsel %vm808_vm3, %v3476_v45, %v3494_v48  ;;  %vm4369_vm7 = vcmask 1046528  }
 0x9c2   : > { %9699 = vmatmul.mubr.msk.bf16.vlgmr.msra.gmra.mrb[52].mxu1 %vm15843_vm10, %v13342_v14  ;;  %v3748_v62 = vsel %vm808_vm3, %v3482_v11, %v3500_v49  ;;  %vm15845_vm10 = vcmask 949248   ;;  %v3860_v1 = vpop.permute.xlu1 %3859 }
 0x9c3   : > { %4193 = vmatpush1.bf16.msra.mxu0 %v3730_v17  ;;  %9953 = vmatpush3.bf16.msra.mxu1 %v13421_v47  ;;  %v3518_v15 = vsel %vm15845_vm10, %v13084_v55, %v3512_v16  ;;  %v13483_v55 = vld [vmem:[%s15743_s6 + $0x18] sm:$0xff]   ;;  %v3926_v35 = vsel %vm15799_vm9, %v13364_v22, %v3860_v1  ;;  %vm4370_vm10 = vcmask 1047552  }
 0x9c4   : > { %4194 = vmatprep.subr.bf16.mxu0 %v3751_v33  ;;  %v3530_v61 = vpop.permute.xlu0 %3529  ;;  %9954 = vmatprep.subr.bf16.mxu1 %v13426_v0 }
 0x9c5   : > { %v3775_v31 = vsel %vm657_vm0, %v3512_v16, %v3530_v61  ;;  %v3536_v25 = vsel %vm3531_vm4, %v13288_v32, %v3530_v61  ;;  %v13472_v32 = vld [vmem:[%s15743_s6 + $0x60] sm:$0xf]  ;;  %v3793_v43 = vsel %vm682_vm2, %v3530_v61, %v3548_v12 }
 0x9c6   : > { %v3771_v39 = vsel %vm657_vm0, %v3518_v15, %v3536_v25  ;;  %v13487_v20 = vcombine.low %v13472_v32, %v568_v59  ;;  %v3790_v9 = vsel %vm682_vm2, %v3536_v25, %v3554_v34  ;;  %v3884_v51 = vpop.permute.xlu1 %3883  ;;  %v9719_v16 = vcombine.low %v13472_v32, %v13472_v32 }
 0x9c7   : > { %4195 = vmatpush1.bf16.msra.mxu0 %v3748_v62  ;;  %9955 = vmatpush3.bf16.msra.mxu1 %v13443_v7  ;;  %v3936_v10 = vsel %vm15799_vm9, %v13379_v28, %v3884_v51 }
 0x9c8   : > { %4196 = vmatprep.subr.bf16.mxu0 %v3775_v31  ;;  %9956 = vmatprep.subr.bf16.mxu1 %v13449_v46  ;;  %v3566_v36 = vpop.permute.xlu0 %3565 }
 0x9c9   : > { %v3572_v6 = vsel %vm15801_vm12, %v13345_v19, %v3566_v36  ;;  %v3811_v4 = vsel %vm808_vm3, %v3548_v12, %v3566_v36  ;;  %v13515_v19 = vld [vmem:[%s15743_s6 + $0x28] sm:$0xff]  }
 0x9ca   : > { %v3808_v57 = vsel %vm808_vm3, %v3554_v34, %v3572_v6  ;;  %v3908_v63 = vpop.permute.xlu1 %3907 }
 0x9cb   : > { %4197 = vmatpush1.bf16.msra.mxu0 %v3771_v39  ;;  %9957 = vmatpush3.bf16.msra.mxu1 %v13459_v2 }
 0x9cc   : > { %4198 = vmatprep.subr.bf16.mxu0 %v3793_v43  ;;  %9958 = vmatprep.subr.bf16.mxu1 %v13465_v8  ;;  %v3872_v26 = vpop.permute.xlu0 %3871 }
 0x9cd   : > { %v3931_v38 = vsel %vm15799_vm9, %v13372_v40, %v3872_v26  ;;  %v3946_v40 = vsel %vm15799_vm9, %v13391_v23, %v3908_v63 }
 0x9cf   : > { %4199 = vmatpush1.bf16.msra.mxu0 %v3790_v9  ;;  %9959 = vmatpush3.bf16.msra.mxu1 %v13483_v55 }
 0x9d0   : > { %4200 = vmatprep.subr.bf16.mxu0 %v3811_v4  ;;  %9960 = vmatprep.subr.bf16.mxu1 %v13487_v20  ;;  %v3896_v37 = vpop.permute.xlu0 %3895 }
 0x9d1   : > { %v3941_v22 = vsel %vm15799_vm9, %v13385_v30, %v3896_v37  ;;  %v10874_v30 = vld [vmem:[%s15743_s6 + $0x78] sm:$0xff]  }
 0x9d3   : > { %4201 = vmatpush1.bf16.msra.mxu0 %v3808_v57  ;;  %9961 = vmatpush3.bf16.msra.mxu1 %v13502_v41 }
 0x9d4   : > { %4202 = vmatprep.subr.bf16.mxu0 %v3860_v1  ;;  %9962 = vmatprep.subr.bf16.mxu1 %v13508_v56  ;;  %v3920_v28 = vpop.permute.xlu0 %3919 }
 0x9d5   : > { %v3951_v60 = vsel %vm15799_vm9, %v13399_v21, %v3920_v28 }
 0x9d7   : > { %4203 = vmatpush1.bf16.msra.mxu0 %v3926_v35  ;;  %9963 = vmatpush3.bf16.msra.mxu1 %v13515_v19 }
 0x9d8   : > { %4204 = vmatprep.subr.bf16.mxu0 %v3872_v26  ;;  %9964 = vmatprep.subr.bf16.mxu1 %v10872_v13 }
 0x9db   : > { %4205 = vmatpush1.bf16.msra.mxu0 %v3931_v38  ;;  %9965 = vmatpush3.bf16.msra.mxu1 %v13536_v58  ;;  %v4516_v39 = vpop.permute.xlu1 %4515 }
 0x9dc   : > { %4206 = vmatprep.subr.bf16.mxu0 %v3884_v51 }
 0x9df   : > { %4207 = vmatpush1.bf16.msra.mxu0 %v3936_v10 }
 0x9e0   : > { %4208 = vmatprep.subr.bf16.mxu0 %v3896_v37 }
 0x9e3   : > { %4209 = vmatpush1.bf16.msra.mxu0 %v3941_v22 }
 0x9e4   : > { %4221 = vmatprep.subr.bf16.mxu0 %v3908_v63 }
 0x9e5   : > { %v4521_v27 = vpop.permute.xlu0 %4520 }
 0x9e6   : > { %4211 = vmatmul.mubr.bf16.vlgmr.msra.gmra.mrb[36].mxu0 %v13317_v29  ;;  %v4371_v29 = vsel %vm4369_vm7, 4294967295, %v11255_v3  ;;  %vm15846_vm7 = vcmask 261120  }
 0x9e7   : > { %4222 = vmatpush1.bf16.msra.mxu0 %v3946_v40  ;;  %4253 = vmatprep.mubr.bf16.mxu0 %v11239_v50  ;;  %v4372_v23 = vsel %vm4370_vm10, %v4371_v29, 0  ;;  %vm15798_vm10 = vcmask 1042432  }
 0x9e8   : > { %4223 = vmatprep.subr.bf16.mxu0 %v3920_v28  ;;  %v13544_v53 = vand.u32 %v10874_v30, %v4372_v23 }
 0x9ea   : > { %9966 = vmatprep.subr.bf16.mxu1 %v13544_v53 }
 0x9eb   : > { %4224 = vmatpush1.bf16.msra.mxu0 %v3951_v60  ;;  %9967 = vmatpush3.bf16.msra.mxu1 %v10875_v42 }
 0x9ec   : > { %9974 = vmatprep.subr.bf16.mxu1 %v13404_v18 }
 0x9f2   : > { %9700 = vmatmul.mubr.msk.bf16.vlgmr.msra.gmra.mrb[36].mxu0 %vm15846_vm7, %v13342_v14  ;;  %vm4462_vm7 = vcmask 564224  }
 0x9f3   : > { %4666 = vmatprep.mubr.bf16.mxu0 %v11239_v50 }
 0xa67   : > { %v4083_v45 = vpop.f32.mrb[32].mxu0 }
 0xa68   : > { %v4085_v24 = vpop.f32.mrb[33].mxu0 }
 0xa69   : > { %v4087_v54 = vpop.f32.mrb[34].mxu0 }
 0xa6a   : > { %v4264_v48 = vpack.c.bf16 %v4087_v54, %v4083_v45  ;;  %v4089_v21 = vpop.f32.mrb[35].mxu0 }
 0xa6b   : > { %v4265_v52 = vpack.c.bf16 %v4089_v21, %v4085_v24 }
 0xa6d   : > { %9717 = vmatprep.mubr.msk.bf16.mxu1 %vm651_vm1, %v4265_v52 }
 0xa6e   : > { %4409 = vmatmul.mubr.bf16.vlgmr.msra.gmra.mrb[56].mxu1 %v4264_v48 }
 0xa6f   : > { %9975 = vmatpush3.bf16.msra.mxu1 %v13421_v47 }
 0xa70   : > { %9976 = vmatprep.subr.bf16.mxu1 %v13426_v0 }
 0xa73   : > { %9977 = vmatpush3.bf16.msra.mxu1 %v13443_v7 }
 0xa74   : > { %9978 = vmatprep.subr.bf16.mxu1 %v13449_v46 }
 0xa77   : > { %9979 = vmatpush3.bf16.msra.mxu1 %v13459_v2 }
 0xa78   : > { %9980 = vmatprep.subr.bf16.mxu1 %v13465_v8 }
 0xa7b   : > { %9981 = vmatpush3.bf16.msra.mxu1 %v13483_v55 }
 0xa7c   : > { %9982 = vmatprep.subr.bf16.mxu1 %v13487_v20 }
 0xa7f   : > { %9983 = vmatpush3.bf16.msra.mxu1 %v13502_v41 }
 0xa80   : > { %9984 = vmatprep.subr.bf16.mxu1 %v13508_v56 }
 0xa83   : > { %9985 = vmatpush3.bf16.msra.mxu1 %v13515_v19 }
 0xa84   : > { %9986 = vmatprep.subr.bf16.mxu1 %v10872_v13 }
 0xa87   : > { %9987 = vmatpush3.bf16.msra.mxu1 %v13536_v58 }
 0xa88   : > { %9988 = vmatprep.subr.bf16.mxu1 %v13544_v53 }
 0xa8b   : > { %9989 = vmatpush3.bf16.msra.mxu1 %v10875_v42 }
 0xa8c   : > { %4472 = vmatprep.subr.bf16.mxu1 %v11239_v50 }
 0xa95   : > { %v4169_v14 = vpop.f32.mrb[52].mxu1 }
 0xa96   : > { %v4171_v5 = vpop.f32.mrb[53].mxu1 }
 0xa97   : > { %v4173_v11 = vpop.f32.mrb[54].mxu1 }
 0xa98   : > { %v4266_v17 = vpack.c.bf16 %v4173_v11, %v4169_v14  ;;  %v4175_v49 = vpop.f32.mrb[55].mxu1 }
 0xa99   : > { %v4267_v33 = vpack.c.bf16 %v4175_v49, %v4171_v5  ;;  %v9725_v5 = vld [vmem:[%s15740_s3 + $0x60] sm:$0xff]  ;;  %v9726_v49 = vld [vmem:[%s15740_s3 + $0x68] sm:$0xf] }
 0xa9b   : > { %9718 = vmatprep.mubr.msk.bf16.mxu1 %vm651_vm1, %v4267_v33 }
 0xa9c   : > { %4453 = vmatmul.mubr.bf16.vlgmr.msra.gmra.mrb[60].mxu1 %v4266_v17 }
 0xa9d   : > { %4473 = vmatpush1.bf16.msra.mxu1 %v13421_v47  ;;  %v4467_v47 = vsel %vm808_vm3, 4294967295, %v11255_v3 }
 0xa9e   : > { %4474 = vmatprep.subr.bf16.mxu1 %v11239_v50 }
 0xaa1   : > { %4475 = vmatpush1.bf16.msra.mxu1 %v13443_v7 }
 0xaa2   : > { %4476 = vmatprep.subr.bf16.mxu1 %v11239_v50 }
 0xaa5   : > { %4477 = vmatpush1.bf16.msra.mxu1 %v13459_v2 }
 0xaa6   : > { %4478 = vmatprep.subr.bf16.mxu1 %v11239_v50 }
 0xaa9   : > { %4479 = vmatpush1.bf16.msra.mxu1 %v13483_v55 }
 0xaaa   : > { %4480 = vmatprep.subr.bf16.mxu1 %v11239_v50 }
 0xaad   : > { %4481 = vmatpush1.bf16.msra.mxu1 %v13502_v41 }
 0xaae   : > { %4482 = vmatprep.subr.bf16.mxu1 %v11239_v50 }
 0xab1   : > { %4483 = vmatpush1.bf16.msra.mxu1 %v13515_v19 }
 0xab2   : > { %4484 = vmatprep.subr.bf16.mxu1 %v11239_v50 }
 0xab5   : > { %4485 = vmatpush1.bf16.msra.mxu1 %v13536_v58 }
 0xab6   : > { %4486 = vmatprep.subr.bf16.mxu1 %v11239_v50 }
 0xab9   : > { %4487 = vmatpush1.bf16.msra.mxu1 %v10875_v42 }
 0xaba   : > { %4488 = vmatprep.subr.bf16.mxu1 %v11239_v50 }
 0xabd   : > { %4489 = vmatpush1.bf16.msra.mxu1 %v13404_v18  ;;  %v4468_v18 = vsel %vm15798_vm10, %v4467_v47, 0  ;;  %vm11257_vm10 = vmmov 0  }
 0xabe   : > { %4490 = vmatprep.subr.bf16.mxu1 %v11239_v50  ;;  %v4470_v15 = vand.u32 %v9719_v16, %v4468_v18 }
 0xac1   : > { %4491 = vmatpush1.bf16.msra.mxu1 %v13426_v0 }
 0xac2   : > { %4492 = vmatprep.subr.bf16.mxu1 %v11239_v50 }
 0xac5   : > { %4493 = vmatpush1.bf16.msra.mxu1 %v13449_v46  ;;  %v4255_v61 = vpop.f32.mrb[36].mxu0 }
 0xac6   : > { %v4257_v62 = vpop.f32.mrb[37].mxu0  ;;  %4494 = vmatprep.subr.bf16.mxu1 %v11239_v50 }
 0xac7   : > { %v4259_v31 = vpop.f32.mrb[38].mxu0 }
 0xac8   : > { %v4268_v25 = vpack.c.bf16 %v4259_v31, %v4255_v61  ;;  %v4261_v0 = vpop.f32.mrb[39].mxu0 }
 0xac9   : > { %v4269_v2 = vpack.c.bf16 %v4261_v0, %v4257_v62  ;;  %4495 = vmatpush1.bf16.msra.mxu1 %v13465_v8 }
 0xaca   : > { %4496 = vmatprep.subr.bf16.mxu1 %v11239_v50 }
 0xacb   : > { %9720 = vmatprep.mubr.msk.bf16.mxu1 %vm4462_vm7, %v4269_v2  ;;  %vm15847_vm7 = vcmask 293888  }
 0xacc   : > { %vm15848_vm9 = vmmov %vm15847_vm7 }
 0xacd   : > { %4497 = vmatpush1.bf16.msra.mxu1 %v4470_v15 }
 0xad0   : > { %4505 = vmatmul.mubr.bf16.vlgmr.msra.gmra.mrb[64].mxu1 %v4268_v25 }
 0xb41   : > { %v9968_v46 = vpop.f32.mrb[56].mxu1 }
 0xb42   : > { %v9969_v32 = vpop.f32.mrb[57].mxu1 }
 0xb43   : > { %v9970_v59 = vadd.f32 %v9969_v32, %v9968_v46  ;;  %v9971_v12 = vpop.f32.mrb[58].mxu1 }
 0xb44   : > { %v9972_v43 = vpop.f32.mrb[59].mxu1 }
 0xb45   : > { %v4523_v55 = vadd.f32 %v9970_v59, %v4516_v39  ;;  %v9973_v36 = vadd.f32 %v9972_v43, %v9971_v12  ;;  %v15808_v43 = vmov 0.0  }
 0xb47   : > { %v4529_v44 = vmul.f32 0.3, %v4523_v55  ;;  %v4526_v34 = vadd.f32 %v9973_v36, %v4521_v27 }
 0xb49   : > { %v4532_v9 = vmul.f32 0.3, %v4526_v34  ;;  %v4535_v6 = vmax.f32 %v4523_v55, %v4529_v44 }
 0xb4b   : > { %v4538_v8 = vmax.f32 %v4526_v34, %v4532_v9 }
 0xb4d   : > { %v4561_v4 = vpack.c.bf16 %v4538_v8, %v4535_v6 }
 0xb4f   : > { %v4567_v56 = vrot.slane %v4561_v4, 2  ;;  %v4578_v17 = vrot.slane %v4561_v4, 4 }
 0xb51   : > { %4570 = vrot.lane.b32.xlu1 %v4567_v56, %s15833_s28 }
 0xb6f   : > { %v9990_v57 = vpop.f32.mrb[60].mxu1 }
 0xb70   : > { %v9991_v1 = vpop.f32.mrb[61].mxu1 }
 0xb71   : > { %v9992_v19 = vadd.f32 %v9991_v1, %v9990_v57  ;;  %v9993_v13 = vpop.f32.mrb[62].mxu1 }
 0xb72   : > { %v9994_v35 = vpop.f32.mrb[63].mxu1 }
 0xb73   : > { %v4524_v26 = vadd.f32 %v9992_v19, %v4516_v39  ;;  %v9995_v38 = vadd.f32 %v9994_v35, %v9993_v13 }
 0xb75   : > { %v4530_v51 = vmul.f32 0.3, %v4524_v26  ;;  %v4527_v10 = vadd.f32 %v9995_v38, %v4521_v27 }
 0xb77   : > { %v4533_v37 = vmul.f32 0.3, %v4527_v10  ;;  %v4536_v22 = vmax.f32 %v4524_v26, %v4530_v51 }
 0xb79   : > { %v4539_v63 = vmax.f32 %v4527_v10, %v4533_v37 }
 0xb7b   : > { %v4562_v40 = vpack.c.bf16 %v4539_v63, %v4536_v22 }
 0xb7d   : > { %v4568_v58 = vrot.slane %v4562_v40, 2  ;;  %v4579_v11 = vrot.slane %v4562_v40, 4 }
 0xb7f   : > { %4572 = vrot.lane.b32.xlu1 %v4568_v58, %s15833_s28 }
 0xba3   : > { %v4506_v28 = vpop.f32.mrb[64].mxu1 }
 0xba4   : > { %v4525_v30 = vadd.f32 %v4516_v39, %v4506_v28  ;;  %v4508_v29 = vpop.f32.mrb[65].mxu1  ;;  %v10876_v39 = vld [vmem:[%s15739_s2 + $0x20] sm:$0x3f]  }
 0xba5   : > { %v4509_v23 = vpop.f32.mrb[66].mxu1 }
 0xba6   : > { %v4531_v60 = vmul.f32 0.3, %v4525_v30  ;;  %v4528_v42 = vadd.f32 %v4521_v27, %v4509_v23  ;;  %v4511_v45 = vpop.f32.mrb[67].mxu1 }
 0xba8   : > { %v4534_v24 = vmul.f32 0.3, %v4528_v42  ;;  %v4537_v54 = vmax.f32 %v4525_v30, %v4531_v60 }
 0xbaa   : > { %v4540_v48 = vmax.f32 %v4528_v42, %v4534_v24 }
 0xbac   : > { %v4563_v21 = vpack.c.bf16 %v4540_v48, %v4537_v54 }
 0xbae   : > { %v4580_v52 = vrot.slane %v4563_v21, 4  ;;  %v4569_v14 = vrot.slane %v4563_v21, 2 }
 0xbb0   : > { %4585 = vrot.lane.b32.xlu1 %v4580_v52, %s15827_s29  ;;  %4574 = vrot.lane.b32.xlu0 %v4569_v14, %s15833_s28 }
 0xbb4   : > { %4612 = vperm.xlu1 %10811, %v9725_v5   ;;  %4583 = vrot.lane.b32.xlu0 %v4579_v11, %s15827_s29  ;;  %v9727_v11 = vld [vmem:[%s15740_s3 + $0x70] sm:$0xff] }
 0xbb8   : > { %4581 = vrot.lane.b32.xlu0 %v4578_v17, %s15827_s29 }
 0xbbc   : > { %4617 = vperm.xlu0 %10810, %v9726_v49  }
 0xbc3   : > { %v4571_v33 = vpop.permute.xlu1 %4570 }
 0xbf1   : > { %v4573_v47 = vpop.permute.xlu1 %4572 }
 0xbf2   : > { %v4576_v16 = vsel %vm651_vm1, %v4571_v33, %v4573_v47  ;;  %v9728_v33 = vld [vmem:[%s15740_s3 + $0x78] sm:$0xf] }
 0xbf3   : > { %v4591_v31 = vsel %vm657_vm0, %v4561_v4, %v4576_v16 }
 0xc22   : > { %v4575_v61 = vpop.permute.xlu0 %4574  ;;  %v4586_v25 = vpop.permute.xlu1 %4585 }
 0xc23   : > { %v4577_v62 = vsel %vm651_vm1, %v4573_v47, %v4575_v61  ;;  %v4599_v55 = vsel %vm657_vm0, %v4563_v21, %v4575_v61  ;;  %v4608_v36 = vsel %vm682_vm2, %v4575_v61, %v4586_v25  ;;  %v4632_v27 = vsel %vm808_vm3, %v4586_v25, 0 }
 0xc24   : > { %v4595_v18 = vsel %vm657_vm0, %v4562_v40, %v4577_v62 }
 0xc25   : > { %4634 = vmatprep.subr.bf16.mxu0 %v4595_v18 }
 0xc26   : > { %4635 = vmatpush1.bf16.msra.mxu0 %v4591_v31  ;;  %v4584_v0 = vpop.permute.xlu0 %4583 }
 0xc27   : > { %v4588_v2 = vsel %vm1771_vm5, %v4584_v0, %v4586_v25 }
 0xc28   : > { %v4605_v15 = vsel %vm682_vm2, %v4577_v62, %v4588_v2 }
 0xc29   : > { %4636 = vmatprep.subr.bf16.mxu0 %v4605_v15 }
 0xc2a   : > { %v4582_v46 = vpop.permute.xlu0 %4581 }
 0xc2b   : > { %v4587_v32 = vsel %vm1771_vm5, %v4582_v46, %v4584_v0 }
 0xc2c   : > { %v4602_v59 = vsel %vm682_vm2, %v4576_v16, %v4587_v32  ;;  %v4628_v12 = vsel %vm808_vm3, %v4587_v32, 0 }
 0xc2d   : > { %4637 = vmatpush1.bf16.msra.mxu0 %v4602_v59 }
 0xc2e   : > { %9736 = vmatprep.subr.msk.bf16.mxu0 %vm808_vm3, %v4588_v2 }
 0xc31   : > { %4639 = vmatpush1.bf16.msra.mxu0 %v4628_v12 }
 0xc32   : > { %10249 = vmatprep.subr.bf16.mxu0 %v15808_v43 }
 0xc33   : > { %v4613_v44 = vpop.permute.xlu1 %4612 }
 0xc34   : > { %9737 = vmatmul.mubr.msk.bf16.vlgmr.msra.gmra.mrb[40].mxu0 %vm15847_vm7, %v10876_v39 }
 0xc35   : > { %10250 = vmatpush3.bf16.msra.mxu0 %v4599_v55  ;;  %10255 = vmatprep.mubr.msk.bf16.mxu0 %vm11257_vm10, %v15808_v43  ;;  %v10877_v55 = vld [vmem:[%s15739_s2 + $0x28] sm:$0x3f]  }
 0xc36   : > { %10251 = vmatprep.subr.bf16.mxu0 %v15808_v43 }
 0xc39   : > { %10252 = vmatpush3.bf16.msra.mxu0 %v4608_v36 }
 0xc3a   : > { %10253 = vmatprep.subr.bf16.mxu0 %v15808_v43 }
 0xc3b   : > { %v4618_v8 = vpop.permute.xlu0 %4617 }
 0xc3d   : > { %10254 = vmatpush3.bf16.msra.mxu0 %v4632_v27 }
 0xc40   : > { %10256 = vmatmul.mubr.msk.bf16.vlgmr.msra.gmra.mrb[44].mxu0 %vm15848_vm9, %v10876_v39  ;;  %vm15849_vm9 = vmmov %vm15847_vm7 }
 0xc41   : > { %4835 = vmatprep.mubr.bf16.mxu0 %v11239_v50 }
 0xd07   : > { %v4668_v34 = vpop.f32.mrb[40].mxu0 }
 0xd08   : > { %v4669_v9 = vadd.f32 %v4668_v34, %v4613_v44  ;;  %v4670_v6 = vpop.f32.mrb[41].mxu0 }
 0xd09   : > { %v4671_v4 = vadd.f32 %v4670_v6, %v4613_v44  ;;  %v4672_v56 = vpop.f32.mrb[42].mxu0 }
 0xd0a   : > { %v4718_v57 = vmul.f32 0.3, %v4669_v9  ;;  %v4673_v1 = vadd.f32 %v4672_v56, %v4618_v8  ;;  %v4674_v19 = vpop.f32.mrb[43].mxu0 }
 0xd0b   : > { %v4719_v13 = vmul.f32 0.3, %v4671_v4  ;;  %v4675_v35 = vadd.f32 %v4674_v19, %v4618_v8 }
 0xd0c   : > { %v4721_v26 = vmul.f32 0.3, %v4673_v1  ;;  %v4724_v51 = vmax.f32 %v4669_v9, %v4718_v57 }
 0xd0d   : > { %v4722_v38 = vmul.f32 0.3, %v4675_v35  ;;  %v4725_v37 = vmax.f32 %v4671_v4, %v4719_v13 }
 0xd0e   : > { %v4727_v10 = vmax.f32 %v4673_v1, %v4721_v26 }
 0xd0f   : > { %v4728_v22 = vmax.f32 %v4675_v35, %v4722_v38 }
 0xd10   : > { %v4730_v63 = vpack.c.bf16 %v4727_v10, %v4724_v51 }
 0xd11   : > { %v4731_v40 = vpack.c.bf16 %v4728_v22, %v4725_v37 }
 0xd12   : > { %v4736_v58 = vrot.slane %v4730_v63, 2  ;;  %v4747_v49 = vrot.slane %v4730_v63, 4 }
 0xd13   : > { %v4711_v28 = vpop.f32.mrb[44].mxu0  ;;  %v4737_v24 = vrot.slane %v4731_v40, 2  ;;  %v4748_v17 = vrot.slane %v4731_v40, 4 }
 0xd14   : > { %v4712_v30 = vadd.f32 %v4711_v28, %v4613_v44  ;;  %v10257_v29 = vpop.f32.mrb[45].mxu0  ;;  %4739 = vrot.lane.b32.xlu1 %v4736_v58, %s15833_s28 }
 0xd15   : > { %v4714_v23 = vpop.f32.mrb[46].mxu0 }
 0xd16   : > { %v4720_v60 = vmul.f32 0.3, %v4712_v30  ;;  %v4715_v42 = vadd.f32 %v4714_v23, %v4618_v8  ;;  %v10258_v45 = vpop.f32.mrb[47].mxu0 }
 0xd18   : > { %v4723_v54 = vmul.f32 0.3, %v4715_v42  ;;  %4741 = vrot.lane.b32.xlu1 %v4737_v24, %s15833_s28  ;;  %v4726_v48 = vmax.f32 %v4712_v30, %v4720_v60 }
 0xd1a   : > { %v4729_v21 = vmax.f32 %v4715_v42, %v4723_v54 }
 0xd1c   : > { %v4732_v52 = vpack.c.bf16 %v4729_v21, %v4726_v48 }
 0xd1e   : > { %v4738_v14 = vrot.slane %v4732_v52, 2  ;;  %v4749_v5 = vrot.slane %v4732_v52, 4 }
 0xd20   : > { %4743 = vrot.lane.b32.xlu0 %v4738_v14, %s15833_s28  ;;  %4754 = vrot.lane.b32.xlu1 %v4749_v5, %s15827_s29 }
 0xd24   : > { %4752 = vrot.lane.b32.xlu0 %v4748_v17, %s15827_s29  ;;  %4781 = vperm.xlu1 %10811, %v9727_v11  }
 0xd28   : > { %4750 = vrot.lane.b32.xlu0 %v4747_v49, %s15827_s29 }
 0xd2c   : > { %4786 = vperm.xlu0 %10810, %v9728_v33  }
 0xd86   : > { %v4740_v47 = vpop.permute.xlu1 %4739 }
 0xd8a   : > { %v4742_v16 = vpop.permute.xlu1 %4741 }
 0xd8b   : > { %v4745_v61 = vsel %vm651_vm1, %v4740_v47, %v4742_v16 }
 0xd8c   : > { %v4760_v25 = vsel %vm657_vm0, %v4730_v63, %v4745_v61 }
 0xd92   : > { %v4744_v62 = vpop.permute.xlu0 %4743  ;;  %v4755_v0 = vpop.permute.xlu1 %4754 }
 0xd93   : > { %v4746_v18 = vsel %vm651_vm1, %v4742_v16, %v4744_v62  ;;  %v4768_v36 = vsel %vm657_vm0, %v4732_v52, %v4744_v62  ;;  %v4777_v27 = vsel %vm682_vm2, %v4744_v62, %v4755_v0  ;;  %v4801_v44 = vsel %vm808_vm3, %v4755_v0, 0 }
 0xd94   : > { %v4764_v31 = vsel %vm657_vm0, %v4731_v40, %v4746_v18 }
 0xd95   : > { %4803 = vmatprep.subr.bf16.mxu0 %v4764_v31 }
 0xd96   : > { %v4753_v2 = vpop.permute.xlu0 %4752  ;;  %4804 = vmatpush1.bf16.msra.mxu0 %v4760_v25 }
 0xd97   : > { %v4757_v15 = vsel %vm1771_vm5, %v4753_v2, %v4755_v0 }
 0xd98   : > { %v4774_v46 = vsel %vm682_vm2, %v4746_v18, %v4757_v15 }
 0xd99   : > { %4805 = vmatprep.subr.bf16.mxu0 %v4774_v46 }
 0xd9a   : > { %v4751_v32 = vpop.permute.xlu0 %4750 }
 0xd9b   : > { %v4756_v59 = vsel %vm1771_vm5, %v4751_v32, %v4753_v2 }
 0xd9c   : > { %v4771_v12 = vsel %vm682_vm2, %v4745_v61, %v4756_v59  ;;  %v4797_v39 = vsel %vm808_vm3, %v4756_v59, 0 }
 0xd9d   : > { %4806 = vmatpush1.bf16.msra.mxu0 %v4771_v12 }
 0xd9e   : > { %9740 = vmatprep.subr.msk.bf16.mxu0 %vm808_vm3, %v4757_v15 }
 0xda1   : > { %4808 = vmatpush1.bf16.msra.mxu0 %v4797_v39 }
 0xda2   : > { %10259 = vmatprep.subr.bf16.mxu0 %v15808_v43 }
 0xda3   : > { %v4782_v34 = vpop.permute.xlu1 %4781 }
 0xda4   : > { %9741 = vmatmul.mubr.msk.bf16.vlgmr.msra.gmra.mrb[48].mxu0 %vm15849_vm9, %v10877_v55  ;;  %vm15853_vm9 = vcmask 1014784  }
 0xda5   : > { %10260 = vmatpush3.bf16.msra.mxu0 %v4768_v36  ;;  %10265 = vmatprep.mubr.msk.bf16.mxu0 %vm11257_vm10, %v15808_v43 }
 0xda6   : > { %10261 = vmatprep.subr.bf16.mxu0 %v15808_v43 }
 0xda9   : > { %10262 = vmatpush3.bf16.msra.mxu0 %v4777_v27 }
 0xdaa   : > { %10263 = vmatprep.subr.bf16.mxu0 %v15808_v43 }
 0xdab   : > { %v4787_v4 = vpop.permute.xlu0 %4786 }
 0xdad   : > { %10264 = vmatpush3.bf16.msra.mxu0 %v4801_v44 }
 0xdb0   : > { %10266 = vmatmul.mubr.msk.bf16.vlgmr.msra.gmra.mrb[52].mxu0 %vm15847_vm7, %v10877_v55  ;;  %vm15854_vm7 = vmmov %vm15853_vm9 }
 0xe77   : > { %v4837_v9 = vpop.f32.mrb[48].mxu0 }
 0xe78   : > { %v4838_v6 = vadd.f32 %v4837_v9, %v4782_v34  ;;  %v4839_v8 = vpop.f32.mrb[49].mxu0 }
 0xe79   : > { %v4840_v56 = vadd.f32 %v4839_v8, %v4782_v34  ;;  %v4841_v57 = vpop.f32.mrb[50].mxu0 }
 0xe7a   : > { %v4887_v1 = vmul.f32 0.3, %v4838_v6  ;;  %v4842_v19 = vadd.f32 %v4841_v57, %v4787_v4  ;;  %v4843_v13 = vpop.f32.mrb[51].mxu0 }
 0xe7b   : > { %v4888_v35 = vmul.f32 0.3, %v4840_v56  ;;  %v4844_v26 = vadd.f32 %v4843_v13, %v4787_v4 }
 0xe7c   : > { %v4890_v38 = vmul.f32 0.3, %v4842_v19  ;;  %v4893_v10 = vmax.f32 %v4838_v6, %v4887_v1 }
 0xe7d   : > { %v4891_v51 = vmul.f32 0.3, %v4844_v26  ;;  %v4894_v22 = vmax.f32 %v4840_v56, %v4888_v35 }
 0xe7e   : > { %v4896_v37 = vmax.f32 %v4842_v19, %v4890_v38 }
 0xe7f   : > { %v4897_v63 = vmax.f32 %v4844_v26, %v4891_v51 }
 0xe80   : > { %v13671_v40 = vpack.c.bf16 %v4896_v37, %v4893_v10 }
 0xe81   : > { %v13673_v58 = vpack.c.bf16 %v4897_v63, %v4894_v22 }
 0xe82   : > { %4938 = vrot.lane.b32.xlu0 %v13671_v40, %s15832_s0  ;;  %v4905_v28 = vrot.slane %v13671_v40, 2  ;;  %v4927_v24 = vrot.slane %v13671_v40, 6  ;;  %v4916_v5 = vrot.slane %v13671_v40, 4 }
 0xe83   : > { %v4880_v30 = vpop.f32.mrb[52].mxu0  ;;  %v4906_v11 = vrot.slane %v13673_v58, 2  ;;  %v4917_v17 = vrot.slane %v13673_v58, 4  ;;  %v4928_v49 = vrot.slane %v13673_v58, 6 }
 0xe84   : > { %v4881_v29 = vadd.f32 %v4880_v30, %v4782_v34  ;;  %v10267_v23 = vpop.f32.mrb[53].mxu0  ;;  %4908 = vrot.lane.b32.xlu1 %v4905_v28, %s15833_s28 }
 0xe85   : > { %v4883_v60 = vpop.f32.mrb[54].mxu0  ;;  %v10880_v23 = vld [vmem:[%s15741_s4 + $0x34] ss:$12 sps:$4 sm:$0x3f]  }
 0xe86   : > { %v4889_v42 = vmul.f32 0.3, %v4881_v29  ;;  %v4884_v45 = vadd.f32 %v4883_v60, %v4787_v4  ;;  %4940 = vrot.lane.b32.xlu0 %v13673_v58, %s15832_s0  ;;  %v10268_v54 = vpop.f32.mrb[55].mxu0  ;;  %5288 = vmatprep.mubr.bf16.mxu1 %v10880_v23 }
 0xe87   : > { %5374 = vmatprep.mubr.bf16.mxu0 %v10880_v23 }
 0xe88   : > { %v4892_v48 = vmul.f32 0.3, %v4884_v45  ;;  %4930 = vrot.lane.b32.xlu1 %v4927_v24, %s15850_s11  ;;  %v4895_v21 = vmax.f32 %v4881_v29, %v4889_v42 }
 0xe8a   : > { %v4898_v52 = vmax.f32 %v4884_v45, %v4892_v48  ;;  %4972 = vrot.lane.b32.xlu0 %v13673_v58, %s15825_s17 }
 0xe8c   : > { %v13685_v14 = vpack.c.bf16 %v4898_v52, %v4895_v21  ;;  %4946 = vrot.lane.b32.xlu1 %v4905_v28, %s15828_s26 }
 0xe8e   : > { %4919 = vrot.lane.b32.xlu0 %v4916_v5, %s15827_s29  ;;  %v4907_v33 = vrot.slane %v13685_v14, 2  ;;  %v4918_v47 = vrot.slane %v13685_v14, 4  ;;  %v4929_v16 = vrot.slane %v13685_v14, 6 }
 0xe90   : > { %4962 = vrot.lane.b32.xlu1 %v4927_v24, %s15831_s25 }
 0xe92   : > { %4954 = vrot.lane.b32.xlu0 %v4916_v5, %s15851_s13 }
 0xe94   : > { %4910 = vrot.lane.b32.xlu1 %v4906_v11, %s15833_s28 }
 0xe96   : > { %4921 = vrot.lane.b32.xlu0 %v4917_v17, %s15827_s29 }
 0xe98   : > { %4932 = vrot.lane.b32.xlu1 %v4928_v49, %s15850_s11 }
 0xe9a   : > { %4948 = vrot.lane.b32.xlu0 %v4906_v11, %s15828_s26 }
 0xe9c   : > { %4964 = vrot.lane.b32.xlu1 %v4928_v49, %s15831_s25 }
 0xe9e   : > { %4956 = vrot.lane.b32.xlu0 %v4917_v17, %s15851_s13 }
 0xea0   : > { %4942 = vrot.lane.b32.xlu1 %v13685_v14, %s15832_s0 }
 0xea2   : > { %4980 = vrot.lane.b32.xlu0 %v4906_v11, %s15838_s27 }
 0xea4   : > { %4974 = vrot.lane.b32.xlu1 %v13685_v14, %s15825_s17 }
 0xea6   : > { %4912 = vrot.lane.b32.xlu0 %v4907_v33, %s15833_s28 }
 0xea8   : > { %4978 = vrot.lane.b32.xlu1 %v4905_v28, %s15838_s27 }
 0xeaa   : > { %4970 = vrot.lane.b32.xlu0 %v13671_v40, %s15825_s17 }
 0xeac   : > { %4923 = vrot.lane.b32.xlu1 %v4918_v47, %s15827_s29 }
 0xeae   : > { %4934 = vrot.lane.b32.xlu0 %v4929_v16, %s15850_s11 }
 0xeb0   : > { %4996 = vrot.lane.b32.xlu1 %v4928_v49, %s15839_s1 }
 0xeb2   : > { %4988 = vrot.lane.b32.xlu0 %v4917_v17, %s15829_s18 }
 0xeb4   : > { %4950 = vrot.lane.b32.xlu1 %v4907_v33, %s15828_s26 }
 0xeb6   : > { %4986 = vrot.lane.b32.xlu0 %v4916_v5, %s15829_s18 }
 0xeb8   : > { %4994 = vrot.lane.b32.xlu1 %v4927_v24, %s15839_s1 }
 0xeba   : > { %5004 = vrot.lane.b32.xlu0 %v13673_v58, %s15826_s23 }
 0xebc   : > { %4958 = vrot.lane.b32.xlu1 %v4918_v47, %s15851_s13 }
 0xebe   : > { %4966 = vrot.lane.b32.xlu0 %v4929_v16, %s15831_s25 }
 0xec0   : > { %5006 = vrot.lane.b32.xlu1 %v13685_v14, %s15826_s23 }
 0xec2   : > { %5012 = vrot.lane.b32.xlu0 %v4906_v11, %s15834_s30 }
 0xec4   : > { %5010 = vrot.lane.b32.xlu1 %v4905_v28, %s15834_s30 }
 0xec6   : > { %5002 = vrot.lane.b32.xlu0 %v13671_v40, %s15826_s23 }
 0xec8   : > { %4982 = vrot.lane.b32.xlu1 %v4907_v33, %s15838_s27 }
 0xeca   : > { %5020 = vrot.lane.b32.xlu0 %v4917_v17, %s15830_s24 }
 0xecc   : > { %4990 = vrot.lane.b32.xlu1 %v4918_v47, %s15829_s18 }
 0xece   : > { %4998 = vrot.lane.b32.xlu0 %v4929_v16, %s15839_s1 }
 0xed0   : > { %5028 = vrot.lane.b32.xlu1 %v4928_v49, %s15835_s20 }
 0xed2   : > { %5018 = vrot.lane.b32.xlu0 %v4916_v5, %s15830_s24 }
 0xed4   : > { %5026 = vrot.lane.b32.xlu1 %v4927_v24, %s15835_s20 }
 0xed6   : > { %5030 = vrot.lane.b32.xlu0 %v4929_v16, %s15835_s20 }
 0xed8   : > { %5014 = vrot.lane.b32.xlu1 %v4907_v33, %s15834_s30 }
 0xedc   : > { %5022 = vrot.lane.b32.xlu1 %v4918_v47, %s15830_s24 }
 0xef4   : > { %v4939_v61 = vpop.permute.xlu0 %4938 }
 0xef6   : > { %v4909_v62 = vpop.permute.xlu1 %4908 }
 0xef8   : > { %v4941_v18 = vpop.permute.xlu0 %4940 }
 0xef9   : > { %v4944_v54 = vsel %vm15854_vm7, %v4939_v61, %v4941_v18 }
 0xefa   : > { %v4931_v31 = vpop.permute.xlu1 %4930 }
 0xefc   : > { %v13740_v25 = vpop.permute.xlu0 %4972 }
 0xefe   : > { %v4947_v0 = vpop.permute.xlu1 %4946 }
 0xf00   : > { %v4920_v2 = vpop.permute.xlu0 %4919 }
 0xf02   : > { %v13742_v15 = vpop.permute.xlu1 %4962 }
 0xf04   : > { %v13744_v46 = vpop.permute.xlu0 %4954 }
 0xf06   : > { %v4911_v32 = vpop.permute.xlu1 %4910 }
 0xf07   : > { %v4914_v59 = vsel %vm651_vm1, %v4909_v62, %v4911_v32 }
 0xf08   : > { %v4922_v12 = vpop.permute.xlu0 %4921  ;;  %v5036_v39 = vsel %vm657_vm0, %v13671_v40, %v4914_v59 }
 0xf09   : > { %v4925_v55 = vsel %vm1771_vm5, %v4920_v2, %v4922_v12  ;;  %5172 = vrot.lane.b32.xlu0 %v5036_v39, %s15852_s14 }
 0xf0a   : > { %v4933_v36 = vpop.permute.xlu1 %4932  ;;  %v5047_v27 = vsel %vm682_vm2, %v4914_v59, %v4925_v55 }
 0xf0b   : > { %5178 = vrot.lane.b32.xlu1 %v5047_v27, %s15852_s14  ;;  %v4936_v63 = vsel %vm1806_vm6, %v4931_v31, %v4933_v36 }
 0xf0c   : > { %v4949_v44 = vpop.permute.xlu0 %4948  ;;  %v5056_v29 = vsel %vm808_vm3, %v4925_v55, %v4936_v63 }
 0xf0d   : > { %v4952_v60 = vsel %vm15800_vm8, %v4947_v0, %v4949_v44 }
 0xf0e   : > { %v13753_v34 = vpop.permute.xlu1 %4964  ;;  %v5066_v52 = vsel %vm657_vm0, %v4944_v54, %v4952_v60 }
 0xf10   : > { %v4957_v9 = vpop.permute.xlu0 %4956 }
 0xf12   : > { %v4943_v6 = vpop.permute.xlu1 %4942 }
 0xf13   : > { %v4945_v45 = vsel %vm15853_vm9, %v4941_v18, %v4943_v6  ;;  %vm15855_vm9 = vcmask 998400  }
 0xf14   : > { %v13755_v8 = vpop.permute.xlu0 %4980  ;;  %v4960_v11 = vsel %vm15855_vm9, %v13744_v46, %v4957_v9  ;;  %vm15856_vm7 = vmmov %vm15855_vm9 }
 0xf15   : > { %v5077_v18 = vsel %vm682_vm2, %v4952_v60, %v4960_v11 }
 0xf16   : > { %v13757_v4 = vpop.permute.xlu1 %4974 }
 0xf18   : > { %v4913_v56 = vpop.permute.xlu0 %4912 }
 0xf19   : > { %v13761_v57 = vsel %vm657_vm0, %v13685_v14, %v4913_v56  ;;  %v4915_v1 = vsel %vm651_vm1, %v4911_v32, %v4913_v56 }
 0xf1a   : > { %5176 = vrot.lane.b32.xlu1 %v13761_v57, %s15852_s14  ;;  %v13766_v19 = vpop.permute.xlu1 %4978  ;;  %v5040_v13 = vsel %vm657_vm0, %v13673_v58, %v4915_v1 }
 0xf1b   : > { %5256 = vmatprep.subr.bf16.mxu1 %v5040_v13 }
 0xf1c   : > { %v13770_v35 = vpop.permute.xlu0 %4970  ;;  %5257 = vmatpush1.bf16.msra.mxu1 %v5036_v39 }
 0xf1d   : > { %v4976_v39 = vsel %vm2317_vm11, %v13770_v35, %v13740_v25 }
 0xf1e   : > { %v4924_v26 = vpop.permute.xlu1 %4923 }
 0xf1f   : > { %v13773_v38 = vsel %vm682_vm2, %v4913_v56, %v4924_v26  ;;  %v4926_v51 = vsel %vm1771_vm5, %v4922_v12, %v4924_v26  ;;  %v9729_v56 = vld [vmem:[%s15740_s3 + $0x80] sm:$0xff] }
 0xf20   : > { %v4935_v10 = vpop.permute.xlu0 %4934  ;;  %5182 = vrot.lane.b32.xlu0 %v13773_v38, %s15852_s14  ;;  %v5050_v37 = vsel %vm682_vm2, %v4915_v1, %v4926_v51 }
 0xf21   : > { %v4937_v22 = vsel %vm1806_vm6, %v4933_v36, %v4935_v10  ;;  %5180 = vrot.lane.b32.xlu1 %v5050_v37, %s15852_s14  ;;  %5258 = vmatprep.subr.bf16.mxu1 %v5050_v37  ;;  %v13789_v30 = vsel %vm808_vm3, %v4924_v26, %v4935_v10  ;;  %v4977_v36 = vsel %vm2317_vm11, %v13740_v25, %v13757_v4 }
 0xf22   : > { %5259 = vmatpush1.bf16.msra.mxu1 %v5047_v27  ;;  %v13782_v40 = vpop.permute.xlu1 %4996  ;;  %v5059_v58 = vsel %vm808_vm3, %v4926_v51, %v4937_v22 }
 0xf23   : > { %5260 = vmatprep.subr.bf16.mxu1 %v5059_v58 }
 0xf24   : > { %v13785_v28 = vpop.permute.xlu0 %4988  ;;  %5174 = vrot.lane.b32.xlu0 %v5040_v13, %s15852_s14 }
 0xf25   : > { %5188 = vrot.lane.b32.xlu1 %v13789_v30, %s15852_s14 }
 0xf26   : > { %5261 = vmatpush1.bf16.msra.mxu1 %v5056_v29  ;;  %v4951_v42 = vpop.permute.xlu1 %4950 }
 0xf27   : > { %v4953_v24 = vsel %vm15800_vm8, %v4949_v44, %v4951_v42  ;;  %v13812_v49 = vsel %vm657_vm0, %v4943_v6, %v4951_v42  ;;  %vm15857_vm8 = vcmask 990208  }
 0xf28   : > { %v4987_v48 = vpop.permute.xlu0 %4986  ;;  %5184 = vrot.lane.b32.xlu0 %v5056_v29, %s15852_s14  ;;  %v5070_v21 = vsel %vm657_vm0, %v4945_v45, %v4953_v24  ;;  %vm15858_vm9 = vmmov %vm15857_vm8 }
 0xf29   : > { %5192 = vrot.lane.b32.xlu1 %v5070_v21, %s15852_s14  ;;  %5262 = vmatprep.subr.bf16.mxu1 %v5070_v21  ;;  %v4968_v2 = vsel %vm15858_vm9, %v13742_v15, %v13753_v34  ;;  %v9730_v15 = vld [vmem:[%s15740_s3 + $0x88] sm:$0xf]  ;;  %v4992_v1 = vsel %vm3477_vm14, %v4987_v48, %v13785_v28  ;;  %vm15861_vm9 = vcmask 949248  }
 0xf2a   : > { %5263 = vmatpush1.bf16.msra.mxu1 %v5066_v52  ;;  %v4995_v14 = vpop.permute.xlu1 %4994  ;;  %v5086_v32 = vsel %vm808_vm3, %v4960_v11, %v4968_v2 }
 0xf2c   : > { %v13805_v5 = vpop.permute.xlu0 %5004  ;;  %5186 = vrot.lane.b32.xlu0 %v5059_v58, %s15852_s14 }
 0xf2d   : > { %5190 = vrot.lane.b32.xlu1 %v5066_v52, %s15852_s14 }
 0xf2e   : > { %v4959_v17 = vpop.permute.xlu1 %4958 }
 0xf2f   : > { %v13815_v33 = vsel %vm682_vm2, %v4951_v42, %v4959_v17  ;;  %v4961_v47 = vsel %vm15856_vm7, %v4957_v9, %v4959_v17 }
 0xf30   : > { %v4967_v16 = vpop.permute.xlu0 %4966  ;;  %5194 = vrot.lane.b32.xlu0 %v13812_v49, %s15852_s14  ;;  %v5080_v61 = vsel %vm682_vm2, %v4953_v24, %v4961_v47 }
 0xf31   : > { %v4969_v62 = vsel %vm15857_vm8, %v13753_v34, %v4967_v16  ;;  %5200 = vrot.lane.b32.xlu1 %v13815_v33, %s15852_s14  ;;  %5264 = vmatprep.subr.bf16.mxu1 %v5080_v61  ;;  %v13847_v27 = vsel %vm808_vm3, %v4959_v17, %v4967_v16  ;;  %v4984_v34 = vsel %vm3459_vm13, %v13766_v19, %v13755_v8  ;;  %vm15859_vm8 = vcmask 957440  }
 0xf32   : > { %5265 = vmatpush1.bf16.msra.mxu1 %v5077_v18  ;;  %v5007_v31 = vpop.permute.xlu1 %5006  ;;  %v5089_v0 = vsel %vm808_vm3, %v4961_v47, %v4969_v62  ;;  %v5096_v25 = vsel %vm657_vm0, %v4976_v39, %v4984_v34  ;;  %v5107_v51 = vsel %vm682_vm2, %v4984_v34, %v4992_v1  ;;  %vm15860_vm7 = vmmov %vm15859_vm8 }
 0xf33   : > { %5266 = vmatprep.subr.bf16.mxu1 %v5089_v0  ;;  %v5000_v37 = vsel %vm15860_vm7, %v4995_v14, %v13782_v40  ;;  %vm15863_vm7 = vcmask 916480  }
 0xf34   : > { %v5013_v46 = vpop.permute.xlu0 %5012  ;;  %5196 = vrot.lane.b32.xlu0 %v5077_v18, %s15852_s14  ;;  %v5116_v58 = vsel %vm808_vm3, %v4992_v1, %v5000_v37  ;;  %v10878_v1 = vld [vmem:[%s15741_s4 + $0x30] ss:$12 sps:$4 sm:$0x3f]   ;;  %v10881_v37 = vld [vmem:[%s15741_s4 + $0x38] ss:$12 sps:$4 sm:$0x3f]  }
 0xf35   : > { %5204 = vrot.lane.b32.xlu1 %v5089_v0, %s15852_s14 }
 0xf36   : > { %5267 = vmatpush1.bf16.msra.mxu1 %v5086_v32  ;;  %v5011_v59 = vpop.permute.xlu1 %5010 }
 0xf37   : > { %v5016_v24 = vsel %vm3531_vm4, %v5011_v59, %v5013_v46 }
 0xf38   : > { %v5003_v12 = vpop.permute.xlu0 %5002  ;;  %5198 = vrot.lane.b32.xlu0 %v5080_v61, %s15852_s14 }
 0xf39   : > { %5202 = vrot.lane.b32.xlu1 %v5086_v32, %s15852_s14  ;;  %v5008_v23 = vsel %vm15861_vm9, %v5003_v12, %v13805_v5 }
 0xf3a   : > { %v13838_v55 = vpop.permute.xlu1 %4982  ;;  %v5126_v54 = vsel %vm657_vm0, %v5008_v23, %v5016_v24  ;;  %v11182_v23 = vld [vmem:[%s15743_s6 + $0x50] sm:$0xff]  }
 0xf3b   : > { %v4985_v44 = vsel %vm3459_vm13, %v13755_v8, %v13838_v55  ;;  %v5104_v12 = vsel %vm657_vm0, %v13757_v4, %v13838_v55 }
 0xf3c   : > { %v5021_v9 = vpop.permute.xlu0 %5020  ;;  %5206 = vrot.lane.b32.xlu0 %v13847_v27, %s15852_s14  ;;  %v5100_v6 = vsel %vm657_vm0, %v4977_v36, %v4985_v44 }
 0xf3d   : > { %5529 = vperm.xlu1 %10811, %v9730_v15   ;;  %5268 = vmatprep.subr.bf16.mxu1 %v5100_v6 }
 0xf3e   : > { %5269 = vmatpush1.bf16.msra.mxu1 %v5096_v25  ;;  %v13864_v13 = vpop.permute.xlu1 %4990 }
 0xf3f   : > { %v4993_v8 = vsel %vm3477_vm14, %v13785_v28, %v13864_v13 }
 0xf40   : > { %v4999_v19 = vpop.permute.xlu0 %4998  ;;  %5524 = vperm.xlu0 %10810, %v9729_v56   ;;  %v5110_v35 = vsel %vm682_vm2, %v4985_v44, %v4993_v8  ;;  %v5113_v56 = vsel %vm682_vm2, %v13838_v55, %v13864_v13 }
 0xf41   : > { %v5001_v26 = vsel %vm15859_vm8, %v13782_v40, %v4999_v19  ;;  %5270 = vmatprep.subr.bf16.mxu1 %v5110_v35  ;;  %v5122_v10 = vsel %vm808_vm3, %v13864_v13, %v4999_v19  ;;  %vm15862_vm8 = vmmov %vm15861_vm9 }
 0xf42   : > { %5271 = vmatpush1.bf16.msra.mxu1 %v5107_v51  ;;  %10004 = vmatprep.subr.bf16.mxu0 %v5122_v10  ;;  %v5029_v22 = vpop.permute.xlu1 %5028  ;;  %v5119_v63 = vsel %vm808_vm3, %v4993_v8, %v5001_v26  ;;  %v5009_v40 = vsel %vm15862_vm8, %v13805_v5, %v5007_v31  ;;  %vm15864_vm9 = vmmov %vm15863_vm7 }
 0xf43   : > { %5272 = vmatprep.subr.bf16.mxu1 %v5119_v63  ;;  %10005 = vmatpush3.bf16.msra.mxu0 %v13761_v57  ;;  %vm15865_vm8 = vmmov %vm15863_vm7 }
 0xf44   : > { %v5019_v29 = vpop.permute.xlu0 %5018 }
 0xf45   : > { %v5024_v48 = vsel %vm15802_vm15, %v5019_v29, %v5021_v9  ;;  %v11181_v29 = vld [vmem:[%s15743_s6 + $0x48] sm:$0xff]  }
 0xf46   : > { %5273 = vmatpush1.bf16.msra.mxu1 %v5116_v58  ;;  %v5027_v28 = vpop.permute.xlu1 %5026  ;;  %v13936_v58 = vld [vmem:[%s15743_s6 + $0x40] sm:$0xff]  }
 0xf47   : > { %v5032_v16 = vsel %vm15801_vm12, %v5027_v28, %v5029_v22  ;;  %v13944_v28 = vld [vmem:[%s15743_s6] sm:$0xff]  }
 0xf48   : > { %v5031_v21 = vpop.permute.xlu0 %5030  ;;  %v5146_v62 = vsel %vm808_vm3, %v5024_v48, %v5032_v16 }
 0xf49   : > { %v5033_v17 = vsel %vm15801_vm12, %v5029_v22, %v5031_v21  ;;  %vm15866_vm12 = vmmov %vm15863_vm7 }
 0xf4a   : > { %v5015_v60 = vpop.permute.xlu1 %5014 }
 0xf4b   : > { %v5134_v42 = vsel %vm657_vm0, %v5007_v31, %v5015_v60  ;;  %v5017_v45 = vsel %vm3531_vm4, %v5013_v46, %v5015_v60 }
 0xf4c   : > { %10006 = vmatprep.subr.bf16.mxu0 %v5134_v42  ;;  %v5130_v57 = vsel %vm657_vm0, %v5009_v40, %v5017_v45  ;;  %v11184_v40 = vld [vmem:[%s15743_s6 + $0x58] sm:$0xff]  }
 0xf4d   : > { %5274 = vmatprep.subr.bf16.mxu1 %v5130_v57  ;;  %10007 = vmatpush3.bf16.msra.mxu0 %v13773_v38  ;;  %v5137_v38 = vsel %vm682_vm2, %v5016_v24, %v5024_v48  ;;  %v13975_v42 = vld [vmem:[%s15743_s6 + $0x18] sm:$0xff]   ;;  %v13988_v24 = vld [vmem:[%s15743_s6 + $0x28] sm:$0xff]   ;;  %v13997_v57 = vld [vmem:[%s15743_s6 + $0x30] sm:$0xff]  }
 0xf4e   : > { %5275 = vmatpush1.bf16.msra.mxu1 %v5126_v54  ;;  %v5023_v52 = vpop.permute.xlu1 %5022  ;;  %v14004_v54 = vld [vmem:[%s15743_s6 + $0x38] sm:$0xff]   ;;  %v11191_v48 = vld [vmem:[%s15743_s6 + $0x20] sm:$0xf] }
 0xf4f   : > { %v5143_v14 = vsel %vm682_vm2, %v5015_v60, %v5023_v52  ;;  %v5025_v5 = vsel %vm15802_vm15, %v5021_v9, %v5023_v52  ;;  %v5152_v47 = vsel %vm808_vm3, %v5023_v52, %v5031_v21  ;;  %vm15868_vm15 = vmmov %vm15863_vm7  ;;  %v13964_v60 = vld [vmem:[%s15743_s6 + $0x10] sm:$0xff]   ;;  %v9749_v21 = vcombine.low %v11191_v48, %v11191_v48 }
 0xf50   : > { %10008 = vmatprep.subr.bf16.mxu0 %v5143_v14  ;;  %v5140_v11 = vsel %vm682_vm2, %v5017_v45, %v5025_v5  ;;  %v5149_v61 = vsel %vm808_vm3, %v5025_v5, %v5033_v17  ;;  %v11186_v45 = vld [vmem:[%s15743_s6 + $0x68] sm:$0xff]  }
 0xf51   : > { %5276 = vmatprep.subr.bf16.mxu1 %v5140_v11  ;;  %10009 = vmatpush3.bf16.msra.mxu0 %v13789_v30 }
 0xf52   : > { %5277 = vmatpush1.bf16.msra.mxu1 %v5137_v38  ;;  %10010 = vmatprep.subr.bf16.mxu0 %v5152_v47 }
 0xf53   : > { %5278 = vmatprep.subr.bf16.mxu1 %v5149_v61 }
 0xf55   : > { %10011 = vmatpush3.bf16.msra.mxu0 %v13812_v49 }
 0xf56   : > { %5279 = vmatpush1.bf16.msra.mxu1 %v5146_v62 }
 0xf7b   : > { %v5173_v30 = vpop.permute.xlu0 %5172 }
 0xf7d   : > { %v5179_v18 = vpop.permute.xlu1 %5178 }
 0xf8c   : > { %v5177_v31 = vpop.permute.xlu1 %5176 }
 0xf8d   : > { %10012 = vmatprep.subr.bf16.mxu0 %v5177_v31 }
 0xf8e   : > { %10013 = vmatpush3.bf16.msra.mxu0 %v13815_v33 }
 0xf92   : > { %v5183_v0 = vpop.permute.xlu0 %5182 }
 0xf93   : > { %10014 = vmatprep.subr.bf16.mxu0 %v5183_v0  ;;  %v5181_v2 = vpop.permute.xlu1 %5180 }
 0xf94   : > { %10015 = vmatpush3.bf16.msra.mxu0 %v13847_v27  ;;  %v5211_v33 = vsel %vm15865_vm8, %v5181_v2, %v5183_v0  ;;  %v5210_v36 = vsel %vm15866_vm12, %v5179_v18, %v5181_v2  ;;  %vm15869_vm12 = vmmov %vm15863_vm7 }
 0xf95   : > { %vm15871_vm8 = vmmov %vm15863_vm7 }
 0xf96   : > { %v5175_v46 = vpop.permute.xlu0 %5174 }
 0xf97   : > { %v5189_v32 = vpop.permute.xlu1 %5188  ;;  %v5209_v59 = vsel %vm15863_vm7, %v5175_v46, %v5177_v31  ;;  %v5208_v49 = vsel %vm15864_vm9, %v5173_v30, %v5175_v46  ;;  %vm15867_vm9 = vmmov %vm15863_vm7 }
 0xf98   : > { %5280 = vmatprep.subr.bf16.mxu1 %v5209_v59  ;;  %10016 = vmatprep.subr.bf16.mxu0 %v5189_v32 }
 0xf99   : > { %5281 = vmatpush1.bf16.msra.mxu1 %v5208_v49  ;;  %10017 = vmatpush3.bf16.msra.mxu0 %v5104_v12 }
 0xf9a   : > { %v5185_v39 = vpop.permute.xlu0 %5184  ;;  %5282 = vmatprep.subr.bf16.mxu1 %v5211_v33 }
 0xf9b   : > { %v5193_v15 = vpop.permute.xlu1 %5192 }
 0xf9d   : > { %5283 = vmatpush1.bf16.msra.mxu1 %v5210_v36 }
 0xf9e   : > { %v5187_v27 = vpop.permute.xlu0 %5186 }
 0xf9f   : > { %v5191_v44 = vpop.permute.xlu1 %5190  ;;  %v5213_v34 = vsel %vm15863_vm7, %v5187_v27, %v5189_v32  ;;  %v5212_v9 = vsel %vm15867_vm9, %v5185_v39, %v5187_v27  ;;  %vm15872_vm9 = vmmov %vm15863_vm7 }
 0xfa0   : > { %5284 = vmatprep.subr.bf16.mxu1 %v5213_v34  ;;  %v5214_v8 = vsel %vm15869_vm12, %v5191_v44, %v5193_v15  ;;  %vm15873_vm12 = vcmask 261120  }
 0xfa1   : > { %5285 = vmatpush1.bf16.msra.mxu1 %v5212_v9 }
 0xfa2   : > { %v5195_v6 = vpop.permute.xlu0 %5194 }
 0xfa3   : > { %10018 = vmatprep.subr.bf16.mxu0 %v5195_v6  ;;  %v5201_v4 = vpop.permute.xlu1 %5200  ;;  %v5215_v25 = vsel %vm15868_vm15, %v5193_v15, %v5195_v6  ;;  %vm15870_vm15 = vmmov %vm15863_vm7 }
 0xfa4   : > { %5286 = vmatprep.subr.bf16.mxu1 %v5215_v25  ;;  %10019 = vmatpush3.bf16.msra.mxu0 %v5113_v56 }
 0xfa5   : > { %5287 = vmatpush1.bf16.msra.mxu1 %v5214_v8  ;;  %10269 = vmatprep.subr.bf16.mxu0 %v15808_v43 }
 0xfa6   : > { %v5197_v19 = vpop.permute.xlu0 %5196 }
 0xfa7   : > { %v5205_v35 = vpop.permute.xlu1 %5204  ;;  %5375 = vmatmul.mubr.bf16.vlgmr.msra.gmra.mrb[56].mxu0 %v10878_v1 }
 0xfa8   : > { %5289 = vmatmul.mubr.bf16.vlgmr.msra.gmra.mrb[68].mxu1 %v10878_v1  ;;  %10270 = vmatpush3.bf16.msra.mxu0 %v5201_v4 }
 0xfa9   : > { %10271 = vmatprep.subr.bf16.mxu0 %v15808_v43  ;;  %10273 = vmatprep.mubr.msk.bf16.mxu0 %vm11257_vm10, %v15808_v43 }
 0xfaa   : > { %v5199_v55 = vpop.permute.xlu0 %5198  ;;  %5331 = vmatprep.mubr.bf16.mxu1 %v11239_v50 }
 0xfab   : > { %v5217_v13 = vsel %vm15870_vm15, %v5199_v55, %v5201_v4  ;;  %v5216_v26 = vsel %vm15871_vm8, %v5197_v19, %v5199_v55  ;;  %v5203_v51 = vpop.permute.xlu1 %5202  ;;  %vm15874_vm15 = vmmov %vm15873_vm12  ;;  %vm15875_vm8 = vcmask 1042432  }
 0xfac   : > { %5299 = vmatprep.subr.bf16.mxu1 %v5217_v13  ;;  %v5218_v63 = vsel %vm15872_vm9, %v5203_v51, %v5205_v35  ;;  %v5476_v52 = vsel %vm15875_vm8, 4294967295, %v11255_v3  ;;  %vm15876_vm9 = vcmask 293888   ;;  %vm15885_vm8 = vcmask 924672  }
 0xfad   : > { %5300 = vmatpush1.bf16.msra.mxu1 %v5216_v26  ;;  %v5477_v14 = vsel %vm682_vm2, %v5476_v52, 0 }
 0xfae   : > { %v5207_v10 = vpop.permute.xlu0 %5206  ;;  %v5479_v5 = vand.u32 %v9749_v21, %v5477_v14  ;;  %v9756_v21 = vld [vmem:[%s15740_s3 + $0x98] sm:$0xf]  ;;  %v9755_v14 = vld [vmem:[%s15740_s3 + $0x90] sm:$0xff] }
 0xfaf   : > { %10272 = vmatpush3.bf16.msra.mxu0 %v5207_v10  ;;  %v5219_v22 = vsel %vm15863_vm7, %v5205_v35, %v5207_v10  ;;  %vm5472_vm7 = vcmask 580608  }
 0xfb0   : > { %5301 = vmatprep.subr.bf16.mxu1 %v5219_v22  ;;  %10029 = vmatprep.subr.bf16.mxu0 %v13936_v58 }
 0xfb1   : > { %5302 = vmatpush1.bf16.msra.mxu1 %v5218_v63 }
 0xfb2   : > { %10274 = vmatmul.mubr.msk.bf16.vlgmr.msra.gmra.mrb[60].mxu0 %vm15873_vm12, %v10881_v37  ;;  %10277 = vmatprep.subr.bf16.mxu1 %v15808_v43  ;;  %vm15877_vm12 = vmmov %vm15876_vm9 }
 0xfb3   : > { %10030 = vmatpush3.bf16.msra.mxu0 %v13944_v28 }
 0xfb4   : > { %9746 = vmatmul.mubr.msk.bf16.vlgmr.msra.gmra.mrb[68].mxu1 %vm15874_vm15, %v10881_v37  ;;  %10031 = vmatprep.subr.bf16.mxu0 %v11181_v29  ;;  %vm15881_vm15 = vcmask 990208  }
 0xfb5   : > { %10278 = vmatpush3.bf16.msra.mxu1 %v13944_v28  ;;  %10287 = vmatprep.mubr.msk.bf16.mxu1 %vm11257_vm10, %v15808_v43 }
 0xfb6   : > { %10279 = vmatprep.subr.bf16.mxu1 %v15808_v43 }
 0xfb7   : > { %10032 = vmatpush3.bf16.msra.mxu0 %v13443_v7 }
 0xfb8   : > { %10033 = vmatprep.subr.bf16.mxu0 %v11182_v23 }
 0xfb9   : > { %10280 = vmatpush3.bf16.msra.mxu1 %v13443_v7 }
 0xfba   : > { %10281 = vmatprep.subr.bf16.mxu1 %v15808_v43 }
 0xfbb   : > { %10034 = vmatpush3.bf16.msra.mxu0 %v13964_v60 }
 0xfbc   : > { %10035 = vmatprep.subr.bf16.mxu0 %v11184_v40  ;;  %v5530_v36 = vpop.permute.xlu1 %5529 }
 0xfbd   : > { %10282 = vmatpush3.bf16.msra.mxu1 %v13964_v60 }
 0xfbe   : > { %10283 = vmatprep.subr.bf16.mxu1 %v15808_v43 }
 0xfbf   : > { %10036 = vmatpush3.bf16.msra.mxu0 %v13975_v42  ;;  %v5525_v39 = vpop.permute.xlu0 %5524 }
 0xfc0   : > { %10037 = vmatprep.subr.bf16.mxu0 %v13487_v20  ;;  %v11188_v20 = vld [vmem:[%s15743_s6 + $0x70] sm:$0xff]  }
 0xfc1   : > { %10284 = vmatpush3.bf16.msra.mxu1 %v13975_v42 }
 0xfc2   : > { %10285 = vmatprep.subr.bf16.mxu1 %v15808_v43 }
 0xfc3   : > { %10038 = vmatpush3.bf16.msra.mxu0 %v13502_v41 }
 0xfc4   : > { %10039 = vmatprep.subr.bf16.mxu0 %v11186_v45 }
 0xfc5   : > { %10286 = vmatpush3.bf16.msra.mxu1 %v5479_v5 }
 0xfc7   : > { %10040 = vmatpush3.bf16.msra.mxu0 %v13988_v24 }
 0xfc8   : > { %10041 = vmatprep.subr.bf16.mxu0 %v11188_v20 }
 0xfcb   : > { %10042 = vmatpush3.bf16.msra.mxu0 %v13997_v57 }
 0xfcc   : > { %10043 = vmatprep.subr.bf16.mxu0 %v13544_v53 }
 0xfcf   : > { %10044 = vmatpush3.bf16.msra.mxu0 %v14004_v54 }
0x107a   : > { %v10020_v53 = vpop.f32.mrb[56].mxu0 }
0x107b   : > { %v10021_v11 = vpop.f32.mrb[57].mxu0 }
0x107c   : > { %v10022_v17 = vadd.f32 %v10021_v11, %v10020_v53  ;;  %v10023_v38 = vpop.f32.mrb[58].mxu0 }
0x107d   : > { %v10024_v47 = vpop.f32.mrb[59].mxu0 }
0x107e   : > { %v10025_v16 = vadd.f32 %v10024_v47, %v10023_v38 }
0x1085   : > { %v5417_v61 = vpop.f32.mrb[60].mxu0 }
0x1086   : > { %v5418_v62 = vadd.f32 %v10022_v17, %v5417_v61  ;;  %v10275_v18 = vpop.f32.mrb[61].mxu0 }
0x1087   : > { %v5333_v31 = vpop.f32.mrb[68].mxu1  ;;  %v5420_v30 = vpop.f32.mrb[62].mxu0 }
0x1088   : > { %v5421_v0 = vadd.f32 %v10025_v16, %v5420_v30  ;;  %v5335_v2 = vpop.f32.mrb[69].mxu1  ;;  %v10276_v46 = vpop.f32.mrb[63].mxu0  ;;  %v10883_v30 = vld [vmem:[%s15739_s2 + $0x30] sm:$0x3f]  }
0x1089   : > { %v5337_v32 = vpop.f32.mrb[70].mxu1 }
0x108a   : > { %v5426_v59 = vpack.c.bf16 %v5421_v0, %v5418_v62  ;;  %v5424_v49 = vpack.c.bf16 %v5337_v32, %v5333_v31  ;;  %v5339_v12 = vpop.f32.mrb[71].mxu1 }
0x108b   : > { %v5425_v33 = vpack.c.bf16 %v5339_v12, %v5335_v2 }
0x108c   : > { %10288 = vmatmul.mubr.msk.bf16.vlgmr.msra.gmra.mrb[72].mxu1 %vm5472_vm7, %v5426_v59 }
0x108d   : > { %9748 = vmatprep.mubr.msk.bf16.mxu0 %vm651_vm1, %v5425_v33 }
0x108e   : > { %5463 = vmatmul.mubr.bf16.vlgmr.msra.gmra.mrb[64].mxu0 %v5424_v49 }
0x108f   : > { %5650 = vmatprep.mubr.bf16.mxu0 %v11239_v50 }
0x115f   : > { %v5515_v15 = vpop.f32.mrb[72].mxu1 }
0x1160   : > { %v5533_v27 = vadd.f32 %v5525_v39, %v5515_v15  ;;  %v10289_v44 = vpop.f32.mrb[73].mxu1 }
0x1161   : > { %v10045_v34 = vpop.f32.mrb[64].mxu0  ;;  %v5518_v9 = vpop.f32.mrb[74].mxu1 }
0x1162   : > { %v5537_v6 = vmul.f32 0.3, %v5533_v27  ;;  %v5535_v4 = vadd.f32 %v5530_v36, %v5518_v9  ;;  %v10046_v25 = vpop.f32.mrb[65].mxu0  ;;  %v10290_v56 = vpop.f32.mrb[75].mxu1 }
0x1163   : > { %v10047_v1 = vadd.f32 %v10046_v25, %v10045_v34  ;;  %v10048_v8 = vpop.f32.mrb[66].mxu0 }
0x1164   : > { %v5539_v19 = vmul.f32 0.3, %v5535_v4  ;;  %v10049_v35 = vpop.f32.mrb[67].mxu0  ;;  %v5541_v26 = vmax.f32 %v5533_v27, %v5537_v6 }
0x1165   : > { %v5532_v55 = vadd.f32 %v10047_v1, %v5525_v39  ;;  %v10050_v13 = vadd.f32 %v10049_v35, %v10048_v8 }
0x1166   : > { %v5543_v51 = vmax.f32 %v5535_v4, %v5539_v19 }
0x1167   : > { %v5536_v10 = vmul.f32 0.3, %v5532_v55  ;;  %v5534_v37 = vadd.f32 %v10050_v13, %v5530_v36  ;;  %v9757_v13 = vld [vmem:[%s15740_s3 + $0xa0] sm:$0xff] }
0x1168   : > { %v5565_v22 = vpack.c.bf16 %v5543_v51, %v5541_v26  ;;  %v9758_v26 = vld [vmem:[%s15740_s3 + $0xa8] sm:$0xf] }
0x1169   : > { %v5538_v63 = vmul.f32 0.3, %v5534_v37  ;;  %v5540_v23 = vmax.f32 %v5532_v55, %v5536_v10 }
0x116a   : > { %v5569_v29 = vrot.slane %v5565_v22, 2  ;;  %v5576_v20 = vrot.slane %v5565_v22, 4 }
0x116b   : > { %v5542_v40 = vmax.f32 %v5534_v37, %v5538_v63 }
0x116c   : > { %5572 = vrot.lane.b32.xlu1 %v5569_v29, %s15833_s28 }
0x116d   : > { %v5564_v45 = vpack.c.bf16 %v5542_v40, %v5540_v23 }
0x116f   : > { %v5568_v48 = vrot.slane %v5564_v45, 2  ;;  %v5575_v52 = vrot.slane %v5564_v45, 4 }
0x1170   : > { %5579 = vrot.lane.b32.xlu1 %v5576_v20, %s15827_s29 }
0x1171   : > { %5570 = vrot.lane.b32.xlu0 %v5568_v48, %s15833_s28 }
0x1174   : > { %5603 = vperm.xlu1 %10811, %v9756_v21   ;;  %v10884_v21 = vld [vmem:[%s15739_s2 + $0x38] sm:$0x3f]  }
0x1175   : > { %5577 = vrot.lane.b32.xlu0 %v5575_v52, %s15827_s29 }
0x1179   : > { %5598 = vperm.xlu0 %10810, %v9755_v14  }
0x11de   : > { %v5573_v5 = vpop.permute.xlu1 %5572 }
0x11df   : > { %v5588_v53 = vsel %vm657_vm0, %v5565_v22, %v5573_v5 }
0x11e0   : > { %5618 = vmatprep.subr.bf16.mxu0 %v5588_v53 }
0x11e2   : > { %v5580_v11 = vpop.permute.xlu1 %5579 }
0x11e3   : > { %v5571_v17 = vpop.permute.xlu0 %5570  ;;  %v5594_v16 = vsel %vm682_vm2, %v5573_v5, %v5580_v11 }
0x11e4   : > { %v5574_v38 = vsel %vm651_vm1, %v5571_v17, %v5573_v5 }
0x11e5   : > { %v5584_v47 = vsel %vm657_vm0, %v5564_v45, %v5574_v38 }
0x11e6   : > { %5619 = vmatpush1.bf16.msra.mxu0 %v5584_v47 }
0x11e7   : > { %v5578_v61 = vpop.permute.xlu0 %5577  ;;  %5620 = vmatprep.subr.bf16.mxu0 %v5594_v16 }
0x11e8   : > { %v5581_v62 = vsel %vm1771_vm5, %v5578_v61, %v5580_v11 }
0x11e9   : > { %v5591_v18 = vsel %vm682_vm2, %v5574_v38, %v5581_v62  ;;  %v5614_v31 = vsel %vm808_vm3, %v5581_v62, 0 }
0x11ea   : > { %5621 = vmatpush1.bf16.msra.mxu0 %v5591_v18 }
0x11eb   : > { %9766 = vmatprep.subr.msk.bf16.mxu0 %vm808_vm3, %v5580_v11 }
0x11ee   : > { %5623 = vmatpush1.bf16.msra.mxu0 %v5614_v31 }
0x11f1   : > { %9767 = vmatmul.mubr.msk.bf16.vlgmr.msra.gmra.mrb[68].mxu0 %vm15876_vm9, %v10883_v30 }
0x11f2   : > { %5755 = vmatprep.mubr.bf16.mxu0 %v11239_v50 }
0x11f3   : > { %v5604_v59 = vpop.permute.xlu1 %5603 }
0x11f8   : > { %v5599_v0 = vpop.permute.xlu0 %5598 }
0x12c4   : > { %v5652_v2 = vpop.f32.mrb[68].mxu0 }
0x12c5   : > { %v5653_v46 = vadd.f32 %v5652_v2, %v5599_v0  ;;  %v5654_v32 = vpop.f32.mrb[69].mxu0 }
0x12c6   : > { %v5655_v49 = vadd.f32 %v5654_v32, %v5599_v0  ;;  %v5656_v12 = vpop.f32.mrb[70].mxu0 }
0x12c7   : > { %v5661_v33 = vmul.f32 0.3, %v5653_v46  ;;  %v5657_v39 = vadd.f32 %v5656_v12, %v5604_v59  ;;  %v5658_v15 = vpop.f32.mrb[71].mxu0 }
0x12c8   : > { %v5662_v36 = vmul.f32 0.3, %v5655_v49  ;;  %v5659_v27 = vadd.f32 %v5658_v15, %v5604_v59 }
0x12c9   : > { %v5663_v44 = vmul.f32 0.3, %v5657_v39  ;;  %v5665_v9 = vmax.f32 %v5653_v46, %v5661_v33 }
0x12ca   : > { %v5664_v34 = vmul.f32 0.3, %v5659_v27  ;;  %v5666_v4 = vmax.f32 %v5655_v49, %v5662_v36 }
0x12cb   : > { %v5667_v6 = vmax.f32 %v5657_v39, %v5663_v44  ;;  %v10887_v44 = vld [vmem:[%s15741_s4 + $0x4c] ss:$12 sps:$4 sm:$0x3f]  }
0x12cc   : > { %v5668_v25 = vmax.f32 %v5659_v27, %v5664_v34  ;;  %6043 = vmatprep.mubr.bf16.mxu1 %v10887_v44 }
0x12cd   : > { %v5669_v56 = vpack.c.bf16 %v5667_v6, %v5665_v9 }
0x12ce   : > { %v5670_v1 = vpack.c.bf16 %v5668_v25, %v5666_v4 }
0x12cf   : > { %v5673_v8 = vrot.slane %v5669_v56, 2  ;;  %v5680_v35 = vrot.slane %v5669_v56, 4 }
0x12d0   : > { %v5674_v19 = vrot.slane %v5670_v1, 2  ;;  %v5681_v55 = vrot.slane %v5670_v1, 4 }
0x12d1   : > { %5675 = vrot.lane.b32.xlu0 %v5673_v8, %s15833_s28 }
0x12d2   : > { %5677 = vrot.lane.b32.xlu1 %v5674_v19, %s15833_s28 }
0x12d5   : > { %5682 = vrot.lane.b32.xlu0 %v5680_v35, %s15827_s29 }
0x12d6   : > { %5684 = vrot.lane.b32.xlu1 %v5681_v55, %s15827_s29 }
0x12d9   : > { %5703 = vperm.xlu0 %10810, %v9757_v13  }
0x12da   : > { %5708 = vperm.xlu1 %10811, %v9758_v26  }
0x1343   : > { %v5676_v51 = vpop.permute.xlu0 %5675 }
0x1344   : > { %v5678_v10 = vpop.permute.xlu1 %5677 }
0x1345   : > { %v5693_v37 = vsel %vm657_vm0, %v5670_v1, %v5678_v10  ;;  %v5679_v22 = vsel %vm651_vm1, %v5676_v51, %v5678_v10 }
0x1346   : > { %5723 = vmatprep.subr.bf16.mxu0 %v5693_v37  ;;  %v5689_v63 = vsel %vm657_vm0, %v5669_v56, %v5679_v22 }
0x1347   : > { %5724 = vmatpush1.bf16.msra.mxu0 %v5689_v63  ;;  %v5683_v29 = vpop.permute.xlu0 %5682 }
0x1348   : > { %v5685_v23 = vpop.permute.xlu1 %5684 }
0x1349   : > { %v5699_v40 = vsel %vm682_vm2, %v5678_v10, %v5685_v23  ;;  %v5686_v45 = vsel %vm1771_vm5, %v5683_v29, %v5685_v23 }
0x134a   : > { %5725 = vmatprep.subr.bf16.mxu0 %v5699_v40  ;;  %v5696_v20 = vsel %vm682_vm2, %v5679_v22, %v5686_v45  ;;  %v5719_v48 = vsel %vm808_vm3, %v5686_v45, 0 }
0x134b   : > { %5726 = vmatpush1.bf16.msra.mxu0 %v5696_v20 }
0x134c   : > { %9769 = vmatprep.subr.msk.bf16.mxu0 %vm808_vm3, %v5685_v23 }
0x134f   : > { %5728 = vmatpush1.bf16.msra.mxu0 %v5719_v48 }
0x1350   : > { %6119 = vmatprep.subr.bf16.mxu0 %v11239_v50 }
0x1352   : > { %9770 = vmatmul.mubr.msk.bf16.vlgmr.msra.gmra.mrb[72].mxu0 %vm15877_vm12, %v10884_v21 }
0x1353   : > { %6120 = vmatpush1.bf16.msra.mxu0 %v13944_v28 }
0x1354   : > { %6121 = vmatprep.subr.bf16.mxu0 %v11239_v50 }
0x1357   : > { %6122 = vmatpush1.bf16.msra.mxu0 %v13443_v7 }
0x1358   : > { %6123 = vmatprep.subr.bf16.mxu0 %v11239_v50  ;;  %v5704_v7 = vpop.permute.xlu0 %5703 }
0x1359   : > { %v5709_v52 = vpop.permute.xlu1 %5708 }
0x135b   : > { %6124 = vmatpush1.bf16.msra.mxu0 %v13964_v60 }
0x135c   : > { %6125 = vmatprep.subr.bf16.mxu0 %v11239_v50 }
0x135f   : > { %6126 = vmatpush1.bf16.msra.mxu0 %v13975_v42 }
0x1360   : > { %6127 = vmatprep.subr.bf16.mxu0 %v11239_v50 }
0x1363   : > { %6128 = vmatpush1.bf16.msra.mxu0 %v13502_v41 }
0x1364   : > { %6129 = vmatprep.subr.bf16.mxu0 %v11239_v50 }
0x1367   : > { %6130 = vmatpush1.bf16.msra.mxu0 %v13988_v24 }
0x1368   : > { %6131 = vmatprep.subr.bf16.mxu0 %v11239_v50 }
0x136b   : > { %6132 = vmatpush1.bf16.msra.mxu0 %v13997_v57 }
0x136c   : > { %6133 = vmatprep.subr.bf16.mxu0 %v11239_v50 }
0x136f   : > { %6134 = vmatpush1.bf16.msra.mxu0 %v14004_v54 }
0x1370   : > { %6135 = vmatprep.subr.bf16.mxu0 %v11239_v50 }
0x1425   : > { %v5757_v28 = vpop.f32.mrb[72].mxu0 }
0x1426   : > { %v5758_v60 = vadd.f32 %v5757_v28, %v5704_v7  ;;  %v5759_v42 = vpop.f32.mrb[73].mxu0  ;;  %v9760_v28 = vld [vmem:[%s15740_s3 + $0xb8] sm:$0xf] }
0x1427   : > { %v5760_v41 = vadd.f32 %v5759_v42, %v5704_v7  ;;  %v5761_v14 = vpop.f32.mrb[74].mxu0  ;;  %v9759_v42 = vld [vmem:[%s15740_s3 + $0xb0] sm:$0xff] }
0x1428   : > { %v5766_v5 = vmul.f32 0.3, %v5758_v60  ;;  %v5762_v53 = vadd.f32 %v5761_v14, %v5709_v52  ;;  %v5763_v24 = vpop.f32.mrb[75].mxu0 }
0x1429   : > { %v5767_v11 = vmul.f32 0.3, %v5760_v41  ;;  %v5764_v17 = vadd.f32 %v5763_v24, %v5709_v52 }
0x142a   : > { %v5768_v38 = vmul.f32 0.3, %v5762_v53  ;;  %v5770_v47 = vmax.f32 %v5758_v60, %v5766_v5 }
0x142b   : > { %v5769_v57 = vmul.f32 0.3, %v5764_v17  ;;  %v5771_v61 = vmax.f32 %v5760_v41, %v5767_v11 }
0x142c   : > { %v5772_v16 = vmax.f32 %v5762_v53, %v5768_v38 }
0x142d   : > { %v5773_v54 = vmax.f32 %v5764_v17, %v5769_v57 }
0x142e   : > { %v5774_v62 = vpack.c.bf16 %v5772_v16, %v5770_v47 }
0x142f   : > { %v5775_v18 = vpack.c.bf16 %v5773_v54, %v5771_v61 }
0x1430   : > { %5799 = vrot.lane.b32.xlu0 %v5774_v62, %s15832_s0  ;;  %v5778_v31 = vrot.slane %v5774_v62, 2  ;;  %v5785_v0 = vrot.slane %v5774_v62, 4  ;;  %v5792_v46 = vrot.slane %v5774_v62, 6 }
0x1431   : > { %5801 = vrot.lane.b32.xlu1 %v5775_v18, %s15832_s0  ;;  %v5779_v30 = vrot.slane %v5775_v18, 2  ;;  %v5786_v2 = vrot.slane %v5775_v18, 4  ;;  %v5793_v32 = vrot.slane %v5775_v18, 6 }
0x1434   : > { %5780 = vrot.lane.b32.xlu0 %v5778_v31, %s15833_s28 }
0x1435   : > { %5782 = vrot.lane.b32.xlu1 %v5779_v30, %s15833_s28 }
0x1438   : > { %5787 = vrot.lane.b32.xlu0 %v5785_v0, %s15827_s29 }
0x1439   : > { %5789 = vrot.lane.b32.xlu1 %v5786_v2, %s15827_s29 }
0x143c   : > { %5794 = vrot.lane.b32.xlu0 %v5792_v46, %s15850_s11 }
0x143d   : > { %5796 = vrot.lane.b32.xlu1 %v5793_v32, %s15850_s11 }
0x1440   : > { %5804 = vrot.lane.b32.xlu0 %v5778_v31, %s15828_s26 }
0x1441   : > { %5806 = vrot.lane.b32.xlu1 %v5779_v30, %s15828_s26 }
0x1444   : > { %5809 = vrot.lane.b32.xlu0 %v5785_v0, %s15851_s13 }
0x1445   : > { %5811 = vrot.lane.b32.xlu1 %v5786_v2, %s15851_s13 }
0x1448   : > { %5814 = vrot.lane.b32.xlu0 %v5792_v46, %s15831_s25 }
0x1449   : > { %5816 = vrot.lane.b32.xlu1 %v5793_v32, %s15831_s25 }
0x144c   : > { %5819 = vrot.lane.b32.xlu0 %v5774_v62, %s15825_s17 }
0x144d   : > { %5821 = vrot.lane.b32.xlu1 %v5775_v18, %s15825_s17 }
0x1450   : > { %5824 = vrot.lane.b32.xlu0 %v5778_v31, %s15838_s27 }
0x1451   : > { %5841 = vrot.lane.b32.xlu1 %v5775_v18, %s15826_s23 }
0x1454   : > { %5829 = vrot.lane.b32.xlu0 %v5785_v0, %s15829_s18 }
0x1455   : > { %5826 = vrot.lane.b32.xlu1 %v5779_v30, %s15838_s27 }
0x1458   : > { %5834 = vrot.lane.b32.xlu0 %v5792_v46, %s15839_s1 }
0x1459   : > { %5831 = vrot.lane.b32.xlu1 %v5786_v2, %s15829_s18 }
0x145c   : > { %5839 = vrot.lane.b32.xlu0 %v5774_v62, %s15826_s23 }
0x145d   : > { %5836 = vrot.lane.b32.xlu1 %v5793_v32, %s15839_s1 }
0x1460   : > { %5844 = vrot.lane.b32.xlu0 %v5778_v31, %s15834_s30 }
0x1461   : > { %5846 = vrot.lane.b32.xlu1 %v5779_v30, %s15834_s30 }
0x1464   : > { %5849 = vrot.lane.b32.xlu0 %v5785_v0, %s15830_s24 }
0x1465   : > { %5851 = vrot.lane.b32.xlu1 %v5786_v2, %s15830_s24 }
0x1468   : > { %5854 = vrot.lane.b32.xlu0 %v5792_v46, %s15835_s20 }
0x1469   : > { %5856 = vrot.lane.b32.xlu1 %v5793_v32, %s15835_s20 }
0x14a2   : > { %v5800_v59 = vpop.permute.xlu0 %5799 }
0x14a3   : > { %v5802_v49 = vpop.permute.xlu1 %5801 }
0x14a6   : > { %v5781_v12 = vpop.permute.xlu0 %5780 }
0x14a7   : > { %v5783_v33 = vpop.permute.xlu1 %5782 }
0x14a8   : > { %v5865_v39 = vsel %vm657_vm0, %v5775_v18, %v5783_v33  ;;  %v5784_v15 = vsel %vm651_vm1, %v5781_v12, %v5783_v33  ;;  %vm15878_vm1 = vcmask 1014784  }
0x14a9   : > { %5953 = vrot.lane.b32.xlu1 %v5865_v39, %s15852_s14  ;;  %6011 = vmatprep.subr.bf16.mxu1 %v5865_v39  ;;  %v5861_v36 = vsel %vm657_vm0, %v5774_v62, %v5784_v15  ;;  %v5803_v13 = vsel %vm15878_vm1, %v5800_v59, %v5802_v49 }
0x14aa   : > { %5951 = vrot.lane.b32.xlu0 %v5861_v36, %s15852_s14  ;;  %6012 = vmatpush1.bf16.msra.mxu1 %v5861_v36  ;;  %v5788_v27 = vpop.permute.xlu0 %5787 }
0x14ab   : > { %v5790_v34 = vpop.permute.xlu1 %5789 }
0x14ac   : > { %v5871_v9 = vsel %vm682_vm2, %v5783_v33, %v5790_v34  ;;  %v5791_v6 = vsel %vm1771_vm5, %v5788_v27, %v5790_v34  ;;  %vm15879_vm5 = vcmask 1006592  }
0x14ad   : > { %5957 = vrot.lane.b32.xlu1 %v5871_v9, %s15852_s14  ;;  %6013 = vmatprep.subr.bf16.mxu1 %v5871_v9  ;;  %v5868_v4 = vsel %vm682_vm2, %v5784_v15, %v5791_v6 }
0x14ae   : > { %5955 = vrot.lane.b32.xlu0 %v5868_v4, %s15852_s14  ;;  %6014 = vmatpush1.bf16.msra.mxu1 %v5868_v4  ;;  %v5795_v25 = vpop.permute.xlu0 %5794 }
0x14af   : > { %v5797_v56 = vpop.permute.xlu1 %5796 }
0x14b0   : > { %v5798_v1 = vsel %vm1806_vm6, %v5795_v25, %v5797_v56  ;;  %v5877_v8 = vsel %vm808_vm3, %v5790_v34, %v5797_v56  ;;  %vm15880_vm6 = vcmask 998400  }
0x14b1   : > { %5961 = vrot.lane.b32.xlu1 %v5877_v8, %s15852_s14  ;;  %6015 = vmatprep.subr.bf16.mxu1 %v5877_v8  ;;  %v5874_v19 = vsel %vm808_vm3, %v5791_v6, %v5798_v1 }
0x14b2   : > { %5959 = vrot.lane.b32.xlu0 %v5874_v19, %s15852_s14  ;;  %6016 = vmatpush1.bf16.msra.mxu1 %v5874_v19  ;;  %v5805_v35 = vpop.permute.xlu0 %5804 }
0x14b3   : > { %v5807_v55 = vpop.permute.xlu1 %5806 }
0x14b4   : > { %v5885_v26 = vsel %vm657_vm0, %v5802_v49, %v5807_v55  ;;  %v5808_v51 = vsel %vm15879_vm5, %v5805_v35, %v5807_v55 }
0x14b5   : > { %5965 = vrot.lane.b32.xlu1 %v5885_v26, %s15852_s14  ;;  %6017 = vmatprep.subr.bf16.mxu1 %v5885_v26  ;;  %v5881_v10 = vsel %vm657_vm0, %v5803_v13, %v5808_v51 }
0x14b6   : > { %5963 = vrot.lane.b32.xlu0 %v5881_v10, %s15852_s14  ;;  %6018 = vmatpush1.bf16.msra.mxu1 %v5881_v10  ;;  %v5810_v37 = vpop.permute.xlu0 %5809 }
0x14b7   : > { %v5812_v22 = vpop.permute.xlu1 %5811 }
0x14b8   : > { %v5891_v63 = vsel %vm682_vm2, %v5807_v55, %v5812_v22  ;;  %v5813_v29 = vsel %vm15880_vm6, %v5810_v37, %v5812_v22  ;;  %v10885_v37 = vld [vmem:[%s15741_s4 + $0x48] ss:$12 sps:$4 sm:$0x3f]   ;;  %vm15892_vm6 = vcmask 261120  }
0x14b9   : > { %5969 = vrot.lane.b32.xlu1 %v5891_v63, %s15852_s14  ;;  %6019 = vmatprep.subr.bf16.mxu1 %v5891_v63  ;;  %v5888_v23 = vsel %vm682_vm2, %v5808_v51, %v5813_v29 }
0x14ba   : > { %5967 = vrot.lane.b32.xlu0 %v5888_v23, %s15852_s14  ;;  %6020 = vmatpush1.bf16.msra.mxu1 %v5888_v23  ;;  %v5815_v40 = vpop.permute.xlu0 %5814 }
0x14bb   : > { %v5817_v45 = vpop.permute.xlu1 %5816 }
0x14bc   : > { %v5818_v20 = vsel %vm15881_vm15, %v5815_v40, %v5817_v45  ;;  %v5897_v48 = vsel %vm808_vm3, %v5812_v22, %v5817_v45  ;;  %vm6113_vm15 = vcmask 1044480  }
0x14bd   : > { %5973 = vrot.lane.b32.xlu1 %v5897_v48, %s15852_s14  ;;  %6021 = vmatprep.subr.bf16.mxu1 %v5897_v48  ;;  %v5894_v21 = vsel %vm808_vm3, %v5813_v29, %v5818_v20  ;;  %v10888_v20 = vld [vmem:[%s15741_s4 + $0x50] ss:$12 sps:$4 sm:$0x3f]   ;;  %v6114_v48 = vsel %vm682_vm2, 4294967295, %v11255_v3 }
0x14be   : > { %5971 = vrot.lane.b32.xlu0 %v5894_v21, %s15852_s14  ;;  %6022 = vmatpush1.bf16.msra.mxu1 %v5894_v21  ;;  %v5820_v7 = vpop.permute.xlu0 %5819  ;;  %v6115_v21 = vsel %vm6113_vm15, %v6114_v48, 0  ;;  %vm7070_vm15 = vcmask 31744  }
0x14bf   : > { %v5822_v60 = vpop.permute.xlu1 %5821 }
0x14c0   : > { %v5823_v53 = vsel %vm2317_vm11, %v5820_v7, %v5822_v60  ;;  %vm15882_vm11 = vcmask 957440   ;;  %v6117_v7 = vand.u32 %v13936_v58, %v6115_v21 }
0x14c1   : > { %6106 = vperm.xlu1 %10811, %v9760_v28  }
0x14c2   : > { %6101 = vperm.xlu0 %10810, %v9759_v42   ;;  %v5825_v52 = vpop.permute.xlu0 %5824  ;;  %6136 = vmatpush1.bf16.msra.mxu0 %v6117_v7 }
0x14c3   : > { %v5842_v41 = vpop.permute.xlu1 %5841  ;;  %10291 = vmatprep.subr.bf16.mxu0 %v15808_v43 }
0x14c6   : > { %v5830_v14 = vpop.permute.xlu0 %5829 }
0x14c7   : > { %v5827_v5 = vpop.permute.xlu1 %5826 }
0x14c8   : > { %v5905_v24 = vsel %vm657_vm0, %v5822_v60, %v5827_v5  ;;  %v5828_v11 = vsel %vm3459_vm13, %v5825_v52, %v5827_v5  ;;  %vm15883_vm13 = vcmask 949248  }
0x14c9   : > { %6023 = vmatprep.subr.bf16.mxu1 %v5905_v24  ;;  %v5901_v17 = vsel %vm657_vm0, %v5823_v53, %v5828_v11 }
0x14ca   : > { %6024 = vmatpush1.bf16.msra.mxu1 %v5901_v17  ;;  %v5835_v38 = vpop.permute.xlu0 %5834 }
0x14cb   : > { %v5832_v57 = vpop.permute.xlu1 %5831 }
0x14cc   : > { %v5911_v47 = vsel %vm682_vm2, %v5827_v5, %v5832_v57  ;;  %v5833_v16 = vsel %vm3477_vm14, %v5830_v14, %v5832_v57  ;;  %vm15884_vm14 = vcmask 932864  }
0x14cd   : > { %6025 = vmatprep.subr.bf16.mxu1 %v5911_v47  ;;  %v5908_v61 = vsel %vm682_vm2, %v5828_v11, %v5833_v16 }
0x14ce   : > { %6026 = vmatpush1.bf16.msra.mxu1 %v5908_v61  ;;  %v5840_v54 = vpop.permute.xlu0 %5839 }
0x14cf   : > { %v5837_v62 = vpop.permute.xlu1 %5836  ;;  %v5843_v46 = vsel %vm15883_vm13, %v5840_v54, %v5842_v41  ;;  %vm15893_vm13 = vcmask 293888  }
0x14d0   : > { %v5838_v18 = vsel %vm15882_vm11, %v5835_v38, %v5837_v62  ;;  %v5917_v31 = vsel %vm808_vm3, %v5832_v57, %v5837_v62  ;;  %vm6109_vm11 = vcmask 72704  }
0x14d1   : > { %6027 = vmatprep.subr.bf16.mxu1 %v5917_v31  ;;  %v5914_v30 = vsel %vm808_vm3, %v5833_v16, %v5838_v18  ;;  %v9781_v31 = vld [vmem:[%s15740_s3 + $0xc8] sm:$0xf] }
0x14d2   : > { %6028 = vmatpush1.bf16.msra.mxu1 %v5914_v30  ;;  %v5845_v0 = vpop.permute.xlu0 %5844  ;;  %v9780_v30 = vld [vmem:[%s15740_s3 + $0xc0] sm:$0xff] }
0x14d3   : > { %v5847_v2 = vpop.permute.xlu1 %5846 }
0x14d4   : > { %v5925_v32 = vsel %vm657_vm0, %v5842_v41, %v5847_v2  ;;  %v5848_v59 = vsel %vm3531_vm4, %v5845_v0, %v5847_v2  ;;  %vm15886_vm4 = vcmask 916480  }
0x14d5   : > { %6029 = vmatprep.subr.bf16.mxu1 %v5925_v32  ;;  %v5921_v49 = vsel %vm657_vm0, %v5843_v46, %v5848_v59  ;;  %vm15887_vm7 = vmmov %vm15886_vm4 }
0x14d6   : > { %6030 = vmatpush1.bf16.msra.mxu1 %v5921_v49  ;;  %v5850_v12 = vpop.permute.xlu0 %5849  ;;  %vm15888_vm9 = vmmov %vm15886_vm4  ;;  %v10889_v49 = vld [vmem:[%s15739_s2 + $0x40] sm:$0x3f]  }
0x14d7   : > { %v5852_v33 = vpop.permute.xlu1 %5851  ;;  %vm15889_vm12 = vmmov %vm15886_vm4 }
0x14d8   : > { %v5931_v39 = vsel %vm682_vm2, %v5847_v2, %v5852_v33  ;;  %v5853_v15 = vsel %vm15884_vm14, %v5850_v12, %v5852_v33  ;;  %vm15890_vm1 = vmmov %vm15886_vm4 }
0x14d9   : > { %6031 = vmatprep.subr.bf16.mxu1 %v5931_v39  ;;  %v5928_v36 = vsel %vm682_vm2, %v5848_v59, %v5853_v15  ;;  %vm15891_vm5 = vmmov %vm15890_vm1 }
0x14da   : > { %6032 = vmatpush1.bf16.msra.mxu1 %v5928_v36  ;;  %v5855_v27 = vpop.permute.xlu0 %5854  ;;  %vm15894_vm14 = vmmov %vm15893_vm13 }
0x14db   : > { %v5857_v44 = vpop.permute.xlu1 %5856 }
0x14dc   : > { %v5858_v34 = vsel %vm15885_vm8, %v5855_v27, %v5857_v44  ;;  %v5937_v9 = vsel %vm808_vm3, %v5852_v33, %v5857_v44  ;;  %vm6668_vm8 = vcmask 138240  }
0x14dd   : > { %6033 = vmatprep.subr.bf16.mxu1 %v5937_v9  ;;  %v5934_v6 = vsel %vm808_vm3, %v5853_v15, %v5858_v34 }
0x14de   : > { %6034 = vmatpush1.bf16.msra.mxu1 %v5934_v6 }
0x151b   : > { %v5954_v4 = vpop.permute.xlu1 %5953 }
0x151c   : > { %6035 = vmatprep.subr.bf16.mxu1 %v5954_v4  ;;  %v5952_v25 = vpop.permute.xlu0 %5951 }
0x151d   : > { %v5975_v56 = vsel %vm15886_vm4, %v5952_v25, %v5954_v4  ;;  %vm7135_vm4 = vcmask 195584  }
0x151e   : > { %6036 = vmatpush1.bf16.msra.mxu1 %v5975_v56 }
0x151f   : > { %v5958_v1 = vpop.permute.xlu1 %5957 }
0x1520   : > { %6037 = vmatprep.subr.bf16.mxu1 %v5958_v1  ;;  %v5956_v8 = vpop.permute.xlu0 %5955 }
0x1521   : > { %v5976_v19 = vsel %vm15887_vm7, %v5956_v8, %v5958_v1  ;;  %vm11260_vm7 = vmmov 1  }
0x1522   : > { %6038 = vmatpush1.bf16.msra.mxu1 %v5976_v19  ;;  %v9783_v19 = vld [vmem:[%s15740_s3 + $0xd8] sm:$0xf] }
0x1523   : > { %v5962_v35 = vpop.permute.xlu1 %5961 }
0x1524   : > { %6039 = vmatprep.subr.bf16.mxu1 %v5962_v35  ;;  %v5960_v55 = vpop.permute.xlu0 %5959 }
0x1525   : > { %v5977_v13 = vsel %vm15888_vm9, %v5960_v55, %v5962_v35  ;;  %v9782_v35 = vld [vmem:[%s15740_s3 + $0xd0] sm:$0xff]  ;;  %vm10690_vm9 = vmpackc.low %vm682_vm2, %vm11260_vm7 }
0x1526   : > { %6040 = vmatpush1.bf16.msra.mxu1 %v5977_v13 }
0x1527   : > { %v5966_v26 = vpop.permute.xlu1 %5965 }
0x1528   : > { %6041 = vmatprep.subr.bf16.mxu1 %v5966_v26  ;;  %v5964_v51 = vpop.permute.xlu0 %5963 }
0x1529   : > { %v5978_v10 = vsel %vm15889_vm12, %v5964_v51, %v5966_v26  ;;  %vm6786_vm12 = vcmask 97280  }
0x152a   : > { %6042 = vmatpush1.bf16.msra.mxu1 %v5978_v10 }
0x152b   : > { %v5970_v22 = vpop.permute.xlu1 %5969 }
0x152c   : > { %6054 = vmatprep.subr.bf16.mxu1 %v5970_v22  ;;  %v5968_v63 = vpop.permute.xlu0 %5967 }
0x152d   : > { %v5979_v29 = vsel %vm15890_vm1, %v5968_v63, %v5970_v22  ;;  %6044 = vmatmul.mubr.bf16.vlgmr.msra.gmra.mrb[76].mxu1 %v10885_v37  ;;  %v10890_v37 = vld [vmem:[%s15739_s2 + $0x48] sm:$0x3f]   ;;  %vm7052_vm1 = vcmask 7168  }
0x152e   : > { %6055 = vmatpush1.bf16.msra.mxu1 %v5979_v29  ;;  %6086 = vmatprep.mubr.bf16.mxu1 %v11239_v50 }
0x152f   : > { %v5974_v23 = vpop.permute.xlu1 %5973 }
0x1530   : > { %6056 = vmatprep.subr.bf16.mxu1 %v5974_v23  ;;  %v5972_v40 = vpop.permute.xlu0 %5971 }
0x1531   : > { %v5980_v45 = vsel %vm15891_vm5, %v5972_v40, %v5974_v23  ;;  %vm7058_vm5 = vcmask 15360  }
0x1532   : > { %6057 = vmatpush1.bf16.msra.mxu1 %v5980_v45 }
0x1539   : > { %9774 = vmatmul.mubr.msk.bf16.vlgmr.msra.gmra.mrb[76].mxu1 %vm15892_vm6, %v10888_v20  ;;  %vm7064_vm6 = vcmask 23552  }
0x1540   : > { %v6107_v24 = vpop.permute.xlu1 %6106 }
0x1541   : > { %v6102_v3 = vpop.permute.xlu0 %6101 }
0x160c   : > { %v6088_v28 = vpop.f32.mrb[76].mxu1 }
0x160d   : > { %v6090_v60 = vpop.f32.mrb[77].mxu1 }
0x160e   : > { %v6092_v42 = vpop.f32.mrb[78].mxu1 }
0x160f   : > { %v6097_v52 = vpack.c.bf16 %v6092_v42, %v6088_v28  ;;  %v6094_v41 = vpop.f32.mrb[79].mxu1 }
0x1610   : > { %v6098_v14 = vpack.c.bf16 %v6094_v41, %v6090_v60 }
0x1612   : > { %9775 = vmatprep.mubr.msk.bf16.mxu0 %vm6109_vm11, %v6098_v14 }
0x1613   : > { %6152 = vmatmul.mubr.bf16.vlgmr.msra.gmra.mrb[76].mxu0 %v6097_v52 }
0x1614   : > { %10297 = vmatprep.mubr.msk.bf16.mxu0 %vm11257_vm10, %v15808_v43 }
0x16e6   : > { %v6153_v5 = vpop.f32.mrb[76].mxu0 }
0x16e7   : > { %v6154_v53 = vadd.f32 %v6153_v5, %v6102_v3  ;;  %v6155_v58 = vpop.f32.mrb[77].mxu0 }
0x16e8   : > { %v6156_v11 = vpop.f32.mrb[78].mxu0 }
0x16e9   : > { %v6160_v17 = vmul.f32 0.3, %v6154_v53  ;;  %v6157_v38 = vadd.f32 %v6156_v11, %v6107_v24  ;;  %v6158_v57 = vpop.f32.mrb[79].mxu0 }
0x16eb   : > { %v6161_v47 = vmul.f32 0.3, %v6157_v38  ;;  %v6162_v16 = vmax.f32 %v6154_v53, %v6160_v17 }
0x16ed   : > { %v6163_v61 = vmax.f32 %v6157_v38, %v6161_v47 }
0x16ef   : > { %v6185_v54 = vpack.c.bf16 %v6163_v61, %v6162_v16 }
0x16f1   : > { %v6190_v62 = vrot.slane %v6185_v54, 4  ;;  %v6187_v18 = vrot.slane %v6185_v54, 2 }
0x16f3   : > { %6191 = vrot.lane.b32.xlu1 %v6190_v62, %s15827_s29  ;;  %6188 = vrot.lane.b32.xlu0 %v6187_v18, %s15833_s28 }
0x16f7   : > { %6207 = vperm.xlu1 %10811, %v9781_v31   ;;  %6202 = vperm.xlu0 %10810, %v9780_v30  }
0x1765   : > { %v6189_v0 = vpop.permute.xlu0 %6188  ;;  %v6192_v46 = vpop.permute.xlu1 %6191 }
0x1766   : > { %v6195_v2 = vsel %vm657_vm0, %v6185_v54, %v6189_v0  ;;  %v6198_v32 = vsel %vm682_vm2, %v6189_v0, %v6192_v46  ;;  %v6218_v59 = vsel %vm808_vm3, %v6192_v46, 0  ;;  %v10893_v0 = vld [vmem:[%s15742_s5 + $0x4] ss:$20 sps:$4 sm:$0x3f]  }
0x1767   : > { %10292 = vmatpush3.bf16.msra.mxu0 %v6195_v2 }
0x1768   : > { %10293 = vmatprep.subr.bf16.mxu0 %v15808_v43 }
0x176b   : > { %10294 = vmatpush3.bf16.msra.mxu0 %v6198_v32 }
0x176c   : > { %10295 = vmatprep.subr.bf16.mxu0 %v15808_v43 }
0x176f   : > { %10296 = vmatpush3.bf16.msra.mxu0 %v6218_v59 }
0x1770   : > { %10301 = vmatprep.subr.bf16.mxu0 %v15808_v43 }
0x1772   : > { %10298 = vmatmul.mubr.msk.bf16.vlgmr.msra.gmra.mrb[80].mxu0 %vm15893_vm13, %v10889_v49  ;;  %vm7076_vm13 = vcmask 39936  }
0x1773   : > { %10307 = vmatprep.mubr.msk.bf16.mxu0 %vm11257_vm10, %v15808_v43 }
0x1776   : > { %v6203_v12 = vpop.permute.xlu0 %6202  ;;  %v6208_v36 = vpop.permute.xlu1 %6207 }
0x1845   : > { %v6254_v33 = vpop.f32.mrb[80].mxu0 }
0x1846   : > { %v6255_v39 = vadd.f32 %v6254_v33, %v6203_v12  ;;  %v10299_v15 = vpop.f32.mrb[81].mxu0 }
0x1847   : > { %v6257_v27 = vpop.f32.mrb[82].mxu0 }
0x1848   : > { %v6261_v44 = vmul.f32 0.3, %v6255_v39  ;;  %v6258_v34 = vadd.f32 %v6257_v27, %v6208_v36  ;;  %v10300_v9 = vpop.f32.mrb[83].mxu0  ;;  %v10896_v27 = vld [vmem:[%s15742_s5 + $0xc] ss:$20 sps:$4 sm:$0x3f]  }
0x1849   : > { %6606 = vmatprep.mubr.bf16.mxu1 %v10896_v27  ;;  %v9785_v9 = vld [vmem:[%s15740_s3 + $0xe8] sm:$0xf] }
0x184a   : > { %v6262_v6 = vmul.f32 0.3, %v6258_v34  ;;  %v6263_v4 = vmax.f32 %v6255_v39, %v6261_v44  ;;  %v9784_v44 = vld [vmem:[%s15740_s3 + $0xe0] sm:$0xff] }
0x184c   : > { %v6264_v25 = vmax.f32 %v6258_v34, %v6262_v6  ;;  %v6736_v34 = vld [vmem:[%s15745_s8 + $0x20] sm:$0xff]  ;;  %v6738_v6 = vld [vmem:[%s15745_s8 + $0x30] sm:$0xff] }
0x184e   : > { %v6265_v56 = vpack.c.bf16 %v6264_v25, %v6263_v4  ;;  %v6737_v4 = vld [vmem:[%s15745_s8 + $0x28] sm:$0xff]  ;;  %v6740_v25 = vld [vmem:[%s15745_s8 + $0x40] sm:$0xff] }
0x1850   : > { %v6270_v1 = vrot.slane %v6265_v56, 4  ;;  %v6267_v8 = vrot.slane %v6265_v56, 2 }
0x1852   : > { %6271 = vrot.lane.b32.xlu1 %v6270_v1, %s15827_s29  ;;  %6268 = vrot.lane.b32.xlu0 %v6267_v8, %s15833_s28  ;;  %v6732_v1 = vld [vmem:[%s15745_s8] sm:$0xff]  ;;  %v6733_v8 = vld [vmem:[%s15745_s8 + $0x8] sm:$0xff] }
0x1856   : > { %6287 = vperm.xlu1 %10811, %v9783_v19   ;;  %6282 = vperm.xlu0 %10810, %v9782_v35   ;;  %v6734_v19 = vld [vmem:[%s15745_s8 + $0x10] sm:$0xff] }
0x18c4   : > { %v6269_v55 = vpop.permute.xlu0 %6268  ;;  %v6272_v26 = vpop.permute.xlu1 %6271 }
0x18c5   : > { %v6275_v13 = vsel %vm657_vm0, %v6265_v56, %v6269_v55  ;;  %v6278_v51 = vsel %vm682_vm2, %v6269_v55, %v6272_v26  ;;  %v6298_v10 = vsel %vm808_vm3, %v6272_v26, 0  ;;  %v6739_v56 = vld [vmem:[%s15745_s8 + $0x38] sm:$0xff] }
0x18c6   : > { %10302 = vmatpush3.bf16.msra.mxu0 %v6275_v13 }
0x18c7   : > { %10303 = vmatprep.subr.bf16.mxu0 %v15808_v43 }
0x18ca   : > { %10304 = vmatpush3.bf16.msra.mxu0 %v6278_v51 }
0x18cb   : > { %10305 = vmatprep.subr.bf16.mxu0 %v15808_v43 }
0x18ce   : > { %10306 = vmatpush3.bf16.msra.mxu0 %v6298_v10 }
0x18d1   : > { %10308 = vmatmul.mubr.msk.bf16.vlgmr.msra.gmra.mrb[84].mxu0 %vm15894_vm14, %v10890_v37  ;;  %vm7082_vm14 = vcmask 48128  }
0x18d2   : > { %6565 = vmatprep.mubr.bf16.mxu0 %v10893_v0 }
0x18d5   : > { %v6283_v22 = vpop.permute.xlu0 %6282  ;;  %v6288_v40 = vpop.permute.xlu1 %6287 }
0x19a4   : > { %v6334_v63 = vpop.f32.mrb[84].mxu0 }
0x19a5   : > { %v6335_v29 = vadd.f32 %v6334_v63, %v6283_v22  ;;  %v10309_v23 = vpop.f32.mrb[85].mxu0 }
0x19a6   : > { %v6337_v45 = vpop.f32.mrb[86].mxu0 }
0x19a7   : > { %v6341_v20 = vmul.f32 0.3, %v6335_v29  ;;  %v6338_v48 = vadd.f32 %v6337_v45, %v6288_v40  ;;  %v10310_v21 = vpop.f32.mrb[87].mxu0 }
0x19a9   : > { %v6342_v7 = vmul.f32 0.3, %v6338_v48  ;;  %v6343_v28 = vmax.f32 %v6335_v29, %v6341_v20  ;;  %v10891_v20 = vld [vmem:[%s15742_s5] ss:$20 sps:$4 sm:$0x3f]  }
0x19ab   : > { %v6344_v60 = vmax.f32 %v6338_v48, %v6342_v7 }
0x19ad   : > { %v6345_v42 = vpack.c.bf16 %v6344_v60, %v6343_v28 }
0x19af   : > { %v6347_v52 = vrot.slane %v6345_v42, 2  ;;  %v6350_v41 = vrot.slane %v6345_v42, 4  ;;  %v6353_v14 = vrot.slane %v6345_v42, 6 }
0x19b1   : > { %6358 = vrot.lane.b32.xlu1 %v6347_v52, %s15828_s26  ;;  %6348 = vrot.lane.b32.xlu0 %v6347_v52, %s15833_s28 }
0x19b5   : > { %6351 = vrot.lane.b32.xlu1 %v6350_v41, %s15827_s29  ;;  %6360 = vrot.lane.b32.xlu0 %v6350_v41, %s15851_s13 }
0x19b9   : > { %6354 = vrot.lane.b32.xlu1 %v6353_v14, %s15850_s11  ;;  %6362 = vrot.lane.b32.xlu0 %v6353_v14, %s15831_s25 }
0x19bd   : > { %6366 = vrot.lane.b32.xlu1 %v6347_v52, %s15838_s27  ;;  %6364 = vrot.lane.b32.xlu0 %v6345_v42, %s15825_s17  ;;  %s11258_s27 = smov 96  }
0x19c1   : > { %6368 = vrot.lane.b32.xlu1 %v6350_v41, %s15829_s18  ;;  %6356 = vrot.lane.b32.xlu0 %v6345_v42, %s15832_s0  ;;  %s15905_s18 = sld [smem:[#allocation12_spill]] }
0x19c5   : > { %6372 = vrot.lane.b32.xlu1 %v6345_v42, %s15826_s23  ;;  %6370 = vrot.lane.b32.xlu0 %v6353_v14, %s15839_s1  ;;  %s11264_s1 = smov 6   ;;  %s11267_s23 = smov 5  }
0x19c9   : > { %6376 = vrot.lane.b32.xlu1 %v6350_v41, %s15830_s24  ;;  %6374 = vrot.lane.b32.xlu0 %v6347_v52, %s15834_s30 }
0x19cd   : > { %6378 = vrot.lane.b32.xlu0 %v6353_v14, %s15835_s20 }
0x1a23   : > { %v6359_v3 = vpop.permute.xlu1 %6358  ;;  %v6349_v5 = vpop.permute.xlu0 %6348 }
0x1a24   : > { %v6382_v53 = vsel %vm657_vm0, %v6345_v42, %v6349_v5 }
0x1a25   : > { %6468 = vrot.lane.b32.xlu1 %v6382_v53, %s11258_s27 }
0x1a27   : > { %v6352_v58 = vpop.permute.xlu1 %6351  ;;  %v6361_v24 = vpop.permute.xlu0 %6360 }
0x1a28   : > { %v6385_v11 = vsel %vm682_vm2, %v6349_v5, %v6352_v58  ;;  %v14244_v17 = vsel %vm682_vm2, %v6359_v3, %v6361_v24  ;;  %v10894_v5 = vld [vmem:[%s15742_s5 + $0x8] ss:$20 sps:$4 sm:$0x3f]  }
0x1a29   : > { %6470 = vrot.lane.b32.xlu1 %v6385_v11, %s11258_s27  ;;  %6440 = vrot.lane.b32.xlu0 %v14244_v17, %s15852_s14 }
0x1a2b   : > { %v6355_v38 = vpop.permute.xlu1 %6354  ;;  %v6363_v57 = vpop.permute.xlu0 %6362 }
0x1a2c   : > { %v14250_v47 = vsel %vm808_vm3, %v6361_v24, %v6363_v57  ;;  %v6388_v54 = vsel %vm808_vm3, %v6352_v58, %v6355_v38  ;;  %v10897_v58 = vld [vmem:[%s15742_s5 + $0x10] ss:$20 sps:$4 sm:$0x3f]  }
0x1a2d   : > { %6432 = vrot.lane.b32.xlu0 %v6382_v53, %s15852_s14  ;;  %6442 = vrot.lane.b32.xlu1 %v14250_v47, %s15852_s14  ;;  %v11192_v24 = vld [vmem:[%s15743_s6] sm:$0xff]  }
0x1a2f   : > { %v6367_v16 = vpop.permute.xlu1 %6366  ;;  %v6365_v61 = vpop.permute.xlu0 %6364 }
0x1a30   : > { %v14259_v31 = vsel %vm657_vm0, %v6365_v61, %v6367_v16 }
0x1a31   : > { %6472 = vrot.lane.b32.xlu0 %v6388_v54, %s11258_s27  ;;  %6434 = vrot.lane.b32.xlu1 %v6385_v11, %s15852_s14 }
0x1a33   : > { %v6369_v62 = vpop.permute.xlu1 %6368  ;;  %v6357_v18 = vpop.permute.xlu0 %6356 }
0x1a34   : > { %v6392_v30 = vsel %vm657_vm0, %v6357_v18, %v6359_v3  ;;  %v14269_v32 = vsel %vm682_vm2, %v6367_v16, %v6369_v62 }
0x1a35   : > { %6444 = vrot.lane.b32.xlu0 %v14259_v31, %s15852_s14  ;;  %6474 = vrot.lane.b32.xlu1 %v6392_v30, %s11258_s27 }
0x1a37   : > { %v6373_v2 = vpop.permute.xlu1 %6372  ;;  %v6371_v46 = vpop.permute.xlu0 %6370 }
0x1a38   : > { %v6408_v59 = vsel %vm808_vm3, %v6369_v62, %v6371_v46 }
0x1a39   : > { %6436 = vrot.lane.b32.xlu0 %v6388_v54, %s15852_s14  ;;  %6446 = vrot.lane.b32.xlu1 %v14269_v32, %s15852_s14 }
0x1a3a   : > { %10065 = vmatprep.subr.bf16.mxu0 %v6408_v59 }
0x1a3b   : > { %10066 = vmatpush3.bf16.msra.mxu0 %v6382_v53  ;;  %v6375_v49 = vpop.permute.xlu0 %6374  ;;  %v6377_v12 = vpop.permute.xlu1 %6376 }
0x1a3c   : > { %v6412_v33 = vsel %vm657_vm0, %v6373_v2, %v6375_v49  ;;  %v6415_v39 = vsel %vm682_vm2, %v6375_v49, %v6377_v12  ;;  %vm6529_vm0 = vcmask 523264  }
0x1a3d   : > { %6476 = vrot.lane.b32.xlu0 %v14244_v17, %s11258_s27  ;;  %6438 = vrot.lane.b32.xlu1 %v6392_v30, %s15852_s14 }
0x1a3e   : > { %10067 = vmatprep.subr.bf16.mxu0 %v6412_v33 }
0x1a3f   : > { %10068 = vmatpush3.bf16.msra.mxu0 %v6385_v11  ;;  %v6379_v15 = vpop.permute.xlu0 %6378  ;;  %v11193_v11 = vld [vmem:[%s15743_s6 + $0x8] sm:$0xf] }
0x1a40   : > { %10069 = vmatprep.subr.bf16.mxu0 %v6415_v39  ;;  %v6418_v36 = vsel %vm808_vm3, %v6377_v12, %v6379_v15  ;;  %vm6672_vm3 = vcmask 1040384  }
0x1a41   : > { %6478 = vrot.lane.b32.xlu1 %v14250_v47, %s11258_s27  ;;  %6448 = vrot.lane.b32.xlu0 %v6408_v59, %s15852_s14  ;;  %v6674_v38 = vsel %vm6672_vm3, 65535, %v11239_v50  ;;  %vm7094_vm3 = vcmask 64512  }
0x1a43   : > { %10070 = vmatpush3.bf16.msra.mxu0 %v6388_v54 }
0x1a44   : > { %10071 = vmatprep.subr.bf16.mxu0 %v6418_v36 }
0x1a45   : > { %6484 = vrot.lane.b32.xlu1 %v6408_v59, %s11258_s27  ;;  %6450 = vrot.lane.b32.xlu0 %v6412_v33, %s15852_s14 }
0x1a47   : > { %10072 = vmatpush3.bf16.msra.mxu0 %v6392_v30 }
0x1a49   : > { %6452 = vrot.lane.b32.xlu1 %v6415_v39, %s15852_s14  ;;  %6480 = vrot.lane.b32.xlu0 %v14259_v31, %s11258_s27 }
0x1a4d   : > { %6482 = vrot.lane.b32.xlu1 %v14269_v32, %s11258_s27  ;;  %6486 = vrot.lane.b32.xlu0 %v6412_v33, %s11258_s27 }
0x1a51   : > { %6488 = vrot.lane.b32.xlu1 %v6415_v39, %s11258_s27  ;;  %6454 = vrot.lane.b32.xlu0 %v6418_v36, %s15852_s14 }
0x1a55   : > { %6659 = vperm.xlu1 %10811, %v9784_v44   ;;  %6490 = vrot.lane.b32.xlu0 %v6418_v36, %s11258_s27  ;;  %v15806_v44 = vmov 0.0|0.0   ;;  %s11263_s27 = smov 8  }
0x1a59   : > { %6763 = vperm.xlu1 %10811, %v6736_v34   ;;  %6664 = vperm.xlu0 %10810, %v9785_v9   ;;  %v14369_v34 = vld [vmem:[%s15746_s9] sm:$0xff]  ;;  %v14378_v9 = vld [vmem:[%s15746_s9 + $0x8] sm:$0xff] }
0x1a5d   : > { %6773 = vperm.xlu1 %10811, %v6738_v6   ;;  %6768 = vperm.xlu0 %10810, %v6737_v4   ;;  %v14387_v6 = vld [vmem:[%s15746_s9 + $0x10] sm:$0xff]  ;;  %v14396_v4 = vld [vmem:[%s15746_s9 + $0x18] sm:$0xff] }
0x1a61   : > { %6783 = vperm.xlu1 %10811, %v6740_v25   ;;  %6778 = vperm.xlu0 %10810, %v6739_v56   ;;  %v14405_v25 = vld [vmem:[%s15746_s9 + $0x20] sm:$0xff]  ;;  %v14414_v56 = vld [vmem:[%s15746_s9 + $0x28] sm:$0xff] }
0x1a65   : > { %6743 = vperm.xlu1 %10811, %v6732_v1   ;;  %6748 = vperm.xlu0 %10810, %v6733_v8   ;;  %v14423_v1 = vld [vmem:[%s15746_s9 + $0x30] sm:$0xff]  ;;  %v14432_v8 = vld [vmem:[%s15746_s9 + $0x38] sm:$0xff] }
0x1a69   : > { %6753 = vperm.xlu0 %10810, %v6734_v19   ;;  %v14441_v19 = vld [vmem:[%s15746_s9 + $0x40] sm:$0xff] }
0x1a97   : > { %v6469_v35 = vpop.permute.xlu1 %6468 }
0x1a98   : > { %10087 = vmatprep.subr.bf16.mxu1 %v6469_v35 }
0x1a9b   : > { %v6471_v55 = vpop.permute.xlu1 %6470  ;;  %v6441_v13 = vpop.permute.xlu0 %6440 }
0x1a9c   : > { %10088 = vmatpush3.bf16.msra.mxu1 %v6441_v13 }
0x1a9d   : > { %10089 = vmatprep.subr.bf16.mxu1 %v6471_v55 }
0x1a9f   : > { %v6443_v26 = vpop.permute.xlu1 %6442  ;;  %v6433_v51 = vpop.permute.xlu0 %6432 }
0x1aa0   : > { %10073 = vmatprep.subr.bf16.mxu0 %v6433_v51  ;;  %10090 = vmatpush3.bf16.msra.mxu1 %v6443_v26 }
0x1aa1   : > { %10074 = vmatpush3.bf16.msra.mxu0 %v14244_v17  ;;  %v9796_v17 = vcombine.low %v11193_v11, %v11193_v11 }
0x1aa3   : > { %v6435_v10 = vpop.permute.xlu1 %6434  ;;  %v6473_v37 = vpop.permute.xlu0 %6472  ;;  %v6676_v57 = vand.u32 %v9796_v17, %v6674_v38 }
0x1aa4   : > { %10075 = vmatprep.subr.bf16.mxu0 %v6435_v10  ;;  %10091 = vmatprep.subr.bf16.mxu1 %v6473_v37 }
0x1aa5   : > { %10076 = vmatpush3.bf16.msra.mxu0 %v14250_v47 }
0x1aa7   : > { %v6475_v22 = vpop.permute.xlu1 %6474  ;;  %v6445_v63 = vpop.permute.xlu0 %6444 }
0x1aa8   : > { %10092 = vmatpush3.bf16.msra.mxu1 %v6445_v63 }
0x1aa9   : > { %10093 = vmatprep.subr.bf16.mxu1 %v6475_v22 }
0x1aab   : > { %v6447_v29 = vpop.permute.xlu1 %6446  ;;  %v6437_v23 = vpop.permute.xlu0 %6436 }
0x1aac   : > { %10077 = vmatprep.subr.bf16.mxu0 %v6437_v23  ;;  %10094 = vmatpush3.bf16.msra.mxu1 %v6447_v29 }
0x1aad   : > { %10078 = vmatpush3.bf16.msra.mxu0 %v14259_v31 }
0x1aaf   : > { %v6439_v40 = vpop.permute.xlu1 %6438  ;;  %v6477_v45 = vpop.permute.xlu0 %6476 }
0x1ab0   : > { %10079 = vmatprep.subr.bf16.mxu0 %v6439_v40  ;;  %10095 = vmatprep.subr.bf16.mxu1 %v6477_v45 }
0x1ab1   : > { %10080 = vmatpush3.bf16.msra.mxu0 %v14269_v32 }
0x1ab2   : > { %10311 = vmatprep.subr.bf16.mxu0 %v15808_v43 }
0x1ab3   : > { %v6479_v48 = vpop.permute.xlu1 %6478  ;;  %v6449_v21 = vpop.permute.xlu0 %6448 }
0x1ab4   : > { %10096 = vmatpush3.bf16.msra.mxu1 %v6449_v21  ;;  %6566 = vmatmul.mubr.bf16.vlgmr.msra.gmra.mrb[88].mxu0 %v10891_v20  ;;  %v6723_v20 = vld [vmem:[%s15895_s19] sm:$0xff]  ;;  %v6725_v21 = vld [vmem:[%s15895_s19 + $0x10] sm:$0xff] }
0x1ab5   : > { %10097 = vmatprep.subr.bf16.mxu1 %v6479_v48  ;;  %10319 = vmatprep.mubr.msk.bf16.mxu0 %vm11257_vm10, %v15808_v43  ;;  %v6724_v48 = vld [vmem:[%s15895_s19 + $0x8] sm:$0xff] }
0x1ab7   : > { %v6485_v7 = vpop.permute.xlu1 %6484  ;;  %v6451_v28 = vpop.permute.xlu0 %6450 }
0x1ab8   : > { %10098 = vmatpush3.bf16.msra.mxu1 %v6451_v28  ;;  %10312 = vmatpush3.bf16.msra.mxu0 %v6485_v7  ;;  %v6726_v7 = vld [vmem:[%s15895_s19 + $0x18] sm:$0xff]  ;;  %v6727_v28 = vld [vmem:[%s15895_s19 + $0x20] sm:$0xff] }
0x1ab9   : > { %10313 = vmatprep.subr.bf16.mxu0 %v15808_v43 }
0x1abb   : > { %v6453_v60 = vpop.permute.xlu1 %6452  ;;  %v6481_v42 = vpop.permute.xlu0 %6480 }
0x1abc   : > { %10099 = vmatprep.subr.bf16.mxu1 %v6481_v42  ;;  %v6729_v42 = vld [vmem:[%s15895_s19 + $0x30] sm:$0xff] }
0x1abd   : > { %10100 = vmatpush3.bf16.msra.mxu1 %v6453_v60  ;;  %v6728_v60 = vld [vmem:[%s15895_s19 + $0x28] sm:$0xff] }
0x1abf   : > { %v6483_v52 = vpop.permute.xlu1 %6482  ;;  %v6487_v41 = vpop.permute.xlu0 %6486 }
0x1ac0   : > { %10101 = vmatprep.subr.bf16.mxu1 %v6483_v52  ;;  %10314 = vmatpush3.bf16.msra.mxu0 %v6487_v41  ;;  %v6730_v52 = vld [vmem:[%s15895_s19 + $0x38] sm:$0xff]  ;;  %v6731_v41 = vld [vmem:[%s15895_s19 + $0x40] sm:$0xff] }
0x1ac1   : > { %10315 = vmatprep.subr.bf16.mxu0 %v15808_v43 }
0x1ac3   : > { %v6489_v14 = vpop.permute.xlu1 %6488  ;;  %v6455_v3 = vpop.permute.xlu0 %6454 }
0x1ac4   : > { %10102 = vmatpush3.bf16.msra.mxu1 %v6455_v3  ;;  %10316 = vmatpush3.bf16.msra.mxu0 %v6489_v14 }
0x1ac5   : > { %10317 = vmatprep.subr.bf16.mxu0 %v15808_v43  ;;  %10323 = vmatprep.subr.bf16.mxu1 %v15808_v43 }
0x1ac7   : > { %6607 = vmatmul.mubr.bf16.vlgmr.msra.gmra.mrb[80].mxu1 %v10894_v5  ;;  %v6491_v53 = vpop.permute.xlu0 %6490 }
0x1ac8   : > { %10318 = vmatpush3.bf16.msra.mxu0 %v6491_v53  ;;  %10324 = vmatpush3.bf16.msra.mxu1 %v11192_v24 }
0x1ac9   : > { %10325 = vmatprep.subr.bf16.mxu1 %v15808_v43  ;;  %10327 = vmatprep.mubr.msk.bf16.mxu1 %vm11257_vm10, %v15808_v43 }
0x1aca   : > { %10362 = vmatprep.subr.mxu0 %v15808_v43 }
0x1acb   : > { %10320 = vmatmul.mubr.msk.bf16.vlgmr.msra.gmra.mrb[92].mxu0 %vm6529_vm0, %v10897_v58  ;;  %vm7088_vm0 = vcmask 56320  }
0x1acc   : > { %10363 = vmatpush3.msra.mxu0 %v15808_v43  ;;  %10364 = vmatprep.mubr.msk.f32.mxu0 %vm11257_vm10, %v15808_v43 }
0x1acd   : > { %10326 = vmatpush3.bf16.msra.mxu1 %v6676_v57  ;;  %10695 = vmatprep.subr.bf16.mxu0 %v15806_v44 }
0x1ace   : > { %10688 = vmatprep.subr.bf16.mxu1 %v15806_v44 }
0x1ad3   : > { %10365 = vmatmul.mubr.msk.f32.vlgmr.msra.gmra.mrb[96].mxu0 %vm7135_vm4, %v14369_v34 }
0x1ad4   : > { %10367 = vmatprep.mubr.msk.f32.mxu0 %vm11257_vm10, %v15808_v43  ;;  %v6660_v35 = vpop.permute.xlu1 %6659 }
0x1ad7   : > { %10368 = vmatmul.mubr.msk.f32.gmra.mrb[98].mxu0 %vm7135_vm4, %v14378_v9 }
0x1ad8   : > { %10370 = vmatprep.mubr.msk.f32.mxu0 %vm11257_vm10, %v15808_v43  ;;  %v6665_v51 = vpop.permute.xlu0 %6664 }
0x1adb   : > { %10371 = vmatmul.mubr.msk.f32.gmra.mrb[100].mxu0 %vm7135_vm4, %v14387_v6 }
0x1adc   : > { %10373 = vmatprep.mubr.msk.f32.mxu0 %vm11257_vm10, %v15808_v43 }
0x1adf   : > { %10374 = vmatmul.mubr.msk.f32.gmra.mrb[102].mxu0 %vm7135_vm4, %v14396_v4 }
0x1ae0   : > { %10376 = vmatprep.mubr.msk.f32.mxu0 %vm11257_vm10, %v15808_v43 }
0x1ae3   : > { %10377 = vmatmul.mubr.msk.f32.gmra.mrb[104].mxu0 %vm7135_vm4, %v14405_v25 }
0x1ae4   : > { %10379 = vmatprep.mubr.msk.f32.mxu0 %vm11257_vm10, %v15808_v43 }
0x1ae7   : > { %10380 = vmatmul.mubr.msk.f32.gmra.mrb[106].mxu0 %vm7135_vm4, %v14414_v56 }
0x1ae8   : > { %10382 = vmatprep.mubr.msk.f32.mxu0 %vm11257_vm10, %v15808_v43 }
0x1aeb   : > { %10383 = vmatmul.mubr.msk.f32.gmra.mrb[108].mxu0 %vm7135_vm4, %v14423_v1 }
0x1aec   : > { %10385 = vmatprep.mubr.msk.f32.mxu0 %vm11257_vm10, %v15808_v43 }
0x1aef   : > { %10386 = vmatmul.mubr.msk.f32.gmra.mrb[110].mxu0 %vm7135_vm4, %v14432_v8 }
0x1af0   : > { %10388 = vmatprep.mubr.msk.f32.mxu0 %vm11257_vm10, %v15808_v43 }
0x1af3   : > { %10389 = vmatmul.mubr.msk.f32.gmra.mrb[112].mxu0 %vm7135_vm4, %v14441_v19 }
0x1af4   : > { %10430 = vmatprep.mubr.msk.f32.mxu0 %vm11257_vm10, %v15808_v43 }
0x1b87   : > { %v10081_v47 = vpop.f32.mrb[88].mxu0 }
0x1b88   : > { %v10082_v16 = vpop.f32.mrb[89].mxu0 }
0x1b89   : > { %v10083_v61 = vadd.f32 %v10082_v16, %v10081_v47  ;;  %v10084_v54 = vpop.f32.mrb[90].mxu0 }
0x1b8a   : > { %v10085_v62 = vpop.f32.mrb[91].mxu0 }
0x1b8b   : > { %v10086_v18 = vadd.f32 %v10085_v62, %v10084_v54  ;;  %v6764_v62 = vpop.permute.xlu1 %6763 }
0x1b9a   : > { %v10103_v31 = vpop.f32.mrb[80].mxu1 }
0x1b9b   : > { %v10104_v30 = vpop.f32.mrb[81].mxu1 }
0x1b9c   : > { %v10105_v0 = vadd.f32 %v10104_v30, %v10103_v31  ;;  %v10106_v2 = vpop.f32.mrb[82].mxu1  ;;  %v6769_v31 = vpop.permute.xlu0 %6768 }
0x1b9d   : > { %v10107_v46 = vpop.f32.mrb[83].mxu1 }
0x1b9e   : > { %v10108_v32 = vadd.f32 %v10107_v46, %v10106_v2  ;;  %v6609_v59 = vadd.f32 %v10105_v0, %v10083_v61  ;;  %v6649_v49 = vpop.f32.mrb[92].mxu0  ;;  %v14522_v2 = vld [vmem:[%s15896_s16] sm:$0xff] }
0x1b9f   : > { %v10321_v12 = vpop.f32.mrb[93].mxu0 }
0x1ba0   : > { %v6650_v33 = vadd.f32 %v6649_v49, %v6609_v59  ;;  %v6612_v39 = vadd.f32 %v10108_v32, %v10086_v18  ;;  %v6652_v50 = vpop.f32.mrb[94].mxu0  ;;  %v14513_v18 = vpop.permute.xlu1 %6773 }
0x1ba1   : > { %v10322_v15 = vpop.f32.mrb[95].mxu0  ;;  %v14517_v0 = vpop.permute.xlu0 %6778 }
0x1ba2   : > { %v6653_v36 = vadd.f32 %v6652_v50, %v6612_v39 }
0x1ba4   : > { %v6656_v27 = vpack.c.bf16 %v6653_v36, %v6650_v33  ;;  %v14515_v30 = vpop.permute.xlu1 %6783 }
0x1ba5   : > { %v6749_v33 = vpop.permute.xlu0 %6748 }
0x1ba6   : > { %10328 = vmatmul.mubr.msk.bf16.vlgmr.msra.gmra.mrb[84].mxu1 %vm6668_vm8, %v6656_v27  ;;  %v7229_v14 = vpop.f32.mrb[96].mxu0 }
0x1ba7   : > { %10335 = vmatprep.mubr.msk.f32.mxu1 %vm11257_vm10, %v15808_v43  ;;  %v10366_v3 = vpop.f32.mrb[97].mxu0  ;;  %v7230_v46 = vadd.f32 %v7229_v14, %v14522_v2 }
0x1ba8   : > { %v6744_v32 = vpop.permute.xlu1 %6743 }
0x1baa   : > { %v14503_v5 = vpop.f32.mrb[98].mxu0 }
0x1bab   : > { %v10369_v53 = vpop.f32.mrb[99].mxu0 }
0x1bae   : > { %v14505_v58 = vpop.f32.mrb[100].mxu0 }
0x1baf   : > { %v10372_v24 = vpop.f32.mrb[101].mxu0 }
0x1bb2   : > { %v14507_v11 = vpop.f32.mrb[102].mxu0 }
0x1bb3   : > { %v10375_v17 = vpop.f32.mrb[103].mxu0 }
0x1bb6   : > { %v14509_v38 = vpop.f32.mrb[104].mxu0 }
0x1bb7   : > { %v10378_v57 = vpop.f32.mrb[105].mxu0 }
0x1bba   : > { %v14511_v47 = vpop.f32.mrb[106].mxu0 }
0x1bbb   : > { %v10381_v16 = vpop.f32.mrb[107].mxu0 }
0x1bbe   : > { %v7259_v61 = vpop.f32.mrb[108].mxu0 }
0x1bbf   : > { %v10384_v54 = vpop.f32.mrb[109].mxu0 }
0x1bc2   : > { %v14588_v16 = vpop.f32.mrb[110].mxu0 }
0x1c79   : > { %v6712_v55 = vpop.f32.mrb[84].mxu1 }
0x1c7a   : > { %v6713_v13 = vadd.f32 %v6712_v55, %v6660_v35  ;;  %v10329_v26 = vpop.f32.mrb[85].mxu1  ;;  %v6754_v35 = vpop.permute.xlu0 %6753 }
0x1c7b   : > { %v6715_v10 = vpop.f32.mrb[86].mxu1 }
0x1c7c   : > { %v6719_v37 = vmul.f32 0.3, %v6713_v13  ;;  %v6716_v22 = vadd.f32 %v6715_v10, %v6665_v51  ;;  %v10330_v63 = vpop.f32.mrb[87].mxu1 }
0x1c7e   : > { %v6720_v29 = vmul.f32 0.3, %v6716_v22  ;;  %v6721_v23 = vmax.f32 %v6713_v13, %v6719_v37 }
0x1c80   : > { %v6722_v40 = vmax.f32 %v6716_v22, %v6720_v29 }
0x1c82   : > { %v10689_v45 = vpack.c.bf16 %v6722_v40, %v6721_v23 }
0x1c84   : > { %10691 = vmatpush3.bf16.msk.msra.mxu1 %vm10690_vm9, %v10689_v45 }
0x1c85   : > { %10692 = vmatprep.subr.bf16.mxu1 %v15806_v44 }
0x1c87   : > { %10336 = vmatmul.mubr.msk.f32.vlgmr.msra.gmra.mrb[88].mxu1 %vm6786_vm12, %v6723_v20 }
0x1c88   : > { %10338 = vmatprep.mubr.msk.f32.mxu1 %vm11257_vm10, %v15808_v43 }
0x1c8b   : > { %10339 = vmatmul.mubr.msk.f32.gmra.mrb[90].mxu1 %vm6786_vm12, %v6724_v48 }
0x1c8c   : > { %10341 = vmatprep.mubr.msk.f32.mxu1 %vm11257_vm10, %v15808_v43 }
0x1c8f   : > { %10342 = vmatmul.mubr.msk.f32.gmra.mrb[92].mxu1 %vm6786_vm12, %v6725_v21 }
0x1c90   : > { %10344 = vmatprep.mubr.msk.f32.mxu1 %vm11257_vm10, %v15808_v43 }
0x1c93   : > { %10345 = vmatmul.mubr.msk.f32.gmra.mrb[94].mxu1 %vm6786_vm12, %v6726_v7 }
0x1c94   : > { %10347 = vmatprep.mubr.msk.f32.mxu1 %vm11257_vm10, %v15808_v43 }
0x1c97   : > { %10348 = vmatmul.mubr.msk.f32.gmra.mrb[96].mxu1 %vm6786_vm12, %v6727_v28  ;;  %v14554_v28 = vld [vmem:[%s15896_s16 + $0x30] sm:$0xff] }
0x1c98   : > { %10350 = vmatprep.mubr.msk.f32.mxu1 %vm11257_vm10, %v15808_v43 }
0x1c9b   : > { %10351 = vmatmul.mubr.msk.f32.gmra.mrb[98].mxu1 %vm6786_vm12, %v6728_v60 }
0x1c9c   : > { %10353 = vmatprep.mubr.msk.f32.mxu1 %vm11257_vm10, %v15808_v43 }
0x1c9f   : > { %10354 = vmatmul.mubr.msk.f32.gmra.mrb[100].mxu1 %vm6786_vm12, %v6729_v42  ;;  %v7260_v42 = vadd.f32 %v7259_v61, %v14554_v28  ;;  %v10387_v61 = vpop.f32.mrb[111].mxu0 }
0x1ca0   : > { %10356 = vmatprep.mubr.msk.f32.mxu1 %vm11257_vm10, %v15808_v43 }
0x1ca3   : > { %10357 = vmatmul.mubr.msk.f32.gmra.mrb[102].mxu1 %vm6786_vm12, %v6730_v52 }
0x1ca4   : > { %10359 = vmatprep.mubr.msk.f32.mxu1 %vm11257_vm10, %v15808_v43 }
0x1ca7   : > { %10360 = vmatmul.mubr.msk.f32.gmra.mrb[104].mxu1 %vm6786_vm12, %v6731_v41 }
0x1ca8   : > { %10397 = vmatprep.mubr.msk.f32.mxu1 %vm11257_vm10, %v15808_v43 }
0x1d5a   : > { %v6883_v59 = vpop.f32.mrb[88].mxu1 }
0x1d5b   : > { %v14525_v49 = vadd.f32 %v6883_v59, %v6744_v32  ;;  %v10337_v12 = vpop.f32.mrb[89].mxu1 }
0x1d5d   : > { %v7273_v39 = vadd.f32 %v7230_v46, %v14525_v49 }
0x1d5e   : > { %v6888_v50 = vpop.f32.mrb[90].mxu1 }
0x1d5f   : > { %v9817_v15 = vmul.f32 -1.442695, %v7273_v39  ;;  %v10340_v36 = vpop.f32.mrb[91].mxu1  ;;  %v14528_v27 = vadd.f32 %v6888_v50, %v6749_v33 }
0x1d61   : > { %10899 = vpow2.f32 %v9817_v15  ;;  %v7102_v51 = vrot.slane %v14528_v27, 4 }
0x1d62   : > { %v6893_v55 = vpop.f32.mrb[92].mxu1 }
0x1d63   : > { %v14530_v13 = vadd.f32 %v6893_v55, %v6754_v35  ;;  %v10343_v26 = vpop.f32.mrb[93].mxu1  ;;  %v14657_v35 = vld [vmem:[%s15896_s16 + $0x8] sm:$0xff] }
0x1d64   : > { %v7235_v26 = vadd.f32 %v14503_v5, %v14657_v35 }
0x1d65   : > { %v7103_v10 = vrot.slane %v14530_v13, 4 }
0x1d66   : > { %v14534_v37 = vpop.f32.mrb[94].mxu1 }
0x1d67   : > { %v14539_v22 = vsel %vm682_vm2, %v7102_v51, %v7103_v10  ;;  %v10346_v63 = vpop.f32.mrb[95].mxu1 }
0x1d6a   : > { %v6903_v29 = vpop.f32.mrb[96].mxu1 }
0x1d6b   : > { %v10900_v23 = vpop.eup %10899  ;;  %v14541_v40 = vadd.f32 %v6903_v29, %v6764_v62  ;;  %v10349_v45 = vpop.f32.mrb[97].mxu1 }
0x1d6c   : > { %v7285_v20 = vadd.f32 1.0, %v10900_v23  ;;  %v14609_v62 = vpop.f32.mrb[112].mxu0 }
0x1d6d   : > { %6947 = vrot.lane.b32.xlu1 %v14541_v40, %s15851_s13  ;;  %6932 = vrot.lane.b32.xlu0 %v14541_v40, %s15825_s17 }
0x1d6e   : > { %10901 = vrcp.f32 %v7285_v20  ;;  %v6908_v48 = vpop.f32.mrb[98].mxu1 }
0x1d6f   : > { %v10352_v21 = vpop.f32.mrb[99].mxu1  ;;  %v14567_v24 = vadd.f32 %v6908_v48, %v6769_v31  ;;  %v6735_v31 = vld [vmem:[%s15745_s8 + $0x18] sm:$0xff] }
0x1d71   : > { %6977 = vrot.lane.b32.xlu1 %v14541_v40, %s15827_s29  ;;  %6962 = vrot.lane.b32.xlu0 %v14541_v40, %s15832_s0 }
0x1d72   : > { %v6913_v7 = vpop.f32.mrb[100].mxu1 }
0x1d73   : > { %v10355_v60 = vpop.f32.mrb[101].mxu1  ;;  %v14582_v57 = vadd.f32 %v6913_v7, %v14513_v18  ;;  %v10390_v18 = vpop.f32.mrb[113].mxu0 }
0x1d75   : > { %7007 = vrot.lane.b32.xlu1 %v14541_v40, %s11261_s7  ;;  %6992 = vrot.lane.b32.xlu0 %v14541_v40, %s11262_s10 }
0x1d76   : > { %v6918_v52 = vpop.f32.mrb[102].mxu1 }
0x1d77   : > { %v10358_v41 = vpop.f32.mrb[103].mxu1  ;;  %v14603_v54 = vadd.f32 %v6918_v52, %v14517_v0 }
0x1d78   : > { %v10902_v14 = vpop.eup %10901 }
0x1d79   : > { %v14561_v3 = vmul.f32 %v10902_v14, %v7260_v42  ;;  %7037 = vrot.lane.b32.xlu1 %v14541_v40, %s11263_s27  ;;  %7022 = vrot.lane.b32.xlu0 %v14541_v40, %s11264_s1 }
0x1d7a   : > { %v6923_v53 = vpop.f32.mrb[104].mxu1 }
0x1d7b   : > { %v10361_v17 = vpop.f32.mrb[105].mxu1  ;;  %v14631_v0 = vadd.f32 %v6923_v53, %v14515_v30 }
0x1d7d   : > { %6949 = vrot.lane.b32.xlu0 %v14567_v24, %s15851_s13  ;;  %6934 = vrot.lane.b32.xlu1 %v14567_v24, %s15825_s17 }
0x1d81   : > { %6964 = vrot.lane.b32.xlu0 %v14567_v24, %s15832_s0  ;;  %6979 = vrot.lane.b32.xlu1 %v14567_v24, %s15827_s29 }
0x1d85   : > { %7039 = vrot.lane.b32.xlu0 %v14567_v24, %s11263_s27  ;;  %6994 = vrot.lane.b32.xlu1 %v14567_v24, %s11262_s10 }
0x1d89   : > { %6951 = vrot.lane.b32.xlu0 %v14582_v57, %s15851_s13  ;;  %7009 = vrot.lane.b32.xlu1 %v14567_v24, %s11261_s7 }
0x1d8d   : > { %6966 = vrot.lane.b32.xlu0 %v14582_v57, %s15832_s0  ;;  %7024 = vrot.lane.b32.xlu1 %v14567_v24, %s11264_s1 }
0x1d91   : > { %6981 = vrot.lane.b32.xlu0 %v14582_v57, %s15827_s29  ;;  %6936 = vrot.lane.b32.xlu1 %v14582_v57, %s15825_s17 }
0x1d95   : > { %7011 = vrot.lane.b32.xlu0 %v14582_v57, %s11261_s7  ;;  %6996 = vrot.lane.b32.xlu1 %v14582_v57, %s11262_s10 }
0x1d99   : > { %7026 = vrot.lane.b32.xlu1 %v14582_v57, %s11264_s1  ;;  %6953 = vrot.lane.b32.xlu0 %v14603_v54, %s15851_s13 }
0x1d9d   : > { %7041 = vrot.lane.b32.xlu1 %v14582_v57, %s11263_s27  ;;  %6968 = vrot.lane.b32.xlu0 %v14603_v54, %s15832_s0 }
0x1da1   : > { %6983 = vrot.lane.b32.xlu0 %v14603_v54, %s15827_s29  ;;  %6938 = vrot.lane.b32.xlu1 %v14603_v54, %s15825_s17 }
0x1da5   : > { %7013 = vrot.lane.b32.xlu0 %v14603_v54, %s11261_s7  ;;  %6998 = vrot.lane.b32.xlu1 %v14603_v54, %s11262_s10 }
0x1da9   : > { %7043 = vrot.lane.b32.xlu0 %v14603_v54, %s11263_s27  ;;  %7028 = vrot.lane.b32.xlu1 %v14603_v54, %s11264_s1 }
0x1dad   : > { %6940 = vrot.lane.b32.xlu0 %v14631_v0, %s15825_s17  ;;  %6758 = vperm.xlu1 %10811, %v6735_v31  }
0x1db1   : > { %6970 = vrot.lane.b32.xlu0 %v14631_v0, %s15832_s0  ;;  %6955 = vrot.lane.b32.xlu1 %v14631_v0, %s15851_s13 }
0x1db5   : > { %7000 = vrot.lane.b32.xlu0 %v14631_v0, %s11262_s10  ;;  %6985 = vrot.lane.b32.xlu1 %v14631_v0, %s15827_s29 }
0x1db9   : > { %7030 = vrot.lane.b32.xlu0 %v14631_v0, %s11264_s1  ;;  %7015 = vrot.lane.b32.xlu1 %v14631_v0, %s11261_s7 }
0x1dbd   : > { %7045 = vrot.lane.b32.xlu1 %v14631_v0, %s11263_s27 }
0x1ddf   : > { %v6948_v30 = vpop.permute.xlu1 %6947  ;;  %v6933_v46 = vpop.permute.xlu0 %6932 }
0x1de0   : > { %v7053_v32 = vsel %vm7052_vm1, %v6933_v46, %v6948_v30 }
0x1de3   : > { %v6978_v59 = vpop.permute.xlu1 %6977  ;;  %v6963_v12 = vpop.permute.xlu0 %6962 }
0x1de4   : > { %v7059_v33 = vsel %vm7058_vm5, %v7053_v32, %v6963_v12 }
0x1de5   : > { %v7065_v39 = vsel %vm7064_vm6, %v7059_v33, %v6978_v59 }
0x1de6   : > { %v7071_v50 = vsel %vm7070_vm15, %v7065_v39, %v14541_v40 }
0x1de7   : > { %v7008_v15 = vpop.permute.xlu1 %7007  ;;  %v6993_v36 = vpop.permute.xlu0 %6992 }
0x1de8   : > { %v7077_v55 = vsel %vm7076_vm13, %v7071_v50, %v6993_v36 }
0x1de9   : > { %v7083_v63 = vsel %vm7082_vm14, %v7077_v55, %v7008_v15 }
0x1deb   : > { %v7038_v51 = vpop.permute.xlu1 %7037  ;;  %v7023_v29 = vpop.permute.xlu0 %7022 }
0x1dec   : > { %v7089_v23 = vsel %vm7088_vm0, %v7083_v63, %v7023_v29 }
0x1ded   : > { %v7095_v45 = vsel %vm7094_vm3, %v7089_v23, %v7038_v51 }
0x1dee   : > { %v14667_v20 = vsel %vm682_vm2, %v14528_v27, %v7095_v45  ;;  %v14676_v27 = vld [vmem:[%s15896_s16 + $0x10] sm:$0xff] }
0x1def   : > { %v6935_v48 = vpop.permute.xlu1 %6934  ;;  %v6950_v21 = vpop.permute.xlu0 %6949  ;;  %v7274_v7 = vadd.f32 %v7235_v26, %v14667_v20  ;;  %v7240_v46 = vadd.f32 %v14505_v58, %v14676_v27  ;;  %v14693_v58 = vld [vmem:[%s15896_s16 + $0x38] sm:$0xff] }
0x1df0   : > { %v7054_v5 = vsel %vm7052_vm1, %v6935_v48, %v6950_v21  ;;  %v7265_v48 = vadd.f32 %v14588_v16, %v14693_v58 }
0x1df1   : > { %v9818_v60 = vmul.f32 -1.442695, %v7274_v7 }
0x1df3   : > { %v6980_v42 = vpop.permute.xlu1 %6979  ;;  %v6965_v52 = vpop.permute.xlu0 %6964  ;;  %10903 = vpow2.f32 %v9818_v60 }
0x1df4   : > { %v7060_v41 = vsel %vm7058_vm5, %v7054_v5, %v6965_v52 }
0x1df5   : > { %v7066_v17 = vsel %vm7064_vm6, %v7060_v41, %v6980_v42  ;;  %v14705_v41 = vld [vmem:[%s15896_s16 + $0x18] sm:$0xff] }
0x1df6   : > { %v7072_v61 = vsel %vm7070_vm15, %v7066_v17, %v14567_v24 }
0x1df7   : > { %v6995_v14 = vpop.permute.xlu1 %6994  ;;  %v7040_v53 = vpop.permute.xlu0 %7039 }
0x1df8   : > { %v7078_v32 = vsel %vm7076_vm13, %v7072_v61, %v6995_v14  ;;  %v14710_v14 = vld [vmem:[%s15896_s16 + $0x20] sm:$0xff] }
0x1dfb   : > { %v7010_v18 = vpop.permute.xlu1 %7009  ;;  %v6952_v31 = vpop.permute.xlu0 %6951 }
0x1dfc   : > { %v7084_v12 = vsel %vm7082_vm14, %v7078_v32, %v7010_v18  ;;  %v7245_v18 = vadd.f32 %v14507_v11, %v14705_v41 }
0x1dfd   : > { %v10904_v30 = vpop.eup %10903 }
0x1dfe   : > { %v7286_v59 = vadd.f32 1.0, %v10904_v30 }
0x1dff   : > { %v7025_v33 = vpop.permute.xlu1 %7024  ;;  %v6967_v39 = vpop.permute.xlu0 %6966 }
0x1e00   : > { %v7090_v50 = vsel %vm7088_vm0, %v7084_v12, %v7025_v33  ;;  %10905 = vrcp.f32 %v7286_v59 }
0x1e01   : > { %v14686_v15 = vsel %vm7094_vm3, %v7090_v50, %v7040_v53 }
0x1e02   : > { %v7275_v24 = vadd.f32 %v7240_v46, %v14686_v15 }
0x1e03   : > { %v6937_v36 = vpop.permute.xlu1 %6936  ;;  %v6982_v55 = vpop.permute.xlu0 %6981 }
0x1e04   : > { %v7055_v26 = vsel %vm7052_vm1, %v6937_v36, %v6952_v31  ;;  %v9819_v51 = vmul.f32 -1.442695, %v7275_v24  ;;  %v7250_v31 = vadd.f32 %v14509_v38, %v14710_v14 }
0x1e05   : > { %v7061_v63 = vsel %vm7058_vm5, %v7055_v26, %v6967_v39  ;;  %v7294_v39 = vadd.f32 %v7245_v18, %v14539_v22  ;;  %v14734_v26 = vld [vmem:[%s15896_s16 + $0x40] sm:$0xff] }
0x1e06   : > { %v7067_v29 = vsel %vm7064_vm6, %v7061_v63, %v6982_v55  ;;  %10907 = vpow2.f32 %v9819_v51 }
0x1e07   : > { %v6997_v23 = vpop.permute.xlu1 %6996  ;;  %v7012_v45 = vpop.permute.xlu0 %7011  ;;  %v7073_v21 = vsel %vm7070_vm15, %v7067_v29, %v14582_v57  ;;  %v9820_v51 = vmul.f32 -1.442695, %v7294_v39  ;;  %v7270_v29 = vadd.f32 %v14609_v62, %v14734_v26 }
0x1e08   : > { %v7079_v60 = vsel %vm7076_vm13, %v7073_v21, %v6997_v23 }
0x1e09   : > { %v7085_v16 = vsel %vm7082_vm14, %v7079_v60, %v7012_v45 }
0x1e0a   : > { %v10906_v7 = vpop.eup %10905 }
0x1e0b   : > { %v7316_v42 = vmul.f32 %v10906_v7, %v7265_v48  ;;  %v7027_v52 = vpop.permute.xlu1 %7026  ;;  %v6954_v5 = vpop.permute.xlu0 %6953 }
0x1e0c   : > { %v7091_v57 = vsel %vm7088_vm0, %v7085_v16, %v7027_v52 }
0x1e0f   : > { %v7042_v53 = vpop.permute.xlu1 %7041  ;;  %v6969_v17 = vpop.permute.xlu0 %6968 }
0x1e10   : > { %v10908_v61 = vpop.eup %10907  ;;  %v7097_v30 = vsel %vm7094_vm3, %v7091_v57, %v7042_v53 }
0x1e11   : > { %v7109_v46 = vrot.slane %v7097_v30, 4  ;;  %v7287_v32 = vadd.f32 1.0, %v10908_v61 }
0x1e13   : > { %v14722_v59 = vsel %vm682_vm2, %v7103_v10, %v7109_v46  ;;  %v6939_v12 = vpop.permute.xlu1 %6938  ;;  %v6984_v33 = vpop.permute.xlu0 %6983  ;;  %10909 = vrcp.f32 %v7287_v32 }
0x1e14   : > { %v7295_v50 = vadd.f32 %v7250_v31, %v14722_v59  ;;  %v7056_v11 = vsel %vm7052_vm1, %v6939_v12, %v6954_v5 }
0x1e15   : > { %v7062_v38 = vsel %vm7058_vm5, %v7056_v11, %v6969_v17 }
0x1e16   : > { %v9821_v24 = vmul.f32 -1.442695, %v7295_v50  ;;  %v7068_v36 = vsel %vm7064_vm6, %v7062_v38, %v6984_v33 }
0x1e17   : > { %v6999_v55 = vpop.permute.xlu1 %6998  ;;  %v7074_v13 = vsel %vm7070_vm15, %v7068_v36, %v14603_v54  ;;  %v7014_v10 = vpop.permute.xlu0 %7013  ;;  %v14743_v54 = vld [vmem:[%s15896_s16 + $0x28] sm:$0xff] }
0x1e18   : > { %10911 = vpow2.f32 %v9821_v24  ;;  %v7080_v63 = vsel %vm7076_vm13, %v7074_v13, %v6999_v55  ;;  %v7255_v62 = vadd.f32 %v14511_v47, %v14743_v54 }
0x1e19   : > { %v7086_v23 = vsel %vm7082_vm14, %v7080_v63, %v7014_v10  ;;  %10913 = vpow2.f32 %v9820_v51 }
0x1e1b   : > { %v7029_v45 = vpop.permute.xlu1 %7028  ;;  %v7044_v48 = vpop.permute.xlu0 %7043 }
0x1e1c   : > { %v7092_v21 = vsel %vm7088_vm0, %v7086_v23, %v7029_v45 }
0x1e1d   : > { %v10910_v7 = vpop.eup %10909  ;;  %v7098_v60 = vsel %vm7094_vm3, %v7092_v21, %v7044_v48 }
0x1e1e   : > { %v7317_v52 = vmul.f32 %v10910_v7, %v7270_v29  ;;  %v7110_v5 = vrot.slane %v7098_v60, 4  ;;  %v14754_v57 = vsel %vm682_vm2, %v14541_v40, %v7098_v60 }
0x1e1f   : > { %v7319_v17 = vadd.f32 %v7316_v42, %v14754_v57  ;;  %v6941_v12 = vpop.permute.xlu0 %6940 }
0x1e20   : > { %v14750_v16 = vsel %vm682_vm2, %v7109_v46, %v7110_v5 }
0x1e21   : > { %v7296_v18 = vadd.f32 %v7255_v62, %v14750_v16 }
0x1e22   : > { %v10912_v53 = vpop.eup %10911 }
0x1e23   : > { %v7307_v61 = vadd.f32 1.0, %v10912_v53  ;;  %v10914_v31 = vpop.eup %10913  ;;  %v9822_v30 = vmul.f32 -1.442695, %v7296_v18  ;;  %v6971_v33 = vpop.permute.xlu0 %6970 }
0x1e24   : > { %v7306_v32 = vadd.f32 1.0, %v10914_v31 }
0x1e25   : > { %10915 = vrcp.f32 %v7307_v61 }
0x1e26   : > { %10917 = vtanh.f32 %v7319_v17 }
0x1e27   : > { %10919 = vpow2.f32 %v9822_v30  ;;  %v7001_v51 = vpop.permute.xlu0 %7000 }
0x1e28   : > { %10921 = vrcp.f32 %v7306_v32 }
0x1e2b   : > { %v7031_v5 = vpop.permute.xlu0 %7030 }
0x1e2c   : > { %v6759_v47 = vpop.permute.xlu1 %6758 }
0x1e2d   : > { %v14759_v46 = vadd.f32 %v14534_v37, %v6759_v47 }
0x1e2f   : > { %v10916_v40 = vpop.eup %10915  ;;  %v7318_v42 = vadd.f32 %v14561_v3, %v14759_v46 }
0x1e30   : > { %v6956_v39 = vpop.permute.xlu1 %6955  ;;  %v7325_v50 = vsub.f32 1.0, %v10916_v40  ;;  %v10918_v11 = vpop.eup %10917  ;;  %v7331_v36 = vmul.f32 0.0, %v10916_v40 }
0x1e31   : > { %v7057_v38 = vsel %vm7052_vm1, %v6941_v12, %v6956_v39  ;;  %10923 = vtanh.f32 %v7318_v42  ;;  %v10920_v37 = vpop.eup %10919 }
0x1e32   : > { %v7328_v24 = vmul.f32 %v10918_v11, %v7325_v50  ;;  %v7063_v13 = vsel %vm7058_vm5, %v7057_v38, %v6971_v33  ;;  %v10922_v29 = vpop.eup %10921  ;;  %v7308_v48 = vadd.f32 1.0, %v10920_v37 }
0x1e33   : > { %v7324_v7 = vsub.f32 1.0, %v10922_v29  ;;  %v7330_v61 = vmul.f32 0.0, %v10922_v29 }
0x1e34   : > { %v6986_v55 = vpop.permute.xlu1 %6985  ;;  %v14765_v10 = vadd.f32 %v7331_v36, %v7328_v24  ;;  %10925 = vrcp.f32 %v7308_v48 }
0x1e35   : > { %v7069_v63 = vsel %vm7064_vm6, %v7063_v13, %v6986_v55 }
0x1e36   : > { %v7075_v3 = vsel %vm7070_vm15, %v7069_v63, %v14631_v0 }
0x1e37   : > { %v7081_v23 = vsel %vm7076_vm13, %v7075_v3, %v7001_v51 }
0x1e38   : > { %v7016_v45 = vpop.permute.xlu1 %7015 }
0x1e39   : > { %v7087_v21 = vsel %vm7082_vm14, %v7081_v23, %v7016_v45 }
0x1e3a   : > { %v7093_v53 = vsel %vm7088_vm0, %v7087_v21, %v7031_v5 }
0x1e3b   : > { %v10924_v60 = vpop.eup %10923 }
0x1e3c   : > { %v7046_v62 = vpop.permute.xlu1 %7045  ;;  %v7327_v17 = vmul.f32 %v10924_v60, %v7324_v7 }
0x1e3d   : > { %v14774_v18 = vsel %vm7094_vm3, %v7093_v53, %v7046_v62 }
0x1e3e   : > { %v14776_v0 = vadd.f32 %v7330_v61, %v7327_v17  ;;  %v7320_v31 = vadd.f32 %v7317_v52, %v14774_v18  ;;  %v10926_v32 = vpop.eup %10925 }
0x1e3f   : > { %v7326_v12 = vsub.f32 1.0, %v10926_v32  ;;  %v7332_v33 = vmul.f32 0.0, %v10926_v32 }
0x1e40   : > { %v10693_v30 = vpack.c.bf16 %v14765_v10, %v14776_v0  ;;  %10927 = vtanh.f32 %v7320_v31 }
0x1e42   : > { %10694 = vmatpush3.bf16.msra.mxu1 %v10693_v30 }
0x1e43   : > { %10395 = vmatprep.subr.mxu1 %v15808_v43 }
0x1e4a   : > { %v10928_v47 = vpop.eup %10927 }
0x1e4b   : > { %v7329_v40 = vmul.f32 %v10928_v47, %v7326_v12 }
0x1e4d   : > { %v14782_v42 = vadd.f32 %v7332_v33, %v7329_v40 }
0x1e4f   : > { %10396 = vmatpush3.msra.mxu1 %v14782_v42 }
0x1e50   : > { %10398 = vmatmul.mubr.msk.f32.vlgmr.msra.gmra.mrb[106].mxu1 %vm7135_vm4, %v14369_v34  ;;  %10698 = vmatprep.subr.bf16.mxu1 %v15806_v44 }
0x1e51   : > { %10400 = vmatprep.mubr.msk.f32.mxu1 %vm11257_vm10, %v15808_v43 }
0x1e54   : > { %10401 = vmatmul.mubr.msk.f32.gmra.mrb[108].mxu1 %vm7135_vm4, %v14378_v9 }
0x1e55   : > { %10403 = vmatprep.mubr.msk.f32.mxu1 %vm11257_vm10, %v15808_v43 }
0x1e58   : > { %10404 = vmatmul.mubr.msk.f32.gmra.mrb[110].mxu1 %vm7135_vm4, %v14387_v6 }
0x1e59   : > { %10406 = vmatprep.mubr.msk.f32.mxu1 %vm11257_vm10, %v15808_v43 }
0x1e5c   : > { %10407 = vmatmul.mubr.msk.f32.gmra.mrb[112].mxu1 %vm7135_vm4, %v14396_v4 }
0x1e5d   : > { %10409 = vmatprep.mubr.msk.f32.mxu1 %vm11257_vm10, %v15808_v43 }
0x1e60   : > { %10410 = vmatmul.mubr.msk.f32.gmra.mrb[114].mxu1 %vm7135_vm4, %v14405_v25 }
0x1e61   : > { %10412 = vmatprep.mubr.msk.f32.mxu1 %vm11257_vm10, %v15808_v43 }
0x1e64   : > { %10413 = vmatmul.mubr.msk.f32.gmra.mrb[116].mxu1 %vm7135_vm4, %v14414_v56 }
0x1e65   : > { %10415 = vmatprep.mubr.msk.f32.mxu1 %vm11257_vm10, %v15808_v43 }
0x1e68   : > { %10416 = vmatmul.mubr.msk.f32.gmra.mrb[118].mxu1 %vm7135_vm4, %v14423_v1 }
0x1e69   : > { %10418 = vmatprep.mubr.msk.f32.mxu1 %vm11257_vm10, %v15808_v43 }
0x1e6c   : > { %10419 = vmatmul.mubr.msk.f32.gmra.mrb[120].mxu1 %vm7135_vm4, %v14432_v8 }
0x1e6d   : > { %10421 = vmatprep.mubr.msk.f32.mxu1 %vm11257_vm10, %v15808_v43 }
0x1e70   : > { %10422 = vmatmul.mubr.msk.f32.gmra.mrb[122].mxu1 %vm7135_vm4, %v14441_v19 }
0x1e71   : > { %10463 = vmatprep.mubr.msk.f32.mxu1 %vm11257_vm10, %v15808_v43 }
0x1f23   : > { %v7402_v52 = vpop.f32.mrb[106].mxu1 }
0x1f24   : > { %v7403_v39 = vadd.f32 %v7402_v52, %v14522_v2  ;;  %v10399_v50 = vpop.f32.mrb[107].mxu1 }
0x1f26   : > { %7449 = vrot.lane.b32.xlu0 %v7403_v39, %s11265_s12 }
0x1f27   : > { %v7407_v11 = vpop.f32.mrb[108].mxu1 }
0x1f28   : > { %v7408_v38 = vadd.f32 %v7407_v11, %v14657_v35  ;;  %v10402_v24 = vpop.f32.mrb[109].mxu1 }
0x1f2a   : > { %7451 = vrot.lane.b32.xlu1 %v7408_v38, %s11265_s12 }
0x1f2b   : > { %v7412_v36 = vpop.f32.mrb[110].mxu1 }
0x1f2c   : > { %v7413_v55 = vadd.f32 %v7412_v36, %v14676_v27  ;;  %v10405_v13 = vpop.f32.mrb[111].mxu1 }
0x1f2e   : > { %7453 = vrot.lane.b32.xlu0 %v7413_v55, %s11265_s12 }
0x1f2f   : > { %v7417_v37 = vpop.f32.mrb[112].mxu1 }
0x1f30   : > { %v7418_v51 = vadd.f32 %v7417_v37, %v14705_v41  ;;  %v10408_v63 = vpop.f32.mrb[113].mxu1 }
0x1f32   : > { %7482 = vrot.lane.b32.xlu1 %v7418_v51, %s11265_s12 }
0x1f33   : > { %v7422_v3 = vpop.f32.mrb[114].mxu1 }
0x1f34   : > { %v7423_v29 = vadd.f32 %v7422_v3, %v14710_v14  ;;  %v10411_v23 = vpop.f32.mrb[115].mxu1 }
0x1f36   : > { %7484 = vrot.lane.b32.xlu0 %v7423_v29, %s11265_s12 }
0x1f37   : > { %v7427_v45 = vpop.f32.mrb[116].mxu1 }
0x1f38   : > { %v7428_v48 = vadd.f32 %v7427_v45, %v14743_v54  ;;  %v10414_v21 = vpop.f32.mrb[117].mxu1 }
0x1f3a   : > { %7486 = vrot.lane.b32.xlu1 %v7428_v48, %s11265_s12 }
0x1f3b   : > { %v7432_v7 = vpop.f32.mrb[118].mxu1 }
0x1f3c   : > { %v7433_v60 = vadd.f32 %v7432_v7, %v14554_v28  ;;  %v10417_v5 = vpop.f32.mrb[119].mxu1 }
0x1f3e   : > { %7515 = vrot.lane.b32.xlu0 %v7433_v60, %s11265_s12 }
0x1f3f   : > { %v7437_v62 = vpop.f32.mrb[120].mxu1 }
0x1f40   : > { %v7438_v53 = vadd.f32 %v7437_v62, %v14693_v58  ;;  %v10420_v17 = vpop.f32.mrb[121].mxu1 }
0x1f42   : > { %7517 = vrot.lane.b32.xlu1 %v7438_v53, %s11265_s12 }
0x1f43   : > { %v7442_v61 = vpop.f32.mrb[122].mxu1 }
0x1f44   : > { %v7443_v31 = vadd.f32 %v7442_v61, %v14734_v26  ;;  %v10423_v30 = vpop.f32.mrb[123].mxu1 }
0x1f46   : > { %7542 = vrot.lane.b32.xlu1 %v14776_v0, %s11265_s12  ;;  %7519 = vrot.lane.b32.xlu0 %v7443_v31, %s11265_s12 }
0x1f4a   : > { %7546 = vrot.lane.b32.xlu1 %v14782_v42, %s11265_s12  ;;  %7544 = vrot.lane.b32.xlu0 %v14765_v10, %s11265_s12 }
0x1f98   : > { %v7450_v32 = vpop.permute.xlu0 %7449 }
0x1f99   : > { %v7458_v12 = vadd.f32 %v7450_v32, %v14525_v49 }
0x1f9b   : > { %v9832_v47 = vmul.f32 -1.442695, %v7458_v12 }
0x1f9c   : > { %v7452_v40 = vpop.permute.xlu1 %7451 }
0x1f9d   : > { %10929 = vpow2.f32 %v9832_v47  ;;  %v7459_v33 = vadd.f32 %v7452_v40, %v14667_v20 }
0x1f9f   : > { %v9833_v52 = vmul.f32 -1.442695, %v7459_v33 }
0x1fa0   : > { %v7454_v39 = vpop.permute.xlu0 %7453 }
0x1fa1   : > { %10931 = vpow2.f32 %v9833_v52  ;;  %v7460_v50 = vadd.f32 %v7454_v39, %v14686_v15 }
0x1fa3   : > { %v9834_v11 = vmul.f32 -1.442695, %v7460_v50 }
0x1fa4   : > { %v7483_v38 = vpop.permute.xlu1 %7482 }
0x1fa5   : > { %10933 = vpow2.f32 %v9834_v11  ;;  %v7491_v24 = vadd.f32 %v7483_v38, %v14539_v22 }
0x1fa7   : > { %v10930_v36 = vpop.eup %10929  ;;  %v9835_v55 = vmul.f32 -1.442695, %v7491_v24 }
0x1fa8   : > { %v7470_v13 = vadd.f32 1.0, %v10930_v36  ;;  %v7485_v37 = vpop.permute.xlu0 %7484 }
0x1fa9   : > { %10935 = vpow2.f32 %v9835_v55  ;;  %v7492_v51 = vadd.f32 %v7485_v37, %v14722_v59 }
0x1faa   : > { %10937 = vrcp.f32 %v7470_v13 }
0x1fab   : > { %v10932_v63 = vpop.eup %10931  ;;  %v9836_v3 = vmul.f32 -1.442695, %v7492_v51 }
0x1fac   : > { %v7471_v29 = vadd.f32 1.0, %v10932_v63  ;;  %v7487_v23 = vpop.permute.xlu1 %7486 }
0x1fad   : > { %10939 = vpow2.f32 %v9836_v3  ;;  %v7493_v45 = vadd.f32 %v7487_v23, %v14750_v16 }
0x1fae   : > { %10941 = vrcp.f32 %v7471_v29 }
0x1faf   : > { %v10934_v48 = vpop.eup %10933  ;;  %v9837_v21 = vmul.f32 -1.442695, %v7493_v45 }
0x1fb0   : > { %v7472_v7 = vadd.f32 1.0, %v10934_v48  ;;  %v7516_v60 = vpop.permute.xlu0 %7515 }
0x1fb1   : > { %10943 = vpow2.f32 %v9837_v21 }
0x1fb2   : > { %10945 = vrcp.f32 %v7472_v7 }
0x1fb3   : > { %v10936_v5 = vpop.eup %10935 }
0x1fb4   : > { %v10938_v62 = vpop.eup %10937  ;;  %v7503_v53 = vadd.f32 1.0, %v10936_v5  ;;  %v7518_v12 = vpop.permute.xlu1 %7517 }
0x1fb5   : > { %v7524_v17 = vmul.f32 %v10938_v62, %v7516_v60 }
0x1fb6   : > { %10947 = vrcp.f32 %v7503_v53 }
0x1fb7   : > { %v10940_v61 = vpop.eup %10939  ;;  %v7527_v31 = vadd.f32 %v7524_v17, %v14759_v46 }
0x1fb8   : > { %v10942_v30 = vpop.eup %10941  ;;  %v7504_v32 = vadd.f32 1.0, %v10940_v61  ;;  %v7520_v50 = vpop.permute.xlu0 %7519 }
0x1fb9   : > { %10949 = vtanh.f32 %v7527_v31  ;;  %v7525_v47 = vmul.f32 %v10942_v30, %v7518_v12  ;;  %v7543_v37 = vpop.permute.xlu1 %7542 }
0x1fba   : > { %10951 = vrcp.f32 %v7504_v32 }
0x1fbb   : > { %v10944_v40 = vpop.eup %10943  ;;  %v7528_v33 = vadd.f32 %v7525_v47, %v14754_v57 }
0x1fbc   : > { %v10946_v52 = vpop.eup %10945  ;;  %v7505_v39 = vadd.f32 1.0, %v10944_v40  ;;  %v7545_v29 = vpop.permute.xlu0 %7544 }
0x1fbd   : > { %10953 = vtanh.f32 %v7528_v33  ;;  %v7526_v11 = vmul.f32 %v10946_v52, %v7520_v50  ;;  %v7547_v53 = vpop.permute.xlu1 %7546 }
0x1fbe   : > { %10955 = vrcp.f32 %v7505_v39 }
0x1fbf   : > { %v7529_v38 = vadd.f32 %v7526_v11, %v14774_v18 }
0x1fc0   : > { %v10948_v24 = vpop.eup %10947 }
0x1fc1   : > { %10957 = vtanh.f32 %v7529_v38  ;;  %v7533_v36 = vsub.f32 1.0, %v10948_v24  ;;  %v7551_v45 = vmul.f32 %v10948_v24, %v7543_v37 }
0x1fc3   : > { %v10950_v55 = vpop.eup %10949 }
0x1fc4   : > { %v10952_v13 = vpop.eup %10951  ;;  %v7536_v63 = vmul.f32 %v10950_v55, %v7533_v36 }
0x1fc5   : > { %v7534_v51 = vsub.f32 1.0, %v10952_v13  ;;  %v7552_v21 = vmul.f32 %v10952_v13, %v7545_v29 }
0x1fc6   : > { %v14855_v60 = vadd.f32 %v7551_v45, %v7536_v63 }
0x1fc7   : > { %v10954_v3 = vpop.eup %10953 }
0x1fc8   : > { %v10956_v23 = vpop.eup %10955  ;;  %v7537_v48 = vmul.f32 %v10954_v3, %v7534_v51 }
0x1fc9   : > { %v7535_v7 = vsub.f32 1.0, %v10956_v23  ;;  %v7553_v61 = vmul.f32 %v10956_v23, %v7547_v53 }
0x1fca   : > { %v14857_v5 = vadd.f32 %v7552_v21, %v7537_v48 }
0x1fcb   : > { %v10958_v62 = vpop.eup %10957 }
0x1fcc   : > { %v7538_v17 = vmul.f32 %v10958_v62, %v7535_v7  ;;  %v10812_v31 = vpack.i.bf16 %v14857_v5, %v14855_v60 }
0x1fce   : > { %v14861_v30 = vadd.f32 %v7553_v61, %v7538_v17  ;;  %10813 = vrot.lane.b32.xlu0 %v10812_v31, %s15833_s28 }
0x1fd0   : > { %7564 = vrot.lane.b32.xlu1 %v14861_v30, %s15833_s28  ;;  %s11266_s28 = smov 3  }
0x2040   : > { %v10814_v32 = vpop.permute.xlu0 %10813 }
0x2041   : > { %v10816_v12 = vunpack.i.h.bf16 %v10814_v32  ;;  %v10815_v47 = vunpack.i.l.bf16 %v10814_v32 }
0x2042   : > { %v7565_v33 = vpop.permute.xlu1 %7564 }
0x2043   : > { %v10696_v40 = vpack.c.bf16 %v10816_v12, %v10815_v47 }
0x2045   : > { %10697 = vmatpush3.bf16.msra.mxu0 %v10696_v40 }
0x2046   : > { %10428 = vmatprep.subr.mxu0 %v15808_v43 }
0x2049   : > { %10429 = vmatpush3.msra.mxu0 %v7565_v33 }
0x204a   : > { %10431 = vmatmul.mubr.msk.f32.vlgmr.msra.gmra.mrb[114].mxu0 %vm7135_vm4, %v14369_v34  ;;  %10701 = vmatprep.subr.bf16.mxu0 %v15806_v44 }
0x204b   : > { %10433 = vmatprep.mubr.msk.f32.mxu0 %vm11257_vm10, %v15808_v43 }
0x204e   : > { %10434 = vmatmul.mubr.msk.f32.gmra.mrb[116].mxu0 %vm7135_vm4, %v14378_v9 }
0x204f   : > { %10436 = vmatprep.mubr.msk.f32.mxu0 %vm11257_vm10, %v15808_v43 }
0x2052   : > { %10437 = vmatmul.mubr.msk.f32.gmra.mrb[118].mxu0 %vm7135_vm4, %v14387_v6 }
0x2053   : > { %10439 = vmatprep.mubr.msk.f32.mxu0 %vm11257_vm10, %v15808_v43 }
0x2056   : > { %10440 = vmatmul.mubr.msk.f32.gmra.mrb[120].mxu0 %vm7135_vm4, %v14396_v4 }
0x2057   : > { %10442 = vmatprep.mubr.msk.f32.mxu0 %vm11257_vm10, %v15808_v43 }
0x205a   : > { %10443 = vmatmul.mubr.msk.f32.gmra.mrb[122].mxu0 %vm7135_vm4, %v14405_v25 }
0x205b   : > { %10445 = vmatprep.mubr.msk.f32.mxu0 %vm11257_vm10, %v15808_v43 }
0x205e   : > { %10446 = vmatmul.mubr.msk.f32.gmra.mrb[124].mxu0 %vm7135_vm4, %v14414_v56 }
0x205f   : > { %10448 = vmatprep.mubr.msk.f32.mxu0 %vm11257_vm10, %v15808_v43 }
0x2062   : > { %10449 = vmatmul.mubr.msk.f32.gmra.mrb[126].mxu0 %vm7135_vm4, %v14423_v1 }
0x2063   : > { %10451 = vmatprep.mubr.msk.f32.mxu0 %vm11257_vm10, %v15808_v43 }
0x2066   : > { %10452 = vmatmul.mubr.msk.f32.gmra.mrb[128].mxu0 %vm7135_vm4, %v14432_v8 }
0x2067   : > { %10454 = vmatprep.mubr.msk.f32.mxu0 %vm11257_vm10, %v15808_v43 }
0x206a   : > { %10455 = vmatmul.mubr.msk.f32.gmra.mrb[130].mxu0 %vm7135_vm4, %v14441_v19 }
0x206b   : > { %10496 = vmatprep.mubr.msk.f32.mxu0 %vm11257_vm10, %v15808_v43 }
0x211d   : > { %v7635_v34 = vpop.f32.mrb[114].mxu0 }
0x211e   : > { %v7636_v9 = vadd.f32 %v7635_v34, %v14522_v2  ;;  %v10432_v6 = vpop.f32.mrb[115].mxu0 }
0x2120   : > { %7682 = vrot.lane.b32.xlu0 %v7636_v9, %s11262_s10 }
0x2121   : > { %v7640_v4 = vpop.f32.mrb[116].mxu0 }
0x2122   : > { %v7641_v25 = vadd.f32 %v7640_v4, %v14657_v35  ;;  %v10435_v56 = vpop.f32.mrb[117].mxu0 }
0x2124   : > { %7684 = vrot.lane.b32.xlu1 %v7641_v25, %s11262_s10 }
0x2125   : > { %v7645_v1 = vpop.f32.mrb[118].mxu0 }
0x2126   : > { %v7646_v8 = vadd.f32 %v7645_v1, %v14676_v27  ;;  %v10438_v52 = vpop.f32.mrb[119].mxu0 }
0x2128   : > { %7686 = vrot.lane.b32.xlu0 %v7646_v8, %s11262_s10 }
0x2129   : > { %v7650_v19 = vpop.f32.mrb[120].mxu0 }
0x212a   : > { %v7651_v39 = vadd.f32 %v7650_v19, %v14705_v41  ;;  %v10441_v50 = vpop.f32.mrb[121].mxu0 }
0x212c   : > { %7715 = vrot.lane.b32.xlu1 %v7651_v39, %s11262_s10 }
0x212d   : > { %v7655_v2 = vpop.f32.mrb[122].mxu0 }
0x212e   : > { %v7656_v11 = vadd.f32 %v7655_v2, %v14710_v14  ;;  %v10444_v38 = vpop.f32.mrb[123].mxu0 }
0x2130   : > { %7717 = vrot.lane.b32.xlu0 %v7656_v11, %s11262_s10 }
0x2131   : > { %v7660_v24 = vpop.f32.mrb[124].mxu0 }
0x2132   : > { %v7661_v36 = vadd.f32 %v7660_v24, %v14743_v54  ;;  %v10447_v55 = vpop.f32.mrb[125].mxu0 }
0x2134   : > { %7719 = vrot.lane.b32.xlu1 %v7661_v36, %s11262_s10 }
0x2135   : > { %v7665_v13 = vpop.f32.mrb[126].mxu0 }
0x2136   : > { %v7666_v37 = vadd.f32 %v7665_v13, %v14554_v28  ;;  %v10450_v51 = vpop.f32.mrb[127].mxu0 }
0x2138   : > { %7748 = vrot.lane.b32.xlu0 %v7666_v37, %s11262_s10 }
0x2139   : > { %v7670_v63 = vpop.f32.mrb[128].mxu0 }
0x213a   : > { %v7671_v3 = vadd.f32 %v7670_v63, %v14693_v58  ;;  %v10453_v29 = vpop.f32.mrb[129].mxu0 }
0x213c   : > { %7750 = vrot.lane.b32.xlu1 %v7671_v3, %s11262_s10 }
0x213d   : > { %v7675_v23 = vpop.f32.mrb[130].mxu0 }
0x213e   : > { %v7676_v45 = vadd.f32 %v7675_v23, %v14734_v26  ;;  %v10456_v48 = vpop.f32.mrb[131].mxu0 }
0x2140   : > { %7772 = vrot.lane.b32.xlu1 %v14855_v60, %s11265_s12  ;;  %7752 = vrot.lane.b32.xlu0 %v7676_v45, %s11262_s10 }
0x2144   : > { %7776 = vrot.lane.b32.xlu1 %v14861_v30, %s11265_s12  ;;  %7774 = vrot.lane.b32.xlu0 %v14857_v5, %s11265_s12 }
0x2192   : > { %v7683_v28 = vpop.permute.xlu0 %7682 }
0x2193   : > { %v7691_v21 = vadd.f32 %v7683_v28, %v14525_v49 }
0x2195   : > { %v9847_v7 = vmul.f32 -1.442695, %v7691_v21 }
0x2196   : > { %v7685_v62 = vpop.permute.xlu1 %7684 }
0x2197   : > { %10959 = vpow2.f32 %v9847_v7  ;;  %v7692_v53 = vadd.f32 %v7685_v62, %v14667_v20 }
0x2199   : > { %v9848_v17 = vmul.f32 -1.442695, %v7692_v53 }
0x219a   : > { %v7687_v61 = vpop.permute.xlu0 %7686 }
0x219b   : > { %10961 = vpow2.f32 %v9848_v17  ;;  %v7693_v31 = vadd.f32 %v7687_v61, %v14686_v15 }
0x219d   : > { %v9849_v32 = vmul.f32 -1.442695, %v7693_v31 }
0x219e   : > { %v7716_v12 = vpop.permute.xlu1 %7715 }
0x219f   : > { %10963 = vpow2.f32 %v9849_v32  ;;  %v7724_v47 = vadd.f32 %v7716_v12, %v14539_v22 }
0x21a1   : > { %v10960_v40 = vpop.eup %10959  ;;  %v9850_v33 = vmul.f32 -1.442695, %v7724_v47 }
0x21a2   : > { %v7703_v34 = vadd.f32 1.0, %v10960_v40  ;;  %v7718_v9 = vpop.permute.xlu0 %7717 }
0x21a3   : > { %10965 = vpow2.f32 %v9850_v33  ;;  %v7725_v6 = vadd.f32 %v7718_v9, %v14722_v59 }
0x21a4   : > { %10967 = vrcp.f32 %v7703_v34 }
0x21a5   : > { %v10962_v4 = vpop.eup %10961  ;;  %v9851_v25 = vmul.f32 -1.442695, %v7725_v6 }
0x21a6   : > { %v7704_v56 = vadd.f32 1.0, %v10962_v4  ;;  %v7720_v1 = vpop.permute.xlu1 %7719 }
0x21a7   : > { %10969 = vpow2.f32 %v9851_v25  ;;  %v7726_v8 = vadd.f32 %v7720_v1, %v14750_v16 }
0x21a8   : > { %10971 = vrcp.f32 %v7704_v56 }
0x21a9   : > { %v10964_v52 = vpop.eup %10963  ;;  %v9852_v19 = vmul.f32 -1.442695, %v7726_v8 }
0x21aa   : > { %v7705_v39 = vadd.f32 1.0, %v10964_v52  ;;  %v7749_v50 = vpop.permute.xlu0 %7748 }
0x21ab   : > { %10973 = vpow2.f32 %v9852_v19 }
0x21ac   : > { %10975 = vrcp.f32 %v7705_v39 }
0x21ad   : > { %v10966_v2 = vpop.eup %10965 }
0x21ae   : > { %v10968_v11 = vpop.eup %10967  ;;  %v7736_v38 = vadd.f32 1.0, %v10966_v2  ;;  %v7751_v51 = vpop.permute.xlu1 %7750 }
0x21af   : > { %v7757_v24 = vmul.f32 %v10968_v11, %v7749_v50 }
0x21b0   : > { %10977 = vrcp.f32 %v7736_v38 }
0x21b1   : > { %v10970_v36 = vpop.eup %10969  ;;  %v7760_v55 = vadd.f32 %v7757_v24, %v14759_v46 }
0x21b2   : > { %v10972_v13 = vpop.eup %10971  ;;  %v7737_v37 = vadd.f32 1.0, %v10970_v36  ;;  %v7753_v48 = vpop.permute.xlu0 %7752  ;;  %v14952_v36 = vld [vmem:[%s15746_s9] sm:$0xff] }
0x21b3   : > { %10979 = vtanh.f32 %v7760_v55  ;;  %v7758_v63 = vmul.f32 %v10972_v13, %v7751_v51  ;;  %v7773_v61 = vpop.permute.xlu1 %7772  ;;  %v14962_v55 = vld [vmem:[%s15746_s9 + $0x8] sm:$0xff]  ;;  %v14971_v13 = vld [vmem:[%s15746_s9 + $0x10] sm:$0xff]  ;;  %v14989_v51 = vld [vmem:[%s15746_s9 + $0x20] sm:$0xff] }
0x21b4   : > { %10981 = vrcp.f32 %v7737_v37  ;;  %v14980_v37 = vld [vmem:[%s15746_s9 + $0x18] sm:$0xff] }
0x21b5   : > { %v10974_v3 = vpop.eup %10973  ;;  %v7761_v29 = vadd.f32 %v7758_v63, %v14754_v57  ;;  %v14998_v63 = vld [vmem:[%s15746_s9 + $0x28] sm:$0xff] }
0x21b6   : > { %v10976_v23 = vpop.eup %10975  ;;  %v7738_v45 = vadd.f32 1.0, %v10974_v3  ;;  %v7775_v47 = vpop.permute.xlu0 %7774  ;;  %v15007_v3 = vld [vmem:[%s15746_s9 + $0x30] sm:$0xff] }
0x21b7   : > { %10983 = vtanh.f32 %v7761_v29  ;;  %v7759_v28 = vmul.f32 %v10976_v23, %v7753_v48  ;;  %v7777_v1 = vpop.permute.xlu1 %7776  ;;  %v15016_v29 = vld [vmem:[%s15746_s9 + $0x38] sm:$0xff]  ;;  %v15025_v23 = vld [vmem:[%s15746_s9 + $0x40] sm:$0xff] }
0x21b8   : > { %10985 = vrcp.f32 %v7738_v45  ;;  %v15034_v48 = vld [vmem:[%s15896_s16] sm:$0xff] }
0x21b9   : > { %v7762_v21 = vadd.f32 %v7759_v28, %v14774_v18 }
0x21ba   : > { %v10978_v7 = vpop.eup %10977 }
0x21bb   : > { %10987 = vtanh.f32 %v7762_v21  ;;  %v7766_v62 = vsub.f32 1.0, %v10978_v7  ;;  %v7781_v33 = vmul.f32 %v10978_v7, %v7773_v61 }
0x21bd   : > { %v10980_v53 = vpop.eup %10979 }
0x21be   : > { %v10982_v17 = vpop.eup %10981  ;;  %v7769_v32 = vmul.f32 %v10980_v53, %v7766_v62 }
0x21bf   : > { %v7767_v31 = vsub.f32 1.0, %v10982_v17  ;;  %v7782_v9 = vmul.f32 %v10982_v17, %v7775_v47 }
0x21c0   : > { %v14937_v4 = vadd.f32 %v7781_v33, %v7769_v32 }
0x21c1   : > { %v10984_v12 = vpop.eup %10983 }
0x21c2   : > { %v10986_v40 = vpop.eup %10985  ;;  %v7770_v34 = vmul.f32 %v10984_v12, %v7767_v31 }
0x21c3   : > { %v7768_v6 = vsub.f32 1.0, %v10986_v40  ;;  %v7783_v52 = vmul.f32 %v10986_v40, %v7777_v1 }
0x21c4   : > { %v14939_v25 = vadd.f32 %v7782_v9, %v7770_v34 }
0x21c5   : > { %v10988_v56 = vpop.eup %10987 }
0x21c6   : > { %v7771_v8 = vmul.f32 %v10988_v56, %v7768_v6  ;;  %v10817_v19 = vpack.i.bf16 %v14939_v25, %v14937_v4 }
0x21c8   : > { %v14943_v39 = vadd.f32 %v7783_v52, %v7771_v8  ;;  %10818 = vrot.lane.b32.xlu0 %v10817_v19, %s15827_s29 }
0x21ca   : > { %7794 = vrot.lane.b32.xlu1 %v14943_v39, %s15827_s29 }
0x223a   : > { %v10819_v50 = vpop.permute.xlu0 %10818 }
0x223b   : > { %v10821_v2 = vunpack.i.h.bf16 %v10819_v50  ;;  %v10820_v11 = vunpack.i.l.bf16 %v10819_v50 }
0x223c   : > { %v7795_v24 = vpop.permute.xlu1 %7794 }
0x223d   : > { %v10699_v38 = vpack.c.bf16 %v10821_v2, %v10820_v11 }
0x223f   : > { %10700 = vmatpush3.bf16.msra.mxu1 %v10699_v38 }
0x2240   : > { %10461 = vmatprep.subr.mxu1 %v15808_v43 }
0x2243   : > { %10462 = vmatpush3.msra.mxu1 %v7795_v24 }
0x2244   : > { %10464 = vmatmul.mubr.msk.f32.vlgmr.msra.gmra.mrb[124].mxu1 %vm7135_vm4, %v14952_v36  ;;  %10704 = vmatprep.subr.bf16.mxu1 %v15806_v44 }
0x2245   : > { %10466 = vmatprep.mubr.msk.f32.mxu1 %vm11257_vm10, %v15808_v43 }
0x2248   : > { %10467 = vmatmul.mubr.msk.f32.gmra.mrb[126].mxu1 %vm7135_vm4, %v14962_v55 }
0x2249   : > { %10469 = vmatprep.mubr.msk.f32.mxu1 %vm11257_vm10, %v15808_v43 }
0x224c   : > { %10470 = vmatmul.mubr.msk.f32.gmra.mrb[128].mxu1 %vm7135_vm4, %v14971_v13 }
0x224d   : > { %10472 = vmatprep.mubr.msk.f32.mxu1 %vm11257_vm10, %v15808_v43 }
0x2250   : > { %10473 = vmatmul.mubr.msk.f32.gmra.mrb[130].mxu1 %vm7135_vm4, %v14980_v37 }
0x2251   : > { %10475 = vmatprep.mubr.msk.f32.mxu1 %vm11257_vm10, %v15808_v43 }
0x2254   : > { %10476 = vmatmul.mubr.msk.f32.gmra.mrb[132].mxu1 %vm7135_vm4, %v14989_v51 }
0x2255   : > { %10478 = vmatprep.mubr.msk.f32.mxu1 %vm11257_vm10, %v15808_v43 }
0x2258   : > { %10479 = vmatmul.mubr.msk.f32.gmra.mrb[134].mxu1 %vm7135_vm4, %v14998_v63 }
0x2259   : > { %10481 = vmatprep.mubr.msk.f32.mxu1 %vm11257_vm10, %v15808_v43 }
0x225c   : > { %10482 = vmatmul.mubr.msk.f32.gmra.mrb[136].mxu1 %vm7135_vm4, %v15007_v3 }
0x225d   : > { %10484 = vmatprep.mubr.msk.f32.mxu1 %vm11257_vm10, %v15808_v43 }
0x2260   : > { %10485 = vmatmul.mubr.msk.f32.gmra.mrb[138].mxu1 %vm7135_vm4, %v15016_v29 }
0x2261   : > { %10487 = vmatprep.mubr.msk.f32.mxu1 %vm11257_vm10, %v15808_v43 }
0x2264   : > { %10488 = vmatmul.mubr.msk.f32.gmra.mrb[140].mxu1 %vm7135_vm4, %v15025_v23 }
0x2265   : > { %10529 = vmatprep.mubr.msk.f32.mxu1 %vm11257_vm10, %v15808_v43 }
0x2317   : > { %v7865_v45 = vpop.f32.mrb[124].mxu1 }
0x2318   : > { %v7866_v28 = vadd.f32 %v15034_v48, %v7865_v45  ;;  %v10465_v21 = vpop.f32.mrb[125].mxu1 }
0x231a   : > { %7912 = vrot.lane.b32.xlu0 %v7866_v28, %s11266_s28 }
0x231b   : > { %v7870_v7 = vpop.f32.mrb[126].mxu1 }
0x231c   : > { %v7871_v62 = vadd.f32 %v7870_v7, %v14657_v35  ;;  %v10468_v53 = vpop.f32.mrb[127].mxu1 }
0x231e   : > { %7914 = vrot.lane.b32.xlu1 %v7871_v62, %s11266_s28 }
0x231f   : > { %v7875_v17 = vpop.f32.mrb[128].mxu1 }
0x2320   : > { %v7876_v61 = vadd.f32 %v7875_v17, %v14676_v27  ;;  %v10471_v31 = vpop.f32.mrb[129].mxu1 }
0x2322   : > { %7916 = vrot.lane.b32.xlu0 %v7876_v61, %s11266_s28 }
0x2323   : > { %v7880_v32 = vpop.f32.mrb[130].mxu1 }
0x2324   : > { %v7881_v12 = vadd.f32 %v7880_v32, %v14705_v41  ;;  %v10474_v47 = vpop.f32.mrb[131].mxu1  ;;  %v15051_v41 = vld [vmem:[%s15896_s16 + $0x30] sm:$0xff] }
0x2326   : > { %7945 = vrot.lane.b32.xlu1 %v7881_v12, %s11266_s28 }
0x2327   : > { %v7885_v40 = vpop.f32.mrb[132].mxu1 }
0x2328   : > { %v7886_v33 = vadd.f32 %v7885_v40, %v14710_v14  ;;  %v10477_v34 = vpop.f32.mrb[133].mxu1 }
0x232a   : > { %7947 = vrot.lane.b32.xlu0 %v7886_v33, %s11266_s28 }
0x232b   : > { %v7890_v35 = vpop.f32.mrb[134].mxu1 }
0x232c   : > { %v7891_v9 = vadd.f32 %v7890_v35, %v14743_v54  ;;  %v10480_v6 = vpop.f32.mrb[135].mxu1 }
0x232e   : > { %7949 = vrot.lane.b32.xlu1 %v7891_v9, %s11266_s28 }
0x232f   : > { %v7895_v27 = vpop.f32.mrb[136].mxu1 }
0x2330   : > { %v7896_v56 = vadd.f32 %v15051_v41, %v7895_v27  ;;  %v10483_v1 = vpop.f32.mrb[137].mxu1 }
0x2332   : > { %7978 = vrot.lane.b32.xlu0 %v7896_v56, %s11266_s28 }
0x2333   : > { %v7900_v14 = vpop.f32.mrb[138].mxu1 }
0x2334   : > { %v7901_v8 = vadd.f32 %v7900_v14, %v14693_v58  ;;  %v10486_v52 = vpop.f32.mrb[139].mxu1 }
0x2336   : > { %7980 = vrot.lane.b32.xlu1 %v7901_v8, %s11266_s28 }
0x2337   : > { %v7905_v54 = vpop.f32.mrb[140].mxu1 }
0x2338   : > { %v7906_v19 = vadd.f32 %v7905_v54, %v14734_v26  ;;  %v10489_v50 = vpop.f32.mrb[141].mxu1 }
0x233a   : > { %8002 = vrot.lane.b32.xlu1 %v14937_v4, %s11265_s12  ;;  %7982 = vrot.lane.b32.xlu0 %v7906_v19, %s11266_s28 }
0x233e   : > { %8006 = vrot.lane.b32.xlu1 %v14943_v39, %s11265_s12  ;;  %8004 = vrot.lane.b32.xlu0 %v14939_v25, %s11265_s12 }
0x238c   : > { %v7913_v2 = vpop.permute.xlu0 %7912 }
0x238d   : > { %v7921_v58 = vadd.f32 %v7913_v2, %v14525_v49 }
0x238f   : > { %v9862_v11 = vmul.f32 -1.442695, %v7921_v58 }
0x2390   : > { %v7915_v38 = vpop.permute.xlu1 %7914 }
0x2391   : > { %10989 = vpow2.f32 %v9862_v11  ;;  %v7922_v26 = vadd.f32 %v7915_v38, %v14667_v20 }
0x2393   : > { %v9863_v24 = vmul.f32 -1.442695, %v7922_v26 }
0x2394   : > { %v7917_v45 = vpop.permute.xlu0 %7916 }
0x2395   : > { %10991 = vpow2.f32 %v9863_v24  ;;  %v7923_v28 = vadd.f32 %v7917_v45, %v14686_v15 }
0x2397   : > { %v9864_v21 = vmul.f32 -1.442695, %v7923_v28 }
0x2398   : > { %v7946_v7 = vpop.permute.xlu1 %7945 }
0x2399   : > { %10993 = vpow2.f32 %v9864_v21  ;;  %v7954_v62 = vadd.f32 %v7946_v7, %v14539_v22 }
0x239b   : > { %v10990_v53 = vpop.eup %10989  ;;  %v9865_v17 = vmul.f32 -1.442695, %v7954_v62 }
0x239c   : > { %v7933_v61 = vadd.f32 1.0, %v10990_v53  ;;  %v7948_v31 = vpop.permute.xlu0 %7947 }
0x239d   : > { %10995 = vpow2.f32 %v9865_v17  ;;  %v7955_v32 = vadd.f32 %v7948_v31, %v14722_v59 }
0x239e   : > { %10997 = vrcp.f32 %v7933_v61 }
0x239f   : > { %v10992_v12 = vpop.eup %10991  ;;  %v9866_v47 = vmul.f32 -1.442695, %v7955_v32 }
0x23a0   : > { %v7934_v40 = vadd.f32 1.0, %v10992_v12  ;;  %v7950_v33 = vpop.permute.xlu1 %7949 }
0x23a1   : > { %10999 = vpow2.f32 %v9866_v47  ;;  %v7956_v34 = vadd.f32 %v7950_v33, %v14750_v16 }
0x23a2   : > { %11001 = vrcp.f32 %v7934_v40 }
0x23a3   : > { %v10994_v35 = vpop.eup %10993  ;;  %v9867_v9 = vmul.f32 -1.442695, %v7956_v34 }
0x23a4   : > { %v7935_v6 = vadd.f32 1.0, %v10994_v35  ;;  %v7979_v27 = vpop.permute.xlu0 %7978 }
0x23a5   : > { %11003 = vpow2.f32 %v9867_v9 }
0x23a6   : > { %11005 = vrcp.f32 %v7935_v6 }
0x23a7   : > { %v10996_v56 = vpop.eup %10995 }
0x23a8   : > { %v10998_v1 = vpop.eup %10997  ;;  %v7966_v14 = vadd.f32 1.0, %v10996_v56  ;;  %v7981_v2 = vpop.permute.xlu1 %7980 }
0x23a9   : > { %v7987_v8 = vmul.f32 %v10998_v1, %v7979_v27 }
0x23aa   : > { %11007 = vrcp.f32 %v7966_v14 }
0x23ab   : > { %v11000_v52 = vpop.eup %10999  ;;  %v7990_v54 = vadd.f32 %v7987_v8, %v14759_v46 }
0x23ac   : > { %v11002_v19 = vpop.eup %11001  ;;  %v7967_v50 = vadd.f32 1.0, %v11000_v52  ;;  %v7983_v45 = vpop.permute.xlu0 %7982 }
0x23ad   : > { %11009 = vtanh.f32 %v7990_v54  ;;  %v7988_v58 = vmul.f32 %v11002_v19, %v7981_v2  ;;  %v8003_v61 = vpop.permute.xlu1 %8002 }
0x23ae   : > { %11011 = vrcp.f32 %v7967_v50 }
0x23af   : > { %v11004_v11 = vpop.eup %11003  ;;  %v7991_v38 = vadd.f32 %v7988_v58, %v14754_v57 }
0x23b0   : > { %v11006_v26 = vpop.eup %11005  ;;  %v7968_v24 = vadd.f32 1.0, %v11004_v11  ;;  %v8005_v47 = vpop.permute.xlu0 %8004 }
0x23b1   : > { %11013 = vtanh.f32 %v7991_v38  ;;  %v7989_v28 = vmul.f32 %v11006_v26, %v7983_v45  ;;  %v8007_v1 = vpop.permute.xlu1 %8006 }
0x23b2   : > { %11015 = vrcp.f32 %v7968_v24 }
0x23b3   : > { %v7992_v21 = vadd.f32 %v7989_v28, %v14774_v18  ;;  %v15128_v28 = vld [vmem:[%s15896_s16 + $0x8] sm:$0xff] }
0x23b4   : > { %v11008_v7 = vpop.eup %11007 }
0x23b5   : > { %11017 = vtanh.f32 %v7992_v21  ;;  %v7996_v62 = vsub.f32 1.0, %v11008_v7  ;;  %v8011_v33 = vmul.f32 %v11008_v7, %v8003_v61 }
0x23b7   : > { %v11010_v53 = vpop.eup %11009 }
0x23b8   : > { %v11012_v17 = vpop.eup %11011  ;;  %v7999_v32 = vmul.f32 %v11010_v53, %v7996_v62  ;;  %v15135_v53 = vld [vmem:[%s15896_s16 + $0x10] sm:$0xff] }
0x23b9   : > { %v7997_v31 = vsub.f32 1.0, %v11012_v17  ;;  %v8012_v35 = vmul.f32 %v11012_v17, %v8005_v47 }
0x23ba   : > { %v15074_v6 = vadd.f32 %v8011_v33, %v7999_v32  ;;  %v15142_v32 = vld [vmem:[%s15896_s16 + $0x18] sm:$0xff]  ;;  %v15149_v33 = vld [vmem:[%s15896_s16 + $0x20] sm:$0xff] }
0x23bb   : > { %v11014_v12 = vpop.eup %11013 }
0x23bc   : > { %v11016_v40 = vpop.eup %11015  ;;  %v8000_v34 = vmul.f32 %v11014_v12, %v7997_v31 }
0x23bd   : > { %v7998_v9 = vsub.f32 1.0, %v11016_v40  ;;  %v8013_v8 = vmul.f32 %v11016_v40, %v8007_v1 }
0x23be   : > { %v15076_v27 = vadd.f32 %v8012_v35, %v8000_v34 }
0x23bf   : > { %v11018_v56 = vpop.eup %11017 }
0x23c0   : > { %v8001_v14 = vmul.f32 %v11018_v56, %v7998_v9  ;;  %v10822_v52 = vpack.i.bf16 %v15076_v27, %v15074_v6  ;;  %v15156_v56 = vld [vmem:[%s15896_s16 + $0x28] sm:$0xff] }
0x23c2   : > { %v15080_v54 = vadd.f32 %v8013_v8, %v8001_v14  ;;  %10823 = vrot.lane.b32.xlu0 %v10822_v52, %s15850_s11 }
0x23c4   : > { %8024 = vrot.lane.b32.xlu1 %v15080_v54, %s15850_s11  ;;  %s11268_s11 = smov 7  }
0x2434   : > { %v10824_v19 = vpop.permute.xlu0 %10823 }
0x2435   : > { %v10826_v50 = vunpack.i.h.bf16 %v10824_v19  ;;  %v10825_v2 = vunpack.i.l.bf16 %v10824_v19 }
0x2436   : > { %v8025_v11 = vpop.permute.xlu1 %8024 }
0x2437   : > { %v10702_v58 = vpack.c.bf16 %v10826_v50, %v10825_v2  ;;  %v15165_v2 = vld [vmem:[%s15896_s16 + $0x38] sm:$0xff] }
0x2439   : > { %10703 = vmatpush3.bf16.msra.mxu0 %v10702_v58 }
0x243a   : > { %10494 = vmatprep.subr.mxu0 %v15808_v43 }
0x243d   : > { %10495 = vmatpush3.msra.mxu0 %v8025_v11 }
0x243e   : > { %10497 = vmatmul.mubr.msk.f32.vlgmr.msra.gmra.mrb[132].mxu0 %vm7135_vm4, %v14952_v36  ;;  %10707 = vmatprep.subr.bf16.mxu0 %v15806_v44 }
0x243f   : > { %10499 = vmatprep.mubr.msk.f32.mxu0 %vm11257_vm10, %v15808_v43 }
0x2442   : > { %10500 = vmatmul.mubr.msk.f32.gmra.mrb[134].mxu0 %vm7135_vm4, %v14962_v55 }
0x2443   : > { %10502 = vmatprep.mubr.msk.f32.mxu0 %vm11257_vm10, %v15808_v43 }
0x2446   : > { %10503 = vmatmul.mubr.msk.f32.gmra.mrb[136].mxu0 %vm7135_vm4, %v14971_v13 }
0x2447   : > { %10505 = vmatprep.mubr.msk.f32.mxu0 %vm11257_vm10, %v15808_v43 }
0x244a   : > { %10506 = vmatmul.mubr.msk.f32.gmra.mrb[138].mxu0 %vm7135_vm4, %v14980_v37 }
0x244b   : > { %10508 = vmatprep.mubr.msk.f32.mxu0 %vm11257_vm10, %v15808_v43 }
0x244e   : > { %10509 = vmatmul.mubr.msk.f32.gmra.mrb[140].mxu0 %vm7135_vm4, %v14989_v51 }
0x244f   : > { %10511 = vmatprep.mubr.msk.f32.mxu0 %vm11257_vm10, %v15808_v43 }
0x2452   : > { %10512 = vmatmul.mubr.msk.f32.gmra.mrb[142].mxu0 %vm7135_vm4, %v14998_v63 }
0x2453   : > { %10514 = vmatprep.mubr.msk.f32.mxu0 %vm11257_vm10, %v15808_v43 }
0x2456   : > { %10515 = vmatmul.mubr.msk.f32.gmra.mrb[144].mxu0 %vm7135_vm4, %v15007_v3 }
0x2457   : > { %10517 = vmatprep.mubr.msk.f32.mxu0 %vm11257_vm10, %v15808_v43 }
0x245a   : > { %10518 = vmatmul.mubr.msk.f32.gmra.mrb[146].mxu0 %vm7135_vm4, %v15016_v29 }
0x245b   : > { %10520 = vmatprep.mubr.msk.f32.mxu0 %vm11257_vm10, %v15808_v43 }
0x245e   : > { %10521 = vmatmul.mubr.msk.f32.gmra.mrb[148].mxu0 %vm7135_vm4, %v15025_v23 }
0x245f   : > { %10562 = vmatprep.mubr.msk.f32.mxu0 %vm11257_vm10, %v15808_v43 }
0x2511   : > { %v8095_v38 = vpop.f32.mrb[132].mxu0 }
0x2512   : > { %v8096_v26 = vadd.f32 %v15034_v48, %v8095_v38  ;;  %v10498_v24 = vpop.f32.mrb[133].mxu0 }
0x2514   : > { %8142 = vrot.lane.b32.xlu0 %v8096_v26, %s11261_s7  ;;  %v15172_v26 = vld [vmem:[%s15896_s16 + $0x40] sm:$0xff] }
0x2515   : > { %v8100_v45 = vpop.f32.mrb[134].mxu0 }
0x2516   : > { %v8101_v21 = vadd.f32 %v15128_v28, %v8100_v45  ;;  %v10501_v7 = vpop.f32.mrb[135].mxu0 }
0x2518   : > { %8144 = vrot.lane.b32.xlu1 %v8101_v21, %s11261_s7 }
0x2519   : > { %v8105_v62 = vpop.f32.mrb[136].mxu0 }
0x251a   : > { %v8106_v17 = vadd.f32 %v15135_v53, %v8105_v62  ;;  %v10504_v61 = vpop.f32.mrb[137].mxu0 }
0x251c   : > { %8146 = vrot.lane.b32.xlu0 %v8106_v17, %s11261_s7 }
0x251d   : > { %v8110_v31 = vpop.f32.mrb[138].mxu0 }
0x251e   : > { %v8111_v12 = vadd.f32 %v15142_v32, %v8110_v31  ;;  %v10507_v47 = vpop.f32.mrb[139].mxu0 }
0x2520   : > { %8175 = vrot.lane.b32.xlu1 %v8111_v12, %s11261_s7 }
0x2521   : > { %v8115_v40 = vpop.f32.mrb[140].mxu0 }
0x2522   : > { %v8116_v34 = vadd.f32 %v15149_v33, %v8115_v40  ;;  %v10510_v35 = vpop.f32.mrb[141].mxu0 }
0x2524   : > { %8177 = vrot.lane.b32.xlu0 %v8116_v34, %s11261_s7 }
0x2525   : > { %v8120_v9 = vpop.f32.mrb[142].mxu0 }
0x2526   : > { %v8121_v1 = vadd.f32 %v15156_v56, %v8120_v9  ;;  %v10513_v14 = vpop.f32.mrb[143].mxu0 }
0x2528   : > { %8179 = vrot.lane.b32.xlu1 %v8121_v1, %s11261_s7 }
0x2529   : > { %v8125_v8 = vpop.f32.mrb[144].mxu0 }
0x252a   : > { %v8126_v52 = vadd.f32 %v15051_v41, %v8125_v8  ;;  %v10516_v19 = vpop.f32.mrb[145].mxu0 }
0x252c   : > { %8208 = vrot.lane.b32.xlu0 %v8126_v52, %s11261_s7 }
0x252d   : > { %v8130_v50 = vpop.f32.mrb[146].mxu0 }
0x252e   : > { %v8131_v58 = vadd.f32 %v15165_v2, %v8130_v50  ;;  %v10519_v11 = vpop.f32.mrb[147].mxu0 }
0x2530   : > { %8210 = vrot.lane.b32.xlu1 %v8131_v58, %s11261_s7 }
0x2531   : > { %v8135_v38 = vpop.f32.mrb[148].mxu0 }
0x2532   : > { %v8136_v24 = vadd.f32 %v15172_v26, %v8135_v38  ;;  %v10522_v45 = vpop.f32.mrb[149].mxu0 }
0x2534   : > { %8232 = vrot.lane.b32.xlu1 %v15074_v6, %s11265_s12  ;;  %8212 = vrot.lane.b32.xlu0 %v8136_v24, %s11261_s7 }
0x2538   : > { %8236 = vrot.lane.b32.xlu1 %v15080_v54, %s11265_s12  ;;  %8234 = vrot.lane.b32.xlu0 %v15076_v27, %s11265_s12 }
0x2586   : > { %v8143_v21 = vpop.permute.xlu0 %8142 }
0x2587   : > { %v8151_v7 = vadd.f32 %v8143_v21, %v14525_v49 }
0x2589   : > { %v9877_v62 = vmul.f32 -1.442695, %v8151_v7 }
0x258a   : > { %v8145_v17 = vpop.permute.xlu1 %8144 }
0x258b   : > { %11019 = vpow2.f32 %v9877_v62  ;;  %v8152_v61 = vadd.f32 %v8145_v17, %v14667_v20 }
0x258d   : > { %v9878_v31 = vmul.f32 -1.442695, %v8152_v61 }
0x258e   : > { %v8147_v12 = vpop.permute.xlu0 %8146 }
0x258f   : > { %11021 = vpow2.f32 %v9878_v31  ;;  %v8153_v47 = vadd.f32 %v8147_v12, %v14686_v15 }
0x2591   : > { %v9879_v40 = vmul.f32 -1.442695, %v8153_v47 }
0x2592   : > { %v8176_v34 = vpop.permute.xlu1 %8175 }
0x2593   : > { %11023 = vpow2.f32 %v9879_v40  ;;  %v8184_v35 = vadd.f32 %v8176_v34, %v14539_v22 }
0x2595   : > { %v11020_v9 = vpop.eup %11019  ;;  %v9880_v1 = vmul.f32 -1.442695, %v8184_v35 }
0x2596   : > { %v8163_v14 = vadd.f32 1.0, %v11020_v9  ;;  %v8178_v8 = vpop.permute.xlu0 %8177 }
0x2597   : > { %11025 = vpow2.f32 %v9880_v1  ;;  %v8185_v52 = vadd.f32 %v8178_v8, %v14722_v59 }
0x2598   : > { %11027 = vrcp.f32 %v8163_v14 }
0x2599   : > { %v11022_v19 = vpop.eup %11021  ;;  %v9881_v50 = vmul.f32 -1.442695, %v8185_v52 }
0x259a   : > { %v8164_v58 = vadd.f32 1.0, %v11022_v19  ;;  %v8180_v11 = vpop.permute.xlu1 %8179 }
0x259b   : > { %11029 = vpow2.f32 %v9881_v50  ;;  %v8186_v38 = vadd.f32 %v8180_v11, %v14750_v16 }
0x259c   : > { %11031 = vrcp.f32 %v8164_v58 }
0x259d   : > { %v11024_v24 = vpop.eup %11023  ;;  %v9882_v45 = vmul.f32 -1.442695, %v8186_v38 }
0x259e   : > { %v8165_v21 = vadd.f32 1.0, %v11024_v24  ;;  %v8209_v7 = vpop.permute.xlu0 %8208 }
0x259f   : > { %11033 = vpow2.f32 %v9882_v45 }
0x25a0   : > { %11035 = vrcp.f32 %v8165_v21 }
0x25a1   : > { %v11026_v62 = vpop.eup %11025 }
0x25a2   : > { %v11028_v17 = vpop.eup %11027  ;;  %v8196_v61 = vadd.f32 1.0, %v11026_v62  ;;  %v8211_v35 = vpop.permute.xlu1 %8210 }
0x25a3   : > { %v8217_v31 = vmul.f32 %v11028_v17, %v8209_v7 }
0x25a4   : > { %11037 = vrcp.f32 %v8196_v61 }
0x25a5   : > { %v11030_v12 = vpop.eup %11029  ;;  %v8220_v47 = vadd.f32 %v8217_v31, %v14759_v46 }
0x25a6   : > { %v11032_v40 = vpop.eup %11031  ;;  %v8197_v34 = vadd.f32 1.0, %v11030_v12  ;;  %v8213_v19 = vpop.permute.xlu0 %8212 }
0x25a7   : > { %11039 = vtanh.f32 %v8220_v47  ;;  %v8218_v9 = vmul.f32 %v11032_v40, %v8211_v35  ;;  %v8233_v21 = vpop.permute.xlu1 %8232 }
0x25a8   : > { %11041 = vrcp.f32 %v8197_v34 }
0x25a9   : > { %v11034_v1 = vpop.eup %11033  ;;  %v8221_v14 = vadd.f32 %v8218_v9, %v14754_v57 }
0x25aa   : > { %v11036_v8 = vpop.eup %11035  ;;  %v8198_v52 = vadd.f32 1.0, %v11034_v1  ;;  %v8235_v61 = vpop.permute.xlu0 %8234 }
0x25ab   : > { %11043 = vtanh.f32 %v8221_v14  ;;  %v8219_v50 = vmul.f32 %v11036_v8, %v8213_v19  ;;  %v8237_v14 = vpop.permute.xlu1 %8236 }
0x25ac   : > { %11045 = vrcp.f32 %v8198_v52 }
0x25ad   : > { %v8222_v58 = vadd.f32 %v8219_v50, %v14774_v18 }
0x25ae   : > { %v11038_v11 = vpop.eup %11037 }
0x25af   : > { %11047 = vtanh.f32 %v8222_v58  ;;  %v8226_v38 = vsub.f32 1.0, %v11038_v11  ;;  %v8241_v12 = vmul.f32 %v11038_v11, %v8233_v21 }
0x25b1   : > { %v11040_v24 = vpop.eup %11039 }
0x25b2   : > { %v11042_v45 = vpop.eup %11041  ;;  %v8229_v62 = vmul.f32 %v11040_v24, %v8226_v38 }
0x25b3   : > { %v8227_v7 = vsub.f32 1.0, %v11042_v45  ;;  %v8242_v40 = vmul.f32 %v11042_v45, %v8235_v61 }
0x25b4   : > { %v15191_v35 = vadd.f32 %v8241_v12, %v8229_v62 }
0x25b5   : > { %v11044_v17 = vpop.eup %11043 }
0x25b6   : > { %v11046_v31 = vpop.eup %11045  ;;  %v8230_v47 = vmul.f32 %v11044_v17, %v8227_v7 }
0x25b7   : > { %v8228_v34 = vsub.f32 1.0, %v11046_v31  ;;  %v8243_v52 = vmul.f32 %v11046_v31, %v8237_v14 }
0x25b8   : > { %v15193_v9 = vadd.f32 %v8242_v40, %v8230_v47 }
0x25b9   : > { %v11048_v1 = vpop.eup %11047 }
0x25ba   : > { %v8231_v8 = vmul.f32 %v11048_v1, %v8228_v34  ;;  %v10827_v19 = vpack.i.bf16 %v15193_v9, %v15191_v35 }
0x25bc   : > { %v15197_v50 = vadd.f32 %v8243_v52, %v8231_v8  ;;  %10828 = vrot.lane.b32.xlu0 %v10827_v19, %s15832_s0 }
0x25be   : > { %15897 = vst [vmem:[#allocation4_spill] sm:$0xff] %v15197_v50  ;;  %8254 = vrot.lane.b32.xlu1 %v15197_v50, %s15832_s0 }
0x262e   : > { %v10829_v58 = vpop.permute.xlu0 %10828 }
0x262f   : > { %v10831_v11 = vunpack.i.h.bf16 %v10829_v58  ;;  %v10830_v38 = vunpack.i.l.bf16 %v10829_v58 }
0x2630   : > { %v8255_v45 = vpop.permute.xlu1 %8254 }
0x2631   : > { %v10705_v24 = vpack.c.bf16 %v10831_v11, %v10830_v38 }
0x2633   : > { %10706 = vmatpush3.bf16.msra.mxu1 %v10705_v24 }
0x2634   : > { %10527 = vmatprep.subr.mxu1 %v15808_v43 }
0x2637   : > { %10528 = vmatpush3.msra.mxu1 %v8255_v45 }
0x2638   : > { %10530 = vmatmul.mubr.msk.f32.vlgmr.msra.gmra.mrb[142].mxu1 %vm7135_vm4, %v14952_v36  ;;  %10710 = vmatprep.subr.bf16.mxu1 %v15806_v44 }
0x2639   : > { %10532 = vmatprep.mubr.msk.f32.mxu1 %vm11257_vm10, %v15808_v43 }
0x263c   : > { %10533 = vmatmul.mubr.msk.f32.gmra.mrb[144].mxu1 %vm7135_vm4, %v14962_v55 }
0x263d   : > { %10535 = vmatprep.mubr.msk.f32.mxu1 %vm11257_vm10, %v15808_v43 }
0x2640   : > { %10536 = vmatmul.mubr.msk.f32.gmra.mrb[146].mxu1 %vm7135_vm4, %v14971_v13 }
0x2641   : > { %10538 = vmatprep.mubr.msk.f32.mxu1 %vm11257_vm10, %v15808_v43 }
0x2644   : > { %10539 = vmatmul.mubr.msk.f32.gmra.mrb[148].mxu1 %vm7135_vm4, %v14980_v37 }
0x2645   : > { %10541 = vmatprep.mubr.msk.f32.mxu1 %vm11257_vm10, %v15808_v43 }
0x2648   : > { %10542 = vmatmul.mubr.msk.f32.gmra.mrb[150].mxu1 %vm7135_vm4, %v14989_v51 }
0x2649   : > { %10544 = vmatprep.mubr.msk.f32.mxu1 %vm11257_vm10, %v15808_v43 }
0x264c   : > { %10545 = vmatmul.mubr.msk.f32.gmra.mrb[152].mxu1 %vm7135_vm4, %v14998_v63 }
0x264d   : > { %10547 = vmatprep.mubr.msk.f32.mxu1 %vm11257_vm10, %v15808_v43 }
0x2650   : > { %10548 = vmatmul.mubr.msk.f32.gmra.mrb[154].mxu1 %vm7135_vm4, %v15007_v3 }
0x2651   : > { %10550 = vmatprep.mubr.msk.f32.mxu1 %vm11257_vm10, %v15808_v43 }
0x2654   : > { %10551 = vmatmul.mubr.msk.f32.gmra.mrb[156].mxu1 %vm7135_vm4, %v15016_v29 }
0x2655   : > { %10553 = vmatprep.mubr.msk.f32.mxu1 %vm11257_vm10, %v15808_v43 }
0x2658   : > { %10554 = vmatmul.mubr.msk.f32.gmra.mrb[158].mxu1 %vm7135_vm4, %v15025_v23 }
0x2659   : > { %10595 = vmatprep.mubr.msk.f32.mxu1 %vm11257_vm10, %v15808_v43 }
0x270b   : > { %v8325_v21 = vpop.f32.mrb[142].mxu1 }
0x270c   : > { %v8326_v7 = vadd.f32 %v15034_v48, %v8325_v21  ;;  %v10531_v62 = vpop.f32.mrb[143].mxu1 }
0x270e   : > { %8372 = vrot.lane.b32.xlu0 %v8326_v7, %s11267_s23 }
0x270f   : > { %v8330_v17 = vpop.f32.mrb[144].mxu1 }
0x2710   : > { %v8331_v61 = vadd.f32 %v15128_v28, %v8330_v17  ;;  %v10534_v31 = vpop.f32.mrb[145].mxu1 }
0x2712   : > { %8374 = vrot.lane.b32.xlu1 %v8331_v61, %s11267_s23 }
0x2713   : > { %v8335_v12 = vpop.f32.mrb[146].mxu1 }
0x2714   : > { %v8336_v47 = vadd.f32 %v15135_v53, %v8335_v12  ;;  %v10537_v40 = vpop.f32.mrb[147].mxu1 }
0x2716   : > { %8376 = vrot.lane.b32.xlu0 %v8336_v47, %s11267_s23 }
0x2717   : > { %v8340_v34 = vpop.f32.mrb[148].mxu1 }
0x2718   : > { %v8341_v1 = vadd.f32 %v15142_v32, %v8340_v34  ;;  %v10540_v14 = vpop.f32.mrb[149].mxu1 }
0x271a   : > { %8405 = vrot.lane.b32.xlu1 %v8341_v1, %s11267_s23 }
0x271b   : > { %v8345_v8 = vpop.f32.mrb[150].mxu1 }
0x271c   : > { %v8346_v52 = vadd.f32 %v15149_v33, %v8345_v8  ;;  %v10543_v19 = vpop.f32.mrb[151].mxu1 }
0x271e   : > { %8407 = vrot.lane.b32.xlu0 %v8346_v52, %s11267_s23 }
0x271f   : > { %v8350_v58 = vpop.f32.mrb[152].mxu1 }
0x2720   : > { %v8351_v11 = vadd.f32 %v15156_v56, %v8350_v58  ;;  %v10546_v38 = vpop.f32.mrb[153].mxu1 }
0x2722   : > { %8409 = vrot.lane.b32.xlu1 %v8351_v11, %s11267_s23 }
0x2723   : > { %v8355_v24 = vpop.f32.mrb[154].mxu1 }
0x2724   : > { %v8356_v45 = vadd.f32 %v15051_v41, %v8355_v24  ;;  %v10549_v21 = vpop.f32.mrb[155].mxu1 }
0x2726   : > { %8438 = vrot.lane.b32.xlu0 %v8356_v45, %s11267_s23 }
0x2727   : > { %v8360_v7 = vpop.f32.mrb[156].mxu1 }
0x2728   : > { %v8361_v62 = vadd.f32 %v15165_v2, %v8360_v7  ;;  %v10552_v17 = vpop.f32.mrb[157].mxu1 }
0x272a   : > { %8440 = vrot.lane.b32.xlu1 %v8361_v62, %s11267_s23 }
0x272b   : > { %v8365_v61 = vpop.f32.mrb[158].mxu1 }
0x272c   : > { %v8366_v31 = vadd.f32 %v15172_v26, %v8365_v61  ;;  %v10555_v12 = vpop.f32.mrb[159].mxu1 }
0x272e   : > { %8462 = vrot.lane.b32.xlu1 %v15191_v35, %s11265_s12  ;;  %8442 = vrot.lane.b32.xlu0 %v8366_v31, %s11267_s23  ;;  %s9951_s23 = sshll.u32 %s15904_s22, 4 }
0x2732   : > { %8466 = vrot.lane.b32.xlu1 %v15197_v50, %s11265_s12  ;;  %8464 = vrot.lane.b32.xlu0 %v15193_v9, %s11265_s12 }
0x2780   : > { %v8373_v47 = vpop.permute.xlu0 %8372 }
0x2781   : > { %v8381_v40 = vadd.f32 %v8373_v47, %v14525_v49 }
0x2783   : > { %v9892_v34 = vmul.f32 -1.442695, %v8381_v40 }
0x2784   : > { %v8375_v1 = vpop.permute.xlu1 %8374 }
0x2785   : > { %11049 = vpow2.f32 %v9892_v34  ;;  %v8382_v14 = vadd.f32 %v8375_v1, %v14667_v20 }
0x2787   : > { %v9893_v8 = vmul.f32 -1.442695, %v8382_v14 }
0x2788   : > { %v8377_v52 = vpop.permute.xlu0 %8376 }
0x2789   : > { %11051 = vpow2.f32 %v9893_v8  ;;  %v8383_v19 = vadd.f32 %v8377_v52, %v14686_v15 }
0x278b   : > { %v9894_v58 = vmul.f32 -1.442695, %v8383_v19 }
0x278c   : > { %v8406_v11 = vpop.permute.xlu1 %8405 }
0x278d   : > { %11053 = vpow2.f32 %v9894_v58  ;;  %v8414_v38 = vadd.f32 %v8406_v11, %v14539_v22 }
0x278f   : > { %v11050_v24 = vpop.eup %11049  ;;  %v9895_v45 = vmul.f32 -1.442695, %v8414_v38 }
0x2790   : > { %v8393_v21 = vadd.f32 1.0, %v11050_v24  ;;  %v8408_v7 = vpop.permute.xlu0 %8407 }
0x2791   : > { %11055 = vpow2.f32 %v9895_v45  ;;  %v8415_v62 = vadd.f32 %v8408_v7, %v14722_v59 }
0x2792   : > { %11057 = vrcp.f32 %v8393_v21 }
0x2793   : > { %v11052_v17 = vpop.eup %11051  ;;  %v9896_v61 = vmul.f32 -1.442695, %v8415_v62 }
0x2794   : > { %v8394_v31 = vadd.f32 1.0, %v11052_v17  ;;  %v8410_v12 = vpop.permute.xlu1 %8409 }
0x2795   : > { %11059 = vpow2.f32 %v9896_v61  ;;  %v8416_v47 = vadd.f32 %v8410_v12, %v14750_v16 }
0x2796   : > { %11061 = vrcp.f32 %v8394_v31 }
0x2797   : > { %v11054_v40 = vpop.eup %11053  ;;  %v9897_v34 = vmul.f32 -1.442695, %v8416_v47 }
0x2798   : > { %v8395_v1 = vadd.f32 1.0, %v11054_v40  ;;  %v8439_v14 = vpop.permute.xlu0 %8438 }
0x2799   : > { %11063 = vpow2.f32 %v9897_v34 }
0x279a   : > { %11065 = vrcp.f32 %v8395_v1 }
0x279b   : > { %v11056_v8 = vpop.eup %11055 }
0x279c   : > { %v11058_v52 = vpop.eup %11057  ;;  %v8426_v19 = vadd.f32 1.0, %v11056_v8  ;;  %v8441_v21 = vpop.permute.xlu1 %8440 }
0x279d   : > { %v8447_v58 = vmul.f32 %v11058_v52, %v8439_v14 }
0x279e   : > { %11067 = vrcp.f32 %v8426_v19 }
0x279f   : > { %v11060_v11 = vpop.eup %11059  ;;  %v8450_v38 = vadd.f32 %v8447_v58, %v14759_v46 }
0x27a0   : > { %v11062_v24 = vpop.eup %11061  ;;  %v8427_v45 = vadd.f32 1.0, %v11060_v11  ;;  %v8443_v12 = vpop.permute.xlu0 %8442 }
0x27a1   : > { %11069 = vtanh.f32 %v8450_v38  ;;  %v8448_v7 = vmul.f32 %v11062_v24, %v8441_v21  ;;  %v8463_v52 = vpop.permute.xlu1 %8462 }
0x27a2   : > { %11071 = vrcp.f32 %v8427_v45 }
0x27a3   : > { %v11064_v62 = vpop.eup %11063  ;;  %v8451_v17 = vadd.f32 %v8448_v7, %v14754_v57 }
0x27a4   : > { %v11066_v61 = vpop.eup %11065  ;;  %v8428_v31 = vadd.f32 1.0, %v11064_v62  ;;  %v8465_v38 = vpop.permute.xlu0 %8464 }
0x27a5   : > { %11073 = vtanh.f32 %v8451_v17  ;;  %v8449_v47 = vmul.f32 %v11066_v61, %v8443_v12  ;;  %v8467_v12 = vpop.permute.xlu1 %8466 }
0x27a6   : > { %11075 = vrcp.f32 %v8428_v31 }
0x27a7   : > { %v8452_v40 = vadd.f32 %v8449_v47, %v14774_v18 }
0x27a8   : > { %v11068_v34 = vpop.eup %11067 }
0x27a9   : > { %11077 = vtanh.f32 %v8452_v40  ;;  %v8456_v1 = vsub.f32 1.0, %v11068_v34  ;;  %v8471_v45 = vmul.f32 %v11068_v34, %v8463_v52  ;;  %v15898_v52 = vmov 0.0  }
0x27ab   : > { %v11070_v14 = vpop.eup %11069 }
0x27ac   : > { %v11072_v8 = vpop.eup %11071  ;;  %v8459_v58 = vmul.f32 %v11070_v14, %v8456_v1 }
0x27ad   : > { %v8457_v19 = vsub.f32 1.0, %v11072_v8  ;;  %v8472_v7 = vmul.f32 %v11072_v8, %v8465_v38 }
0x27ae   : > { %v15273_v17 = vadd.f32 %v8471_v45, %v8459_v58  ;;  %v15899_v58 = vmov 0.0|0.0  }
0x27af   : > { %v11074_v11 = vpop.eup %11073 }
0x27b0   : > { %v11076_v24 = vpop.eup %11075  ;;  %v8460_v21 = vmul.f32 %v11074_v11, %v8457_v19 }
0x27b1   : > { %v8458_v62 = vsub.f32 1.0, %v11076_v24  ;;  %v8473_v40 = vmul.f32 %v11076_v24, %v8467_v12 }
0x27b2   : > { %v15275_v61 = vadd.f32 %v8472_v7, %v8460_v21 }
0x27b3   : > { %v11078_v31 = vpop.eup %11077 }
0x27b4   : > { %v8461_v47 = vmul.f32 %v11078_v31, %v8458_v62  ;;  %v10832_v44 = vpack.i.bf16 %v15275_v61, %v15273_v17 }
0x27b6   : > { %v15279_v43 = vadd.f32 %v8473_v40, %v8461_v47  ;;  %10833 = vrot.lane.b32.xlu0 %v10832_v44, %s15828_s26 }
0x27b8   : > { %8484 = vrot.lane.b32.xlu1 %v15279_v43, %s15828_s26  ;;  %s15900_s26 = sld [smem:[#allocation10_spill]] }
0x2828   : > { %v10834_v34 = vpop.permute.xlu0 %10833 }
0x2829   : > { %v10836_v1 = vunpack.i.h.bf16 %v10834_v34  ;;  %v10835_v14 = vunpack.i.l.bf16 %v10834_v34 }
0x282a   : > { %v8485_v19 = vpop.permute.xlu1 %8484 }
0x282b   : > { %v10708_v8 = vpack.c.bf16 %v10836_v1, %v10835_v14 }
0x282d   : > { %10709 = vmatpush3.bf16.msra.mxu0 %v10708_v8 }
0x282e   : > { %10560 = vmatprep.subr.mxu0 %v15898_v52 }
0x2831   : > { %10561 = vmatpush3.msra.mxu0 %v8485_v19 }
0x2832   : > { %10563 = vmatmul.mubr.msk.f32.vlgmr.msra.gmra.mrb[150].mxu0 %vm7135_vm4, %v14952_v36  ;;  %10713 = vmatprep.subr.bf16.mxu0 %v15899_v58 }
0x2833   : > { %10565 = vmatprep.mubr.msk.f32.mxu0 %vm11257_vm10, %v15898_v52 }
0x2836   : > { %10566 = vmatmul.mubr.msk.f32.gmra.mrb[152].mxu0 %vm7135_vm4, %v14962_v55 }
0x2837   : > { %10568 = vmatprep.mubr.msk.f32.mxu0 %vm11257_vm10, %v15898_v52 }
0x283a   : > { %10569 = vmatmul.mubr.msk.f32.gmra.mrb[154].mxu0 %vm7135_vm4, %v14971_v13 }
0x283b   : > { %10571 = vmatprep.mubr.msk.f32.mxu0 %vm11257_vm10, %v15898_v52 }
0x283e   : > { %10572 = vmatmul.mubr.msk.f32.gmra.mrb[156].mxu0 %vm7135_vm4, %v14980_v37 }
0x283f   : > { %10574 = vmatprep.mubr.msk.f32.mxu0 %vm11257_vm10, %v15898_v52 }
0x2842   : > { %10575 = vmatmul.mubr.msk.f32.gmra.mrb[158].mxu0 %vm7135_vm4, %v14989_v51 }
0x2843   : > { %10577 = vmatprep.mubr.msk.f32.mxu0 %vm11257_vm10, %v15898_v52 }
0x2846   : > { %10578 = vmatmul.mubr.msk.f32.gmra.mrb[160].mxu0 %vm7135_vm4, %v14998_v63 }
0x2847   : > { %10580 = vmatprep.mubr.msk.f32.mxu0 %vm11257_vm10, %v15898_v52 }
0x284a   : > { %10581 = vmatmul.mubr.msk.f32.gmra.mrb[162].mxu0 %vm7135_vm4, %v15007_v3 }
0x284b   : > { %10583 = vmatprep.mubr.msk.f32.mxu0 %vm11257_vm10, %v15898_v52 }
0x284e   : > { %10584 = vmatmul.mubr.msk.f32.gmra.mrb[164].mxu0 %vm7135_vm4, %v15016_v29 }
0x284f   : > { %10586 = vmatprep.mubr.msk.f32.mxu0 %vm11257_vm10, %v15898_v52 }
0x2852   : > { %10587 = vmatmul.mubr.msk.f32.gmra.mrb[166].mxu0 %vm7135_vm4, %v15025_v23 }
0x2853   : > { %10628 = vmatprep.mubr.msk.f32.mxu0 %vm11257_vm10, %v15898_v52 }
0x2905   : > { %v8555_v44 = vpop.f32.mrb[150].mxu0 }
0x2906   : > { %v8556_v36 = vadd.f32 %v15034_v48, %v8555_v44  ;;  %v10564_v55 = vpop.f32.mrb[151].mxu0 }
0x2908   : > { %8602 = vrot.lane.b32.xlu0 %v8556_v36, %s11264_s1 }
0x2909   : > { %v8560_v13 = vpop.f32.mrb[152].mxu0 }
0x290a   : > { %v8561_v37 = vadd.f32 %v15128_v28, %v8560_v13  ;;  %v10567_v51 = vpop.f32.mrb[153].mxu0 }
0x290c   : > { %8604 = vrot.lane.b32.xlu1 %v8561_v37, %s11264_s1 }
0x290d   : > { %v8565_v63 = vpop.f32.mrb[154].mxu0 }
0x290e   : > { %v8566_v3 = vadd.f32 %v15135_v53, %v8565_v63  ;;  %v10570_v29 = vpop.f32.mrb[155].mxu0 }
0x2910   : > { %8606 = vrot.lane.b32.xlu0 %v8566_v3, %s11264_s1 }
0x2911   : > { %v8570_v23 = vpop.f32.mrb[156].mxu0 }
0x2912   : > { %v8571_v11 = vadd.f32 %v15142_v32, %v8570_v23  ;;  %v10573_v38 = vpop.f32.mrb[157].mxu0 }
0x2914   : > { %8635 = vrot.lane.b32.xlu1 %v8571_v11, %s11264_s1 }
0x2915   : > { %v8575_v48 = vpop.f32.mrb[158].mxu0 }
0x2916   : > { %v8576_v24 = vadd.f32 %v15149_v33, %v8575_v48  ;;  %v10576_v45 = vpop.f32.mrb[159].mxu0 }
0x2918   : > { %8637 = vrot.lane.b32.xlu0 %v8576_v24, %s11264_s1 }
0x2919   : > { %v8580_v21 = vpop.f32.mrb[160].mxu0 }
0x291a   : > { %v8581_v7 = vadd.f32 %v15156_v56, %v8580_v21  ;;  %v10579_v62 = vpop.f32.mrb[161].mxu0 }
0x291c   : > { %8639 = vrot.lane.b32.xlu1 %v8581_v7, %s11264_s1 }
0x291d   : > { %v8585_v31 = vpop.f32.mrb[162].mxu0 }
0x291e   : > { %v8586_v12 = vadd.f32 %v15051_v41, %v8585_v31  ;;  %v10582_v47 = vpop.f32.mrb[163].mxu0 }
0x2920   : > { %8668 = vrot.lane.b32.xlu0 %v8586_v12, %s11264_s1 }
0x2921   : > { %v8590_v40 = vpop.f32.mrb[164].mxu0 }
0x2922   : > { %v8591_v34 = vadd.f32 %v15165_v2, %v8590_v40  ;;  %v10585_v1 = vpop.f32.mrb[165].mxu0 }
0x2924   : > { %8670 = vrot.lane.b32.xlu1 %v8591_v34, %s11264_s1 }
0x2925   : > { %v8595_v14 = vpop.f32.mrb[166].mxu0 }
0x2926   : > { %v8596_v8 = vadd.f32 %v15172_v26, %v8595_v14  ;;  %v10588_v19 = vpop.f32.mrb[167].mxu0 }
0x2928   : > { %8692 = vrot.lane.b32.xlu1 %v15273_v17, %s11265_s12  ;;  %8672 = vrot.lane.b32.xlu0 %v8596_v8, %s11264_s1 }
0x292c   : > { %8696 = vrot.lane.b32.xlu1 %v15279_v43, %s11265_s12  ;;  %8694 = vrot.lane.b32.xlu0 %v15275_v61, %s11265_s12 }
0x297a   : > { %v8603_v41 = vpop.permute.xlu0 %8602 }
0x297b   : > { %v8611_v44 = vadd.f32 %v8603_v41, %v14525_v49 }
0x297d   : > { %v9907_v36 = vmul.f32 -1.442695, %v8611_v44 }
0x297e   : > { %v8605_v55 = vpop.permute.xlu1 %8604 }
0x297f   : > { %11079 = vpow2.f32 %v9907_v36  ;;  %v8612_v13 = vadd.f32 %v8605_v55, %v14667_v20 }
0x2981   : > { %v9908_v37 = vmul.f32 -1.442695, %v8612_v13 }
0x2982   : > { %v8607_v51 = vpop.permute.xlu0 %8606 }
0x2983   : > { %11081 = vpow2.f32 %v9908_v37  ;;  %v8613_v63 = vadd.f32 %v8607_v51, %v14686_v15 }
0x2985   : > { %v9909_v3 = vmul.f32 -1.442695, %v8613_v63 }
0x2986   : > { %v8636_v29 = vpop.permute.xlu1 %8635 }
0x2987   : > { %11083 = vpow2.f32 %v9909_v3  ;;  %v8644_v23 = vadd.f32 %v8636_v29, %v14539_v22 }
0x2989   : > { %v11080_v11 = vpop.eup %11079  ;;  %v9910_v38 = vmul.f32 -1.442695, %v8644_v23 }
0x298a   : > { %v8623_v48 = vadd.f32 1.0, %v11080_v11  ;;  %v8638_v24 = vpop.permute.xlu0 %8637 }
0x298b   : > { %11085 = vpow2.f32 %v9910_v38  ;;  %v8645_v45 = vadd.f32 %v8638_v24, %v14722_v59 }
0x298c   : > { %11087 = vrcp.f32 %v8623_v48 }
0x298d   : > { %v11082_v21 = vpop.eup %11081  ;;  %v9911_v7 = vmul.f32 -1.442695, %v8645_v45 }
0x298e   : > { %v8624_v62 = vadd.f32 1.0, %v11082_v21  ;;  %v8640_v31 = vpop.permute.xlu1 %8639 }
0x298f   : > { %11089 = vpow2.f32 %v9911_v7  ;;  %v8646_v12 = vadd.f32 %v8640_v31, %v14750_v16 }
0x2990   : > { %11091 = vrcp.f32 %v8624_v62 }
0x2991   : > { %v11084_v47 = vpop.eup %11083  ;;  %v9912_v40 = vmul.f32 -1.442695, %v8646_v12 }
0x2992   : > { %v8625_v34 = vadd.f32 1.0, %v11084_v47  ;;  %v8669_v1 = vpop.permute.xlu0 %8668 }
0x2993   : > { %11093 = vpow2.f32 %v9912_v40 }
0x2994   : > { %11095 = vrcp.f32 %v8625_v34 }
0x2995   : > { %v11086_v14 = vpop.eup %11085 }
0x2996   : > { %v11088_v8 = vpop.eup %11087  ;;  %v8656_v19 = vadd.f32 1.0, %v11086_v14  ;;  %v8671_v37 = vpop.permute.xlu1 %8670 }
0x2997   : > { %v8677_v41 = vmul.f32 %v11088_v8, %v8669_v1 }
0x2998   : > { %11097 = vrcp.f32 %v8656_v19 }
0x2999   : > { %v11090_v44 = vpop.eup %11089  ;;  %v8680_v36 = vadd.f32 %v8677_v41, %v14759_v46 }
0x299a   : > { %v11092_v55 = vpop.eup %11091  ;;  %v8657_v13 = vadd.f32 1.0, %v11090_v44  ;;  %v8673_v11 = vpop.permute.xlu0 %8672 }
0x299b   : > { %11099 = vtanh.f32 %v8680_v36  ;;  %v8678_v51 = vmul.f32 %v11092_v55, %v8671_v37  ;;  %v8693_v62 = vpop.permute.xlu1 %8692 }
0x299c   : > { %11101 = vrcp.f32 %v8657_v13 }
0x299d   : > { %v11094_v63 = vpop.eup %11093  ;;  %v8681_v3 = vadd.f32 %v8678_v51, %v14754_v57 }
0x299e   : > { %v11096_v29 = vpop.eup %11095  ;;  %v8658_v23 = vadd.f32 1.0, %v11094_v63  ;;  %v8695_v40 = vpop.permute.xlu0 %8694 }
0x299f   : > { %11103 = vtanh.f32 %v8681_v3  ;;  %v8679_v38 = vmul.f32 %v11096_v29, %v8673_v11  ;;  %v8697_v55 = vpop.permute.xlu1 %8696 }
0x29a0   : > { %11105 = vrcp.f32 %v8658_v23 }
0x29a1   : > { %v8682_v48 = vadd.f32 %v8679_v38, %v14774_v18 }
0x29a2   : > { %v11098_v24 = vpop.eup %11097 }
0x29a3   : > { %11107 = vtanh.f32 %v8682_v48  ;;  %v8686_v45 = vsub.f32 1.0, %v11098_v24  ;;  %v8701_v1 = vmul.f32 %v11098_v24, %v8693_v62  ;;  %v15370_v48 = vld [vmem:[%s15746_s9] sm:$0xff]  ;;  %v15380_v24 = vld [vmem:[%s15746_s9 + $0x8] sm:$0xff] }
0x29a4   : > { %v15416_v62 = vld [vmem:[%s15746_s9 + $0x28] sm:$0xff] }
0x29a5   : > { %v11100_v21 = vpop.eup %11099 }
0x29a6   : > { %v11102_v7 = vpop.eup %11101  ;;  %v8689_v12 = vmul.f32 %v11100_v21, %v8686_v45  ;;  %v15389_v45 = vld [vmem:[%s15746_s9 + $0x10] sm:$0xff]  ;;  %v15398_v21 = vld [vmem:[%s15746_s9 + $0x18] sm:$0xff] }
0x29a7   : > { %v8687_v31 = vsub.f32 1.0, %v11102_v7  ;;  %v8702_v8 = vmul.f32 %v11102_v7, %v8695_v40  ;;  %v15407_v7 = vld [vmem:[%s15746_s9 + $0x20] sm:$0xff] }
0x29a8   : > { %v15355_v41 = vadd.f32 %v8701_v1, %v8689_v12  ;;  %v15434_v12 = vld [vmem:[%s15746_s9 + $0x38] sm:$0xff] }
0x29a9   : > { %v11104_v47 = vpop.eup %11103 }
0x29aa   : > { %v11106_v34 = vpop.eup %11105  ;;  %v8690_v14 = vmul.f32 %v11104_v47, %v8687_v31  ;;  %v15425_v31 = vld [vmem:[%s15746_s9 + $0x30] sm:$0xff]  ;;  %v15443_v47 = vld [vmem:[%s15746_s9 + $0x40] sm:$0xff] }
0x29ab   : > { %v8688_v19 = vsub.f32 1.0, %v11106_v34  ;;  %v8703_v37 = vmul.f32 %v11106_v34, %v8697_v55  ;;  %v15452_v34 = vld [vmem:[%s15896_s16] sm:$0xff] }
0x29ac   : > { %v15357_v44 = vadd.f32 %v8702_v8, %v8690_v14 }
0x29ad   : > { %v11108_v36 = vpop.eup %11107 }
0x29ae   : > { %v8691_v13 = vmul.f32 %v11108_v36, %v8688_v19  ;;  %v10837_v51 = vpack.i.bf16 %v15357_v44, %v15355_v41 }
0x29b0   : > { %v15361_v63 = vadd.f32 %v8703_v37, %v8691_v13  ;;  %10838 = vrot.lane.b32.xlu0 %v10837_v51, %s15851_s13 }
0x29b2   : > { %8714 = vrot.lane.b32.xlu1 %v15361_v63, %s15851_s13 }
0x2a22   : > { %v10839_v3 = vpop.permute.xlu0 %10838 }
0x2a23   : > { %v10841_v29 = vunpack.i.h.bf16 %v10839_v3  ;;  %v10840_v23 = vunpack.i.l.bf16 %v10839_v3 }
0x2a24   : > { %v8715_v38 = vpop.permute.xlu1 %8714 }
0x2a25   : > { %v10711_v11 = vpack.c.bf16 %v10841_v29, %v10840_v23 }
0x2a27   : > { %10712 = vmatpush3.bf16.msra.mxu1 %v10711_v11 }
0x2a28   : > { %10593 = vmatprep.subr.mxu1 %v15898_v52 }
0x2a2b   : > { %10594 = vmatpush3.msra.mxu1 %v8715_v38 }
0x2a2c   : > { %10596 = vmatmul.mubr.msk.f32.vlgmr.msra.gmra.mrb[160].mxu1 %vm7135_vm4, %v15370_v48  ;;  %10716 = vmatprep.subr.bf16.mxu1 %v15899_v58 }
0x2a2d   : > { %10598 = vmatprep.mubr.msk.f32.mxu1 %vm11257_vm10, %v15898_v52 }
0x2a30   : > { %10599 = vmatmul.mubr.msk.f32.gmra.mrb[162].mxu1 %vm7135_vm4, %v15380_v24 }
0x2a31   : > { %10601 = vmatprep.mubr.msk.f32.mxu1 %vm11257_vm10, %v15898_v52 }
0x2a34   : > { %10602 = vmatmul.mubr.msk.f32.gmra.mrb[164].mxu1 %vm7135_vm4, %v15389_v45 }
0x2a35   : > { %10604 = vmatprep.mubr.msk.f32.mxu1 %vm11257_vm10, %v15898_v52 }
0x2a38   : > { %10605 = vmatmul.mubr.msk.f32.gmra.mrb[166].mxu1 %vm7135_vm4, %v15398_v21 }
0x2a39   : > { %10607 = vmatprep.mubr.msk.f32.mxu1 %vm11257_vm10, %v15898_v52 }
0x2a3c   : > { %10608 = vmatmul.mubr.msk.f32.gmra.mrb[168].mxu1 %vm7135_vm4, %v15407_v7 }
0x2a3d   : > { %10610 = vmatprep.mubr.msk.f32.mxu1 %vm11257_vm10, %v15898_v52 }
0x2a40   : > { %10611 = vmatmul.mubr.msk.f32.gmra.mrb[170].mxu1 %vm7135_vm4, %v15416_v62 }
0x2a41   : > { %10613 = vmatprep.mubr.msk.f32.mxu1 %vm11257_vm10, %v15898_v52 }
0x2a44   : > { %10614 = vmatmul.mubr.msk.f32.gmra.mrb[172].mxu1 %vm7135_vm4, %v15425_v31 }
0x2a45   : > { %10616 = vmatprep.mubr.msk.f32.mxu1 %vm11257_vm10, %v15898_v52 }
0x2a48   : > { %10617 = vmatmul.mubr.msk.f32.gmra.mrb[174].mxu1 %vm7135_vm4, %v15434_v12 }
0x2a49   : > { %10619 = vmatprep.mubr.msk.f32.mxu1 %vm11257_vm10, %v15898_v52 }
0x2a4c   : > { %10620 = vmatmul.mubr.msk.f32.gmra.mrb[176].mxu1 %vm7135_vm4, %v15443_v47 }
0x2a4d   : > { %10661 = vmatprep.mubr.msk.f32.mxu1 %vm11257_vm10, %v15898_v52 }
0x2aff   : > { %v8785_v40 = vpop.f32.mrb[160].mxu1 }
0x2b00   : > { %v8786_v1 = vadd.f32 %v15452_v34, %v8785_v40  ;;  %v10597_v14 = vpop.f32.mrb[161].mxu1 }
0x2b02   : > { %8832 = vrot.lane.b32.xlu0 %v8786_v1, %s11268_s11 }
0x2b03   : > { %v8790_v8 = vpop.f32.mrb[162].mxu1 }
0x2b04   : > { %v8791_v19 = vadd.f32 %v15128_v28, %v8790_v8  ;;  %v10600_v36 = vpop.f32.mrb[163].mxu1 }
0x2b06   : > { %8834 = vrot.lane.b32.xlu1 %v8791_v19, %s11268_s11 }
0x2b07   : > { %v8795_v55 = vpop.f32.mrb[164].mxu1 }
0x2b08   : > { %v8796_v13 = vadd.f32 %v15135_v53, %v8795_v55  ;;  %v10603_v37 = vpop.f32.mrb[165].mxu1 }
0x2b0a   : > { %8836 = vrot.lane.b32.xlu0 %v8796_v13, %s11268_s11 }
0x2b0b   : > { %v8800_v51 = vpop.f32.mrb[166].mxu1 }
0x2b0c   : > { %v8801_v3 = vadd.f32 %v15142_v32, %v8800_v51  ;;  %v10606_v29 = vpop.f32.mrb[167].mxu1  ;;  %v15469_v32 = vld [vmem:[%s15896_s16 + $0x30] sm:$0xff] }
0x2b0e   : > { %8865 = vrot.lane.b32.xlu1 %v8801_v3, %s11268_s11 }
0x2b0f   : > { %v8805_v23 = vpop.f32.mrb[168].mxu1 }
0x2b10   : > { %v8806_v11 = vadd.f32 %v15149_v33, %v8805_v23  ;;  %v10609_v38 = vpop.f32.mrb[169].mxu1 }
0x2b12   : > { %8867 = vrot.lane.b32.xlu0 %v8806_v11, %s11268_s11 }
0x2b13   : > { %v8810_v28 = vpop.f32.mrb[170].mxu1 }
0x2b14   : > { %v8811_v40 = vadd.f32 %v15156_v56, %v8810_v28  ;;  %v10612_v1 = vpop.f32.mrb[171].mxu1 }
0x2b16   : > { %8869 = vrot.lane.b32.xlu1 %v8811_v40, %s11268_s11 }
0x2b17   : > { %v8815_v53 = vpop.f32.mrb[172].mxu1 }
0x2b18   : > { %v8816_v14 = vadd.f32 %v15469_v32, %v8815_v53  ;;  %v10615_v8 = vpop.f32.mrb[173].mxu1 }
0x2b1a   : > { %8898 = vrot.lane.b32.xlu0 %v8816_v14, %s11268_s11 }
0x2b1b   : > { %v8820_v33 = vpop.f32.mrb[174].mxu1 }
0x2b1c   : > { %v8821_v19 = vadd.f32 %v15165_v2, %v8820_v33  ;;  %v10618_v36 = vpop.f32.mrb[175].mxu1 }
0x2b1e   : > { %8900 = vrot.lane.b32.xlu1 %v8821_v19, %s11268_s11 }
0x2b1f   : > { %v8825_v56 = vpop.f32.mrb[176].mxu1 }
0x2b20   : > { %v8826_v55 = vadd.f32 %v15172_v26, %v8825_v56  ;;  %v10621_v13 = vpop.f32.mrb[177].mxu1 }
0x2b22   : > { %8922 = vrot.lane.b32.xlu1 %v15355_v41, %s11265_s12  ;;  %8902 = vrot.lane.b32.xlu0 %v8826_v55, %s11268_s11 }
0x2b26   : > { %8926 = vrot.lane.b32.xlu1 %v15361_v63, %s11265_s12  ;;  %8924 = vrot.lane.b32.xlu0 %v15357_v44, %s11265_s12 }
0x2b74   : > { %v8833_v37 = vpop.permute.xlu0 %8832 }
0x2b75   : > { %v8841_v2 = vadd.f32 %v8833_v37, %v14525_v49 }
0x2b77   : > { %v9922_v51 = vmul.f32 -1.442695, %v8841_v2 }
0x2b78   : > { %v8835_v3 = vpop.permute.xlu1 %8834 }
0x2b79   : > { %11109 = vpow2.f32 %v9922_v51  ;;  %v8842_v26 = vadd.f32 %v8835_v3, %v14667_v20 }
0x2b7b   : > { %v9923_v29 = vmul.f32 -1.442695, %v8842_v26 }
0x2b7c   : > { %v8837_v23 = vpop.permute.xlu0 %8836 }
0x2b7d   : > { %11111 = vpow2.f32 %v9923_v29  ;;  %v8843_v11 = vadd.f32 %v8837_v23, %v14686_v15 }
0x2b7f   : > { %v9924_v38 = vmul.f32 -1.442695, %v8843_v11 }
0x2b80   : > { %v8866_v28 = vpop.permute.xlu1 %8865 }
0x2b81   : > { %11113 = vpow2.f32 %v9924_v38  ;;  %v8874_v40 = vadd.f32 %v8866_v28, %v14539_v22 }
0x2b83   : > { %v11110_v1 = vpop.eup %11109  ;;  %v9925_v53 = vmul.f32 -1.442695, %v8874_v40 }
0x2b84   : > { %v8853_v14 = vadd.f32 1.0, %v11110_v1  ;;  %v8868_v8 = vpop.permute.xlu0 %8867 }
0x2b85   : > { %11115 = vpow2.f32 %v9925_v53  ;;  %v8875_v33 = vadd.f32 %v8868_v8, %v14722_v59 }
0x2b86   : > { %11117 = vrcp.f32 %v8853_v14 }
0x2b87   : > { %v11112_v19 = vpop.eup %11111  ;;  %v9926_v36 = vmul.f32 -1.442695, %v8875_v33 }
0x2b88   : > { %v8854_v56 = vadd.f32 1.0, %v11112_v19  ;;  %v8870_v55 = vpop.permute.xlu1 %8869 }
0x2b89   : > { %11119 = vpow2.f32 %v9926_v36  ;;  %v8876_v13 = vadd.f32 %v8870_v55, %v14750_v16 }
0x2b8a   : > { %11121 = vrcp.f32 %v8854_v56 }
0x2b8b   : > { %v11114_v37 = vpop.eup %11113  ;;  %v9927_v2 = vmul.f32 -1.442695, %v8876_v13 }
0x2b8c   : > { %v8855_v51 = vadd.f32 1.0, %v11114_v37  ;;  %v8899_v3 = vpop.permute.xlu0 %8898 }
0x2b8d   : > { %11123 = vpow2.f32 %v9927_v2 }
0x2b8e   : > { %11125 = vrcp.f32 %v8855_v51 }
0x2b8f   : > { %v11116_v26 = vpop.eup %11115 }
0x2b90   : > { %v11118_v29 = vpop.eup %11117  ;;  %v8886_v23 = vadd.f32 1.0, %v11116_v26  ;;  %v8901_v53 = vpop.permute.xlu1 %8900 }
0x2b91   : > { %v8907_v11 = vmul.f32 %v11118_v29, %v8899_v3 }
0x2b92   : > { %11127 = vrcp.f32 %v8886_v23 }
0x2b93   : > { %v11120_v38 = vpop.eup %11119  ;;  %v8910_v28 = vadd.f32 %v8907_v11, %v14759_v46 }
0x2b94   : > { %v11122_v40 = vpop.eup %11121  ;;  %v8887_v1 = vadd.f32 1.0, %v11120_v38  ;;  %v8903_v56 = vpop.permute.xlu0 %8902 }
0x2b95   : > { %11129 = vtanh.f32 %v8910_v28  ;;  %v8908_v14 = vmul.f32 %v11122_v40, %v8901_v53  ;;  %v8923_v26 = vpop.permute.xlu1 %8922 }
0x2b96   : > { %11131 = vrcp.f32 %v8887_v1 }
0x2b97   : > { %v11124_v8 = vpop.eup %11123  ;;  %v8911_v33 = vadd.f32 %v8908_v14, %v14754_v57 }
0x2b98   : > { %v11126_v19 = vpop.eup %11125  ;;  %v8888_v36 = vadd.f32 1.0, %v11124_v8  ;;  %v8925_v38 = vpop.permute.xlu0 %8924 }
0x2b99   : > { %11133 = vtanh.f32 %v8911_v33  ;;  %v8909_v55 = vmul.f32 %v11126_v19, %v8903_v56 }
0x2b9a   : > { %11135 = vrcp.f32 %v8888_v36  ;;  %v8927_v36 = vpop.permute.xlu1 %8926 }
0x2b9b   : > { %v8912_v13 = vadd.f32 %v8909_v55, %v14774_v18 }
0x2b9c   : > { %v11128_v37 = vpop.eup %11127 }
0x2b9d   : > { %11137 = vtanh.f32 %v8912_v13  ;;  %v8916_v2 = vsub.f32 1.0, %v11128_v37  ;;  %v8931_v40 = vmul.f32 %v11128_v37, %v8923_v26 }
0x2b9f   : > { %v11130_v51 = vpop.eup %11129 }
0x2ba0   : > { %v11132_v3 = vpop.eup %11131  ;;  %v8919_v23 = vmul.f32 %v11130_v51, %v8916_v2 }
0x2ba1   : > { %v8917_v29 = vsub.f32 1.0, %v11132_v3  ;;  %v8932_v53 = vmul.f32 %v11132_v3, %v8925_v38  ;;  %v11225_v38 = vld [vmem:[%s15896_s16 + $0x20] sm:$0xff] }
0x2ba2   : > { %v15492_v8 = vadd.f32 %v8931_v40, %v8919_v23 }
0x2ba3   : > { %v11134_v11 = vpop.eup %11133 }
0x2ba4   : > { %v11136_v28 = vpop.eup %11135  ;;  %v8920_v1 = vmul.f32 %v11134_v11, %v8917_v29 }
0x2ba5   : > { %v8918_v14 = vsub.f32 1.0, %v11136_v28  ;;  %v8933_v55 = vmul.f32 %v11136_v28, %v8927_v36 }
0x2ba6   : > { %v15494_v33 = vadd.f32 %v8932_v53, %v8920_v1  ;;  %v11226_v53 = vld [vmem:[%s15896_s16 + $0x28] sm:$0xff] }
0x2ba7   : > { %v11138_v19 = vpop.eup %11137 }
0x2ba8   : > { %v8921_v56 = vmul.f32 %v11138_v19, %v8918_v14  ;;  %v10842_v13 = vpack.i.bf16 %v15494_v33, %v15492_v8 }
0x2baa   : > { %v15498_v50 = vadd.f32 %v8933_v55, %v8921_v56  ;;  %10843 = vrot.lane.b32.xlu0 %v10842_v13, %s15831_s25  ;;  %v11227_v13 = vld [vmem:[%s15896_s16 + $0x38] sm:$0xff] }
0x2bac   : > { %8944 = vrot.lane.b32.xlu1 %v15498_v50, %s15831_s25 }
0x2c1c   : > { %v10844_v37 = vpop.permute.xlu0 %10843 }
0x2c1d   : > { %v10846_v2 = vunpack.i.h.bf16 %v10844_v37  ;;  %v10845_v51 = vunpack.i.l.bf16 %v10844_v37 }
0x2c1e   : > { %v8945_v26 = vpop.permute.xlu1 %8944 }
0x2c1f   : > { %v10714_v3 = vpack.c.bf16 %v10846_v2, %v10845_v51 }
0x2c21   : > { %10715 = vmatpush3.bf16.msra.mxu0 %v10714_v3  ;;  %v11228_v3 = vld [vmem:[%s15896_s16 + $0x40] sm:$0xff] }
0x2c22   : > { %10626 = vmatprep.subr.mxu0 %v15898_v52 }
0x2c25   : > { %10627 = vmatpush3.msra.mxu0 %v8945_v26 }
0x2c26   : > { %10629 = vmatmul.mubr.msk.f32.vlgmr.msra.gmra.mrb[168].mxu0 %vm7135_vm4, %v15370_v48  ;;  %10719 = vmatprep.subr.bf16.mxu0 %v15899_v58 }
0x2c27   : > { %10631 = vmatprep.mubr.msk.f32.mxu0 %vm11257_vm10, %v15898_v52 }
0x2c2a   : > { %10632 = vmatmul.mubr.msk.f32.gmra.mrb[170].mxu0 %vm7135_vm4, %v15380_v24 }
0x2c2b   : > { %10634 = vmatprep.mubr.msk.f32.mxu0 %vm11257_vm10, %v15898_v52 }
0x2c2e   : > { %10635 = vmatmul.mubr.msk.f32.gmra.mrb[172].mxu0 %vm7135_vm4, %v15389_v45  ;;  %v11223_v45 = vld [vmem:[%s15896_s16 + $0x8] sm:$0xff] }
0x2c2f   : > { %10637 = vmatprep.mubr.msk.f32.mxu0 %vm11257_vm10, %v15898_v52 }
0x2c32   : > { %10638 = vmatmul.mubr.msk.f32.gmra.mrb[174].mxu0 %vm7135_vm4, %v15398_v21 }
0x2c33   : > { %10640 = vmatprep.mubr.msk.f32.mxu0 %vm11257_vm10, %v15898_v52 }
0x2c36   : > { %10641 = vmatmul.mubr.msk.f32.gmra.mrb[176].mxu0 %vm7135_vm4, %v15407_v7 }
0x2c37   : > { %10643 = vmatprep.mubr.msk.f32.mxu0 %vm11257_vm10, %v15898_v52 }
0x2c3a   : > { %10644 = vmatmul.mubr.msk.f32.gmra.mrb[178].mxu0 %vm7135_vm4, %v15416_v62 }
0x2c3b   : > { %10646 = vmatprep.mubr.msk.f32.mxu0 %vm11257_vm10, %v15898_v52 }
0x2c3e   : > { %10647 = vmatmul.mubr.msk.f32.gmra.mrb[180].mxu0 %vm7135_vm4, %v15425_v31  ;;  %v11224_v31 = vld [vmem:[%s15896_s16 + $0x10] sm:$0xff] }
0x2c3f   : > { %10649 = vmatprep.mubr.msk.f32.mxu0 %vm11257_vm10, %v15898_v52 }
0x2c42   : > { %10650 = vmatmul.mubr.msk.f32.gmra.mrb[182].mxu0 %vm7135_vm4, %v15434_v12 }
0x2c43   : > { %10652 = vmatprep.mubr.msk.f32.mxu0 %vm11257_vm10, %v15898_v52 }
0x2c46   : > { %10653 = vmatmul.mubr.msk.f32.gmra.mrb[184].mxu0 %vm7135_vm4, %v15443_v47 }
0x2c47   : > { %10676 = vmatprep.mubr.msk.f32.mxu0 %vm11257_vm10, %v15898_v52 }
0x2cf9   : > { %v9015_v58 = vpop.f32.mrb[168].mxu0 }
0x2cfa   : > { %v10630_v48 = vpop.f32.mrb[169].mxu0 }
0x2cfd   : > { %v9020_v24 = vpop.f32.mrb[170].mxu0 }
0x2cfe   : > { %v9021_v21 = vadd.f32 %v11223_v45, %v9020_v24  ;;  %v10633_v7 = vpop.f32.mrb[171].mxu0  ;;  %v9016_v24 = vadd.f32 %v15452_v34, %v9015_v58  ;;  %v11229_v45 = vld [vmem:[%s15896_s16 + $0x18] sm:$0xff]  ;;  %v9253_v34 = vld [vmem:[%s15900_s26] sm:$0xff] }
0x2d00   : > { %9064 = vrot.lane.b32.xlu0 %v9021_v21, %s11263_s27 }
0x2d01   : > { %v9025_v62 = vpop.f32.mrb[172].mxu0 }
0x2d02   : > { %v9026_v12 = vadd.f32 %v11224_v31, %v9025_v62  ;;  %v10636_v47 = vpop.f32.mrb[173].mxu0 }
0x2d04   : > { %9066 = vrot.lane.b32.xlu1 %v9026_v12, %s11263_s27 }
0x2d05   : > { %v9030_v29 = vpop.f32.mrb[174].mxu0 }
0x2d06   : > { %v10639_v23 = vpop.f32.mrb[175].mxu0  ;;  %v9031_v21 = vadd.f32 %v11229_v45, %v9030_v29 }
0x2d09   : > { %v9035_v11 = vpop.f32.mrb[176].mxu0 }
0x2d0a   : > { %v9036_v28 = vadd.f32 %v11225_v38, %v9035_v11  ;;  %v10642_v40 = vpop.f32.mrb[177].mxu0 }
0x2d0c   : > { %9097 = vrot.lane.b32.xlu0 %v9036_v28, %s11263_s27 }
0x2d0d   : > { %v9040_v1 = vpop.f32.mrb[178].mxu0 }
0x2d0e   : > { %v9041_v14 = vadd.f32 %v11226_v53, %v9040_v1  ;;  %v10645_v19 = vpop.f32.mrb[179].mxu0 }
0x2d10   : > { %9099 = vrot.lane.b32.xlu1 %v9041_v14, %s11263_s27 }
0x2d11   : > { %v9045_v36 = vpop.f32.mrb[180].mxu0 }
0x2d12   : > { %v10648_v56 = vpop.f32.mrb[181].mxu0  ;;  %v9046_v7 = vadd.f32 %v15469_v32, %v9045_v36  ;;  %v9255_v32 = vld [vmem:[%s15900_s26 + $0x10] sm:$0xff] }
0x2d15   : > { %v9050_v55 = vpop.f32.mrb[182].mxu0 }
0x2d16   : > { %v9051_v37 = vadd.f32 %v11227_v13, %v9050_v55  ;;  %v10651_v2 = vpop.f32.mrb[183].mxu0 }
0x2d18   : > { %9130 = vrot.lane.b32.xlu0 %v9051_v37, %s11263_s27 }
0x2d19   : > { %v9055_v51 = vpop.f32.mrb[184].mxu0 }
0x2d1a   : > { %v9056_v26 = vadd.f32 %v11228_v3, %v9055_v51  ;;  %v10654_v48 = vpop.f32.mrb[185].mxu0 }
0x2d1c   : > { %9154 = vrot.lane.b32.xlu0 %v15494_v33, %s11265_s12  ;;  %9132 = vrot.lane.b32.xlu1 %v9056_v26, %s11263_s27 }
0x2d20   : > { %9062 = vrot.lane.b32.xlu0 %v9016_v24, %s11263_s27  ;;  %9156 = vrot.lane.b32.xlu1 %v15498_v50, %s11265_s12 }
0x2d24   : > { %9128 = vrot.lane.b32.xlu0 %v9046_v7, %s11263_s27  ;;  %9095 = vrot.lane.b32.xlu1 %v9031_v21, %s11263_s27 }
0x2d28   : > { %9191 = vrot.lane.b32.xlu0 %v15494_v33, %s15851_s13  ;;  %9197 = vrot.lane.b32.xlu1 %v15357_v44, %s15832_s0 }
0x2d2c   : > { %9203 = vrot.lane.b32.xlu0 %v15275_v61, %s15827_s29  ;;  %9152 = vrot.lane.b32.xlu1 %v15492_v8, %s11265_s12 }
0x2d30   : > { %9209 = vrot.lane.b32.xlu0 %v15076_v27, %s11262_s10  ;;  %9215 = vrot.lane.b32.xlu1 %v14939_v25, %s11261_s7 }
0x2d34   : > { %9221 = vrot.lane.b32.xlu0 %v14857_v5, %s11264_s1  ;;  %9227 = vrot.lane.b32.xlu1 %v14765_v10, %s11263_s27 }
0x2d38   : > { %9193 = vrot.lane.b32.xlu0 %v15498_v50, %s15851_s13 }
0x2d3c   : > { %9199 = vrot.lane.b32.xlu0 %v15361_v63, %s15832_s0  ;;  %s15906_s0 = sld [smem:[#allocation13_spill]] }
0x2d40   : > { %9211 = vrot.lane.b32.xlu0 %v15080_v54, %s11262_s10 }
0x2d44   : > { %9223 = vrot.lane.b32.xlu0 %v14861_v30, %s11264_s1 }
0x2d48   : > { %9258 = vperm.xlu0 %10810, %v9253_v34  }
0x2d4c   : > { %9268 = vperm.xlu0 %10810, %v9255_v32  }
0x2d72   : > { %v9065_v50 = vpop.permute.xlu0 %9064 }
0x2d73   : > { %v9072_v58 = vadd.f32 %v9065_v50, %v14667_v20 }
0x2d75   : > { %v9938_v63 = vmul.f32 -1.442695, %v9072_v58  ;;  %v9254_v58 = vld [vmem:[%s15900_s26 + $0x8] sm:$0xff] }
0x2d76   : > { %v9067_v62 = vpop.permute.xlu1 %9066 }
0x2d77   : > { %11139 = vpow2.f32 %v9938_v63  ;;  %v9073_v54 = vadd.f32 %v9067_v62, %v14686_v15 }
0x2d79   : > { %v9939_v31 = vmul.f32 -1.442695, %v9073_v54 }
0x2d7b   : > { %11141 = vpow2.f32 %v9939_v31 }
0x2d7e   : > { %v9098_v30 = vpop.permute.xlu0 %9097 }
0x2d7f   : > { %v9105_v12 = vadd.f32 %v9098_v30, %v14722_v59 }
0x2d81   : > { %v11140_v47 = vpop.eup %11139  ;;  %v9941_v29 = vmul.f32 -1.442695, %v9105_v12 }
0x2d82   : > { %v9084_v23 = vadd.f32 1.0, %v11140_v47  ;;  %v9100_v11 = vpop.permute.xlu1 %9099 }
0x2d83   : > { %11143 = vpow2.f32 %v9941_v29  ;;  %v9106_v38 = vadd.f32 %v9100_v11, %v14750_v16 }
0x2d84   : > { %11145 = vrcp.f32 %v9084_v23 }
0x2d85   : > { %v11142_v28 = vpop.eup %11141  ;;  %v9942_v20 = vmul.f32 -1.442695, %v9106_v38 }
0x2d86   : > { %v9085_v40 = vadd.f32 1.0, %v11142_v28 }
0x2d87   : > { %11147 = vpow2.f32 %v9942_v20 }
0x2d88   : > { %11149 = vrcp.f32 %v9085_v40 }
0x2d8a   : > { %v9131_v14 = vpop.permute.xlu0 %9130 }
0x2d8d   : > { %v11144_v1 = vpop.eup %11143 }
0x2d8e   : > { %v11146_v15 = vpop.eup %11145  ;;  %v9117_v53 = vadd.f32 1.0, %v11144_v1  ;;  %v9133_v13 = vpop.permute.xlu1 %9132 }
0x2d8f   : > { %v9138_v19 = vmul.f32 %v11146_v15, %v9131_v14  ;;  %v9155_v26 = vpop.permute.xlu0 %9154 }
0x2d90   : > { %11151 = vrcp.f32 %v9117_v53 }
0x2d91   : > { %v11148_v59 = vpop.eup %11147  ;;  %v9141_v36 = vadd.f32 %v9138_v19, %v14754_v57 }
0x2d92   : > { %v11150_v56 = vpop.eup %11149  ;;  %v9118_v55 = vadd.f32 1.0, %v11148_v59  ;;  %v9157_v32 = vpop.permute.xlu1 %9156 }
0x2d93   : > { %11153 = vtanh.f32 %v9141_v36  ;;  %v9139_v16 = vmul.f32 %v11150_v56, %v9133_v13  ;;  %v9063_v63 = vpop.permute.xlu0 %9062 }
0x2d94   : > { %11155 = vrcp.f32 %v9118_v55  ;;  %v9071_v62 = vadd.f32 %v9063_v63, %v14525_v49  ;;  %v9168_v55 = vsel %vm7052_vm1, %v14765_v10, %v14857_v5 }
0x2d95   : > { %v9142_v37 = vadd.f32 %v9139_v16, %v14774_v18 }
0x2d96   : > { %v9937_v54 = vmul.f32 -1.442695, %v9071_v62 }
0x2d97   : > { %11157 = vtanh.f32 %v9142_v37  ;;  %v9170_v37 = vsel %vm7058_vm5, %v9168_v55, %v14939_v25  ;;  %v9363_v55 = vld [vmem:[%s15903_s21] sm:$0x1] }
0x2d98   : > { %11159 = vpow2.f32 %v9937_v54 }
0x2d9a   : > { %v11152_v2 = vpop.eup %11151 }
0x2d9b   : > { %v9147_v51 = vsub.f32 1.0, %v11152_v2  ;;  %v9162_v45 = vmul.f32 %v11152_v2, %v9155_v26  ;;  %v9172_v26 = vsel %vm7064_vm6, %v9170_v37, %v15076_v27 }
0x2d9d   : > { %v11154_v3 = vpop.eup %11153 }
0x2d9e   : > { %v11156_v48 = vpop.eup %11155  ;;  %v9150_v24 = vmul.f32 %v11154_v3, %v9147_v51 }
0x2d9f   : > { %v9148_v7 = vsub.f32 1.0, %v11156_v48  ;;  %v9163_v50 = vmul.f32 %v11156_v48, %v9157_v32 }
0x2da0   : > { %v15613_v21 = vadd.f32 %v9162_v45, %v9150_v24 }
0x2da1   : > { %v11158_v57 = vpop.eup %11157 }
0x2da2   : > { %9185 = vrot.lane.b32.xlu1 %v15613_v21, %s15825_s17  ;;  %v9151_v34 = vmul.f32 %v11158_v57, %v9148_v7  ;;  %v11160_v31 = vpop.eup %11159 }
0x2da3   : > { %v9083_v12 = vadd.f32 1.0, %v11160_v31 }
0x2da4   : > { %v9166_v18 = vadd.f32 %v9163_v50, %v9151_v34 }
0x2da5   : > { %11161 = vrcp.f32 %v9083_v12 }
0x2da6   : > { %9205 = vrot.lane.b32.xlu1 %v15279_v43, %s15827_s29  ;;  %v9096_v43 = vpop.permute.xlu1 %9095 }
0x2da7   : > { %v9104_v30 = vadd.f32 %v9096_v43, %v14539_v22 }
0x2da9   : > { %v9940_v47 = vmul.f32 -1.442695, %v9104_v30 }
0x2daa   : > { %9187 = vrot.lane.b32.xlu1 %v9166_v18, %s15825_s17  ;;  %v9198_v23 = vpop.permute.xlu1 %9197 }
0x2dab   : > { %11163 = vpow2.f32 %v9940_v47 }
0x2dae   : > { %9217 = vrot.lane.b32.xlu1 %v14943_v39, %s11261_s7  ;;  %v9129_v39 = vpop.permute.xlu0 %9128  ;;  %v9153_v40 = vpop.permute.xlu1 %9152  ;;  %s15902_s7 = sld [smem:[#allocation9_spill]] }
0x2daf   : > { %v11162_v29 = vpop.eup %11161 }
0x2db0   : > { %v9137_v28 = vmul.f32 %v11162_v29, %v9129_v39 }
0x2db2   : > { %9229 = vrot.lane.b32.xlu1 %v14782_v42, %s11263_s27  ;;  %v9192_v42 = vpop.permute.xlu0 %9191  ;;  %v9140_v49 = vadd.f32 %v9137_v28, %v14759_v46  ;;  %v9216_v15 = vpop.permute.xlu1 %9215  ;;  %v9167_v46 = vsel %vm7052_vm1, %v14776_v0, %v14855_v60  ;;  %v9174_v0 = vsel %vm7070_vm15, %v9172_v26, %v15193_v9  ;;  %s15907_s27 = sld [smem:[#allocation14_spill]] }
0x2db3   : > { %v9169_v3 = vsel %vm7058_vm5, %v9167_v46, %v14937_v4  ;;  %v9176_v4 = vsel %vm7076_vm13, %v9174_v0, %v15275_v61 }
0x2db4   : > { %v9171_v48 = vsel %vm7064_vm6, %v9169_v3, %v15074_v6  ;;  %v9178_v6 = vsel %vm7082_vm14, %v9176_v4, %v15357_v44  ;;  %v9250_v39 = vld [vmem:[%s15902_s7] sm:$0xff]  ;;  %v9251_v29 = vld [vmem:[%s15902_s7 + $0x8] sm:$0xff] }
0x2db5   : > { %v11164_v38 = vpop.eup %11163  ;;  %v9173_v24 = vsel %vm7070_vm15, %v9171_v48, %v15191_v35  ;;  %v9180_v35 = vsel %vm7088_vm0, %v9178_v6, %v15494_v33 }
0x2db6   : > { %9263 = vperm.xlu1 %10811, %v9254_v58   ;;  %v9204_v11 = vpop.permute.xlu0 %9203  ;;  %v9116_v20 = vadd.f32 1.0, %v11164_v38  ;;  %v9228_v14 = vpop.permute.xlu1 %9227  ;;  %v9175_v7 = vsel %vm7076_vm13, %v9173_v24, %v15273_v17  ;;  %v9182_v32 = vsel %vm7094_vm3, %v9180_v35, %v15613_v21  ;;  %v15901_v21 = vld [vmem:[#allocation4_spill] sm:$0xff] }
0x2db8   : > { %11165 = vrcp.f32 %v9116_v20  ;;  %s541_s1 = scalar_lea.vmem %s15907_s27, %s9951_s23 }
0x2db9   : > { %11167 = vtanh.f32 %v9140_v49 }
0x2dba   : > { %v9210_v1 = vpop.permute.xlu0 %9209 }
0x2dbe   : > { %v9222_v22 = vpop.permute.xlu0 %9221 }
0x2dc2   : > { %v11166_v53 = vpop.eup %11165  ;;  %v9194_v19 = vpop.permute.xlu0 %9193 }
0x2dc3   : > { %v11168_v59 = vpop.eup %11167  ;;  %v9146_v36 = vsub.f32 1.0, %v11166_v53  ;;  %v9161_v10 = vmul.f32 %v11166_v53, %v9153_v40 }
0x2dc5   : > { %v9149_v13 = vmul.f32 %v11168_v59, %v9146_v36 }
0x2dc6   : > { %v9200_v2 = vpop.permute.xlu0 %9199 }
0x2dc7   : > { %v9164_v27 = vadd.f32 %v9161_v10, %v9149_v13 }
0x2dca   : > { %v9212_v17 = vpop.permute.xlu0 %9211 }
0x2dce   : > { %v9224_v31 = vpop.permute.xlu0 %9223 }
0x2dd2   : > { %v9259_v38 = vpop.permute.xlu0 %9258 }
0x2e14   : > { %v9186_v56 = vpop.permute.xlu1 %9185 }
0x2e15   : > { %v9233_v16 = vsel %vm7052_vm1, %v9186_v56, %v9192_v42 }
0x2e16   : > { %v9235_v51 = vsel %vm7058_vm5, %v9233_v16, %v9198_v23  ;;  %v9252_v23 = vld [vmem:[%s15902_s7 + $0x10] sm:$0xff] }
0x2e17   : > { %v9237_v5 = vsel %vm7064_vm6, %v9235_v51, %v9204_v11 }
0x2e18   : > { %v9239_v60 = vsel %vm7070_vm15, %v9237_v5, %v15193_v9  ;;  %v9206_v25 = vpop.permute.xlu1 %9205  ;;  %v9177_v9 = vsel %vm7082_vm14, %v9175_v7, %v15355_v41  ;;  %v9449_v5 = vlaneseq }
0x2e19   : > { %v9241_v45 = vsel %vm7076_vm13, %v9239_v60, %v9210_v1  ;;  %v9179_v61 = vsel %vm7088_vm0, %v9177_v9, %v15492_v8  ;;  %v9465_v9 = vld [vmem:[%s15905_s18] sm:$0xff] }
0x2e1a   : > { %v9243_v57 = vsel %vm7082_vm14, %v9241_v45, %v9216_v15  ;;  %v15672_v18 = vsel %vm7094_vm3, %v9179_v61, %v9164_v27  ;;  %v9450_v48 = vshrl.u32 %v9449_v5, 7 }
0x2e1b   : > { %v9245_v34 = vsel %vm7088_vm0, %v9243_v57, %v9222_v22  ;;  %v9269_v22 = vpop.permute.xlu0 %9268 }
0x2e1c   : > { %v9188_v50 = vpop.permute.xlu1 %9187  ;;  %v9247_v44 = vsel %vm7094_vm3, %v9245_v34, %v9228_v14  ;;  %v9451_v0 = vsub.s32 0, %v9450_v48 }
0x2e1d   : > { %v9234_v41 = vsel %vm7052_vm1, %v9188_v50, %v9194_v19  ;;  %v15676_v58 = vsel %vm682_vm2, %v9182_v32, %v9247_v44  ;;  %vm9437_vm2 = vcmask 65536   ;;  %v9468_v50 = vld [vmem:[%s15906_s0 + $0x8] sm:$0x1]  ;;  %v9467_v44 = vld [vmem:[%s15906_s0] sm:$0xff] }
0x2e1e   : > { %v9236_v33 = vsel %vm7058_vm5, %v9234_v41, %v9200_v2  ;;  %v10717_v8 = vpack.c.bf16 %v15676_v58, %v15672_v18 }
0x2e1f   : > { %v9238_v63 = vsel %vm7064_vm6, %v9236_v33, %v9206_v25 }
0x2e20   : > { %v9240_v62 = vsel %vm7070_vm15, %v9238_v63, %v15901_v21  ;;  %v9218_v54 = vpop.permute.xlu1 %9217  ;;  %10718 = vmatpush3.bf16.msra.mxu1 %v10717_v8 }
0x2e21   : > { %v9242_v43 = vsel %vm7076_vm13, %v9240_v62, %v9212_v17  ;;  %10659 = vmatprep.subr.mxu1 %v15898_v52  ;;  %v9466_v17 = vld [vmem:[%s15905_s18 + $0x8] sm:$0x1] }
0x2e22   : > { %v9244_v30 = vsel %vm7082_vm14, %v9242_v43, %v9218_v54 }
0x2e23   : > { %v9246_v12 = vsel %vm7088_vm0, %v9244_v30, %v9224_v31 }
0x2e24   : > { %v9230_v47 = vpop.permute.xlu1 %9229 }
0x2e25   : > { %v9248_v42 = vsel %vm7094_vm3, %v9246_v12, %v9230_v47 }
0x2e26   : > { %10660 = vmatpush3.msra.mxu1 %v9248_v42 }
0x2e27   : > { %10662 = vmatmul.mubr.msk.f32.vlgmr.msra.gmra.mrb[178].mxu1 %vm7135_vm4, %v9250_v39 }
0x2e28   : > { %10664 = vmatprep.mubr.msk.f32.mxu1 %vm11257_vm10, %v15898_v52 }
0x2e2b   : > { %10665 = vmatmul.mubr.msk.f32.gmra.mrb[180].mxu1 %vm7135_vm4, %v9251_v29 }
0x2e2c   : > { %10667 = vmatprep.mubr.msk.f32.mxu1 %vm11257_vm10, %v15898_v52  ;;  %vm9551_vm10 = vcmask 0  }
0x2e2f   : > { %10668 = vmatmul.mubr.msk.f32.gmra.mrb[182].mxu1 %vm7135_vm4, %v9252_v23 }
0x2e35   : > { %v9264_v49 = vpop.permute.xlu1 %9263 }
0x2efa   : > { %v9346_v11 = vpop.f32.mrb[178].mxu1 }
0x2efb   : > { %v10663_v28 = vpop.f32.mrb[179].mxu1  ;;  %v9347_v20 = vadd.f32 %v9346_v11, %v9259_v38 }
0x2efd   : > { %11169 = vtanh.f32 %v9347_v20 }
0x2efe   : > { %v9351_v40 = vpop.f32.mrb[180].mxu1 }
0x2eff   : > { %v9352_v1 = vadd.f32 %v9351_v40, %v9264_v49  ;;  %v10666_v15 = vpop.f32.mrb[181].mxu1 }
0x2f01   : > { %11171 = vtanh.f32 %v9352_v1 }
0x2f02   : > { %v9356_v53 = vpop.f32.mrb[182].mxu1 }
0x2f03   : > { %v9357_v14 = vadd.f32 %v9356_v53, %v9269_v22  ;;  %v10669_v19 = vpop.f32.mrb[183].mxu1 }
0x2f05   : > { %11173 = vtanh.f32 %v9357_v14 }
0x2f07   : > { %v11170_v59 = vpop.eup %11169 }
0x2f0b   : > { %v11172_v36 = vpop.eup %11171 }
0x2f0c   : > { %v10720_v56 = vpack.c.bf16 %v11172_v36, %v11170_v59 }
0x2f0e   : > { %10721 = vmatpush3.bf16.msra.mxu0 %v10720_v56 }
0x2f0f   : > { %10674 = vmatprep.subr.mxu0 %v15898_v52  ;;  %v11174_v13 = vpop.eup %11173 }
0x2f12   : > { %10675 = vmatpush3.msra.mxu0 %v11174_v13 }
0x2f13   : > { %10677 = vmatmul.mubr.msk.f32.vlgmr.msra.gmra.mrb[186].mxu0 %vm7135_vm4, %v9363_v55 }
0x2f14   : > { %10685 = vmatprep.mubr.msk.f32.mxu0 %vm7135_vm4, %v9465_v9 }
0x2fe6   : > { %v9433_v16 = vpop.f32.mrb[186].mxu0 }
0x2fe7   : > { %v9438_v46 = vsel %vm9437_vm2, %v9433_v16, -inf  ;;  %v10678_v37 = vpop.f32.mrb[187].mxu0 }
0x2fe8   : > { %9439 = vmax.xlane.f32.xlu1 %v9438_v46 }
0x3075   : > { %v9440_v2 = vpop.xlane.xlu1 %9439 }
0x3076   : > { %v9441_v51 = vsub.f32 %v9433_v16, %v9440_v2 }
0x3078   : > { %v9442_v3 = vmul.f32 1.442695, %v9441_v51 }
0x307a   : > { %11175 = vpow2.f32 %v9442_v3 }
0x3084   : > { %v11176_v26 = vpop.eup %11175 }
0x3085   : > { %v9444_v10 = vsel %vm9437_vm2, %v11176_v26, 0.0 }
0x3086   : > { %9445 = vadd.xlane.f32.xlu0 %v9444_v10 }
0x3113   : > { %v9446_v52 = vpop.xlane.xlu0 %9445 }
0x3114   : > { %11177 = vrcp.f32 %v9446_v52 }
0x311e   : > { %v11178_v60 = vpop.eup %11177 }
0x311f   : > { %v9448_v25 = vmul.f32 %v11178_v60, %v11176_v26 }
0x3121   : > { %v9452_v24 = vrot.slane %v9448_v25, %v9451_v0 }
0x3123   : > { %v9454_v4 = vmul.f32 %v9452_v24, %v15676_v58  ;;  %v9453_v27 = vmul.f32 %v9452_v24, %v15672_v18  ;;  %v9455_v6 = vmul.f32 %v9452_v24, %v9248_v42 }
0x3125   : > { %v9459_v45 = vsel %vm6109_vm11, %v9454_v4, 0.0  ;;  %v9456_v7 = vsel %vm6109_vm11, %v9453_v27, 0.0  ;;  %v9462_v57 = vsel %vm6109_vm11, %v9455_v6, 0.0 }
0x3126   : > { %9460 = vadd.xlane.f32.xlu1 %v9459_v45  ;;  %9457 = vadd.xlane.f32.xlu0 %v9456_v7 }
0x312a   : > { %9463 = vadd.xlane.f32.xlu0 %v9462_v57 }
0x31b3   : > { %v9461_v35 = vpop.xlane.xlu1 %9460  ;;  %v9458_v34 = vpop.xlane.xlu0 %9457 }
0x31b4   : > { %v10722_v61 = vpack.c.bf16 %v9461_v35, %v9458_v34 }
0x31b6   : > { %10723 = vmatprep.subr.bf16.mxu0 %v10722_v61 }
0x31b7   : > { %10725 = vmatpush3.bf16.msra.mxu0 %v10722_v61  ;;  %v9464_v32 = vpop.xlane.xlu0 %9463 }
0x31b8   : > { %10683 = vmatprep.subr.mxu0 %v9464_v32 }
0x31bb   : > { %10684 = vmatpush3.msra.mxu0 %v9464_v32 }
0x31bc   : > { %10686 = vmatmul.mubr.msk.f32.vlgmr.msra.gmra.mrb[188].mxu0 %vm7135_vm4, %v9466_v17 }
0x328f   : > { %v10687_v18 = vpop.f32.mrb[188].mxu0 }
0x3290   : > { %v9547_v41 = vadd.f32 %v10687_v18, %v9468_v50  ;;  %v9541_v58 = vpop.f32.mrb[189].mxu0 }
0x3291   : > { %v9542_v33 = vadd.f32 %v9541_v58, %v9467_v44 }
0x3292   : > { %9552 = vst.msk [vmem:[%s541_s1 + $0x8] sm:$0x1] %vm9551_vm10, %v9547_v41 }
0x3293   : > { %9550 = vst.msk [vmem:[%s541_s1] sm:$0xff] %vm7052_vm1, %v9542_v33 }
0x3294 PF: > { %s15908_s20 = sld [smem:[#allocation2_spill]] }
0x329a   : > { %s26_s21 = sadd.s32 1, %s15908_s20  }
0x329b   : > { %p23_p4 = scmp.ge.s32.totalorder %s26_s21, 4  }
0x329d   :  { %25 = sbr.rel (!%p23_p4) target bundleno = 11 (0xb), region = 143 }

</bundles_post_ra>
